<compile_context>
chip_gen: v6e
topology: v6e:2x2x1
jax: 0.10.0
libtpu: 0.0.40
codegen_flags: <defaults>
</compile_context>

<pallas_src>
import jax
import jax.numpy as jnp
import numpy as np
from jax import lax
from jax.experimental import pallas as pl
from jax.experimental.pallas import tpu as pltpu

LEAK = 0.1

# Sub-pixel decomposition of ConvTranspose2d(k=4, s=2, p=1), per spatial axis:
#   out[2m + a] = sum over (offset, ktap) in DECONV_TAPS[a] of
#                 x_pad[m + offset] . W[ktap]
# where x_pad is the input zero-padded by 1.
DECONV_TAPS = (((0, 3), (1, 1)),   # output parity 0
               ((1, 2), (2, 0)))   # output parity 1

# est_normal 3x3 conv evaluated in parity space: for output parity a and conv
# tap d in {0,1,2}, the sampled row lives in parity plane EST_TAPS[a][d][0]
# at slice offset EST_TAPS[a][d][1] inside that plane's zero-padded buffer.
EST_TAPS = (((1, 0), (0, 1), (1, 1)),   # output parity 0
            ((0, 1), (1, 1), (0, 2)))   # output parity 1


def _leaky(x):
    return jnp.where(x >= 0, x, LEAK * x)


# ----------------------------------------------------------------------------
# Fused kernel: maxpool -> conv1 -> conv2 -> deconv -> est_normal + normalize
# ----------------------------------------------------------------------------
def _regressor_kernel(x_ref, w1_ref, b1_ref, w2_ref, b2_ref, wd_ref, wo_ref,
                      o_ref, xp_ref, pp_ref):
    D, H, W, C = x_ref.shape            # C = 128
    C2 = wd_ref.shape[-1]               # 64
    HW = H * W

    # Zero the padded scratch buffers; only the interiors are written below,
    # so the 1-pixel borders provide the conv zero-padding.  (Re-zeroed every
    # grid step: with a "parallel" grid a core may never see step 0.)
    xp_ref[...] = jnp.zeros(xp_ref.shape, xp_ref.dtype)
    pp_ref[...] = jnp.zeros(pp_ref.shape, pp_ref.dtype)

    # ---- Stage 0: max-pool over the depth axis ------------------------------
    xp_ref[0, 1:H + 1, 1:W + 1, :] = jnp.max(x_ref[...], axis=0)

    # ---- helper: im2col of the 3x3 neighborhood from a padded slot ----------
    def im2col3(slot):
        cols = []
        for dy in range(3):
            for dx in range(3):
                cols.append(
                    xp_ref[slot, dy:dy + H, dx:dx + W, :].reshape(HW, C))
        return jnp.concatenate(cols, axis=-1)            # (HW, 9*C)

    # ---- Stage 1: deconv1 = conv3x3(128->128) + bias + LeakyReLU ------------
    a1 = jnp.dot(im2col3(0), w1_ref[...], preferred_element_type=jnp.float32)
    a1 = _leaky(a1 + b1_ref[...])
    xp_ref[1, 1:H + 1, 1:W + 1, :] = a1.reshape(H, W, C)

    # ---- Stage 2: deconv2 = conv3x3(128->128) + bias + LeakyReLU ------------
    a2 = jnp.dot(im2col3(1), w2_ref[...], preferred_element_type=jnp.float32)
    a2 = _leaky(a2 + b2_ref[...])
    xp_ref[0, 1:H + 1, 1:W + 1, :] = a2.reshape(H, W, C)

    # ---- Stage 3: ConvTranspose2d(128->64, k=4, s=2, p=1) + LeakyReLU -------
    # 4 sub-pixel parity planes, each a single K = 4*C matmul.
    for a in range(2):
        for b in range(2):
            cols = []
            for oy, _ in DECONV_TAPS[a]:
                for ox, _ in DECONV_TAPS[b]:
                    cols.append(
                        xp_ref[0, oy:oy + H, ox:ox + W, :].reshape(HW, C))
            patches = jnp.concatenate(cols, axis=-1)      # (HW, 4*C)
            d = jnp.dot(patches, wd_ref[a, b],
                        preferred_element_type=jnp.float32)
            pp_ref[a, b, 1:H + 1, 1:W + 1, :] = _leaky(d).reshape(H, W, C2)

    # ---- Stage 4: est_normal conv3x3(64->3) + L2 normalize ------------------
    # Evaluated directly on the parity planes; the interleaved (2H, 2W, 64)
    # image is never materialized.  One K = 9*C2 matmul per output parity.
    for a in range(2):
        for b in range(2):
            cols = []
            for dy in range(3):
                py, oy = EST_TAPS[a][dy]
                for dx in range(3):
                    px, ox = EST_TAPS[b][dx]
                    cols.append(pp_ref[py, px, oy:oy + H, ox:ox + W, :]
                                .reshape(HW, C2))
            patches = jnp.concatenate(cols, axis=-1)      # (HW, 9*C2)
            nrm = jnp.dot(patches, wo_ref[...],
                          preferred_element_type=jnp.float32)   # (HW, 3)
            ssq = jnp.sum(nrm * nrm, axis=-1, keepdims=True)
            inv = lax.rsqrt(jnp.maximum(ssq, 1e-24))      # == 1/max(||n||,1e-12)
            o_ref[a, b, :, :, :] = (nrm * inv).reshape(H, W, 3).astype(o_ref.dtype)


# ----------------------------------------------------------------------------
# Host-side weight packing + wrapper
# ----------------------------------------------------------------------------
def _pack_deconv_weights(wd):
    """(4, 4, Cin, Cout) transposed-conv weight -> (2, 2, 4*Cin, Cout)."""
    rows = []
    for a in range(2):
        cols = []
        for b in range(2):
            parts = [wd[ky, kx]
                     for _, ky in DECONV_TAPS[a] for _, kx in DECONV_TAPS[b]]
            cols.append(jnp.concatenate(parts, axis=0))   # (4*Cin, Cout)
        rows.append(jnp.stack(cols, axis=0))
    return jnp.stack(rows, axis=0)                        # (2, 2, 4*Cin, Cout)


def _vmem_limit_bytes(D, H, W, C, C2):
    f32 = 4
    blocks = D * H * W * C + 2 * 2 * H * W * 3               # in/out blocks
    weights = 2 * 9 * C * C + 2 * C + 4 * 4 * C * C2 + 9 * C2 * 3
    scratch = 2 * (H + 2) * (W + 2) * C + 4 * (H + 2) * (W + 2) * C2
    temps = H * W * (9 * C + 4 * C + 9 * C2) * 3              # im2col temporaries
    total = (2 * blocks + 2 * weights + scratch + temps) * f32 + (8 << 20)
    return int(min(max(total, 16 << 20), 64 << 20))


@jax.jit
def regressor_forward(x, w1, b1, w2, b2, wd, wo):
    N, D, H, W, C = x.shape
    C2 = wd.shape[-1]
    w1f = w1.reshape(9 * C, C)          # (dy, dx, cin) row-major  -> K = 9*C
    w2f = w2.reshape(9 * C, C)
    wdp = _pack_deconv_weights(wd)      # (2, 2, 4*C, C2)
    wof = wo.reshape(9 * C2, 3)

    out_par = pl.pallas_call(
        _regressor_kernel,
        out_shape=jax.ShapeDtypeStruct((N, 2, 2, H, W, 3), x.dtype),
        grid=(N,),
        in_specs=[
            pl.BlockSpec((None, D, H, W, C), lambda n: (n, 0, 0, 0, 0)),
            pl.BlockSpec((9 * C, C), lambda n: (0, 0)),
            pl.BlockSpec((1, C), lambda n: (0, 0)),
            pl.BlockSpec((9 * C, C), lambda n: (0, 0)),
            pl.BlockSpec((1, C), lambda n: (0, 0)),
            pl.BlockSpec((2, 2, 4 * C, C2), lambda n: (0, 0, 0, 0)),
            pl.BlockSpec((9 * C2, 3), lambda n: (0, 0)),
        ],
        out_specs=pl.BlockSpec((None, 2, 2, H, W, 3),
                               lambda n: (n, 0, 0, 0, 0, 0)),
        scratch_shapes=[
            pltpu.VMEM((2, H + 2, W + 2, C), jnp.float32),      # ping-pong act.
            pltpu.VMEM((2, 2, H + 2, W + 2, C2), jnp.float32),  # padded parities
        ],
        compiler_params=pltpu.CompilerParams(
            dimension_semantics=("parallel",),
            vmem_limit_bytes=_vmem_limit_bytes(D, H, W, C, C2),
        ),
    )(x, w1f, b1, w2f, b2, wdp, wof)

    # Interleave the 4 sub-pixel parity planes of the tiny (3-channel) output:
    # out[n, 2m+a, 2k+b, c] = out_par[n, a, b, m, k, c]
    out = out_par.transpose(0, 3, 1, 4, 2, 5).reshape(N, 2 * H, 2 * W, 3)
    return out


# ----------------------------------------------------------------------------
# Pure-JAX reference (for validation)
# ----------------------------------------------------------------------------
def reference_forward(x, w1, b1, w2, b2, wd, wo):
    dn = ('NHWC', 'HWIO', 'NHWC')
    prec = lax.Precision.HIGHEST
    h = jnp.max(x, axis=1)
    h = _leaky(lax.conv_general_dilated(h, w1, (1, 1), ((1, 1), (1, 1)),
                                        dimension_numbers=dn,
                                        precision=prec) + b1[0])
    h = _leaky(lax.conv_general_dilated(h, w2, (1, 1), ((1, 1), (1, 1)),
                                        dimension_numbers=dn,
                                        precision=prec) + b2[0])
    # transposed conv == dilated conv with spatially flipped kernel, pad k-1-p
    h = _leaky(lax.conv_general_dilated(h, wd[::-1, ::-1, :, :], (1, 1),
                                        ((2, 2), (2, 2)), lhs_dilation=(2, 2),
                                        dimension_numbers=dn, precision=prec))
    h = lax.conv_general_dilated(h, wo, (1, 1), ((1, 1), (1, 1)),
                                 dimension_numbers=dn, precision=prec)
    nrm = jnp.maximum(jnp.sqrt(jnp.sum(h * h, axis=-1, keepdims=True)), 1e-12)
    return h / nrm


if __name__ == "__main__":
    key = jax.random.PRNGKey(0)
    ks = jax.random.split(key, 7)

    # Small shapes consistent with the module (channel counts are architectural).
    N, D, H, W = 2, 4, 8, 8
    x = jax.random.normal(ks[0], (N, D, H, W, 128), jnp.float32)

    def kaiming(k, shape, fan_in):
        return jax.random.normal(k, shape, jnp.float32) * (2.0 / fan_in) ** 0.5

    # deconv1 / deconv2: Conv2d(128,128,k=3,pad=1,bias=True) + LeakyReLU(0.1)
    w1 = kaiming(ks[1], (3, 3, 128, 128), 9 * 128)
    b1 = 0.01 * jax.random.normal(ks[2], (1, 128), jnp.float32)
    w2 = kaiming(ks[3], (3, 3, 128, 128), 9 * 128)
    b2 = 0.01 * jax.random.normal(ks[4], (1, 128), jnp.float32)
    # deconv3: ConvTranspose2d(128,64,k=4,s=2,p=1,bias=False); weight stored as
    # (kH,kW,Cin,Cout) == PyTorch (Cin,Cout,kH,kW).transpose(2,3,0,1)
    wd = kaiming(ks[5], (4, 4, 128, 64), 16 * 128)
    # est_normal: Conv2d(64,3,k=3,pad=1,bias=False)
    wo = kaiming(ks[6], (3, 3, 64, 3), 9 * 64)

    out = jax.block_until_ready(regressor_forward(x, w1, b1, w2, b2, wd, wo))
    assert out.shape == (N, 2 * H, 2 * W, 3), out.shape

    ref = reference_forward(x, w1, b1, w2, b2, wd, wo)
    np.testing.assert_allclose(np.asarray(out), np.asarray(ref),
                               rtol=2e-3, atol=2e-3)
    print("KERNEL_OK")
</pallas_src>

<mosaic_0001>
module attributes {stable_mosaic.version = 11 : i64} {
  func.func @_regressor_kernel(%arg0: i32, %arg1: memref<1x4x8x8x128xf32, #tpu.memory_space<vmem>>, %arg2: memref<1152x128xf32, #tpu.memory_space<vmem>>, %arg3: memref<1x128xf32, #tpu.memory_space<vmem>>, %arg4: memref<1152x128xf32, #tpu.memory_space<vmem>>, %arg5: memref<1x128xf32, #tpu.memory_space<vmem>>, %arg6: memref<2x2x512x64xf32, #tpu.memory_space<vmem>>, %arg7: memref<576x3xf32, #tpu.memory_space<vmem>>, %arg8: memref<1x2x2x8x8x3xf32, #tpu.memory_space<vmem>>, %arg9: memref<2x10x10x128xf32, #tpu.memory_space<vmem>>, %arg10: memref<2x2x10x10x64xf32, #tpu.memory_space<vmem>>) attributes {dimension_semantics = [#tpu.dimension_semantics<parallel>], iteration_bounds = array<i64: 2>, scalar_prefetch = 0 : i64, scratch_operands = 2 : i64, tpu.core_type = #tpu.core_type<tc>, window_params = [{transform_indices = @transform_0, window_bounds = array<i64: 1, 4, 8, 8, 128>}, {pipeline_mode = #tpu.pipeline_mode<synchronous>, transform_indices = @transform_1, window_bounds = array<i64: 1152, 128>}, {pipeline_mode = #tpu.pipeline_mode<synchronous>, transform_indices = @transform_2, window_bounds = array<i64: 1, 128>}, {pipeline_mode = #tpu.pipeline_mode<synchronous>, transform_indices = @transform_3, window_bounds = array<i64: 1152, 128>}, {pipeline_mode = #tpu.pipeline_mode<synchronous>, transform_indices = @transform_4, window_bounds = array<i64: 1, 128>}, {pipeline_mode = #tpu.pipeline_mode<synchronous>, transform_indices = @transform_5, window_bounds = array<i64: 2, 2, 512, 64>}, {pipeline_mode = #tpu.pipeline_mode<synchronous>, transform_indices = @transform_6, window_bounds = array<i64: 576, 3>}, {transform_indices = @transform_7, window_bounds = array<i64: 1, 2, 2, 8, 8, 3>}]} {
    %cst = arith.constant 0.000000e+00 : f32
    %0 = vector.broadcast %cst : f32 to vector<2x10x10x128xf32>
    %c0 = arith.constant 0 : index
    %c0_0 = arith.constant 0 : index
    %c0_1 = arith.constant 0 : index
    %c0_2 = arith.constant 0 : index
    %1 = vector.load %arg9[%c0, %c0_0, %c0_1, %c0_2] : memref<2x10x10x128xf32, #tpu.memory_space<vmem>>, vector<2x10x10x128xf32>
    tpu.vector_store %arg9[%c0, %c0_0, %c0_1, %c0_2], %0 {strides = array<i32>} : memref<2x10x10x128xf32, #tpu.memory_space<vmem>>, vector<2x10x10x128xf32>,
    %cst_3 = arith.constant 0.000000e+00 : f32
    %2 = vector.broadcast %cst_3 : f32 to vector<2x2x10x10x64xf32>
    %c0_4 = arith.constant 0 : index
    %c0_5 = arith.constant 0 : index
    %c0_6 = arith.constant 0 : index
    %c0_7 = arith.constant 0 : index
    %c0_8 = arith.constant 0 : index
    %3 = vector.load %arg10[%c0_4, %c0_5, %c0_6, %c0_7, %c0_8] : memref<2x2x10x10x64xf32, #tpu.memory_space<vmem>>, vector<2x2x10x10x64xf32>
    tpu.vector_store %arg10[%c0_4, %c0_5, %c0_6, %c0_7, %c0_8], %2 {strides = array<i32>} : memref<2x2x10x10x64xf32, #tpu.memory_space<vmem>>, vector<2x2x10x10x64xf32>,
    %c0_9 = arith.constant 0 : index
    %c0_10 = arith.constant 0 : index
    %c0_11 = arith.constant 0 : index
    %c0_12 = arith.constant 0 : index
    %c0_13 = arith.constant 0 : index
    %4 = vector.load %arg1[%c0_9, %c0_10, %c0_11, %c0_12, %c0_13] : memref<1x4x8x8x128xf32, #tpu.memory_space<vmem>>, vector<1x4x8x8x128xf32>
    %5 = vector.shape_cast %4 : vector<1x4x8x8x128xf32> to vector<4x8x8x128xf32>
    %cst_14 = arith.constant dense<0xFF800000> : vector<8x8x128xf32>
    %6 = vector.multi_reduction <maximumf>, %5, %cst_14 [0] : vector<4x8x8x128xf32> to vector<8x8x128xf32>
    %c0_15 = arith.constant 0 : index
    %c1 = arith.constant 1 : index
    %c1_16 = arith.constant 1 : index
    %c0_17 = arith.constant 0 : index
    %7 = vector.load %arg9[%c0_15, %c1, %c1_16, %c0_17] : memref<2x10x10x128xf32, #tpu.memory_space<vmem>>, vector<1x8x8x128xf32>
    %8 = vector.shape_cast %7 : vector<1x8x8x128xf32> to vector<8x8x128xf32>
    %9 = vector.shape_cast %6 : vector<8x8x128xf32> to vector<1x8x8x128xf32>
    tpu.vector_store %arg9[%c0_15, %c1, %c1_16, %c0_17], %9 {strides = array<i32>} : memref<2x10x10x128xf32, #tpu.memory_space<vmem>>, vector<1x8x8x128xf32>,
    %c0_18 = arith.constant 0 : index
    %c0_19 = arith.constant 0 : index
    %c0_20 = arith.constant 0 : index
    %c0_21 = arith.constant 0 : index
    %10 = vector.load %arg9[%c0_18, %c0_19, %c0_20, %c0_21] : memref<2x10x10x128xf32, #tpu.memory_space<vmem>>, vector<1x8x8x128xf32>
    %11 = vector.shape_cast %10 : vector<1x8x8x128xf32> to vector<8x8x128xf32>
    %12 = vector.shape_cast %11 : vector<8x8x128xf32> to vector<64x128xf32>
    %c0_22 = arith.constant 0 : index
    %c0_23 = arith.constant 0 : index
    %c1_24 = arith.constant 1 : index
    %c0_25 = arith.constant 0 : index
    %13 = vector.load %arg9[%c0_22, %c0_23, %c1_24, %c0_25] : memref<2x10x10x128xf32, #tpu.memory_space<vmem>>, vector<1x8x8x128xf32>
    %14 = vector.shape_cast %13 : vector<1x8x8x128xf32> to vector<8x8x128xf32>
    %15 = vector.shape_cast %14 : vector<8x8x128xf32> to vector<64x128xf32>
    %c0_26 = arith.constant 0 : index
    %c0_27 = arith.constant 0 : index
    %c2 = arith.constant 2 : index
    %c0_28 = arith.constant 0 : index
    %16 = vector.load %arg9[%c0_26, %c0_27, %c2, %c0_28] : memref<2x10x10x128xf32, #tpu.memory_space<vmem>>, vector<1x8x8x128xf32>
    %17 = vector.shape_cast %16 : vector<1x8x8x128xf32> to vector<8x8x128xf32>
    %18 = vector.shape_cast %17 : vector<8x8x128xf32> to vector<64x128xf32>
    %c0_29 = arith.constant 0 : index
    %c1_30 = arith.constant 1 : index
    %c0_31 = arith.constant 0 : index
    %c0_32 = arith.constant 0 : index
    %19 = vector.load %arg9[%c0_29, %c1_30, %c0_31, %c0_32] : memref<2x10x10x128xf32, #tpu.memory_space<vmem>>, vector<1x8x8x128xf32>
    %20 = vector.shape_cast %19 : vector<1x8x8x128xf32> to vector<8x8x128xf32>
    %21 = vector.shape_cast %20 : vector<8x8x128xf32> to vector<64x128xf32>
    %c0_33 = arith.constant 0 : index
    %c1_34 = arith.constant 1 : index
    %c1_35 = arith.constant 1 : index
    %c0_36 = arith.constant 0 : index
    %22 = vector.load %arg9[%c0_33, %c1_34, %c1_35, %c0_36] : memref<2x10x10x128xf32, #tpu.memory_space<vmem>>, vector<1x8x8x128xf32>
    %23 = vector.shape_cast %22 : vector<1x8x8x128xf32> to vector<8x8x128xf32>
    %24 = vector.shape_cast %23 : vector<8x8x128xf32> to vector<64x128xf32>
    %c0_37 = arith.constant 0 : index
    %c1_38 = arith.constant 1 : index
    %c2_39 = arith.constant 2 : index
    %c0_40 = arith.constant 0 : index
    %25 = vector.load %arg9[%c0_37, %c1_38, %c2_39, %c0_40] : memref<2x10x10x128xf32, #tpu.memory_space<vmem>>, vector<1x8x8x128xf32>
    %26 = vector.shape_cast %25 : vector<1x8x8x128xf32> to vector<8x8x128xf32>
    %27 = vector.shape_cast %26 : vector<8x8x128xf32> to vector<64x128xf32>
    %c0_41 = arith.constant 0 : index
    %c2_42 = arith.constant 2 : index
    %c0_43 = arith.constant 0 : index
    %c0_44 = arith.constant 0 : index
    %28 = vector.load %arg9[%c0_41, %c2_42, %c0_43, %c0_44] : memref<2x10x10x128xf32, #tpu.memory_space<vmem>>, vector<1x8x8x128xf32>
    %29 = vector.shape_cast %28 : vector<1x8x8x128xf32> to vector<8x8x128xf32>
    %30 = vector.shape_cast %29 : vector<8x8x128xf32> to vector<64x128xf32>
    %c0_45 = arith.constant 0 : index
    %c2_46 = arith.constant 2 : index
    %c1_47 = arith.constant 1 : index
    %c0_48 = arith.constant 0 : index
    %31 = vector.load %arg9[%c0_45, %c2_46, %c1_47, %c0_48] : memref<2x10x10x128xf32, #tpu.memory_space<vmem>>, vector<1x8x8x128xf32>
    %32 = vector.shape_cast %31 : vector<1x8x8x128xf32> to vector<8x8x128xf32>
    %33 = vector.shape_cast %32 : vector<8x8x128xf32> to vector<64x128xf32>
    %c0_49 = arith.constant 0 : index
    %c2_50 = arith.constant 2 : index
    %c2_51 = arith.constant 2 : index
    %c0_52 = arith.constant 0 : index
    %34 = vector.load %arg9[%c0_49, %c2_50, %c2_51, %c0_52] : memref<2x10x10x128xf32, #tpu.memory_space<vmem>>, vector<1x8x8x128xf32>
    %35 = vector.shape_cast %34 : vector<1x8x8x128xf32> to vector<8x8x128xf32>
    %36 = vector.shape_cast %35 : vector<8x8x128xf32> to vector<64x128xf32>
    %37 = tpu.concatenate %12, %15, %18, %21, %24, %27, %30, %33, %36 in 1 : vector<64x128xf32>, vector<64x128xf32>, vector<64x128xf32>, vector<64x128xf32>, vector<64x128xf32>, vector<64x128xf32>, vector<64x128xf32>, vector<64x128xf32>, vector<64x128xf32> -> vector<64x1152xf32>
    %c0_53 = arith.constant 0 : index
    %c0_54 = arith.constant 0 : index
    %38 = vector.load %arg2[%c0_53, %c0_54] : memref<1152x128xf32, #tpu.memory_space<vmem>>, vector<1152x128xf32>
    %cst_55 = arith.constant dense<0.000000e+00> : vector<64x128xf32>
    %39 = tpu.matmul %37, %38, %cst_55 {dimension_numbers = #tpu.dot_dimension_numbers<[1], [0], [0], [1], [0, 0, 1, 1], [], []>} : vector<64x1152xf32>, vector<1152x128xf32>, vector<64x128xf32> -> vector<64x128xf32>
    %c0_56 = arith.constant 0 : index
    %c0_57 = arith.constant 0 : index
    %40 = vector.load %arg3[%c0_56, %c0_57] : memref<1x128xf32, #tpu.memory_space<vmem>>, vector<1x128xf32>
    %41 = vector.broadcast %40 : vector<1x128xf32> to vector<64x128xf32>
    %42 = arith.addf %39, %41 : vector<64x128xf32>
    %cst_58 = arith.constant 0.000000e+00 : f32
    %43 = vector.broadcast %cst_58 : f32 to vector<64x128xf32>
    %44 = arith.cmpf oge, %42, %43 : vector<64x128xf32>
    %cst_59 = arith.constant 1.000000e-01 : f32
    %45 = vector.broadcast %cst_59 : f32 to vector<64x128xf32>
    %46 = arith.mulf %45, %42 : vector<64x128xf32>
    %47 = arith.select %44, %42, %46 : vector<64x128xi1>, vector<64x128xf32>
    %48 = vector.shape_cast %47 : vector<64x128xf32> to vector<8x8x128xf32>
    %c1_60 = arith.constant 1 : index
    %c1_61 = arith.constant 1 : index
    %c1_62 = arith.constant 1 : index
    %c0_63 = arith.constant 0 : index
    %49 = vector.load %arg9[%c1_60, %c1_61, %c1_62, %c0_63] : memref<2x10x10x128xf32, #tpu.memory_space<vmem>>, vector<1x8x8x128xf32>
    %50 = vector.shape_cast %49 : vector<1x8x8x128xf32> to vector<8x8x128xf32>
    %51 = vector.shape_cast %48 : vector<8x8x128xf32> to vector<1x8x8x128xf32>
    tpu.vector_store %arg9[%c1_60, %c1_61, %c1_62, %c0_63], %51 {strides = array<i32>} : memref<2x10x10x128xf32, #tpu.memory_space<vmem>>, vector<1x8x8x128xf32>,
    %c1_64 = arith.constant 1 : index
    %c0_65 = arith.constant 0 : index
    %c0_66 = arith.constant 0 : index
    %c0_67 = arith.constant 0 : index
    %52 = vector.load %arg9[%c1_64, %c0_65, %c0_66, %c0_67] : memref<2x10x10x128xf32, #tpu.memory_space<vmem>>, vector<1x8x8x128xf32>
    %53 = vector.shape_cast %52 : vector<1x8x8x128xf32> to vector<8x8x128xf32>
    %54 = vector.shape_cast %53 : vector<8x8x128xf32> to vector<64x128xf32>
    %c1_68 = arith.constant 1 : index
    %c0_69 = arith.constant 0 : index
    %c1_70 = arith.constant 1 : index
    %c0_71 = arith.constant 0 : index
    %55 = vector.load %arg9[%c1_68, %c0_69, %c1_70, %c0_71] : memref<2x10x10x128xf32, #tpu.memory_space<vmem>>, vector<1x8x8x128xf32>
    %56 = vector.shape_cast %55 : vector<1x8x8x128xf32> to vector<8x8x128xf32>
    %57 = vector.shape_cast %56 : vector<8x8x128xf32> to vector<64x128xf32>
    %c1_72 = arith.constant 1 : index
    %c0_73 = arith.constant 0 : index
    %c2_74 = arith.constant 2 : index
    %c0_75 = arith.constant 0 : index
    %58 = vector.load %arg9[%c1_72, %c0_73, %c2_74, %c0_75] : memref<2x10x10x128xf32, #tpu.memory_space<vmem>>, vector<1x8x8x128xf32>
    %59 = vector.shape_cast %58 : vector<1x8x8x128xf32> to vector<8x8x128xf32>
    %60 = vector.shape_cast %59 : vector<8x8x128xf32> to vector<64x128xf32>
    %c1_76 = arith.constant 1 : index
    %c1_77 = arith.constant 1 : index
    %c0_78 = arith.constant 0 : index
    %c0_79 = arith.constant 0 : index
    %61 = vector.load %arg9[%c1_76, %c1_77, %c0_78, %c0_79] : memref<2x10x10x128xf32, #tpu.memory_space<vmem>>, vector<1x8x8x128xf32>
    %62 = vector.shape_cast %61 : vector<1x8x8x128xf32> to vector<8x8x128xf32>
    %63 = vector.shape_cast %62 : vector<8x8x128xf32> to vector<64x128xf32>
    %c1_80 = arith.constant 1 : index
    %c1_81 = arith.constant 1 : index
    %c1_82 = arith.constant 1 : index
    %c0_83 = arith.constant 0 : index
    %64 = vector.load %arg9[%c1_80, %c1_81, %c1_82, %c0_83] : memref<2x10x10x128xf32, #tpu.memory_space<vmem>>, vector<1x8x8x128xf32>
    %65 = vector.shape_cast %64 : vector<1x8x8x128xf32> to vector<8x8x128xf32>
    %66 = vector.shape_cast %65 : vector<8x8x128xf32> to vector<64x128xf32>
    %c1_84 = arith.constant 1 : index
    %c1_85 = arith.constant 1 : index
    %c2_86 = arith.constant 2 : index
    %c0_87 = arith.constant 0 : index
    %67 = vector.load %arg9[%c1_84, %c1_85, %c2_86, %c0_87] : memref<2x10x10x128xf32, #tpu.memory_space<vmem>>, vector<1x8x8x128xf32>
    %68 = vector.shape_cast %67 : vector<1x8x8x128xf32> to vector<8x8x128xf32>
    %69 = vector.shape_cast %68 : vector<8x8x128xf32> to vector<64x128xf32>
    %c1_88 = arith.constant 1 : index
    %c2_89 = arith.constant 2 : index
    %c0_90 = arith.constant 0 : index
    %c0_91 = arith.constant 0 : index
    %70 = vector.load %arg9[%c1_88, %c2_89, %c0_90, %c0_91] : memref<2x10x10x128xf32, #tpu.memory_space<vmem>>, vector<1x8x8x128xf32>
    %71 = vector.shape_cast %70 : vector<1x8x8x128xf32> to vector<8x8x128xf32>
    %72 = vector.shape_cast %71 : vector<8x8x128xf32> to vector<64x128xf32>
    %c1_92 = arith.constant 1 : index
    %c2_93 = arith.constant 2 : index
    %c1_94 = arith.constant 1 : index
    %c0_95 = arith.constant 0 : index
    %73 = vector.load %arg9[%c1_92, %c2_93, %c1_94, %c0_95] : memref<2x10x10x128xf32, #tpu.memory_space<vmem>>, vector<1x8x8x128xf32>
    %74 = vector.shape_cast %73 : vector<1x8x8x128xf32> to vector<8x8x128xf32>
    %75 = vector.shape_cast %74 : vector<8x8x128xf32> to vector<64x128xf32>
    %c1_96 = arith.constant 1 : index
    %c2_97 = arith.constant 2 : index
    %c2_98 = arith.constant 2 : index
    %c0_99 = arith.constant 0 : index
    %76 = vector.load %arg9[%c1_96, %c2_97, %c2_98, %c0_99] : memref<2x10x10x128xf32, #tpu.memory_space<vmem>>, vector<1x8x8x128xf32>
    %77 = vector.shape_cast %76 : vector<1x8x8x128xf32> to vector<8x8x128xf32>
    %78 = vector.shape_cast %77 : vector<8x8x128xf32> to vector<64x128xf32>
    %79 = tpu.concatenate %54, %57, %60, %63, %66, %69, %72, %75, %78 in 1 : vector<64x128xf32>, vector<64x128xf32>, vector<64x128xf32>, vector<64x128xf32>, vector<64x128xf32>, vector<64x128xf32>, vector<64x128xf32>, vector<64x128xf32>, vector<64x128xf32> -> vector<64x1152xf32>
    %c0_100 = arith.constant 0 : index
    %c0_101 = arith.constant 0 : index
    %80 = vector.load %arg4[%c0_100, %c0_101] : memref<1152x128xf32, #tpu.memory_space<vmem>>, vector<1152x128xf32>
    %cst_102 = arith.constant dense<0.000000e+00> : vector<64x128xf32>
    %81 = tpu.matmul %79, %80, %cst_102 {dimension_numbers = #tpu.dot_dimension_numbers<[1], [0], [0], [1], [0, 0, 1, 1], [], []>} : vector<64x1152xf32>, vector<1152x128xf32>, vector<64x128xf32> -> vector<64x128xf32>
    %c0_103 = arith.constant 0 : index
    %c0_104 = arith.constant 0 : index
    %82 = vector.load %arg5[%c0_103, %c0_104] : memref<1x128xf32, #tpu.memory_space<vmem>>, vector<1x128xf32>
    %83 = vector.broadcast %82 : vector<1x128xf32> to vector<64x128xf32>
    %84 = arith.addf %81, %83 : vector<64x128xf32>
    %cst_105 = arith.constant 0.000000e+00 : f32
    %85 = vector.broadcast %cst_105 : f32 to vector<64x128xf32>
    %86 = arith.cmpf oge, %84, %85 : vector<64x128xf32>
    %cst_106 = arith.constant 1.000000e-01 : f32
    %87 = vector.broadcast %cst_106 : f32 to vector<64x128xf32>
    %88 = arith.mulf %87, %84 : vector<64x128xf32>
    %89 = arith.select %86, %84, %88 : vector<64x128xi1>, vector<64x128xf32>
    %90 = vector.shape_cast %89 : vector<64x128xf32> to vector<8x8x128xf32>
    %c0_107 = arith.constant 0 : index
    %c1_108 = arith.constant 1 : index
    %c1_109 = arith.constant 1 : index
    %c0_110 = arith.constant 0 : index
    %91 = vector.load %arg9[%c0_107, %c1_108, %c1_109, %c0_110] : memref<2x10x10x128xf32, #tpu.memory_space<vmem>>, vector<1x8x8x128xf32>
    %92 = vector.shape_cast %91 : vector<1x8x8x128xf32> to vector<8x8x128xf32>
    %93 = vector.shape_cast %90 : vector<8x8x128xf32> to vector<1x8x8x128xf32>
    tpu.vector_store %arg9[%c0_107, %c1_108, %c1_109, %c0_110], %93 {strides = array<i32>} : memref<2x10x10x128xf32, #tpu.memory_space<vmem>>, vector<1x8x8x128xf32>,
    %c0_111 = arith.constant 0 : index
    %c0_112 = arith.constant 0 : index
    %c0_113 = arith.constant 0 : index
    %c0_114 = arith.constant 0 : index
    %94 = vector.load %arg9[%c0_111, %c0_112, %c0_113, %c0_114] : memref<2x10x10x128xf32, #tpu.memory_space<vmem>>, vector<1x8x8x128xf32>
    %95 = vector.shape_cast %94 : vector<1x8x8x128xf32> to vector<8x8x128xf32>
    %96 = vector.shape_cast %95 : vector<8x8x128xf32> to vector<64x128xf32>
    %c0_115 = arith.constant 0 : index
    %c0_116 = arith.constant 0 : index
    %c1_117 = arith.constant 1 : index
    %c0_118 = arith.constant 0 : index
    %97 = vector.load %arg9[%c0_115, %c0_116, %c1_117, %c0_118] : memref<2x10x10x128xf32, #tpu.memory_space<vmem>>, vector<1x8x8x128xf32>
    %98 = vector.shape_cast %97 : vector<1x8x8x128xf32> to vector<8x8x128xf32>
    %99 = vector.shape_cast %98 : vector<8x8x128xf32> to vector<64x128xf32>
    %c0_119 = arith.constant 0 : index
    %c1_120 = arith.constant 1 : index
    %c0_121 = arith.constant 0 : index
    %c0_122 = arith.constant 0 : index
    %100 = vector.load %arg9[%c0_119, %c1_120, %c0_121, %c0_122] : memref<2x10x10x128xf32, #tpu.memory_space<vmem>>, vector<1x8x8x128xf32>
    %101 = vector.shape_cast %100 : vector<1x8x8x128xf32> to vector<8x8x128xf32>
    %102 = vector.shape_cast %101 : vector<8x8x128xf32> to vector<64x128xf32>
    %c0_123 = arith.constant 0 : index
    %c1_124 = arith.constant 1 : index
    %c1_125 = arith.constant 1 : index
    %c0_126 = arith.constant 0 : index
    %103 = vector.load %arg9[%c0_123, %c1_124, %c1_125, %c0_126] : memref<2x10x10x128xf32, #tpu.memory_space<vmem>>, vector<1x8x8x128xf32>
    %104 = vector.shape_cast %103 : vector<1x8x8x128xf32> to vector<8x8x128xf32>
    %105 = vector.shape_cast %104 : vector<8x8x128xf32> to vector<64x128xf32>
    %106 = tpu.concatenate %96, %99, %102, %105 in 1 : vector<64x128xf32>, vector<64x128xf32>, vector<64x128xf32>, vector<64x128xf32> -> vector<64x512xf32>
    %c0_127 = arith.constant 0 : index
    %c0_128 = arith.constant 0 : index
    %c0_129 = arith.constant 0 : index
    %c0_130 = arith.constant 0 : index
    %107 = vector.load %arg6[%c0_127, %c0_128, %c0_129, %c0_130] : memref<2x2x512x64xf32, #tpu.memory_space<vmem>>, vector<1x1x512x64xf32>
    %108 = vector.shape_cast %107 : vector<1x1x512x64xf32> to vector<512x64xf32>
    %cst_131 = arith.constant dense<0.000000e+00> : vector<64x64xf32>
    %109 = tpu.matmul %106, %108, %cst_131 {dimension_numbers = #tpu.dot_dimension_numbers<[1], [0], [0], [1], [0, 0, 1, 1], [], []>} : vector<64x512xf32>, vector<512x64xf32>, vector<64x64xf32> -> vector<64x64xf32>
    %cst_132 = arith.constant 0.000000e+00 : f32
    %110 = vector.broadcast %cst_132 : f32 to vector<64x64xf32>
    %111 = arith.cmpf oge, %109, %110 : vector<64x64xf32>
    %cst_133 = arith.constant 1.000000e-01 : f32
    %112 = vector.broadcast %cst_133 : f32 to vector<64x64xf32>
    %113 = arith.mulf %112, %109 : vector<64x64xf32>
    %114 = arith.select %111, %109, %113 : vector<64x64xi1>, vector<64x64xf32>
    %115 = vector.shape_cast %114 : vector<64x64xf32> to vector<8x8x64xf32>
    %c0_134 = arith.constant 0 : index
    %c0_135 = arith.constant 0 : index
    %c1_136 = arith.constant 1 : index
    %c1_137 = arith.constant 1 : index
    %c0_138 = arith.constant 0 : index
    %116 = vector.load %arg10[%c0_134, %c0_135, %c1_136, %c1_137, %c0_138] : memref<2x2x10x10x64xf32, #tpu.memory_space<vmem>>, vector<1x1x8x8x64xf32>
    %117 = vector.shape_cast %116 : vector<1x1x8x8x64xf32> to vector<8x8x64xf32>
    %118 = vector.shape_cast %115 : vector<8x8x64xf32> to vector<1x1x8x8x64xf32>
    tpu.vector_store %arg10[%c0_134, %c0_135, %c1_136, %c1_137, %c0_138], %118 {strides = array<i32>} : memref<2x2x10x10x64xf32, #tpu.memory_space<vmem>>, vector<1x1x8x8x64xf32>,
    %c0_139 = arith.constant 0 : index
    %c0_140 = arith.constant 0 : index
    %c1_141 = arith.constant 1 : index
    %c0_142 = arith.constant 0 : index
    %119 = vector.load %arg9[%c0_139, %c0_140, %c1_141, %c0_142] : memref<2x10x10x128xf32, #tpu.memory_space<vmem>>, vector<1x8x8x128xf32>
    %120 = vector.shape_cast %119 : vector<1x8x8x128xf32> to vector<8x8x128xf32>
    %121 = vector.shape_cast %120 : vector<8x8x128xf32> to vector<64x128xf32>
    %c0_143 = arith.constant 0 : index
    %c0_144 = arith.constant 0 : index
    %c2_145 = arith.constant 2 : index
    %c0_146 = arith.constant 0 : index
    %122 = vector.load %arg9[%c0_143, %c0_144, %c2_145, %c0_146] : memref<2x10x10x128xf32, #tpu.memory_space<vmem>>, vector<1x8x8x128xf32>
    %123 = vector.shape_cast %122 : vector<1x8x8x128xf32> to vector<8x8x128xf32>
    %124 = vector.shape_cast %123 : vector<8x8x128xf32> to vector<64x128xf32>
    %c0_147 = arith.constant 0 : index
    %c1_148 = arith.constant 1 : index
    %c1_149 = arith.constant 1 : index
    %c0_150 = arith.constant 0 : index
    %125 = vector.load %arg9[%c0_147, %c1_148, %c1_149, %c0_150] : memref<2x10x10x128xf32, #tpu.memory_space<vmem>>, vector<1x8x8x128xf32>
    %126 = vector.shape_cast %125 : vector<1x8x8x128xf32> to vector<8x8x128xf32>
    %127 = vector.shape_cast %126 : vector<8x8x128xf32> to vector<64x128xf32>
    %c0_151 = arith.constant 0 : index
    %c1_152 = arith.constant 1 : index
    %c2_153 = arith.constant 2 : index
    %c0_154 = arith.constant 0 : index
    %128 = vector.load %arg9[%c0_151, %c1_152, %c2_153, %c0_154] : memref<2x10x10x128xf32, #tpu.memory_space<vmem>>, vector<1x8x8x128xf32>
    %129 = vector.shape_cast %128 : vector<1x8x8x128xf32> to vector<8x8x128xf32>
    %130 = vector.shape_cast %129 : vector<8x8x128xf32> to vector<64x128xf32>
    %131 = tpu.concatenate %121, %124, %127, %130 in 1 : vector<64x128xf32>, vector<64x128xf32>, vector<64x128xf32>, vector<64x128xf32> -> vector<64x512xf32>
    %c0_155 = arith.constant 0 : index
    %c1_156 = arith.constant 1 : index
    %c0_157 = arith.constant 0 : index
    %c0_158 = arith.constant 0 : index
    %132 = vector.load %arg6[%c0_155, %c1_156, %c0_157, %c0_158] : memref<2x2x512x64xf32, #tpu.memory_space<vmem>>, vector<1x1x512x64xf32>
    %133 = vector.shape_cast %132 : vector<1x1x512x64xf32> to vector<512x64xf32>
    %cst_159 = arith.constant dense<0.000000e+00> : vector<64x64xf32>
    %134 = tpu.matmul %131, %133, %cst_159 {dimension_numbers = #tpu.dot_dimension_numbers<[1], [0], [0], [1], [0, 0, 1, 1], [], []>} : vector<64x512xf32>, vector<512x64xf32>, vector<64x64xf32> -> vector<64x64xf32>
    %cst_160 = arith.constant 0.000000e+00 : f32
    %135 = vector.broadcast %cst_160 : f32 to vector<64x64xf32>
    %136 = arith.cmpf oge, %134, %135 : vector<64x64xf32>
    %cst_161 = arith.constant 1.000000e-01 : f32
    %137 = vector.broadcast %cst_161 : f32 to vector<64x64xf32>
    %138 = arith.mulf %137, %134 : vector<64x64xf32>
    %139 = arith.select %136, %134, %138 : vector<64x64xi1>, vector<64x64xf32>
    %140 = vector.shape_cast %139 : vector<64x64xf32> to vector<8x8x64xf32>
    %c0_162 = arith.constant 0 : index
    %c1_163 = arith.constant 1 : index
    %c1_164 = arith.constant 1 : index
    %c1_165 = arith.constant 1 : index
    %c0_166 = arith.constant 0 : index
    %141 = vector.load %arg10[%c0_162, %c1_163, %c1_164, %c1_165, %c0_166] : memref<2x2x10x10x64xf32, #tpu.memory_space<vmem>>, vector<1x1x8x8x64xf32>
    %142 = vector.shape_cast %141 : vector<1x1x8x8x64xf32> to vector<8x8x64xf32>
    %143 = vector.shape_cast %140 : vector<8x8x64xf32> to vector<1x1x8x8x64xf32>
    tpu.vector_store %arg10[%c0_162, %c1_163, %c1_164, %c1_165, %c0_166], %143 {strides = array<i32>} : memref<2x2x10x10x64xf32, #tpu.memory_space<vmem>>, vector<1x1x8x8x64xf32>,
    %c0_167 = arith.constant 0 : index
    %c1_168 = arith.constant 1 : index
    %c0_169 = arith.constant 0 : index
    %c0_170 = arith.constant 0 : index
    %144 = vector.load %arg9[%c0_167, %c1_168, %c0_169, %c0_170] : memref<2x10x10x128xf32, #tpu.memory_space<vmem>>, vector<1x8x8x128xf32>
    %145 = vector.shape_cast %144 : vector<1x8x8x128xf32> to vector<8x8x128xf32>
    %146 = vector.shape_cast %145 : vector<8x8x128xf32> to vector<64x128xf32>
    %c0_171 = arith.constant 0 : index
    %c1_172 = arith.constant 1 : index
    %c1_173 = arith.constant 1 : index
    %c0_174 = arith.constant 0 : index
    %147 = vector.load %arg9[%c0_171, %c1_172, %c1_173, %c0_174] : memref<2x10x10x128xf32, #tpu.memory_space<vmem>>, vector<1x8x8x128xf32>
    %148 = vector.shape_cast %147 : vector<1x8x8x128xf32> to vector<8x8x128xf32>
    %149 = vector.shape_cast %148 : vector<8x8x128xf32> to vector<64x128xf32>
    %c0_175 = arith.constant 0 : index
    %c2_176 = arith.constant 2 : index
    %c0_177 = arith.constant 0 : index
    %c0_178 = arith.constant 0 : index
    %150 = vector.load %arg9[%c0_175, %c2_176, %c0_177, %c0_178] : memref<2x10x10x128xf32, #tpu.memory_space<vmem>>, vector<1x8x8x128xf32>
    %151 = vector.shape_cast %150 : vector<1x8x8x128xf32> to vector<8x8x128xf32>
    %152 = vector.shape_cast %151 : vector<8x8x128xf32> to vector<64x128xf32>
    %c0_179 = arith.constant 0 : index
    %c2_180 = arith.constant 2 : index
    %c1_181 = arith.constant 1 : index
    %c0_182 = arith.constant 0 : index
    %153 = vector.load %arg9[%c0_179, %c2_180, %c1_181, %c0_182] : memref<2x10x10x128xf32, #tpu.memory_space<vmem>>, vector<1x8x8x128xf32>
    %154 = vector.shape_cast %153 : vector<1x8x8x128xf32> to vector<8x8x128xf32>
    %155 = vector.shape_cast %154 : vector<8x8x128xf32> to vector<64x128xf32>
    %156 = tpu.concatenate %146, %149, %152, %155 in 1 : vector<64x128xf32>, vector<64x128xf32>, vector<64x128xf32>, vector<64x128xf32> -> vector<64x512xf32>
    %c1_183 = arith.constant 1 : index
    %c0_184 = arith.constant 0 : index
    %c0_185 = arith.constant 0 : index
    %c0_186 = arith.constant 0 : index
    %157 = vector.load %arg6[%c1_183, %c0_184, %c0_185, %c0_186] : memref<2x2x512x64xf32, #tpu.memory_space<vmem>>, vector<1x1x512x64xf32>
    %158 = vector.shape_cast %157 : vector<1x1x512x64xf32> to vector<512x64xf32>
    %cst_187 = arith.constant dense<0.000000e+00> : vector<64x64xf32>
    %159 = tpu.matmul %156, %158, %cst_187 {dimension_numbers = #tpu.dot_dimension_numbers<[1], [0], [0], [1], [0, 0, 1, 1], [], []>} : vector<64x512xf32>, vector<512x64xf32>, vector<64x64xf32> -> vector<64x64xf32>
    %cst_188 = arith.constant 0.000000e+00 : f32
    %160 = vector.broadcast %cst_188 : f32 to vector<64x64xf32>
    %161 = arith.cmpf oge, %159, %160 : vector<64x64xf32>
    %cst_189 = arith.constant 1.000000e-01 : f32
    %162 = vector.broadcast %cst_189 : f32 to vector<64x64xf32>
    %163 = arith.mulf %162, %159 : vector<64x64xf32>
    %164 = arith.select %161, %159, %163 : vector<64x64xi1>, vector<64x64xf32>
    %165 = vector.shape_cast %164 : vector<64x64xf32> to vector<8x8x64xf32>
    %c1_190 = arith.constant 1 : index
    %c0_191 = arith.constant 0 : index
    %c1_192 = arith.constant 1 : index
    %c1_193 = arith.constant 1 : index
    %c0_194 = arith.constant 0 : index
    %166 = vector.load %arg10[%c1_190, %c0_191, %c1_192, %c1_193, %c0_194] : memref<2x2x10x10x64xf32, #tpu.memory_space<vmem>>, vector<1x1x8x8x64xf32>
    %167 = vector.shape_cast %166 : vector<1x1x8x8x64xf32> to vector<8x8x64xf32>
    %168 = vector.shape_cast %165 : vector<8x8x64xf32> to vector<1x1x8x8x64xf32>
    tpu.vector_store %arg10[%c1_190, %c0_191, %c1_192, %c1_193, %c0_194], %168 {strides = array<i32>} : memref<2x2x10x10x64xf32, #tpu.memory_space<vmem>>, vector<1x1x8x8x64xf32>,
    %c0_195 = arith.constant 0 : index
    %c1_196 = arith.constant 1 : index
    %c1_197 = arith.constant 1 : index
    %c0_198 = arith.constant 0 : index
    %169 = vector.load %arg9[%c0_195, %c1_196, %c1_197, %c0_198] : memref<2x10x10x128xf32, #tpu.memory_space<vmem>>, vector<1x8x8x128xf32>
    %170 = vector.shape_cast %169 : vector<1x8x8x128xf32> to vector<8x8x128xf32>
    %171 = vector.shape_cast %170 : vector<8x8x128xf32> to vector<64x128xf32>
    %c0_199 = arith.constant 0 : index
    %c1_200 = arith.constant 1 : index
    %c2_201 = arith.constant 2 : index
    %c0_202 = arith.constant 0 : index
    %172 = vector.load %arg9[%c0_199, %c1_200, %c2_201, %c0_202] : memref<2x10x10x128xf32, #tpu.memory_space<vmem>>, vector<1x8x8x128xf32>
    %173 = vector.shape_cast %172 : vector<1x8x8x128xf32> to vector<8x8x128xf32>
    %174 = vector.shape_cast %173 : vector<8x8x128xf32> to vector<64x128xf32>
    %c0_203 = arith.constant 0 : index
    %c2_204 = arith.constant 2 : index
    %c1_205 = arith.constant 1 : index
    %c0_206 = arith.constant 0 : index
    %175 = vector.load %arg9[%c0_203, %c2_204, %c1_205, %c0_206] : memref<2x10x10x128xf32, #tpu.memory_space<vmem>>, vector<1x8x8x128xf32>
    %176 = vector.shape_cast %175 : vector<1x8x8x128xf32> to vector<8x8x128xf32>
    %177 = vector.shape_cast %176 : vector<8x8x128xf32> to vector<64x128xf32>
    %c0_207 = arith.constant 0 : index
    %c2_208 = arith.constant 2 : index
    %c2_209 = arith.constant 2 : index
    %c0_210 = arith.constant 0 : index
    %178 = vector.load %arg9[%c0_207, %c2_208, %c2_209, %c0_210] : memref<2x10x10x128xf32, #tpu.memory_space<vmem>>, vector<1x8x8x128xf32>
    %179 = vector.shape_cast %178 : vector<1x8x8x128xf32> to vector<8x8x128xf32>
    %180 = vector.shape_cast %179 : vector<8x8x128xf32> to vector<64x128xf32>
    %181 = tpu.concatenate %171, %174, %177, %180 in 1 : vector<64x128xf32>, vector<64x128xf32>, vector<64x128xf32>, vector<64x128xf32> -> vector<64x512xf32>
    %c1_211 = arith.constant 1 : index
    %c1_212 = arith.constant 1 : index
    %c0_213 = arith.constant 0 : index
    %c0_214 = arith.constant 0 : index
    %182 = vector.load %arg6[%c1_211, %c1_212, %c0_213, %c0_214] : memref<2x2x512x64xf32, #tpu.memory_space<vmem>>, vector<1x1x512x64xf32>
    %183 = vector.shape_cast %182 : vector<1x1x512x64xf32> to vector<512x64xf32>
    %cst_215 = arith.constant dense<0.000000e+00> : vector<64x64xf32>
    %184 = tpu.matmul %181, %183, %cst_215 {dimension_numbers = #tpu.dot_dimension_numbers<[1], [0], [0], [1], [0, 0, 1, 1], [], []>} : vector<64x512xf32>, vector<512x64xf32>, vector<64x64xf32> -> vector<64x64xf32>
    %cst_216 = arith.constant 0.000000e+00 : f32
    %185 = vector.broadcast %cst_216 : f32 to vector<64x64xf32>
    %186 = arith.cmpf oge, %184, %185 : vector<64x64xf32>
    %cst_217 = arith.constant 1.000000e-01 : f32
    %187 = vector.broadcast %cst_217 : f32 to vector<64x64xf32>
    %188 = arith.mulf %187, %184 : vector<64x64xf32>
    %189 = arith.select %186, %184, %188 : vector<64x64xi1>, vector<64x64xf32>
    %190 = vector.shape_cast %189 : vector<64x64xf32> to vector<8x8x64xf32>
    %c1_218 = arith.constant 1 : index
    %c1_219 = arith.constant 1 : index
    %c1_220 = arith.constant 1 : index
    %c1_221 = arith.constant 1 : index
    %c0_222 = arith.constant 0 : index
    %191 = vector.load %arg10[%c1_218, %c1_219, %c1_220, %c1_221, %c0_222] : memref<2x2x10x10x64xf32, #tpu.memory_space<vmem>>, vector<1x1x8x8x64xf32>
    %192 = vector.shape_cast %191 : vector<1x1x8x8x64xf32> to vector<8x8x64xf32>
    %193 = vector.shape_cast %190 : vector<8x8x64xf32> to vector<1x1x8x8x64xf32>
    tpu.vector_store %arg10[%c1_218, %c1_219, %c1_220, %c1_221, %c0_222], %193 {strides = array<i32>} : memref<2x2x10x10x64xf32, #tpu.memory_space<vmem>>, vector<1x1x8x8x64xf32>,
    %c1_223 = arith.constant 1 : index
    %c1_224 = arith.constant 1 : index
    %c0_225 = arith.constant 0 : index
    %c0_226 = arith.constant 0 : index
    %c0_227 = arith.constant 0 : index
    %194 = vector.load %arg10[%c1_223, %c1_224, %c0_225, %c0_226, %c0_227] : memref<2x2x10x10x64xf32, #tpu.memory_space<vmem>>, vector<1x1x8x8x64xf32>
    %195 = vector.shape_cast %194 : vector<1x1x8x8x64xf32> to vector<8x8x64xf32>
    %196 = vector.shape_cast %195 : vector<8x8x64xf32> to vector<64x64xf32>
    %c1_228 = arith.constant 1 : index
    %c0_229 = arith.constant 0 : index
    %c0_230 = arith.constant 0 : index
    %c1_231 = arith.constant 1 : index
    %c0_232 = arith.constant 0 : index
    %197 = vector.load %arg10[%c1_228, %c0_229, %c0_230, %c1_231, %c0_232] : memref<2x2x10x10x64xf32, #tpu.memory_space<vmem>>, vector<1x1x8x8x64xf32>
    %198 = vector.shape_cast %197 : vector<1x1x8x8x64xf32> to vector<8x8x64xf32>
    %199 = vector.shape_cast %198 : vector<8x8x64xf32> to vector<64x64xf32>
    %c1_233 = arith.constant 1 : index
    %c1_234 = arith.constant 1 : index
    %c0_235 = arith.constant 0 : index
    %c1_236 = arith.constant 1 : index
    %c0_237 = arith.constant 0 : index
    %200 = vector.load %arg10[%c1_233, %c1_234, %c0_235, %c1_236, %c0_237] : memref<2x2x10x10x64xf32, #tpu.memory_space<vmem>>, vector<1x1x8x8x64xf32>
    %201 = vector.shape_cast %200 : vector<1x1x8x8x64xf32> to vector<8x8x64xf32>
    %202 = vector.shape_cast %201 : vector<8x8x64xf32> to vector<64x64xf32>
    %c0_238 = arith.constant 0 : index
    %c1_239 = arith.constant 1 : index
    %c1_240 = arith.constant 1 : index
    %c0_241 = arith.constant 0 : index
    %c0_242 = arith.constant 0 : index
    %203 = vector.load %arg10[%c0_238, %c1_239, %c1_240, %c0_241, %c0_242] : memref<2x2x10x10x64xf32, #tpu.memory_space<vmem>>, vector<1x1x8x8x64xf32>
    %204 = vector.shape_cast %203 : vector<1x1x8x8x64xf32> to vector<8x8x64xf32>
    %205 = vector.shape_cast %204 : vector<8x8x64xf32> to vector<64x64xf32>
    %c0_243 = arith.constant 0 : index
    %c0_244 = arith.constant 0 : index
    %c1_245 = arith.constant 1 : index
    %c1_246 = arith.constant 1 : index
    %c0_247 = arith.constant 0 : index
    %206 = vector.load %arg10[%c0_243, %c0_244, %c1_245, %c1_246, %c0_247] : memref<2x2x10x10x64xf32, #tpu.memory_space<vmem>>, vector<1x1x8x8x64xf32>
    %207 = vector.shape_cast %206 : vector<1x1x8x8x64xf32> to vector<8x8x64xf32>
    %208 = vector.shape_cast %207 : vector<8x8x64xf32> to vector<64x64xf32>
    %c0_248 = arith.constant 0 : index
    %c1_249 = arith.constant 1 : index
    %c1_250 = arith.constant 1 : index
    %c1_251 = arith.constant 1 : index
    %c0_252 = arith.constant 0 : index
    %209 = vector.load %arg10[%c0_248, %c1_249, %c1_250, %c1_251, %c0_252] : memref<2x2x10x10x64xf32, #tpu.memory_space<vmem>>, vector<1x1x8x8x64xf32>
    %210 = vector.shape_cast %209 : vector<1x1x8x8x64xf32> to vector<8x8x64xf32>
    %211 = vector.shape_cast %210 : vector<8x8x64xf32> to vector<64x64xf32>
    %c1_253 = arith.constant 1 : index
    %c1_254 = arith.constant 1 : index
    %c1_255 = arith.constant 1 : index
    %c0_256 = arith.constant 0 : index
    %c0_257 = arith.constant 0 : index
    %212 = vector.load %arg10[%c1_253, %c1_254, %c1_255, %c0_256, %c0_257] : memref<2x2x10x10x64xf32, #tpu.memory_space<vmem>>, vector<1x1x8x8x64xf32>
    %213 = vector.shape_cast %212 : vector<1x1x8x8x64xf32> to vector<8x8x64xf32>
    %214 = vector.shape_cast %213 : vector<8x8x64xf32> to vector<64x64xf32>
    %c1_258 = arith.constant 1 : index
    %c0_259 = arith.constant 0 : index
    %c1_260 = arith.constant 1 : index
    %c1_261 = arith.constant 1 : index
    %c0_262 = arith.constant 0 : index
    %215 = vector.load %arg10[%c1_258, %c0_259, %c1_260, %c1_261, %c0_262] : memref<2x2x10x10x64xf32, #tpu.memory_space<vmem>>, vector<1x1x8x8x64xf32>
    %216 = vector.shape_cast %215 : vector<1x1x8x8x64xf32> to vector<8x8x64xf32>
    %217 = vector.shape_cast %216 : vector<8x8x64xf32> to vector<64x64xf32>
    %c1_263 = arith.constant 1 : index
    %c1_264 = arith.constant 1 : index
    %c1_265 = arith.constant 1 : index
    %c1_266 = arith.constant 1 : index
    %c0_267 = arith.constant 0 : index
    %218 = vector.load %arg10[%c1_263, %c1_264, %c1_265, %c1_266, %c0_267] : memref<2x2x10x10x64xf32, #tpu.memory_space<vmem>>, vector<1x1x8x8x64xf32>
    %219 = vector.shape_cast %218 : vector<1x1x8x8x64xf32> to vector<8x8x64xf32>
    %220 = vector.shape_cast %219 : vector<8x8x64xf32> to vector<64x64xf32>
    %221 = tpu.concatenate %196, %199, %202, %205, %208, %211, %214, %217, %220 in 1 : vector<64x64xf32>, vector<64x64xf32>, vector<64x64xf32>, vector<64x64xf32>, vector<64x64xf32>, vector<64x64xf32>, vector<64x64xf32>, vector<64x64xf32>, vector<64x64xf32> -> vector<64x576xf32>
    %c0_268 = arith.constant 0 : index
    %c0_269 = arith.constant 0 : index
    %222 = vector.load %arg7[%c0_268, %c0_269] : memref<576x3xf32, #tpu.memory_space<vmem>>, vector<576x3xf32>
    %cst_270 = arith.constant dense<0.000000e+00> : vector<64x3xf32>
    %223 = tpu.matmul %221, %222, %cst_270 {dimension_numbers = #tpu.dot_dimension_numbers<[1], [0], [0], [1], [0, 0, 1, 1], [], []>} : vector<64x576xf32>, vector<576x3xf32>, vector<64x3xf32> -> vector<64x3xf32>
    %224 = arith.mulf %223, %223 : vector<64x3xf32>
    %cst_271 = arith.constant dense<0.000000e+00> : vector<64xf32>
    %225 = vector.multi_reduction <add>, %224, %cst_271 [1] : vector<64x3xf32> to vector<64xf32>
    %226 = vector.shape_cast %225 : vector<64xf32> to vector<64x1xf32>
    %cst_272 = arith.constant 1.000000e-24 : f32
    %227 = vector.broadcast %cst_272 : f32 to vector<64x1xf32>
    %228 = arith.maximumf %226, %227 : vector<64x1xf32>
    %229 = math.rsqrt %228 : vector<64x1xf32>
    %230 = vector.broadcast %229 : vector<64x1xf32> to vector<64x3xf32>
    %231 = arith.mulf %223, %230 : vector<64x3xf32>
    %232 = vector.shape_cast %231 : vector<64x3xf32> to vector<8x8x3xf32>
    %c0_273 = arith.constant 0 : index
    %c0_274 = arith.constant 0 : index
    %c0_275 = arith.constant 0 : index
    %c0_276 = arith.constant 0 : index
    %c0_277 = arith.constant 0 : index
    %c0_278 = arith.constant 0 : index
    %233 = vector.load %arg8[%c0_273, %c0_274, %c0_275, %c0_276, %c0_277, %c0_278] : memref<1x2x2x8x8x3xf32, #tpu.memory_space<vmem>>, vector<1x1x1x8x8x3xf32>
    %234 = vector.shape_cast %233 : vector<1x1x1x8x8x3xf32> to vector<8x8x3xf32>
    %235 = vector.shape_cast %232 : vector<8x8x3xf32> to vector<1x1x1x8x8x3xf32>
    tpu.vector_store %arg8[%c0_273, %c0_274, %c0_275, %c0_276, %c0_277, %c0_278], %235 {strides = array<i32>} : memref<1x2x2x8x8x3xf32, #tpu.memory_space<vmem>>, vector<1x1x1x8x8x3xf32>,
    %c1_279 = arith.constant 1 : index
    %c0_280 = arith.constant 0 : index
    %c0_281 = arith.constant 0 : index
    %c1_282 = arith.constant 1 : index
    %c0_283 = arith.constant 0 : index
    %236 = vector.load %arg10[%c1_279, %c0_280, %c0_281, %c1_282, %c0_283] : memref<2x2x10x10x64xf32, #tpu.memory_space<vmem>>, vector<1x1x8x8x64xf32>
    %237 = vector.shape_cast %236 : vector<1x1x8x8x64xf32> to vector<8x8x64xf32>
    %238 = vector.shape_cast %237 : vector<8x8x64xf32> to vector<64x64xf32>
    %c1_284 = arith.constant 1 : index
    %c1_285 = arith.constant 1 : index
    %c0_286 = arith.constant 0 : index
    %c1_287 = arith.constant 1 : index
    %c0_288 = arith.constant 0 : index
    %239 = vector.load %arg10[%c1_284, %c1_285, %c0_286, %c1_287, %c0_288] : memref<2x2x10x10x64xf32, #tpu.memory_space<vmem>>, vector<1x1x8x8x64xf32>
    %240 = vector.shape_cast %239 : vector<1x1x8x8x64xf32> to vector<8x8x64xf32>
    %241 = vector.shape_cast %240 : vector<8x8x64xf32> to vector<64x64xf32>
    %c1_289 = arith.constant 1 : index
    %c0_290 = arith.constant 0 : index
    %c0_291 = arith.constant 0 : index
    %c2_292 = arith.constant 2 : index
    %c0_293 = arith.constant 0 : index
    %242 = vector.load %arg10[%c1_289, %c0_290, %c0_291, %c2_292, %c0_293] : memref<2x2x10x10x64xf32, #tpu.memory_space<vmem>>, vector<1x1x8x8x64xf32>
    %243 = vector.shape_cast %242 : vector<1x1x8x8x64xf32> to vector<8x8x64xf32>
    %244 = vector.shape_cast %243 : vector<8x8x64xf32> to vector<64x64xf32>
    %c0_294 = arith.constant 0 : index
    %c0_295 = arith.constant 0 : index
    %c1_296 = arith.constant 1 : index
    %c1_297 = arith.constant 1 : index
    %c0_298 = arith.constant 0 : index
    %245 = vector.load %arg10[%c0_294, %c0_295, %c1_296, %c1_297, %c0_298] : memref<2x2x10x10x64xf32, #tpu.memory_space<vmem>>, vector<1x1x8x8x64xf32>
    %246 = vector.shape_cast %245 : vector<1x1x8x8x64xf32> to vector<8x8x64xf32>
    %247 = vector.shape_cast %246 : vector<8x8x64xf32> to vector<64x64xf32>
    %c0_299 = arith.constant 0 : index
    %c1_300 = arith.constant 1 : index
    %c1_301 = arith.constant 1 : index
    %c1_302 = arith.constant 1 : index
    %c0_303 = arith.constant 0 : index
    %248 = vector.load %arg10[%c0_299, %c1_300, %c1_301, %c1_302, %c0_303] : memref<2x2x10x10x64xf32, #tpu.memory_space<vmem>>, vector<1x1x8x8x64xf32>
    %249 = vector.shape_cast %248 : vector<1x1x8x8x64xf32> to vector<8x8x64xf32>
    %250 = vector.shape_cast %249 : vector<8x8x64xf32> to vector<64x64xf32>
    %c0_304 = arith.constant 0 : index
    %c0_305 = arith.constant 0 : index
    %c1_306 = arith.constant 1 : index
    %c2_307 = arith.constant 2 : index
    %c0_308 = arith.constant 0 : index
    %251 = vector.load %arg10[%c0_304, %c0_305, %c1_306, %c2_307, %c0_308] : memref<2x2x10x10x64xf32, #tpu.memory_space<vmem>>, vector<1x1x8x8x64xf32>
    %252 = vector.shape_cast %251 : vector<1x1x8x8x64xf32> to vector<8x8x64xf32>
    %253 = vector.shape_cast %252 : vector<8x8x64xf32> to vector<64x64xf32>
    %c1_309 = arith.constant 1 : index
    %c0_310 = arith.constant 0 : index
    %c1_311 = arith.constant 1 : index
    %c1_312 = arith.constant 1 : index
    %c0_313 = arith.constant 0 : index
    %254 = vector.load %arg10[%c1_309, %c0_310, %c1_311, %c1_312, %c0_313] : memref<2x2x10x10x64xf32, #tpu.memory_space<vmem>>, vector<1x1x8x8x64xf32>
    %255 = vector.shape_cast %254 : vector<1x1x8x8x64xf32> to vector<8x8x64xf32>
    %256 = vector.shape_cast %255 : vector<8x8x64xf32> to vector<64x64xf32>
    %c1_314 = arith.constant 1 : index
    %c1_315 = arith.constant 1 : index
    %c1_316 = arith.constant 1 : index
    %c1_317 = arith.constant 1 : index
    %c0_318 = arith.constant 0 : index
    %257 = vector.load %arg10[%c1_314, %c1_315, %c1_316, %c1_317, %c0_318] : memref<2x2x10x10x64xf32, #tpu.memory_space<vmem>>, vector<1x1x8x8x64xf32>
    %258 = vector.shape_cast %257 : vector<1x1x8x8x64xf32> to vector<8x8x64xf32>
    %259 = vector.shape_cast %258 : vector<8x8x64xf32> to vector<64x64xf32>
    %c1_319 = arith.constant 1 : index
    %c0_320 = arith.constant 0 : index
    %c1_321 = arith.constant 1 : index
    %c2_322 = arith.constant 2 : index
    %c0_323 = arith.constant 0 : index
    %260 = vector.load %arg10[%c1_319, %c0_320, %c1_321, %c2_322, %c0_323] : memref<2x2x10x10x64xf32, #tpu.memory_space<vmem>>, vector<1x1x8x8x64xf32>
    %261 = vector.shape_cast %260 : vector<1x1x8x8x64xf32> to vector<8x8x64xf32>
    %262 = vector.shape_cast %261 : vector<8x8x64xf32> to vector<64x64xf32>
    %263 = tpu.concatenate %238, %241, %244, %247, %250, %253, %256, %259, %262 in 1 : vector<64x64xf32>, vector<64x64xf32>, vector<64x64xf32>, vector<64x64xf32>, vector<64x64xf32>, vector<64x64xf32>, vector<64x64xf32>, vector<64x64xf32>, vector<64x64xf32> -> vector<64x576xf32>
    %c0_324 = arith.constant 0 : index
    %c0_325 = arith.constant 0 : index
    %264 = vector.load %arg7[%c0_324, %c0_325] : memref<576x3xf32, #tpu.memory_space<vmem>>, vector<576x3xf32>
    %cst_326 = arith.constant dense<0.000000e+00> : vector<64x3xf32>
    %265 = tpu.matmul %263, %264, %cst_326 {dimension_numbers = #tpu.dot_dimension_numbers<[1], [0], [0], [1], [0, 0, 1, 1], [], []>} : vector<64x576xf32>, vector<576x3xf32>, vector<64x3xf32> -> vector<64x3xf32>
    %266 = arith.mulf %265, %265 : vector<64x3xf32>
    %cst_327 = arith.constant dense<0.000000e+00> : vector<64xf32>
    %267 = vector.multi_reduction <add>, %266, %cst_327 [1] : vector<64x3xf32> to vector<64xf32>
    %268 = vector.shape_cast %267 : vector<64xf32> to vector<64x1xf32>
    %cst_328 = arith.constant 1.000000e-24 : f32
    %269 = vector.broadcast %cst_328 : f32 to vector<64x1xf32>
    %270 = arith.maximumf %268, %269 : vector<64x1xf32>
    %271 = math.rsqrt %270 : vector<64x1xf32>
    %272 = vector.broadcast %271 : vector<64x1xf32> to vector<64x3xf32>
    %273 = arith.mulf %265, %272 : vector<64x3xf32>
    %274 = vector.shape_cast %273 : vector<64x3xf32> to vector<8x8x3xf32>
    %c0_329 = arith.constant 0 : index
    %c0_330 = arith.constant 0 : index
    %c1_331 = arith.constant 1 : index
    %c0_332 = arith.constant 0 : index
    %c0_333 = arith.constant 0 : index
    %c0_334 = arith.constant 0 : index
    %275 = vector.load %arg8[%c0_329, %c0_330, %c1_331, %c0_332, %c0_333, %c0_334] : memref<1x2x2x8x8x3xf32, #tpu.memory_space<vmem>>, vector<1x1x1x8x8x3xf32>
    %276 = vector.shape_cast %275 : vector<1x1x1x8x8x3xf32> to vector<8x8x3xf32>
    %277 = vector.shape_cast %274 : vector<8x8x3xf32> to vector<1x1x1x8x8x3xf32>
    tpu.vector_store %arg8[%c0_329, %c0_330, %c1_331, %c0_332, %c0_333, %c0_334], %277 {strides = array<i32>} : memref<1x2x2x8x8x3xf32, #tpu.memory_space<vmem>>, vector<1x1x1x8x8x3xf32>,
    %c0_335 = arith.constant 0 : index
    %c1_336 = arith.constant 1 : index
    %c1_337 = arith.constant 1 : index
    %c0_338 = arith.constant 0 : index
    %c0_339 = arith.constant 0 : index
    %278 = vector.load %arg10[%c0_335, %c1_336, %c1_337, %c0_338, %c0_339] : memref<2x2x10x10x64xf32, #tpu.memory_space<vmem>>, vector<1x1x8x8x64xf32>
    %279 = vector.shape_cast %278 : vector<1x1x8x8x64xf32> to vector<8x8x64xf32>
    %280 = vector.shape_cast %279 : vector<8x8x64xf32> to vector<64x64xf32>
    %c0_340 = arith.constant 0 : index
    %c0_341 = arith.constant 0 : index
    %c1_342 = arith.constant 1 : index
    %c1_343 = arith.constant 1 : index
    %c0_344 = arith.constant 0 : index
    %281 = vector.load %arg10[%c0_340, %c0_341, %c1_342, %c1_343, %c0_344] : memref<2x2x10x10x64xf32, #tpu.memory_space<vmem>>, vector<1x1x8x8x64xf32>
    %282 = vector.shape_cast %281 : vector<1x1x8x8x64xf32> to vector<8x8x64xf32>
    %283 = vector.shape_cast %282 : vector<8x8x64xf32> to vector<64x64xf32>
    %c0_345 = arith.constant 0 : index
    %c1_346 = arith.constant 1 : index
    %c1_347 = arith.constant 1 : index
    %c1_348 = arith.constant 1 : index
    %c0_349 = arith.constant 0 : index
    %284 = vector.load %arg10[%c0_345, %c1_346, %c1_347, %c1_348, %c0_349] : memref<2x2x10x10x64xf32, #tpu.memory_space<vmem>>, vector<1x1x8x8x64xf32>
    %285 = vector.shape_cast %284 : vector<1x1x8x8x64xf32> to vector<8x8x64xf32>
    %286 = vector.shape_cast %285 : vector<8x8x64xf32> to vector<64x64xf32>
    %c1_350 = arith.constant 1 : index
    %c1_351 = arith.constant 1 : index
    %c1_352 = arith.constant 1 : index
    %c0_353 = arith.constant 0 : index
    %c0_354 = arith.constant 0 : index
    %287 = vector.load %arg10[%c1_350, %c1_351, %c1_352, %c0_353, %c0_354] : memref<2x2x10x10x64xf32, #tpu.memory_space<vmem>>, vector<1x1x8x8x64xf32>
    %288 = vector.shape_cast %287 : vector<1x1x8x8x64xf32> to vector<8x8x64xf32>
    %289 = vector.shape_cast %288 : vector<8x8x64xf32> to vector<64x64xf32>
    %c1_355 = arith.constant 1 : index
    %c0_356 = arith.constant 0 : index
    %c1_357 = arith.constant 1 : index
    %c1_358 = arith.constant 1 : index
    %c0_359 = arith.constant 0 : index
    %290 = vector.load %arg10[%c1_355, %c0_356, %c1_357, %c1_358, %c0_359] : memref<2x2x10x10x64xf32, #tpu.memory_space<vmem>>, vector<1x1x8x8x64xf32>
    %291 = vector.shape_cast %290 : vector<1x1x8x8x64xf32> to vector<8x8x64xf32>
    %292 = vector.shape_cast %291 : vector<8x8x64xf32> to vector<64x64xf32>
    %c1_360 = arith.constant 1 : index
    %c1_361 = arith.constant 1 : index
    %c1_362 = arith.constant 1 : index
    %c1_363 = arith.constant 1 : index
    %c0_364 = arith.constant 0 : index
    %293 = vector.load %arg10[%c1_360, %c1_361, %c1_362, %c1_363, %c0_364] : memref<2x2x10x10x64xf32, #tpu.memory_space<vmem>>, vector<1x1x8x8x64xf32>
    %294 = vector.shape_cast %293 : vector<1x1x8x8x64xf32> to vector<8x8x64xf32>
    %295 = vector.shape_cast %294 : vector<8x8x64xf32> to vector<64x64xf32>
    %c0_365 = arith.constant 0 : index
    %c1_366 = arith.constant 1 : index
    %c2_367 = arith.constant 2 : index
    %c0_368 = arith.constant 0 : index
    %c0_369 = arith.constant 0 : index
    %296 = vector.load %arg10[%c0_365, %c1_366, %c2_367, %c0_368, %c0_369] : memref<2x2x10x10x64xf32, #tpu.memory_space<vmem>>, vector<1x1x8x8x64xf32>
    %297 = vector.shape_cast %296 : vector<1x1x8x8x64xf32> to vector<8x8x64xf32>
    %298 = vector.shape_cast %297 : vector<8x8x64xf32> to vector<64x64xf32>
    %c0_370 = arith.constant 0 : index
    %c0_371 = arith.constant 0 : index
    %c2_372 = arith.constant 2 : index
    %c1_373 = arith.constant 1 : index
    %c0_374 = arith.constant 0 : index
    %299 = vector.load %arg10[%c0_370, %c0_371, %c2_372, %c1_373, %c0_374] : memref<2x2x10x10x64xf32, #tpu.memory_space<vmem>>, vector<1x1x8x8x64xf32>
    %300 = vector.shape_cast %299 : vector<1x1x8x8x64xf32> to vector<8x8x64xf32>
    %301 = vector.shape_cast %300 : vector<8x8x64xf32> to vector<64x64xf32>
    %c0_375 = arith.constant 0 : index
    %c1_376 = arith.constant 1 : index
    %c2_377 = arith.constant 2 : index
    %c1_378 = arith.constant 1 : index
    %c0_379 = arith.constant 0 : index
    %302 = vector.load %arg10[%c0_375, %c1_376, %c2_377, %c1_378, %c0_379] : memref<2x2x10x10x64xf32, #tpu.memory_space<vmem>>, vector<1x1x8x8x64xf32>
    %303 = vector.shape_cast %302 : vector<1x1x8x8x64xf32> to vector<8x8x64xf32>
    %304 = vector.shape_cast %303 : vector<8x8x64xf32> to vector<64x64xf32>
    %305 = tpu.concatenate %280, %283, %286, %289, %292, %295, %298, %301, %304 in 1 : vector<64x64xf32>, vector<64x64xf32>, vector<64x64xf32>, vector<64x64xf32>, vector<64x64xf32>, vector<64x64xf32>, vector<64x64xf32>, vector<64x64xf32>, vector<64x64xf32> -> vector<64x576xf32>
    %c0_380 = arith.constant 0 : index
    %c0_381 = arith.constant 0 : index
    %306 = vector.load %arg7[%c0_380, %c0_381] : memref<576x3xf32, #tpu.memory_space<vmem>>, vector<576x3xf32>
    %cst_382 = arith.constant dense<0.000000e+00> : vector<64x3xf32>
    %307 = tpu.matmul %305, %306, %cst_382 {dimension_numbers = #tpu.dot_dimension_numbers<[1], [0], [0], [1], [0, 0, 1, 1], [], []>} : vector<64x576xf32>, vector<576x3xf32>, vector<64x3xf32> -> vector<64x3xf32>
    %308 = arith.mulf %307, %307 : vector<64x3xf32>
    %cst_383 = arith.constant dense<0.000000e+00> : vector<64xf32>
    %309 = vector.multi_reduction <add>, %308, %cst_383 [1] : vector<64x3xf32> to vector<64xf32>
    %310 = vector.shape_cast %309 : vector<64xf32> to vector<64x1xf32>
    %cst_384 = arith.constant 1.000000e-24 : f32
    %311 = vector.broadcast %cst_384 : f32 to vector<64x1xf32>
    %312 = arith.maximumf %310, %311 : vector<64x1xf32>
    %313 = math.rsqrt %312 : vector<64x1xf32>
    %314 = vector.broadcast %313 : vector<64x1xf32> to vector<64x3xf32>
    %315 = arith.mulf %307, %314 : vector<64x3xf32>
    %316 = vector.shape_cast %315 : vector<64x3xf32> to vector<8x8x3xf32>
    %c0_385 = arith.constant 0 : index
    %c1_386 = arith.constant 1 : index
    %c0_387 = arith.constant 0 : index
    %c0_388 = arith.constant 0 : index
    %c0_389 = arith.constant 0 : index
    %c0_390 = arith.constant 0 : index
    %317 = vector.load %arg8[%c0_385, %c1_386, %c0_387, %c0_388, %c0_389, %c0_390] : memref<1x2x2x8x8x3xf32, #tpu.memory_space<vmem>>, vector<1x1x1x8x8x3xf32>
    %318 = vector.shape_cast %317 : vector<1x1x1x8x8x3xf32> to vector<8x8x3xf32>
    %319 = vector.shape_cast %316 : vector<8x8x3xf32> to vector<1x1x1x8x8x3xf32>
    tpu.vector_store %arg8[%c0_385, %c1_386, %c0_387, %c0_388, %c0_389, %c0_390], %319 {strides = array<i32>} : memref<1x2x2x8x8x3xf32, #tpu.memory_space<vmem>>, vector<1x1x1x8x8x3xf32>,
    %c0_391 = arith.constant 0 : index
    %c0_392 = arith.constant 0 : index
    %c1_393 = arith.constant 1 : index
    %c1_394 = arith.constant 1 : index
    %c0_395 = arith.constant 0 : index
    %320 = vector.load %arg10[%c0_391, %c0_392, %c1_393, %c1_394, %c0_395] : memref<2x2x10x10x64xf32, #tpu.memory_space<vmem>>, vector<1x1x8x8x64xf32>
    %321 = vector.shape_cast %320 : vector<1x1x8x8x64xf32> to vector<8x8x64xf32>
    %322 = vector.shape_cast %321 : vector<8x8x64xf32> to vector<64x64xf32>
    %c0_396 = arith.constant 0 : index
    %c1_397 = arith.constant 1 : index
    %c1_398 = arith.constant 1 : index
    %c1_399 = arith.constant 1 : index
    %c0_400 = arith.constant 0 : index
    %323 = vector.load %arg10[%c0_396, %c1_397, %c1_398, %c1_399, %c0_400] : memref<2x2x10x10x64xf32, #tpu.memory_space<vmem>>, vector<1x1x8x8x64xf32>
    %324 = vector.shape_cast %323 : vector<1x1x8x8x64xf32> to vector<8x8x64xf32>
    %325 = vector.shape_cast %324 : vector<8x8x64xf32> to vector<64x64xf32>
    %c0_401 = arith.constant 0 : index
    %c0_402 = arith.constant 0 : index
    %c1_403 = arith.constant 1 : index
    %c2_404 = arith.constant 2 : index
    %c0_405 = arith.constant 0 : index
    %326 = vector.load %arg10[%c0_401, %c0_402, %c1_403, %c2_404, %c0_405] : memref<2x2x10x10x64xf32, #tpu.memory_space<vmem>>, vector<1x1x8x8x64xf32>
    %327 = vector.shape_cast %326 : vector<1x1x8x8x64xf32> to vector<8x8x64xf32>
    %328 = vector.shape_cast %327 : vector<8x8x64xf32> to vector<64x64xf32>
    %c1_406 = arith.constant 1 : index
    %c0_407 = arith.constant 0 : index
    %c1_408 = arith.constant 1 : index
    %c1_409 = arith.constant 1 : index
    %c0_410 = arith.constant 0 : index
    %329 = vector.load %arg10[%c1_406, %c0_407, %c1_408, %c1_409, %c0_410] : memref<2x2x10x10x64xf32, #tpu.memory_space<vmem>>, vector<1x1x8x8x64xf32>
    %330 = vector.shape_cast %329 : vector<1x1x8x8x64xf32> to vector<8x8x64xf32>
    %331 = vector.shape_cast %330 : vector<8x8x64xf32> to vector<64x64xf32>
    %c1_411 = arith.constant 1 : index
    %c1_412 = arith.constant 1 : index
    %c1_413 = arith.constant 1 : index
    %c1_414 = arith.constant 1 : index
    %c0_415 = arith.constant 0 : index
    %332 = vector.load %arg10[%c1_411, %c1_412, %c1_413, %c1_414, %c0_415] : memref<2x2x10x10x64xf32, #tpu.memory_space<vmem>>, vector<1x1x8x8x64xf32>
    %333 = vector.shape_cast %332 : vector<1x1x8x8x64xf32> to vector<8x8x64xf32>
    %334 = vector.shape_cast %333 : vector<8x8x64xf32> to vector<64x64xf32>
    %c1_416 = arith.constant 1 : index
    %c0_417 = arith.constant 0 : index
    %c1_418 = arith.constant 1 : index
    %c2_419 = arith.constant 2 : index
    %c0_420 = arith.constant 0 : index
    %335 = vector.load %arg10[%c1_416, %c0_417, %c1_418, %c2_419, %c0_420] : memref<2x2x10x10x64xf32, #tpu.memory_space<vmem>>, vector<1x1x8x8x64xf32>
    %336 = vector.shape_cast %335 : vector<1x1x8x8x64xf32> to vector<8x8x64xf32>
    %337 = vector.shape_cast %336 : vector<8x8x64xf32> to vector<64x64xf32>
    %c0_421 = arith.constant 0 : index
    %c0_422 = arith.constant 0 : index
    %c2_423 = arith.constant 2 : index
    %c1_424 = arith.constant 1 : index
    %c0_425 = arith.constant 0 : index
    %338 = vector.load %arg10[%c0_421, %c0_422, %c2_423, %c1_424, %c0_425] : memref<2x2x10x10x64xf32, #tpu.memory_space<vmem>>, vector<1x1x8x8x64xf32>
    %339 = vector.shape_cast %338 : vector<1x1x8x8x64xf32> to vector<8x8x64xf32>
    %340 = vector.shape_cast %339 : vector<8x8x64xf32> to vector<64x64xf32>
    %c0_426 = arith.constant 0 : index
    %c1_427 = arith.constant 1 : index
    %c2_428 = arith.constant 2 : index
    %c1_429 = arith.constant 1 : index
    %c0_430 = arith.constant 0 : index
    %341 = vector.load %arg10[%c0_426, %c1_427, %c2_428, %c1_429, %c0_430] : memref<2x2x10x10x64xf32, #tpu.memory_space<vmem>>, vector<1x1x8x8x64xf32>
    %342 = vector.shape_cast %341 : vector<1x1x8x8x64xf32> to vector<8x8x64xf32>
    %343 = vector.shape_cast %342 : vector<8x8x64xf32> to vector<64x64xf32>
    %c0_431 = arith.constant 0 : index
    %c0_432 = arith.constant 0 : index
    %c2_433 = arith.constant 2 : index
    %c2_434 = arith.constant 2 : index
    %c0_435 = arith.constant 0 : index
    %344 = vector.load %arg10[%c0_431, %c0_432, %c2_433, %c2_434, %c0_435] : memref<2x2x10x10x64xf32, #tpu.memory_space<vmem>>, vector<1x1x8x8x64xf32>
    %345 = vector.shape_cast %344 : vector<1x1x8x8x64xf32> to vector<8x8x64xf32>
    %346 = vector.shape_cast %345 : vector<8x8x64xf32> to vector<64x64xf32>
    %347 = tpu.concatenate %322, %325, %328, %331, %334, %337, %340, %343, %346 in 1 : vector<64x64xf32>, vector<64x64xf32>, vector<64x64xf32>, vector<64x64xf32>, vector<64x64xf32>, vector<64x64xf32>, vector<64x64xf32>, vector<64x64xf32>, vector<64x64xf32> -> vector<64x576xf32>
    %c0_436 = arith.constant 0 : index
    %c0_437 = arith.constant 0 : index
    %348 = vector.load %arg7[%c0_436, %c0_437] : memref<576x3xf32, #tpu.memory_space<vmem>>, vector<576x3xf32>
    %cst_438 = arith.constant dense<0.000000e+00> : vector<64x3xf32>
    %349 = tpu.matmul %347, %348, %cst_438 {dimension_numbers = #tpu.dot_dimension_numbers<[1], [0], [0], [1], [0, 0, 1, 1], [], []>} : vector<64x576xf32>, vector<576x3xf32>, vector<64x3xf32> -> vector<64x3xf32>
    %350 = arith.mulf %349, %349 : vector<64x3xf32>
    %cst_439 = arith.constant dense<0.000000e+00> : vector<64xf32>
    %351 = vector.multi_reduction <add>, %350, %cst_439 [1] : vector<64x3xf32> to vector<64xf32>
    %352 = vector.shape_cast %351 : vector<64xf32> to vector<64x1xf32>
    %cst_440 = arith.constant 1.000000e-24 : f32
    %353 = vector.broadcast %cst_440 : f32 to vector<64x1xf32>
    %354 = arith.maximumf %352, %353 : vector<64x1xf32>
    %355 = math.rsqrt %354 : vector<64x1xf32>
    %356 = vector.broadcast %355 : vector<64x1xf32> to vector<64x3xf32>
    %357 = arith.mulf %349, %356 : vector<64x3xf32>
    %358 = vector.shape_cast %357 : vector<64x3xf32> to vector<8x8x3xf32>
    %c0_441 = arith.constant 0 : index
    %c1_442 = arith.constant 1 : index
    %c1_443 = arith.constant 1 : index
    %c0_444 = arith.constant 0 : index
    %c0_445 = arith.constant 0 : index
    %c0_446 = arith.constant 0 : index
    %359 = vector.load %arg8[%c0_441, %c1_442, %c1_443, %c0_444, %c0_445, %c0_446] : memref<1x2x2x8x8x3xf32, #tpu.memory_space<vmem>>, vector<1x1x1x8x8x3xf32>
    %360 = vector.shape_cast %359 : vector<1x1x1x8x8x3xf32> to vector<8x8x3xf32>
    %361 = vector.shape_cast %358 : vector<8x8x3xf32> to vector<1x1x1x8x8x3xf32>
    tpu.vector_store %arg8[%c0_441, %c1_442, %c1_443, %c0_444, %c0_445, %c0_446], %361 {strides = array<i32>} : memref<1x2x2x8x8x3xf32, #tpu.memory_space<vmem>>, vector<1x1x1x8x8x3xf32>,
    return
  }
  func.func @transform_0(%arg0: i32) -> (i32, i32, i32, i32, i32) {
    %c0_i32 = arith.constant 0 : i32
    %c0_i32_0 = arith.constant 0 : i32
    %c0_i32_1 = arith.constant 0 : i32
    %c0_i32_2 = arith.constant 0 : i32
    %c0_i32_3 = arith.constant 0 : i32
    return %arg0, %c0_i32, %c0_i32_0, %c0_i32_1, %c0_i32_2 : i32, i32, i32, i32, i32
  }
  func.func @transform_1(%arg0: i32) -> (i32, i32) {
    %c0_i32 = arith.constant 0 : i32
    %c0_i32_0 = arith.constant 0 : i32
    %c0_i32_1 = arith.constant 0 : i32
    return %c0_i32, %c0_i32_0 : i32, i32
  }
  func.func @transform_2(%arg0: i32) -> (i32, i32) {
    %c0_i32 = arith.constant 0 : i32
    %c0_i32_0 = arith.constant 0 : i32
    %c0_i32_1 = arith.constant 0 : i32
    return %c0_i32, %c0_i32_0 : i32, i32
  }
  func.func @transform_3(%arg0: i32) -> (i32, i32) {
    %c0_i32 = arith.constant 0 : i32
    %c0_i32_0 = arith.constant 0 : i32
    %c0_i32_1 = arith.constant 0 : i32
    return %c0_i32, %c0_i32_0 : i32, i32
  }
  func.func @transform_4(%arg0: i32) -> (i32, i32) {
    %c0_i32 = arith.constant 0 : i32
    %c0_i32_0 = arith.constant 0 : i32
    %c0_i32_1 = arith.constant 0 : i32
    return %c0_i32, %c0_i32_0 : i32, i32
  }
  func.func @transform_5(%arg0: i32) -> (i32, i32, i32, i32) {
    %c0_i32 = arith.constant 0 : i32
    %c0_i32_0 = arith.constant 0 : i32
    %c0_i32_1 = arith.constant 0 : i32
    %c0_i32_2 = arith.constant 0 : i32
    %c0_i32_3 = arith.constant 0 : i32
    return %c0_i32, %c0_i32_0, %c0_i32_1, %c0_i32_2 : i32, i32, i32, i32
  }
  func.func @transform_6(%arg0: i32) -> (i32, i32) {
    %c0_i32 = arith.constant 0 : i32
    %c0_i32_0 = arith.constant 0 : i32
    %c0_i32_1 = arith.constant 0 : i32
    return %c0_i32, %c0_i32_0 : i32, i32
  }
  func.func @transform_7(%arg0: i32) -> (i32, i32, i32, i32, i32, i32) {
    %c0_i32 = arith.constant 0 : i32
    %c0_i32_0 = arith.constant 0 : i32
    %c0_i32_1 = arith.constant 0 : i32
    %c0_i32_2 = arith.constant 0 : i32
    %c0_i32_3 = arith.constant 0 : i32
    %c0_i32_4 = arith.constant 0 : i32
    return %arg0, %c0_i32, %c0_i32_0, %c0_i32_1, %c0_i32_2, %c0_i32_3 : i32, i32, i32, i32, i32, i32
  }
}

</mosaic_0001>

<bundles_post_ra>
// kernel: regressor_forward.1
= control target key start
LH: loop header
LB: loop body
LE: loop exit
PB: predicated region body
PF: predicated region fallthrough
CT: control target
= control target key end

     0   :  { %s8709_s24 = smov 0   ;;  %s13158_s0 = inlined_call_operand.vmem [shape: f32[2,4,8,8,128], index: 0, kind: input, shape index: {}]   ;;  %s13159_s1 = inlined_call_operand.vmem [shape: f32[1152,128], index: 1, kind: input, shape index: {}]   ;;  %s13160_s2 = inlined_call_operand.vmem [shape: f32[1,128], index: 2, kind: input, shape index: {}]   ;;  %s13161_s3 = inlined_call_operand.vmem [shape: f32[1152,128], index: 3, kind: input, shape index: {}]   ;;  %s13162_s4 = inlined_call_operand.vmem [shape: f32[1,128], index: 4, kind: input, shape index: {}]   ;;  %s13163_s5 = inlined_call_operand.vmem [shape: f32[2,2,512,64], index: 5, kind: input, shape index: {}]   ;;  %s13164_s6 = inlined_call_operand.vmem [shape: f32[576,3], index: 6, kind: input, shape index: {}]   ;;  %s13165_s7 = inlined_call_operand.vmem [shape: f32[2,2,2,8,8,3], index: 7, kind: output, shape index: {}]  }
   0x1 LB: > { %s6280_s25 = sadd.s32 4294967295, %s8665_s24   ;;  %p6284_p0 = scmp.ge.s32.totalorder %s8665_s24, 1  ;;  %s8665_s24 = sphi %s8709_s24, %s17_s24  }
   0x2   : > { %p237_p1 = scmp.lt.s32.totalorder %s8665_s24, 3 }
   0x4   : > { %p238_p2 = pnand %p6284_p0, %p237_p1 }
   0x6   : > { %241 = sbr.rel (%p238_p2) target bundleno = 1610 (0x64a), region = 48 }
   0xb   : > { %v570_v0 = vld [vmem:[%s13159_s1 + $0xf8] sm:$0xff]  ;;  %v569_v2 = vld [vmem:[%s13159_s1 + $0xf0] sm:$0xff]  ;;  %v8667_v6 = vmov 0.0   ;;  %v568_v7 = vld [vmem:[%s13159_s1 + $0xe8] sm:$0xff]  ;;  %p8822_p3 = scmp.lt.s32.totalorder %s6280_s25, 1  ;;  %s8668_s8 = smov 64  }
   0xc   : > { %v554_v1 = vld [vmem:[%s13159_s1 + $0x78] sm:$0xff]  ;;  %6543 = vmatprep.subr.mxu0 %v570_v0  ;;  %v553_v4 = vld [vmem:[%s13159_s1 + $0x70] sm:$0xff]  ;;  %279 = vst [vmem:[#allocation2] sm:$0xff] %v8667_v6  ;;  %280 = vst [vmem:[#allocation2 + $0x8] sm:$0x3] %v8667_v6 }
   0xd   : > { %v602_v3 = vld [vmem:[%s13159_s1 + $0x1f8] sm:$0xff]  ;;  %281 = vst [vmem:[#allocation2 + $0x10] sm:$0xff] %v8667_v6  ;;  %282 = vst [vmem:[#allocation2 + $0x18] sm:$0x3] %v8667_v6  ;;  %6544 = vmatpush3.msra.mxu0 %v554_v1  ;;  %v601_v8 = vld [vmem:[%s13159_s1 + $0x1f0] sm:$0xff]  ;;  %s13320_s25 = smov (!%p8822_p3, %s6280_s25), 1 }
   0xe   : > { %v586_v5 = vld [vmem:[%s13159_s1 + $0x178] sm:$0xff]  ;;  %283 = vst [vmem:[#allocation2 + $0x20] sm:$0xff] %v8667_v6  ;;  %284 = vst [vmem:[#allocation2 + $0x28] sm:$0x3] %v8667_v6  ;;  %6599 = vmatprep.subr.mxu1 %v602_v3  ;;  %6545 = vmatprep.subr.mxu0 %v569_v2  ;;  %v552_v9 = vld [vmem:[%s13159_s1 + $0x68] sm:$0xff]  ;;  %s6541_s15 = sshll.u32 %s13320_s25, 8 }
   0xf   : > { %285 = vst [vmem:[#allocation2 + $0x30] sm:$0xff] %v8667_v6  ;;  %286 = vst [vmem:[#allocation2 + $0x38] sm:$0x3] %v8667_v6  ;;  %6600 = vmatpush3.msra.mxu1 %v586_v5  ;;  %v585_v10 = vld [vmem:[%s13159_s1 + $0x170] sm:$0xff]  ;;  %v600_v11 = vld [vmem:[%s13159_s1 + $0x1e8] sm:$0xff]  ;;  %6546 = vmatpush3.msra.mxu0 %v553_v4  ;;  %s8904_s9 = scalar_lea.vmem %s13158_s0, %s6541_s15  ;;  %s13001_s27 = scalar_lea.vmem %s13165_s7, %s6541_s15 }
  0x10   : > { %287 = vst [vmem:[#allocation2 + $0x40] sm:$0xff] %v8667_v6  ;;  %288 = vst [vmem:[#allocation2 + $0x48] sm:$0x3] %v8667_v6  ;;  %6601 = vmatprep.subr.mxu1 %v601_v8  ;;  %v567_v12 = vld [vmem:[%s13159_s1 + $0xe0] sm:$0xff]  ;;  %v584_v13 = vld [vmem:[%s13159_s1 + $0x168] sm:$0xff]  ;;  %6547 = vmatprep.subr.mxu0 %v568_v7 }
  0x11   : > { %289 = vst [vmem:[#allocation2 + $0x50] sm:$0xff] %v8667_v6  ;;  %290 = vst [vmem:[#allocation2 + $0x58] sm:$0x3] %v8667_v6  ;;  %6602 = vmatpush3.msra.mxu1 %v585_v10  ;;  %v551_v14 = vld [vmem:[%s13159_s1 + $0x60] sm:$0xff]  ;;  %6548 = vmatpush3.msra.mxu0 %v552_v9  ;;  %v566_v16 = vld [vmem:[%s13159_s1 + $0xd8] sm:$0xff] }
  0x12   : > { %291 = vst [vmem:[#allocation2 + $0x60] sm:$0xff] %v8667_v6  ;;  %292 = vst [vmem:[#allocation2 + $0x68] sm:$0x3] %v8667_v6  ;;  %v599_v15 = vld [vmem:[%s13159_s1 + $0x1e0] sm:$0xff]  ;;  %6603 = vmatprep.subr.mxu1 %v600_v11  ;;  %6549 = vmatprep.subr.mxu0 %v567_v12  ;;  %v550_v18 = vld [vmem:[%s13159_s1 + $0x58] sm:$0xff] }
  0x13   : > { %293 = vst [vmem:[#allocation2 + $0x70] sm:$0xff] %v8667_v6  ;;  %294 = vst [vmem:[#allocation2 + $0x78] sm:$0x3] %v8667_v6  ;;  %v583_v17 = vld [vmem:[%s13159_s1 + $0x160] sm:$0xff]  ;;  %6604 = vmatpush3.msra.mxu1 %v584_v13  ;;  %v598_v19 = vld [vmem:[%s13159_s1 + $0x1d8] sm:$0xff]  ;;  %6550 = vmatpush3.msra.mxu0 %v551_v14 }
  0x14   : > { %295 = vst [vmem:[#allocation2 + $0x80] sm:$0xff] %v8667_v6  ;;  %296 = vst [vmem:[#allocation2 + $0x88] sm:$0x3] %v8667_v6  ;;  %6605 = vmatprep.subr.mxu1 %v599_v15  ;;  %v565_v20 = vld [vmem:[%s13159_s1 + $0xd0] sm:$0xff]  ;;  %v582_v21 = vld [vmem:[%s13159_s1 + $0x158] sm:$0xff]  ;;  %6551 = vmatprep.subr.mxu0 %v566_v16 }
  0x15   : > { %297 = vst [vmem:[#allocation2 + $0x90] sm:$0xff] %v8667_v6  ;;  %298 = vst [vmem:[#allocation2 + $0x98] sm:$0x3] %v8667_v6  ;;  %6606 = vmatpush3.msra.mxu1 %v583_v17  ;;  %v549_v22 = vld [vmem:[%s13159_s1 + $0x50] sm:$0xff]  ;;  %6552 = vmatpush3.msra.mxu0 %v550_v18  ;;  %v564_v24 = vld [vmem:[%s13159_s1 + $0xc8] sm:$0xff] }
  0x16   : > { %299 = vst [vmem:[#allocation2 + $0xa0] sm:$0xff] %v8667_v6  ;;  %300 = vst [vmem:[#allocation2 + $0xa8] sm:$0x3] %v8667_v6  ;;  %v597_v23 = vld [vmem:[%s13159_s1 + $0x1d0] sm:$0xff]  ;;  %6607 = vmatprep.subr.mxu1 %v598_v19  ;;  %6553 = vmatprep.subr.mxu0 %v565_v20  ;;  %v548_v26 = vld [vmem:[%s13159_s1 + $0x48] sm:$0xff] }
  0x17   : > { %301 = vst [vmem:[#allocation2 + $0xb0] sm:$0xff] %v8667_v6  ;;  %302 = vst [vmem:[#allocation2 + $0xb8] sm:$0x3] %v8667_v6  ;;  %v581_v25 = vld [vmem:[%s13159_s1 + $0x150] sm:$0xff]  ;;  %6608 = vmatpush3.msra.mxu1 %v582_v21  ;;  %v596_v27 = vld [vmem:[%s13159_s1 + $0x1c8] sm:$0xff]  ;;  %6554 = vmatpush3.msra.mxu0 %v549_v22 }
  0x18   : > { %303 = vst [vmem:[#allocation2 + $0xc0] sm:$0xff] %v8667_v6  ;;  %304 = vst [vmem:[#allocation2 + $0xc8] sm:$0x3] %v8667_v6  ;;  %6609 = vmatprep.subr.mxu1 %v597_v23  ;;  %v563_v28 = vld [vmem:[%s13159_s1 + $0xc0] sm:$0xff]  ;;  %v580_v29 = vld [vmem:[%s13159_s1 + $0x148] sm:$0xff]  ;;  %6555 = vmatprep.subr.mxu0 %v564_v24 }
  0x19   : > { %305 = vst [vmem:[#allocation2 + $0xd0] sm:$0xff] %v8667_v6  ;;  %306 = vst [vmem:[#allocation2 + $0xd8] sm:$0x3] %v8667_v6  ;;  %6610 = vmatpush3.msra.mxu1 %v581_v25  ;;  %v547_v30 = vld [vmem:[%s13159_s1 + $0x40] sm:$0xff]  ;;  %6556 = vmatpush3.msra.mxu0 %v548_v26  ;;  %v562_v32 = vld [vmem:[%s13159_s1 + $0xb8] sm:$0xff] }
  0x1a   : > { %307 = vst [vmem:[#allocation2 + $0xe0] sm:$0xff] %v8667_v6  ;;  %308 = vst [vmem:[#allocation2 + $0xe8] sm:$0x3] %v8667_v6  ;;  %v595_v31 = vld [vmem:[%s13159_s1 + $0x1c0] sm:$0xff]  ;;  %6611 = vmatprep.subr.mxu1 %v596_v27  ;;  %6557 = vmatprep.subr.mxu0 %v563_v28  ;;  %v546_v34 = vld [vmem:[%s13159_s1 + $0x38] sm:$0xff] }
  0x1b   : > { %309 = vst [vmem:[#allocation2 + $0xf0] sm:$0xff] %v8667_v6  ;;  %310 = vst [vmem:[#allocation2 + $0xf8] sm:$0x3] %v8667_v6  ;;  %v579_v33 = vld [vmem:[%s13159_s1 + $0x140] sm:$0xff]  ;;  %6612 = vmatpush3.msra.mxu1 %v580_v29  ;;  %v594_v35 = vld [vmem:[%s13159_s1 + $0x1b8] sm:$0xff]  ;;  %6558 = vmatpush3.msra.mxu0 %v547_v30 }
  0x1c   : > { %311 = vst [vmem:[#allocation2 + $0x100] sm:$0xff] %v8667_v6  ;;  %312 = vst [vmem:[#allocation2 + $0x108] sm:$0x3] %v8667_v6  ;;  %6613 = vmatprep.subr.mxu1 %v595_v31  ;;  %v561_v36 = vld [vmem:[%s13159_s1 + $0xb0] sm:$0xff]  ;;  %v578_v37 = vld [vmem:[%s13159_s1 + $0x138] sm:$0xff]  ;;  %6559 = vmatprep.subr.mxu0 %v562_v32 }
  0x1d   : > { %313 = vst [vmem:[#allocation2 + $0x110] sm:$0xff] %v8667_v6  ;;  %314 = vst [vmem:[#allocation2 + $0x118] sm:$0x3] %v8667_v6  ;;  %6614 = vmatpush3.msra.mxu1 %v579_v33  ;;  %v545_v38 = vld [vmem:[%s13159_s1 + $0x30] sm:$0xff]  ;;  %6560 = vmatpush3.msra.mxu0 %v546_v34  ;;  %v560_v40 = vld [vmem:[%s13159_s1 + $0xa8] sm:$0xff] }
  0x1e   : > { %315 = vst [vmem:[#allocation2 + $0x120] sm:$0xff] %v8667_v6  ;;  %316 = vst [vmem:[#allocation2 + $0x128] sm:$0x3] %v8667_v6  ;;  %v593_v39 = vld [vmem:[%s13159_s1 + $0x1b0] sm:$0xff]  ;;  %6615 = vmatprep.subr.mxu1 %v594_v35  ;;  %6561 = vmatprep.subr.mxu0 %v561_v36  ;;  %v544_v42 = vld [vmem:[%s13159_s1 + $0x28] sm:$0xff] }
  0x1f   : > { %317 = vst [vmem:[#allocation2 + $0x130] sm:$0xff] %v8667_v6  ;;  %318 = vst [vmem:[#allocation2 + $0x138] sm:$0x3] %v8667_v6  ;;  %v577_v41 = vld [vmem:[%s13159_s1 + $0x130] sm:$0xff]  ;;  %6616 = vmatpush3.msra.mxu1 %v578_v37  ;;  %v592_v43 = vld [vmem:[%s13159_s1 + $0x1a8] sm:$0xff]  ;;  %6562 = vmatpush3.msra.mxu0 %v545_v38 }
  0x20   : > { %6617 = vmatprep.subr.mxu1 %v593_v39  ;;  %v559_v44 = vld [vmem:[%s13159_s1 + $0xa0] sm:$0xff]  ;;  %v576_v46 = vld [vmem:[%s13159_s1 + $0x128] sm:$0xff]  ;;  %6563 = vmatprep.subr.mxu0 %v560_v40  ;;  %v558_v47 = vld [vmem:[%s13159_s1 + $0x98] sm:$0xff] }
  0x21   : > { %v543_v45 = vld [vmem:[%s13159_s1 + $0x20] sm:$0xff]  ;;  %6618 = vmatpush3.msra.mxu1 %v577_v41  ;;  %6564 = vmatpush3.msra.mxu0 %v544_v42  ;;  %v542_v53 = vld [vmem:[%s13159_s1 + $0x18] sm:$0xff]  ;;  %v557_v54 = vld [vmem:[%s13159_s1 + $0x90] sm:$0xff] }
  0x22   : > { %v591_v48 = vld [vmem:[%s13159_s1 + $0x1a0] sm:$0xff]  ;;  %6619 = vmatprep.subr.mxu1 %v592_v43  ;;  %6565 = vmatprep.subr.mxu0 %v559_v44  ;;  %v590_v55 = vld [vmem:[%s13159_s1 + $0x198] sm:$0xff]  ;;  %v541_v57 = vld [vmem:[%s13159_s1 + $0x10] sm:$0xff] }
  0x23   : > { %v575_v49 = vld [vmem:[%s13159_s1 + $0x120] sm:$0xff]  ;;  %6620 = vmatpush3.msra.mxu1 %v576_v46  ;;  %6566 = vmatpush3.msra.mxu0 %v543_v45  ;;  %v574_v58 = vld [vmem:[%s13159_s1 + $0x118] sm:$0xff]  ;;  %v556_v60 = vld [vmem:[%s13159_s1 + $0x88] sm:$0xff] }
  0x24   : > { %v401_v50 = vld [vmem:[%s8904_s9] sm:$0xff]  ;;  %6621 = vmatprep.subr.mxu1 %v591_v48  ;;  %6567 = vmatprep.subr.mxu0 %v558_v47  ;;  %v589_v61 = vld [vmem:[%s13159_s1 + $0x190] sm:$0xff]  ;;  %v402_v0 = vld [vmem:[%s8904_s9 + $0x8] sm:$0xff] }
  0x25   : > { %v409_v51 = vld [vmem:[%s8904_s9 + $0x40] sm:$0xff]  ;;  %6622 = vmatpush3.msra.mxu1 %v575_v49  ;;  %v573_v62 = vld [vmem:[%s13159_s1 + $0x110] sm:$0xff]  ;;  %6568 = vmatpush3.msra.mxu0 %v542_v53  ;;  %v410_v1 = vld [vmem:[%s8904_s9 + $0x48] sm:$0xff] }
  0x26   : > { %v417_v52 = vld [vmem:[%s8904_s9 + $0x80] sm:$0xff]  ;;  %v433_v56 = vmax.f32 %v401_v50, %v409_v51  ;;  %6623 = vmatprep.subr.mxu1 %v590_v55  ;;  %v418_v2 = vld [vmem:[%s8904_s9 + $0x88] sm:$0xff]  ;;  %6569 = vmatprep.subr.mxu0 %v557_v54  ;;  %v436_v7 = vmax.f32 %v402_v0, %v410_v1  ;;  %v403_v15 = vld [vmem:[%s8904_s9 + $0x10] sm:$0xff] }
  0x27   : > { %v425_v59 = vld [vmem:[%s8904_s9 + $0xc0] sm:$0xff]  ;;  %6624 = vmatpush3.msra.mxu1 %v574_v58  ;;  %v540_v3 = vld [vmem:[%s13159_s1 + $0x8] sm:$0xff]  ;;  %6570 = vmatpush3.msra.mxu0 %v541_v57  ;;  %v411_v16 = vld [vmem:[%s8904_s9 + $0x50] sm:$0xff] }
  0x28   : > { %v434_v63 = vmax.f32 %v433_v56, %v417_v52  ;;  %v588_v4 = vld [vmem:[%s13159_s1 + $0x188] sm:$0xff]  ;;  %6625 = vmatprep.subr.mxu1 %v589_v61  ;;  %v555_v8 = vld [vmem:[%s13159_s1 + $0x80] sm:$0xff]  ;;  %6571 = vmatprep.subr.mxu0 %v556_v60  ;;  %v437_v14 = vmax.f32 %v436_v7, %v418_v2  ;;  %v419_v17 = vld [vmem:[%s8904_s9 + $0x90] sm:$0xff]  ;;  %v439_v21 = vmax.f32 %v403_v15, %v411_v16 }
  0x29   : > { %v474_v9 = vld [vmem:[#allocation2 + $0x1] sm:$0xff]  ;;  %6626 = vmatpush3.msra.mxu1 %v573_v62  ;;  %6572 = vmatpush3.msra.mxu0 %v540_v3  ;;  %v634_v18 = vld [vmem:[%s13159_s1 + $0x2f8] sm:$0xff]  ;;  %v427_v24 = vld [vmem:[%s8904_s9 + $0xd0] sm:$0xff] }
  0x2a   : > { %v8961_v5 = vmax.f32 %v434_v63, %v425_v59  ;;  %v426_v10 = vld [vmem:[%s8904_s9 + $0xc8] sm:$0xff]  ;;  %v539_v11 = vld [vmem:[%s13159_s1] sm:$0xff]  ;;  %6627 = vmatprep.subr.mxu1 %v588_v4  ;;  %6573 = vmatprep.subr.mxu0 %v555_v8  ;;  %v618_v22 = vld [vmem:[%s13159_s1 + $0x278] sm:$0xff]  ;;  %v440_v27 = vmax.f32 %v439_v21, %v419_v17 }
  0x2b   : > { %v572_v12 = vld [vmem:[%s13159_s1 + $0x108] sm:$0xff]  ;;  %v587_v13 = vld [vmem:[%s13159_s1 + $0x180] sm:$0xff]  ;;  %754 = vmatprep.mubr.f32.mxu0 %v474_v9  ;;  %v8986_v20 = vmax.f32 %v437_v14, %v426_v10  ;;  %6574 = vmatpush3.msra.mxu0 %v539_v11  ;;  %v666_v23 = vld [vmem:[%s13159_s1 + $0x3f8] sm:$0xff] }
  0x2c   : > { %458 = vst [vmem:[#allocation2 + $0x11] sm:$0xff] %v8961_v5  ;;  %v571_v19 = vld [vmem:[%s13159_s1 + $0x100] sm:$0xff]  ;;  %6628 = vmatpush3.msra.mxu1 %v572_v12  ;;  %755 = vmatmul.mubr.f32.vlgmr.msra.gmra.mxu0 %v8667_v6  ;;  %v633_v25 = vld [vmem:[%s13159_s1 + $0x2f0] sm:$0xff]  ;;  %v404_v28 = vld [vmem:[%s8904_s9 + $0x18] sm:$0xff]  ;;  %v9009_v33 = vmax.f32 %v440_v27, %v427_v24 }
  0x2d   : > { %6629 = vmatprep.subr.mxu1 %v587_v13  ;;  %v617_v26 = vld [vmem:[%s13159_s1 + $0x270] sm:$0xff]  ;;  %459 = vst [vmem:[#allocation2 + $0x21] sm:$0xff] %v8986_v20  ;;  %6655 = vmatprep.subr.mxu0 %v634_v18  ;;  %v412_v29 = vld [vmem:[%s8904_s9 + $0x58] sm:$0xff]  ;;  %v482_v31 = vld [vmem:[#allocation2 + $0x2] sm:$0xff] }
  0x2e   : > { %6630 = vmatpush3.msra.mxu1 %v571_v19  ;;  %v420_v30 = vld [vmem:[%s8904_s9 + $0x98] sm:$0xff]  ;;  %6656 = vmatpush3.msra.mxu0 %v618_v22  ;;  %v442_v34 = vmax.f32 %v404_v28, %v412_v29  ;;  %v632_v36 = vld [vmem:[%s13159_s1 + $0x2e8] sm:$0xff]  ;;  %v665_v38 = vld [vmem:[%s13159_s1 + $0x3f0] sm:$0xff]  ;;  %460 = vst [vmem:[#allocation2 + $0x31] sm:$0xff] %v9009_v33 }
  0x2f   : > { %6711 = vmatprep.subr.mxu1 %v666_v23  ;;  %v650_v32 = vld [vmem:[%s13159_s1 + $0x378] sm:$0xff]  ;;  %6657 = vmatprep.subr.mxu0 %v633_v25  ;;  %v616_v39 = vld [vmem:[%s13159_s1 + $0x268] sm:$0xff]  ;;  %v649_v41 = vld [vmem:[%s13159_s1 + $0x370] sm:$0xff] }
  0x30   : > { %759 = vmatprep.mubr.f32.mxu0 %v8961_v5  ;;  %v428_v37 = vld [vmem:[%s8904_s9 + $0xd8] sm:$0xff]  ;;  %6658 = vmatpush3.msra.mxu0 %v617_v26  ;;  %v443_v40 = vmax.f32 %v442_v34, %v420_v30  ;;  %v631_v42 = vld [vmem:[%s13159_s1 + $0x2e0] sm:$0xff]  ;;  %v664_v49 = vld [vmem:[%s13159_s1 + $0x3e8] sm:$0xff] }
  0x31   : > { %v405_v43 = vld [vmem:[%s8904_s9 + $0x20] sm:$0xff]  ;;  %6659 = vmatprep.subr.mxu0 %v632_v36  ;;  %v648_v52 = vld [vmem:[%s13159_s1 + $0x368] sm:$0xff]  ;;  %v630_v54 = vld [vmem:[%s13159_s1 + $0x2d8] sm:$0xff] }
  0x32   : > { %v9032_v45 = vmax.f32 %v443_v40, %v428_v37  ;;  %v413_v46 = vld [vmem:[%s8904_s9 + $0x60] sm:$0xff]  ;;  %6660 = vmatpush3.msra.mxu0 %v616_v39  ;;  %v614_v57 = vld [vmem:[%s13159_s1 + $0x258] sm:$0xff]  ;;  %v406_v58 = vld [vmem:[%s8904_s9 + $0x28] sm:$0xff] }
  0x33   : > { %v490_v35 = vld [vmem:[#allocation2 + $0x10] sm:$0xff]  ;;  %v421_v47 = vld [vmem:[%s8904_s9 + $0xa0] sm:$0xff]  ;;  %v445_v50 = vmax.f32 %v405_v43, %v413_v46  ;;  %6661 = vmatprep.subr.mxu0 %v631_v42  ;;  %v414_v59 = vld [vmem:[%s8904_s9 + $0x68] sm:$0xff] }
  0x34   : > { %859 = vmatprep.mubr.f32.mxu1 %v490_v35  ;;  %760 = vmatmul.mubr.f32.gmra.mxu0 %v490_v35  ;;  %v9030_v44 = vld [vmem:[#allocation2 + $0x12] sm:$0xff]  ;;  %v9036_v48 = vld [vmem:[#allocation2 + $0x20] sm:$0xff]  ;;  %461 = vst [vmem:[#allocation2 + $0x41] sm:$0xff] %v9032_v45  ;;  %v422_v63 = vld [vmem:[%s8904_s9 + $0xa8] sm:$0xff]  ;;  %v448_v0 = vmax.f32 %v406_v58, %v414_v59 }
  0x35   : > { %860 = vmatmul.mubr.f32.vlgmr.msra.gmra.mxu1 %v482_v31  ;;  %v615_v51 = vld [vmem:[%s13159_s1 + $0x260] sm:$0xff]  ;;  %v446_v56 = vmax.f32 %v445_v50, %v421_v47  ;;  %764 = vmatprep.mubr.f32.mxu0 %v8986_v20  ;;  %v9063_v60 = vld [vmem:[#allocation2 + $0x30] sm:$0xff]  ;;  %v430_v3 = vld [vmem:[%s8904_s9 + $0xe8] sm:$0xff] }
  0x36   : > { %6712 = vmatpush3.msra.mxu1 %v650_v32  ;;  %864 = vmatprep.mubr.f32.mxu1 %v9036_v48  ;;  %v429_v53 = vld [vmem:[%s8904_s9 + $0xe0] sm:$0xff]  ;;  %v629_v2 = vld [vmem:[%s13159_s1 + $0x2d0] sm:$0xff]  ;;  %v662_v4 = vld [vmem:[%s13159_s1 + $0x3d8] sm:$0xff]  ;;  %v449_v7 = vmax.f32 %v448_v0, %v422_v63 }
  0x37   : > { %6713 = vmatprep.subr.mxu1 %v665_v38  ;;  %v663_v55 = vld [vmem:[%s13159_s1 + $0x3e0] sm:$0xff]  ;;  %6662 = vmatpush3.msra.mxu0 %v615_v51  ;;  %v9068_v62 = vmax.f32 %v446_v56, %v429_v53  ;;  %v613_v8 = vld [vmem:[%s13159_s1 + $0x250] sm:$0xff]  ;;  %v646_v9 = vld [vmem:[%s13159_s1 + $0x358] sm:$0xff] }
  0x38   : > { %6714 = vmatpush3.msra.mxu1 %v649_v41  ;;  %v647_v61 = vld [vmem:[%s13159_s1 + $0x360] sm:$0xff]  ;;  %765 = vmatmul.mubr.f32.gmra.mxu0 %v9036_v48  ;;  %v628_v10 = vld [vmem:[%s13159_s1 + $0x2c8] sm:$0xff]  ;;  %v661_v11 = vld [vmem:[%s13159_s1 + $0x3d0] sm:$0xff]  ;;  %v9096_v12 = vmax.f32 %v449_v7, %v430_v3 }
  0x39   : > { %865 = vmatmul.mubr.f32.gmra.mxu1 %v9030_v44  ;;  %6715 = vmatprep.subr.mxu1 %v664_v49  ;;  %v9072_v1 = vld [vmem:[#allocation2 + $0x22] sm:$0xff]  ;;  %462 = vst [vmem:[#allocation2 + $0x51] sm:$0xff] %v9068_v62  ;;  %v407_v13 = vld [vmem:[%s8904_s9 + $0x30] sm:$0xff]  ;;  %v408_v26 = vld [vmem:[%s8904_s9 + $0x38] sm:$0xff] }
  0x3a   : > { %6716 = vmatpush3.msra.mxu1 %v648_v52  ;;  %6663 = vmatprep.subr.mxu0 %v630_v54  ;;  %v415_v15 = vld [vmem:[%s8904_s9 + $0x70] sm:$0xff]  ;;  %v612_v17 = vld [vmem:[%s13159_s1 + $0x248] sm:$0xff]  ;;  %463 = vst [vmem:[#allocation2 + $0x61] sm:$0xff] %v9096_v12  ;;  %v627_v22 = vld [vmem:[%s13159_s1 + $0x2c0] sm:$0xff] }
  0x3b   : > { %6717 = vmatprep.subr.mxu1 %v663_v55  ;;  %869 = vmatprep.mubr.f32.mxu1 %v9063_v60  ;;  %v9100_v14 = vld [vmem:[#allocation2 + $0x40] sm:$0xff]  ;;  %v423_v16 = vld [vmem:[%s8904_s9 + $0xb0] sm:$0xff]  ;;  %v451_v19 = vmax.f32 %v407_v13, %v415_v15  ;;  %v660_v24 = vld [vmem:[%s13159_s1 + $0x3c8] sm:$0xff] }
  0x3c   : > { %6664 = vmatpush3.msra.mxu0 %v614_v57  ;;  %6718 = vmatpush3.msra.mxu1 %v647_v61  ;;  %v645_v18 = vld [vmem:[%s13159_s1 + $0x350] sm:$0xff]  ;;  %v611_v27 = vld [vmem:[%s13159_s1 + $0x240] sm:$0xff]  ;;  %v644_v28 = vld [vmem:[%s13159_s1 + $0x348] sm:$0xff] }
  0x3d   : > { %870 = vmatmul.mubr.f32.gmra.mxu1 %v9072_v1  ;;  %6665 = vmatprep.subr.mxu0 %v629_v2  ;;  %v9112_v21 = vld [vmem:[#allocation2 + $0x32] sm:$0xff]  ;;  %v452_v25 = vmax.f32 %v451_v19, %v423_v16  ;;  %v659_v35 = vld [vmem:[%s13159_s1 + $0x3c0] sm:$0xff]  ;;  %v624_v50 = vld [vmem:[%s13159_s1 + $0x2a8] sm:$0xff] }
  0x3e   : > { %6719 = vmatprep.subr.mxu1 %v662_v4  ;;  %769 = vmatprep.mubr.f32.mxu0 %v9009_v33  ;;  %v431_v23 = vld [vmem:[%s8904_s9 + $0xf0] sm:$0xff]  ;;  %v416_v29 = vld [vmem:[%s8904_s9 + $0x78] sm:$0xff]  ;;  %v643_v39 = vld [vmem:[%s13159_s1 + $0x340] sm:$0xff] }
  0x3f   : > { %6666 = vmatpush3.msra.mxu0 %v613_v8  ;;  %6720 = vmatpush3.msra.mxu1 %v646_v9  ;;  %v626_v30 = vld [vmem:[%s13159_s1 + $0x2b8] sm:$0xff]  ;;  %v9134_v31 = vmax.f32 %v452_v25, %v431_v23  ;;  %v454_v34 = vmax.f32 %v408_v26, %v416_v29  ;;  %v9152_v41 = vld [vmem:[#allocation2 + $0x42] sm:$0xff]  ;;  %v625_v42 = vld [vmem:[%s13159_s1 + $0x2b0] sm:$0xff] }
  0x40   : > { %770 = vmatmul.mubr.f32.gmra.mxu0 %v9063_v60  ;;  %6667 = vmatprep.subr.mxu0 %v628_v10  ;;  %v424_v32 = vld [vmem:[%s8904_s9 + $0xb8] sm:$0xff]  ;;  %v9141_v36 = vld [vmem:[#allocation2 + $0x50] sm:$0xff]  ;;  %v608_v53 = vld [vmem:[%s13159_s1 + $0x228] sm:$0xff] }
  0x41   : > { %6721 = vmatprep.subr.mxu1 %v661_v11  ;;  %874 = vmatprep.mubr.f32.mxu1 %v9100_v14  ;;  %v432_v37 = vld [vmem:[%s8904_s9 + $0xf8] sm:$0xff]  ;;  %464 = vst [vmem:[#allocation2 + $0x71] sm:$0xff] %v9134_v31  ;;  %v455_v40 = vmax.f32 %v454_v34, %v424_v32  ;;  %v609_v47 = vld [vmem:[%s13159_s1 + $0x230] sm:$0xff]  ;;  %v9178_v52 = vld [vmem:[#allocation2 + $0x60] sm:$0xff] }
  0x42   : > { %6668 = vmatpush3.msra.mxu0 %v612_v17  ;;  %6722 = vmatpush3.msra.mxu1 %v645_v18  ;;  %v610_v38 = vld [vmem:[%s13159_s1 + $0x238] sm:$0xff]  ;;  %v657_v51 = vld [vmem:[%s13159_s1 + $0x3b0] sm:$0xff]  ;;  %v623_v56 = vld [vmem:[%s13159_s1 + $0x2a0] sm:$0xff] }
  0x43   : > { %875 = vmatmul.mubr.f32.gmra.mxu1 %v9112_v21  ;;  %6669 = vmatprep.subr.mxu0 %v627_v22  ;;  %v658_v43 = vld [vmem:[%s13159_s1 + $0x3b8] sm:$0xff]  ;;  %v9161_v46 = vmax.f32 %v455_v40, %v432_v37  ;;  %v641_v54 = vld [vmem:[%s13159_s1 + $0x330] sm:$0xff]  ;;  %v656_v57 = vld [vmem:[%s13159_s1 + $0x3a8] sm:$0xff] }
  0x44   : > { %6723 = vmatprep.subr.mxu1 %v660_v24  ;;  %774 = vmatprep.mubr.f32.mxu0 %v9032_v45  ;;  %v642_v49 = vld [vmem:[%s13159_s1 + $0x338] sm:$0xff]  ;;  %v607_v58 = vld [vmem:[%s13159_s1 + $0x220] sm:$0xff]  ;;  %v640_v59 = vld [vmem:[%s13159_s1 + $0x328] sm:$0xff] }
  0x45   : > { %6670 = vmatpush3.msra.mxu0 %v611_v27  ;;  %6724 = vmatpush3.msra.mxu1 %v644_v28  ;;  %465 = vst [vmem:[#allocation2 + $0x81] sm:$0xff] %v9161_v46  ;;  %v9187_v55 = vld [vmem:[#allocation2 + $0x52] sm:$0xff]  ;;  %v655_v63 = vld [vmem:[%s13159_s1 + $0x3a0] sm:$0xff]  ;;  %v620_v11 = vld [vmem:[%s13159_s1 + $0x288] sm:$0xff] }
  0x46   : > { %775 = vmatmul.mubr.f32.gmra.mxu0 %v9100_v14  ;;  %6671 = vmatprep.subr.mxu0 %v626_v30  ;;  %v622_v61 = vld [vmem:[%s13159_s1 + $0x298] sm:$0xff]  ;;  %v639_v3 = vld [vmem:[%s13159_s1 + $0x320] sm:$0xff]  ;;  %v621_v7 = vld [vmem:[%s13159_s1 + $0x290] sm:$0xff] }
  0x47   : > { %6725 = vmatprep.subr.mxu1 %v659_v35  ;;  %879 = vmatprep.mubr.f32.mxu1 %v9141_v36  ;;  %v606_v2 = vld [vmem:[%s13159_s1 + $0x218] sm:$0xff]  ;;  %v9219_v4 = vld [vmem:[#allocation2 + $0x62] sm:$0xff]  ;;  %v605_v9 = vld [vmem:[%s13159_s1 + $0x210] sm:$0xff] }
  0x48   : > { %6672 = vmatpush3.msra.mxu0 %v610_v38  ;;  %6726 = vmatpush3.msra.mxu1 %v643_v39  ;;  %v9210_v0 = vld [vmem:[#allocation2 + $0x70] sm:$0xff]  ;;  %v654_v8 = vld [vmem:[%s13159_s1 + $0x398] sm:$0xff]  ;;  %v604_v16 = vld [vmem:[%s13159_s1 + $0x208] sm:$0xff] }
  0x49   : > { %880 = vmatmul.mubr.f32.gmra.mxu1 %v9152_v41  ;;  %6673 = vmatprep.subr.mxu0 %v625_v42  ;;  %v638_v10 = vld [vmem:[%s13159_s1 + $0x318] sm:$0xff]  ;;  %v653_v13 = vld [vmem:[%s13159_s1 + $0x390] sm:$0xff]  ;;  %v619_v19 = vld [vmem:[%s13159_s1 + $0x280] sm:$0xff] }
  0x4a   : > { %6727 = vmatprep.subr.mxu1 %v658_v43  ;;  %779 = vmatprep.mubr.f32.mxu0 %v9068_v62  ;;  %v637_v17 = vld [vmem:[%s13159_s1 + $0x310] sm:$0xff]  ;;  %v652_v22 = vld [vmem:[%s13159_s1 + $0x388] sm:$0xff]  ;;  %v603_v23 = vld [vmem:[%s13159_s1 + $0x200] sm:$0xff] }
  0x4b   : > { %6674 = vmatpush3.msra.mxu0 %v609_v47  ;;  %6728 = vmatpush3.msra.mxu1 %v642_v49  ;;  %v9251_v18 = vld [vmem:[#allocation2 + $0x72] sm:$0xff]  ;;  %v636_v24 = vld [vmem:[%s13159_s1 + $0x308] sm:$0xff]  ;;  %v651_v25 = vld [vmem:[%s13159_s1 + $0x380] sm:$0xff] }
  0x4c   : > { %780 = vmatmul.mubr.f32.gmra.mxu0 %v9141_v36  ;;  %6675 = vmatprep.subr.mxu0 %v624_v50  ;;  %v9242_v15 = vld [vmem:[#allocation2 + $0x80] sm:$0xff]  ;;  %v682_v26 = vld [vmem:[%s13159_s1 + $0x478] sm:$0xff]  ;;  %v681_v28 = vld [vmem:[%s13159_s1 + $0x470] sm:$0xff] }
  0x4d   : > { %6729 = vmatprep.subr.mxu1 %v657_v51  ;;  %884 = vmatprep.mubr.f32.mxu1 %v9178_v52  ;;  %v635_v27 = vld [vmem:[%s13159_s1 + $0x300] sm:$0xff]  ;;  %v680_v29 = vld [vmem:[%s13159_s1 + $0x468] sm:$0xff]  ;;  %v669_v32 = vld [vmem:[%s13159_s1 + $0x410] sm:$0xff] }
  0x4e   : > { %6676 = vmatpush3.msra.mxu0 %v608_v53  ;;  %6730 = vmatpush3.msra.mxu1 %v641_v54  ;;  %v671_v30 = vld [vmem:[%s13159_s1 + $0x420] sm:$0xff]  ;;  %v668_v34 = vld [vmem:[%s13159_s1 + $0x408] sm:$0xff]  ;;  %v530_v35 = vld [vmem:[#allocation2 + $0x91] sm:$0xff] }
  0x4f   : > { %885 = vmatmul.mubr.f32.gmra.mxu1 %v9187_v55  ;;  %6677 = vmatprep.subr.mxu0 %v623_v56  ;;  %v1336_v37 = vld [vmem:[%s13161_s3 + $0x70] sm:$0xff]  ;;  %v1351_v38 = vld [vmem:[%s13161_s3 + $0xe8] sm:$0xff]  ;;  %v1350_v40 = vld [vmem:[%s13161_s3 + $0xe0] sm:$0xff] }
  0x50   : > { %6731 = vmatprep.subr.mxu1 %v656_v57  ;;  %784 = vmatprep.mubr.f32.mxu0 %v9096_v12  ;;  %v1335_v39 = vld [vmem:[%s13161_s3 + $0x68] sm:$0xff]  ;;  %v1349_v42 = vld [vmem:[%s13161_s3 + $0xd8] sm:$0xff]  ;;  %v1348_v47 = vld [vmem:[%s13161_s3 + $0xd0] sm:$0xff] }
  0x51   : > { %6678 = vmatpush3.msra.mxu0 %v607_v58  ;;  %6732 = vmatpush3.msra.mxu1 %v640_v59  ;;  %v1333_v43 = vld [vmem:[%s13161_s3 + $0x58] sm:$0xff]  ;;  %v1332_v50 = vld [vmem:[%s13161_s3 + $0x50] sm:$0xff]  ;;  %v1331_v54 = vld [vmem:[%s13161_s3 + $0x48] sm:$0xff] }
  0x52   : > { %785 = vmatmul.mubr.f32.gmra.mxu0 %v9178_v52  ;;  %6679 = vmatprep.subr.mxu0 %v622_v61  ;;  %v1369_v49 = vld [vmem:[%s13161_s3 + $0x178] sm:$0xff]  ;;  %v1384_v51 = vld [vmem:[%s13161_s3 + $0x1f0] sm:$0xff]  ;;  %v1346_v56 = vld [vmem:[%s13161_s3 + $0xc0] sm:$0xff] }
  0x53   : > { %6733 = vmatprep.subr.mxu1 %v655_v63  ;;  %889 = vmatprep.mubr.f32.mxu1 %v9210_v0  ;;  %v1368_v53 = vld [vmem:[%s13161_s3 + $0x170] sm:$0xff]  ;;  %v1367_v57 = vld [vmem:[%s13161_s3 + $0x168] sm:$0xff]  ;;  %v1330_v58 = vld [vmem:[%s13161_s3 + $0x40] sm:$0xff] }
  0x54   : > { %6680 = vmatpush3.msra.mxu0 %v606_v2  ;;  %6734 = vmatpush3.msra.mxu1 %v639_v3  ;;  %v1382_v59 = vld [vmem:[%s13161_s3 + $0x1e0] sm:$0xff]  ;;  %v1345_v61 = vld [vmem:[%s13161_s3 + $0xb8] sm:$0xff]  ;;  %v1344_v3 = vld [vmem:[%s13161_s3 + $0xb0] sm:$0xff] }
  0x55   : > { %890 = vmatmul.mubr.f32.gmra.mxu1 %v9219_v4  ;;  %6681 = vmatprep.subr.mxu0 %v621_v7  ;;  %v1366_v63 = vld [vmem:[%s13161_s3 + $0x160] sm:$0xff]  ;;  %v1381_v2 = vld [vmem:[%s13161_s3 + $0x1d8] sm:$0xff]  ;;  %v1328_v7 = vld [vmem:[%s13161_s3 + $0x30] sm:$0xff] }
  0x56   : > { %6735 = vmatprep.subr.mxu1 %v654_v8  ;;  %789 = vmatprep.mubr.f32.mxu0 %v9134_v31  ;;  %v1380_v8 = vld [vmem:[%s13161_s3 + $0x1d0] sm:$0xff] }
  0x57   : > { %6682 = vmatpush3.msra.mxu0 %v605_v9  ;;  %6736 = vmatpush3.msra.mxu1 %v638_v10  ;;  %v1343_v9 = vld [vmem:[%s13161_s3 + $0xa8] sm:$0xff]  ;;  %v1364_v10 = vld [vmem:[%s13161_s3 + $0x150] sm:$0xff] }
  0x58   : > { %790 = vmatmul.mubr.f32.gmra.mxu0 %v9210_v0  ;;  %6683 = vmatprep.subr.mxu0 %v620_v11  ;;  %v1327_v11 = vld [vmem:[%s13161_s3 + $0x28] sm:$0xff] }
  0x59   : > { %6737 = vmatprep.subr.mxu1 %v653_v13  ;;  %894 = vmatprep.mubr.f32.mxu1 %v9242_v15  ;;  %v1379_v13 = vld [vmem:[%s13161_s3 + $0x1c8] sm:$0xff] }
  0x5a   : > { %6684 = vmatpush3.msra.mxu0 %v604_v16  ;;  %6738 = vmatpush3.msra.mxu1 %v637_v17  ;;  %v1363_v16 = vld [vmem:[%s13161_s3 + $0x148] sm:$0xff]  ;;  %v1326_v17 = vld [vmem:[%s13161_s3 + $0x20] sm:$0xff] }
  0x5b   : > { %895 = vmatmul.mubr.f32.gmra.mxu1 %v9251_v18  ;;  %6685 = vmatprep.subr.mxu0 %v619_v19  ;;  %v1341_v19 = vld [vmem:[%s13161_s3 + $0x98] sm:$0xff] }
  0x5c   : > { %6739 = vmatprep.subr.mxu1 %v652_v22  ;;  %6686 = vmatpush3.msra.mxu0 %v603_v23  ;;  %v1362_v22 = vld [vmem:[%s13161_s3 + $0x140] sm:$0xff]  ;;  %v1325_v23 = vld [vmem:[%s13161_s3 + $0x18] sm:$0xff] }
  0x5d   : > { %964 = vmatprep.mubr.f32.mxu0 %v9030_v44  ;;  %6740 = vmatpush3.msra.mxu1 %v636_v24  ;;  %v678_v44 = vld [vmem:[%s13159_s1 + $0x458] sm:$0xff] }
  0x5e   : > { %965 = vmatmul.mubr.f32.vlgmr.msra.gmra.mxu0 %v8961_v5  ;;  %6741 = vmatprep.subr.mxu1 %v651_v25  ;;  %v679_v5 = vld [vmem:[%s13159_s1 + $0x460] sm:$0xff]  ;;  %v1377_v24 = vld [vmem:[%s13161_s3 + $0x1b8] sm:$0xff]  ;;  %v1340_v25 = vld [vmem:[%s13161_s3 + $0x90] sm:$0xff] }
  0x5f   : > { %7999 = vmatprep.subr.mxu0 %v682_v26  ;;  %6742 = vmatpush3.msra.mxu1 %v635_v27  ;;  %v1324_v27 = vld [vmem:[%s13161_s3 + $0x10] sm:$0xff] }
  0x60   : > { %1069 = vmatprep.mubr.f32.mxu1 %v8986_v20  ;;  %8000 = vmatpush3.msra.mxu0 %v682_v26  ;;  %v1361_v26 = vld [vmem:[%s13161_s3 + $0x138] sm:$0xff] }
  0x61   : > { %1070 = vmatmul.mubr.f32.vlgmr.msra.gmra.mxu1 %v9036_v48  ;;  %8001 = vmatprep.subr.mxu0 %v681_v28  ;;  %v677_v48 = vld [vmem:[%s13159_s1 + $0x450] sm:$0xff] }
  0x62   : > { %969 = vmatprep.mubr.f32.mxu0 %v9072_v1  ;;  %8002 = vmatpush3.msra.mxu0 %v681_v28  ;;  %v1376_v28 = vld [vmem:[%s13161_s3 + $0x1b0] sm:$0xff] }
  0x63   : > { %970 = vmatmul.mubr.f32.gmra.mxu0 %v8986_v20  ;;  %8003 = vmatprep.subr.mxu0 %v680_v29  ;;  %v676_v20 = vld [vmem:[%s13159_s1 + $0x448] sm:$0xff] }
  0x64   : > { %1074 = vmatprep.mubr.f32.mxu1 %v9009_v33  ;;  %8004 = vmatpush3.msra.mxu0 %v680_v29  ;;  %v1339_v29 = vld [vmem:[%s13161_s3 + $0x88] sm:$0xff] }
  0x65   : > { %1075 = vmatmul.mubr.f32.gmra.mxu1 %v9063_v60  ;;  %8005 = vmatprep.subr.mxu0 %v679_v5  ;;  %v675_v60 = vld [vmem:[%s13159_s1 + $0x440] sm:$0xff] }
  0x66   : > { %974 = vmatprep.mubr.f32.mxu0 %v9112_v21  ;;  %8006 = vmatpush3.msra.mxu0 %v679_v5  ;;  %v1360_v5 = vld [vmem:[%s13161_s3 + $0x130] sm:$0xff] }
  0x67   : > { %975 = vmatmul.mubr.f32.gmra.mxu0 %v9009_v33  ;;  %8007 = vmatprep.subr.mxu0 %v678_v44  ;;  %v674_v33 = vld [vmem:[%s13159_s1 + $0x438] sm:$0xff] }
  0x68   : > { %1079 = vmatprep.mubr.f32.mxu1 %v9032_v45  ;;  %8008 = vmatpush3.msra.mxu0 %v678_v44  ;;  %v1323_v44 = vld [vmem:[%s13161_s3 + $0x8] sm:$0xff] }
  0x69   : > { %1080 = vmatmul.mubr.f32.gmra.mxu1 %v9100_v14  ;;  %8009 = vmatprep.subr.mxu0 %v677_v48  ;;  %v673_v14 = vld [vmem:[%s13159_s1 + $0x430] sm:$0xff] }
  0x6a   : > { %979 = vmatprep.mubr.f32.mxu0 %v9152_v41  ;;  %8010 = vmatpush3.msra.mxu0 %v677_v48  ;;  %v1375_v48 = vld [vmem:[%s13161_s3 + $0x1a8] sm:$0xff] }
  0x6b   : > { %980 = vmatmul.mubr.f32.gmra.mxu0 %v9032_v45  ;;  %8011 = vmatprep.subr.mxu0 %v676_v20  ;;  %v672_v45 = vld [vmem:[%s13159_s1 + $0x428] sm:$0xff] }
  0x6c   : > { %1084 = vmatprep.mubr.f32.mxu1 %v9068_v62  ;;  %8012 = vmatpush3.msra.mxu0 %v676_v20  ;;  %v1338_v20 = vld [vmem:[%s13161_s3 + $0x80] sm:$0xff] }
  0x6d   : > { %1085 = vmatmul.mubr.f32.gmra.mxu1 %v9141_v36  ;;  %8013 = vmatprep.subr.mxu0 %v675_v60  ;;  %v667_v36 = vld [vmem:[%s13159_s1 + $0x400] sm:$0xff] }
  0x6e   : > { %984 = vmatprep.mubr.f32.mxu0 %v9187_v55  ;;  %8014 = vmatpush3.msra.mxu0 %v675_v60  ;;  %v1359_v60 = vld [vmem:[%s13161_s3 + $0x128] sm:$0xff] }
  0x6f   : > { %985 = vmatmul.mubr.f32.gmra.mxu0 %v9068_v62  ;;  %8015 = vmatprep.subr.mxu0 %v674_v33  ;;  %v670_v62 = vld [vmem:[%s13159_s1 + $0x418] sm:$0xff] }
  0x70   : > { %1089 = vmatprep.mubr.f32.mxu1 %v9096_v12  ;;  %8016 = vmatpush3.msra.mxu0 %v674_v33  ;;  %v1322_v33 = vld [vmem:[%s13161_s3] sm:$0xff] }
  0x71   : > { %1090 = vmatmul.mubr.f32.gmra.mxu1 %v9178_v52  ;;  %8017 = vmatprep.subr.mxu0 %v673_v14  ;;  %v1347_v52 = vld [vmem:[%s13161_s3 + $0xc8] sm:$0xff] }
  0x72   : > { %989 = vmatprep.mubr.f32.mxu0 %v9219_v4  ;;  %8018 = vmatpush3.msra.mxu0 %v673_v14  ;;  %v1257_v14 = vld [vmem:[#allocation2 + $0xa1] sm:$0xff] }
  0x73   : > { %990 = vmatmul.mubr.f32.gmra.mxu0 %v9096_v12  ;;  %8019 = vmatprep.subr.mxu0 %v672_v45  ;;  %v513_v12 = vld [vmem:[#allocation2 + $0x82] sm:$0xff] }
  0x74   : > { %1094 = vmatprep.mubr.f32.mxu1 %v9134_v31  ;;  %8020 = vmatpush3.msra.mxu0 %v672_v45  ;;  %v1374_v45 = vld [vmem:[%s13161_s3 + $0x1a0] sm:$0xff] }
  0x75   : > { %1095 = vmatmul.mubr.f32.gmra.mxu1 %v9210_v0  ;;  %8021 = vmatprep.subr.mxu0 %v671_v30  ;;  %v1329_v0 = vld [vmem:[%s13161_s3 + $0x38] sm:$0xff] }
  0x76   : > { %994 = vmatprep.mubr.f32.mxu0 %v9251_v18  ;;  %8022 = vmatpush3.msra.mxu0 %v671_v30  ;;  %v1358_v30 = vld [vmem:[%s13161_s3 + $0x120] sm:$0xff] }
  0x77   : > { %995 = vmatmul.mubr.f32.gmra.mxu0 %v9134_v31  ;;  %8023 = vmatprep.subr.mxu0 %v670_v62  ;;  %v538_v31 = vld [vmem:[#allocation2 + $0x92] sm:$0xff] }
  0x78   : > { %1099 = vmatprep.mubr.f32.mxu1 %v9161_v46  ;;  %8024 = vmatpush3.msra.mxu0 %v670_v62  ;;  %v1373_v62 = vld [vmem:[%s13161_s3 + $0x198] sm:$0xff] }
  0x79   : > { %1100 = vmatmul.mubr.f32.gmra.mxu1 %v9242_v15  ;;  %8025 = vmatprep.subr.mxu0 %v669_v32  ;;  %v1342_v15 = vld [vmem:[%s13161_s3 + $0xa0] sm:$0xff] }
  0x7a   : > { %999 = vmatprep.mubr.f32.mxu0 %v513_v12  ;;  %8026 = vmatpush3.msra.mxu0 %v669_v32  ;;  %v9528_v32 = vld [vmem:[#allocation2] sm:$0xff] }
  0x7b   : > { %1000 = vmatmul.mubr.f32.gmra.mxu0 %v9161_v46  ;;  %8027 = vmatprep.subr.mxu0 %v668_v34  ;;  %v1385_v46 = vld [vmem:[%s13161_s3 + $0x1f8] sm:$0xff]  ;;  %13215 = vst [vmem:[#allocation4_spill] sm:$0xff] %v9528_v32 }
  0x7c   : > { %1104 = vmatprep.mubr.f32.mxu1 %v530_v35  ;;  %8028 = vmatpush3.msra.mxu0 %v668_v34  ;;  %v1372_v34 = vld [vmem:[%s13161_s3 + $0x190] sm:$0xff] }
  0x7d   : > { %1105 = vmatmul.mubr.f32.gmra.mxu1 %v8667_v6  ;;  %8029 = vmatprep.subr.mxu0 %v667_v36  ;;  %v1353_v6 = vld [vmem:[%s13161_s3 + $0xf8] sm:$0xff]  ;;  %v1356_v35 = vld [vmem:[%s13161_s3 + $0x110] sm:$0xff] }
  0x7e   : > { %8030 = vmatpush3.msra.mxu0 %v667_v36  ;;  %8031 = vmatprep.mubr.f32.mxu0 %v9072_v1  ;;  %v1337_v1 = vld [vmem:[%s13161_s3 + $0x78] sm:$0xff] }
  0x7f   : > { %8032 = vmatmul.mubr.f32.vlgmr.msra.gmra.mxu0 %v9112_v21  ;;  %6791 = vmatprep.subr.mxu1 %v1353_v6  ;;  %v1352_v21 = vld [vmem:[%s13161_s3 + $0xf0] sm:$0xff]  ;;  %v1417_v36 = vld [vmem:[%s13161_s3 + $0x2f8] sm:$0xff] }
  0x80   : > { %8034 = vmatprep.mubr.f32.mxu0 %v9152_v41  ;;  %6792 = vmatpush3.msra.mxu1 %v1337_v1  ;;  %v1334_v41 = vld [vmem:[%s13161_s3 + $0x60] sm:$0xff]  ;;  %v1401_v6 = vld [vmem:[%s13161_s3 + $0x278] sm:$0xff]  ;;  %v1355_v1 = vld [vmem:[%s13161_s3 + $0x108] sm:$0xff] }
  0x81   : > { %6793 = vmatprep.subr.mxu1 %v1352_v21  ;;  %6847 = vmatprep.subr.mxu0 %v1385_v46  ;;  %v1416_v21 = vld [vmem:[%s13161_s3 + $0x2f0] sm:$0xff]  ;;  %v1398_v46 = vld [vmem:[%s13161_s3 + $0x260] sm:$0xff] }
  0x82   : > { %6794 = vmatpush3.msra.mxu1 %v1336_v37  ;;  %6848 = vmatpush3.msra.mxu0 %v1369_v49  ;;  %v1370_v37 = vld [vmem:[%s13161_s3 + $0x180] sm:$0xff]  ;;  %v1397_v49 = vld [vmem:[%s13161_s3 + $0x258] sm:$0xff] }
  0x83   : > { %8035 = vmatmul.mubr.f32.gmra.mxu0 %v9187_v55  ;;  %6795 = vmatprep.subr.mxu1 %v1351_v38  ;;  %v1383_v55 = vld [vmem:[%s13161_s3 + $0x1e8] sm:$0xff]  ;;  %v1400_v38 = vld [vmem:[%s13161_s3 + $0x270] sm:$0xff] }
  0x84   : > { %8037 = vmatprep.mubr.f32.mxu0 %v9219_v4  ;;  %6796 = vmatpush3.msra.mxu1 %v1335_v39  ;;  %v1365_v4 = vld [vmem:[%s13161_s3 + $0x158] sm:$0xff]  ;;  %v1354_v39 = vld [vmem:[%s13161_s3 + $0x100] sm:$0xff] }
  0x85   : > { %6797 = vmatprep.subr.mxu1 %v1350_v40  ;;  %6849 = vmatprep.subr.mxu0 %v1384_v51  ;;  %v1415_v40 = vld [vmem:[%s13161_s3 + $0x2e8] sm:$0xff]  ;;  %v1396_v51 = vld [vmem:[%s13161_s3 + $0x250] sm:$0xff] }
  0x86   : > { %6798 = vmatpush3.msra.mxu1 %v1334_v41  ;;  %6850 = vmatpush3.msra.mxu0 %v1368_v53  ;;  %v1449_v41 = vld [vmem:[%s13161_s3 + $0x3f8] sm:$0xff]  ;;  %v1395_v53 = vld [vmem:[%s13161_s3 + $0x248] sm:$0xff] }
  0x87   : > { %8038 = vmatmul.mubr.f32.gmra.mxu0 %v9251_v18  ;;  %6799 = vmatprep.subr.mxu1 %v1349_v42  ;;  %v1378_v18 = vld [vmem:[%s13161_s3 + $0x1c0] sm:$0xff]  ;;  %v1399_v42 = vld [vmem:[%s13161_s3 + $0x268] sm:$0xff] }
  0x88   : > { %8040 = vmatprep.mubr.f32.mxu0 %v513_v12  ;;  %6800 = vmatpush3.msra.mxu1 %v1333_v43  ;;  %v1357_v12 = vld [vmem:[%s13161_s3 + $0x118] sm:$0xff]  ;;  %v1414_v43 = vld [vmem:[%s13161_s3 + $0x2e0] sm:$0xff] }
  0x89   : > { %6801 = vmatprep.subr.mxu1 %v1348_v47  ;;  %6851 = vmatprep.subr.mxu0 %v1383_v55  ;;  %v1413_v47 = vld [vmem:[%s13161_s3 + $0x2d8] sm:$0xff]  ;;  %v1394_v55 = vld [vmem:[%s13161_s3 + $0x240] sm:$0xff] }
  0x8a   : > { %6802 = vmatpush3.msra.mxu1 %v1332_v50  ;;  %6852 = vmatpush3.msra.mxu0 %v1367_v57  ;;  %v1412_v50 = vld [vmem:[%s13161_s3 + $0x2d0] sm:$0xff]  ;;  %v1393_v57 = vld [vmem:[%s13161_s3 + $0x238] sm:$0xff] }
  0x8b   : > { %8041 = vmatmul.mubr.f32.gmra.mxu0 %v538_v31  ;;  %6803 = vmatprep.subr.mxu1 %v1347_v52  ;;  %v1371_v31 = vld [vmem:[%s13161_s3 + $0x188] sm:$0xff] }
  0x8c   : > { %6804 = vmatpush3.msra.mxu1 %v1331_v54  ;;  %6853 = vmatprep.subr.mxu0 %v1382_v59  ;;  %v1411_v52 = vld [vmem:[%s13161_s3 + $0x2c8] sm:$0xff]  ;;  %v1410_v54 = vld [vmem:[%s13161_s3 + $0x2c0] sm:$0xff]  ;;  %v1392_v59 = vld [vmem:[%s13161_s3 + $0x230] sm:$0xff] }
  0x8d   : > { %6805 = vmatprep.subr.mxu1 %v1346_v56  ;;  %6854 = vmatpush3.msra.mxu0 %v1366_v63  ;;  %v1409_v56 = vld [vmem:[%s13161_s3 + $0x2b8] sm:$0xff]  ;;  %v1391_v63 = vld [vmem:[%s13161_s3 + $0x228] sm:$0xff] }
  0x8e   : > { %6806 = vmatpush3.msra.mxu1 %v1330_v58  ;;  %6855 = vmatprep.subr.mxu0 %v1381_v2  ;;  %v1408_v58 = vld [vmem:[%s13161_s3 + $0x2b0] sm:$0xff]  ;;  %v1390_v2 = vld [vmem:[%s13161_s3 + $0x220] sm:$0xff] }
  0x8f   : > { %6807 = vmatprep.subr.mxu1 %v1345_v61  ;;  %6856 = vmatpush3.msra.mxu0 %v1365_v4  ;;  %v1407_v61 = vld [vmem:[%s13161_s3 + $0x2a8] sm:$0xff]  ;;  %v1389_v4 = vld [vmem:[%s13161_s3 + $0x218] sm:$0xff] }
  0x90   : > { %6808 = vmatpush3.msra.mxu1 %v1329_v0  ;;  %6857 = vmatprep.subr.mxu0 %v1380_v8  ;;  %v1406_v0 = vld [vmem:[%s13161_s3 + $0x2a0] sm:$0xff]  ;;  %v1388_v8 = vld [vmem:[%s13161_s3 + $0x210] sm:$0xff] }
  0x91   : > { %6809 = vmatprep.subr.mxu1 %v1344_v3  ;;  %6858 = vmatpush3.msra.mxu0 %v1364_v10  ;;  %v1405_v3 = vld [vmem:[%s13161_s3 + $0x298] sm:$0xff]  ;;  %v1387_v10 = vld [vmem:[%s13161_s3 + $0x208] sm:$0xff] }
  0x92   : > { %6810 = vmatpush3.msra.mxu1 %v1328_v7  ;;  %6859 = vmatprep.subr.mxu0 %v1379_v13  ;;  %v1404_v7 = vld [vmem:[%s13161_s3 + $0x290] sm:$0xff]  ;;  %v1386_v13 = vld [vmem:[%s13161_s3 + $0x200] sm:$0xff] }
  0x93   : > { %6811 = vmatprep.subr.mxu1 %v1343_v9  ;;  %6860 = vmatpush3.msra.mxu0 %v1363_v16  ;;  %v1403_v9 = vld [vmem:[%s13161_s3 + $0x288] sm:$0xff] }
  0x94   : > { %6812 = vmatpush3.msra.mxu1 %v1327_v11  ;;  %6861 = vmatprep.subr.mxu0 %v1378_v18  ;;  %v1402_v11 = vld [vmem:[%s13161_s3 + $0x280] sm:$0xff] }
  0x95   : > { %6813 = vmatprep.subr.mxu1 %v1342_v15  ;;  %6862 = vmatpush3.msra.mxu0 %v1362_v22  ;;  %v9654_v15 = vld [vmem:[%s13161_s3 + $0x478] sm:$0xff] }
  0x96   : > { %6814 = vmatpush3.msra.mxu1 %v1326_v17  ;;  %6863 = vmatprep.subr.mxu0 %v1377_v24  ;;  %13216 = vst [vmem:[#allocation5_spill] sm:$0xff] %v9654_v15 }
  0x97   : > { %6815 = vmatprep.subr.mxu1 %v1341_v19  ;;  %6864 = vmatpush3.msra.mxu0 %v1361_v26 }
  0x98   : > { %6816 = vmatpush3.msra.mxu1 %v1325_v23  ;;  %6865 = vmatprep.subr.mxu0 %v1376_v28 }
  0x99   : > { %6817 = vmatprep.subr.mxu1 %v1340_v25  ;;  %6866 = vmatpush3.msra.mxu0 %v1360_v5 }
  0x9a   : > { %6818 = vmatpush3.msra.mxu1 %v1324_v27  ;;  %6867 = vmatprep.subr.mxu0 %v1375_v48 }
  0x9b   : > { %6819 = vmatprep.subr.mxu1 %v1339_v29  ;;  %6868 = vmatpush3.msra.mxu0 %v1359_v60 }
  0x9c   : > { %6820 = vmatpush3.msra.mxu1 %v1323_v44  ;;  %6869 = vmatprep.subr.mxu0 %v1374_v45 }
  0x9d   : > { %6821 = vmatprep.subr.mxu1 %v1338_v20  ;;  %1537 = vmatprep.mubr.f32.mxu1 %v1257_v14 }
  0x9e   : > { %6822 = vmatpush3.msra.mxu1 %v1322_v33  ;;  %6870 = vmatpush3.msra.mxu0 %v1358_v30 }
  0x9f   : > { %1538 = vmatmul.mubr.f32.vlgmr.msra.gmra.mxu1 %v9528_v32  ;;  %6871 = vmatprep.subr.mxu0 %v1373_v62 }
  0xa0   : > { %6872 = vmatpush3.msra.mxu0 %v1357_v12  ;;  %6903 = vmatprep.subr.mxu1 %v1417_v36 }
  0xa1   : > { %6873 = vmatprep.subr.mxu0 %v1372_v34  ;;  %6904 = vmatpush3.msra.mxu1 %v1401_v6 }
  0xa2   : > { %6874 = vmatpush3.msra.mxu0 %v1356_v35  ;;  %6905 = vmatprep.subr.mxu1 %v1416_v21 }
  0xa3   : > { %6875 = vmatprep.subr.mxu0 %v1371_v31  ;;  %6906 = vmatpush3.msra.mxu1 %v1400_v38 }
  0xa4   : > { %6876 = vmatpush3.msra.mxu0 %v1355_v1  ;;  %6907 = vmatprep.subr.mxu1 %v1415_v40 }
  0xa5   : > { %6877 = vmatprep.subr.mxu0 %v1370_v37  ;;  %6908 = vmatpush3.msra.mxu1 %v1399_v42 }
  0xa6   : > { %6878 = vmatpush3.msra.mxu0 %v1354_v39  ;;  %6909 = vmatprep.subr.mxu1 %v1414_v43 }
  0xa7   : > { %6959 = vmatprep.subr.mxu0 %v1449_v41  ;;  %6910 = vmatpush3.msra.mxu1 %v1398_v46 }
  0xa8   : > { %6911 = vmatprep.subr.mxu1 %v1413_v47 }
  0xa9   : > { %6912 = vmatpush3.msra.mxu1 %v1397_v49 }
  0xaa   : > { %6913 = vmatprep.subr.mxu1 %v1412_v50 }
  0xab   : > { %6914 = vmatpush3.msra.mxu1 %v1396_v51 }
  0xac   : > { %6915 = vmatprep.subr.mxu1 %v1411_v52 }
  0xad   : > { %6916 = vmatpush3.msra.mxu1 %v1395_v53 }
  0xae   : > { %6917 = vmatprep.subr.mxu1 %v1410_v54 }
  0xaf   : > { %6918 = vmatpush3.msra.mxu1 %v1394_v55 }
  0xb0   : > { %6919 = vmatprep.subr.mxu1 %v1409_v56 }
  0xb1   : > { %6920 = vmatpush3.msra.mxu1 %v1393_v57 }
  0xb2   : > { %6921 = vmatprep.subr.mxu1 %v1408_v58 }
  0xb3   : > { %6922 = vmatpush3.msra.mxu1 %v1392_v59 }
  0xb4   : > { %6923 = vmatprep.subr.mxu1 %v1407_v61  ;;  %v6289_v61 = vld [vmem:[%s13160_s2] ss:$0 sm:$0xff] }
  0xb5   : > { %6924 = vmatpush3.msra.mxu1 %v1391_v63 }
  0xb6   : > { %6925 = vmatprep.subr.mxu1 %v1406_v0 }
  0xb7   : > { %6926 = vmatpush3.msra.mxu1 %v1390_v2 }
  0xb8   : > { %6927 = vmatprep.subr.mxu1 %v1405_v3 }
  0xb9   : > { %6928 = vmatpush3.msra.mxu1 %v1389_v4 }
  0xba   : > { %6929 = vmatprep.subr.mxu1 %v1404_v7 }
  0xbb   : > { %6930 = vmatpush3.msra.mxu1 %v1388_v8 }
  0xbc   : > { %6931 = vmatprep.subr.mxu1 %v1403_v9 }
  0xbd   : > { %6932 = vmatpush3.msra.mxu1 %v1387_v10 }
  0xbe   : > { %6933 = vmatprep.subr.mxu1 %v1402_v11 }
  0xbf   : > { %6934 = vmatpush3.msra.mxu1 %v1386_v13 }
  0xc0   : > { %8043 = vmatprep.subr.mxu1 %v9654_v15 }
  0xec   : > { %v6575_v16 = vpop.f32.mrf.mxu0 }
  0xee   : > { %v6576_v17 = vpop.f32.mrf.mxu0 }
  0xef   : > { %v6577_v57 = vadd.f32 %v6576_v17, %v6575_v16 }
  0xf1   : > { %v757_v3 = vadd.f32 %v6577_v57, %v6289_v61 }
  0xf4   : > { %v6578_v19 = vpop.f32.mrf.mxu0 }
  0xf5   : > { %v6631_v18 = vpop.f32.mrf.mxu1 }
  0xf6   : > { %v6579_v23 = vpop.f32.mrf.mxu0 }
  0xf7   : > { %v6632_v22 = vpop.f32.mrf.mxu1  ;;  %v6580_v63 = vadd.f32 %v6579_v23, %v6578_v19 }
  0xf8   : > { %v6581_v26 = vpop.f32.mrf.mxu0  ;;  %v6633_v4 = vadd.f32 %v6632_v22, %v6631_v18 }
  0xf9   : > { %v6634_v24 = vpop.f32.mrf.mxu1  ;;  %v762_v9 = vadd.f32 %v6580_v63, %v6289_v61 }
  0xfa   : > { %v6582_v27 = vpop.f32.mrf.mxu0 }
  0xfb   : > { %v6635_v25 = vpop.f32.mrf.mxu1  ;;  %v6583_v13 = vadd.f32 %v6582_v27, %v6581_v26 }
  0xfc   : > { %v6636_v10 = vadd.f32 %v6635_v25, %v6634_v24 }
  0xfd   : > { %v9657_v28 = vpop.f32.mrf.mxu1  ;;  %v767_v18 = vadd.f32 %v6583_v13, %v6289_v61 }
  0xfe   : > { %v867_v23 = vadd.f32 %v6636_v10, %v762_v9 }
  0xff   : > { %v9659_v29 = vpop.f32.mrf.mxu1 }
 0x100   : > { %v6584_v5 = vpop.f32.mrf.mxu0  ;;  %v6639_v22 = vadd.f32 %v9659_v29, %v9657_v28 }
 0x102   : > { %v6585_v44 = vpop.f32.mrf.mxu0 }
 0x103   : > { %v6640_v48 = vpop.f32.mrf.mxu1  ;;  %v6586_v11 = vadd.f32 %v6585_v44, %v6584_v5 }
 0x105   : > { %v6641_v20 = vpop.f32.mrf.mxu1 }
 0x106   : > { %v6587_v60 = vpop.f32.mrf.mxu0 }
 0x108   : > { %v6588_v33 = vpop.f32.mrf.mxu0 }
 0x109   : > { %v6643_v14 = vpop.f32.mrf.mxu1  ;;  %v6589_v16 = vadd.f32 %v6588_v33, %v6587_v60 }
 0x10b   : > { %v6644_v45 = vpop.f32.mrf.mxu1  ;;  %v777_v63 = vadd.f32 %v6589_v16, %v6289_v61 }
 0x10c   : > { %v6590_v30 = vpop.f32.mrf.mxu0  ;;  %v6645_v27 = vadd.f32 %v6644_v45, %v6643_v14 }
 0x10e   : > { %v6591_v62 = vpop.f32.mrf.mxu0 }
 0x10f   : > { %v9661_v12 = vpop.f32.mrf.mxu1 }
 0x111   : > { %v6647_v34 = vpop.f32.mrf.mxu1 }
 0x112   : > { %v9663_v35 = vpop.f32.mrf.mxu0 }
 0x114   : > { %v9665_v36 = vpop.f32.mrf.mxu0 }
 0x115   : > { %v9667_v31 = vpop.f32.mrf.mxu1 }
 0x116   : > { %13217 = vst [vmem:[#allocation6_spill] sm:$0xff] %v9667_v31  ;;  %v6592_v31 = vadd.f32 %v6591_v62, %v6590_v30  ;;  %v6648_v30 = vadd.f32 %v6647_v34, %v9661_v12 }
 0x117   : > { %v9669_v6 = vpop.f32.mrf.mxu1 }
 0x118   : > { %13218 = vst [vmem:[#allocation7_spill] sm:$0xff] %v9669_v6  ;;  %v6596_v1 = vpop.f32.mrf.mxu0  ;;  %v862_v6 = vadd.f32 %v6633_v4, %v757_v3  ;;  %v782_v33 = vadd.f32 %v6592_v31, %v6289_v61 }
 0x11a   : > { %v6597_v21 = vpop.f32.mrf.mxu0 }
 0x11b   : > { %v9671_v37 = vpop.f32.mrf.mxu1  ;;  %v6598_v24 = vadd.f32 %v6597_v21, %v6596_v1  ;;  %v872_v1 = vadd.f32 %v6639_v22, %v767_v18 }
 0x11d   : > { %v9673_v38 = vpop.f32.mrf.mxu1  ;;  %v792_v21 = vadd.f32 %v6598_v24, %v6289_v61 }
 0x11e   : > { %13219 = vst [vmem:[#allocation8_spill] sm:$0xff] %v9673_v38  ;;  %v6687_v39 = vpop.f32.mrf.mxu0  ;;  %v772_v38 = vadd.f32 %v6586_v11, %v6289_v61 }
 0x120   : > { %v6688_v40 = vpop.f32.mrf.mxu0 }
 0x121   : > { %v6743_v41 = vpop.f32.mrf.mxu1  ;;  %v6689_v57 = vadd.f32 %v6688_v40, %v6687_v39  ;;  %v6595_v39 = vadd.f32 %v9665_v36, %v9663_v35 }
 0x123   : > { %v6690_v42 = vpop.f32.mrf.mxu0  ;;  %v6744_v43 = vpop.f32.mrf.mxu1  ;;  %v967_v28 = vadd.f32 %v6689_v57, %v862_v6  ;;  %v787_v36 = vadd.f32 %v6595_v39, %v6289_v61  ;;  %v13224_v6 = vld [vmem:[#allocation6_spill] sm:$0xff] }
 0x124   : > { %v6745_v29 = vadd.f32 %v6744_v43, %v6743_v41  ;;  %v13225_v41 = vld [vmem:[#allocation7_spill] sm:$0xff] }
 0x125   : > { %v6691_v46 = vpop.f32.mrf.mxu0  ;;  %v6746_v47 = vpop.f32.mrf.mxu1  ;;  %v13222_v40 = vld [vmem:[#allocation8_spill] sm:$0xff]  ;;  %v6651_v43 = vadd.f32 %v13225_v41, %v13224_v6 }
 0x126   : > { %v6692_v15 = vadd.f32 %v6691_v46, %v6690_v42  ;;  %v6654_v14 = vadd.f32 %v13222_v40, %v9671_v37  ;;  %v882_v46 = vadd.f32 %v6645_v27, %v777_v63  ;;  %v1446_v41 = vld [vmem:[%s13161_s3 + $0x3e0] sm:$0xff] }
 0x127   : > { %v6693_v49 = vpop.f32.mrf.mxu0  ;;  %v6747_v50 = vpop.f32.mrf.mxu1 }
 0x128   : > { %v972_v5 = vadd.f32 %v6692_v15, %v867_v23  ;;  %v6748_v44 = vadd.f32 %v6747_v50, %v6746_v47  ;;  %v897_v37 = vadd.f32 %v6654_v14, %v792_v21  ;;  %v1265_v14 = vld [vmem:[#allocation2 + $0xa2] sm:$0xff] }
 0x129   : > { %v6694_v51 = vpop.f32.mrf.mxu0  ;;  %v9675_v52 = vpop.f32.mrf.mxu1 }
 0x12a   : > { %13220 = vst [vmem:[#allocation9_spill] sm:$0xff] %v9675_v52  ;;  %v6695_v62 = vadd.f32 %v6694_v51, %v6693_v49  ;;  %v1077_v34 = vadd.f32 %v6748_v44, %v972_v5  ;;  %v887_v49 = vadd.f32 %v6648_v30, %v782_v33 }
 0x12b   : > { %v6696_v53 = vpop.f32.mrf.mxu0  ;;  %v6750_v54 = vpop.f32.mrf.mxu1 }
 0x12c   : > { %v977_v50 = vadd.f32 %v6695_v62, %v872_v1 }
 0x12d   : > { %v6697_v55 = vpop.f32.mrf.mxu0  ;;  %v6752_v56 = vpop.f32.mrf.mxu1 }
 0x12e   : > { %v6698_v60 = vadd.f32 %v6697_v55, %v6696_v53 }
 0x12f   : > { %v6699_v58 = vpop.f32.mrf.mxu0  ;;  %v6753_v59 = vpop.f32.mrf.mxu1 }
 0x130   : > { %v6754_v47 = vadd.f32 %v6753_v59, %v6752_v56 }
 0x131   : > { %v6700_v0 = vpop.f32.mrf.mxu0  ;;  %v9680_v2 = vpop.f32.mrf.mxu1 }
 0x132   : > { %13221 = vst [vmem:[#allocation10_spill] sm:$0xff] %v9680_v2  ;;  %v6642_v2 = vadd.f32 %v6641_v20, %v6640_v48  ;;  %v6701_v53 = vadd.f32 %v6700_v0, %v6699_v58 }
 0x133   : > { %v6702_v7 = vpop.f32.mrf.mxu0  ;;  %v9682_v8 = vpop.f32.mrf.mxu1 }
 0x134   : > { %v877_v20 = vadd.f32 %v6642_v2, %v772_v38  ;;  %v13223_v38 = vld [vmem:[#allocation9_spill] sm:$0xff]  ;;  %v1072_v2 = vadd.f32 %v6745_v29, %v967_v28  ;;  %v987_v13 = vadd.f32 %v6701_v53, %v882_v46 }
 0x135   : > { %v6703_v17 = vpop.f32.mrf.mxu0  ;;  %v6758_v32 = vpop.f32.mrf.mxu1  ;;  %v6751_v51 = vadd.f32 %v6750_v54, %v13223_v38  ;;  %v1432_v38 = vld [vmem:[%s13161_s3 + $0x370] sm:$0xff] }
 0x136   : > { %v6704_v15 = vadd.f32 %v6703_v17, %v6702_v7  ;;  %v982_v31 = vadd.f32 %v6698_v60, %v877_v20 }
 0x137   : > { %v6705_v52 = vpop.f32.mrf.mxu0  ;;  %v6759_v19 = vpop.f32.mrf.mxu1  ;;  %v1082_v16 = vadd.f32 %v6751_v51, %v977_v50  ;;  %v1447_v51 = vld [vmem:[%s13161_s3 + $0x3e8] sm:$0xff] }
 0x138   : > { %v992_v3 = vadd.f32 %v6704_v15, %v887_v49  ;;  %v6760_v4 = vadd.f32 %v6759_v19, %v6758_v32  ;;  %v1087_v11 = vadd.f32 %v6754_v47, %v982_v31  ;;  %v892_v32 = vadd.f32 %v6651_v43, %v787_v36  ;;  %v1433_v47 = vld [vmem:[%s13161_s3 + $0x378] sm:$0xff]  ;;  %v1431_v36 = vld [vmem:[%s13161_s3 + $0x368] sm:$0xff]  ;;  %v1430_v43 = vld [vmem:[%s13161_s3 + $0x360] sm:$0xff] }
 0x139   : > { %v6706_v25 = vpop.f32.mrf.mxu0  ;;  %v9686_v26 = vpop.f32.mrf.mxu1  ;;  %v13226_v54 = vld [vmem:[#allocation10_spill] sm:$0xff] }
 0x13a   : > { %v6757_v58 = vadd.f32 %v9682_v8, %v13226_v54  ;;  %v6707_v61 = vadd.f32 %v6706_v25, %v6705_v52  ;;  %v1097_v63 = vadd.f32 %v6760_v4, %v992_v3  ;;  %v1444_v3 = vld [vmem:[%s13161_s3 + $0x3d0] sm:$0xff]  ;;  %v1441_v54 = vld [vmem:[%s13161_s3 + $0x3b8] sm:$0xff] }
 0x13b   : > { %v6708_v42 = vpop.f32.mrf.mxu0  ;;  %v6762_v48 = vpop.f32.mrf.mxu1 }
 0x13c   : > { %v997_v52 = vadd.f32 %v6707_v61, %v892_v32  ;;  %v6763_v25 = vadd.f32 %v6762_v48, %v9686_v26  ;;  %v1092_v44 = vadd.f32 %v6757_v58, %v987_v13  ;;  %v1426_v13 = vld [vmem:[%s13161_s3 + $0x340] sm:$0xff]  ;;  %v1425_v58 = vld [vmem:[%s13161_s3 + $0x338] sm:$0xff]  ;;  %v1423_v32 = vld [vmem:[%s13161_s3 + $0x328] sm:$0xff] }
 0x13d   : > { %v6709_v45 = vpop.f32.mrf.mxu0  ;;  %v6764_v12 = vpop.f32.mrf.mxu1 }
 0x13e   : > { %v6710_v7 = vadd.f32 %v6709_v45, %v6708_v42  ;;  %v1102_v28 = vadd.f32 %v6763_v25, %v997_v52  ;;  %v1436_v25 = vld [vmem:[%s13161_s3 + $0x390] sm:$0xff] }
 0x13f   : > { %v8033_v35 = vpop.f32.mrf.mxu0  ;;  %v6765_v56 = vpop.f32.mrf.mxu1 }
 0x140   : > { %v1182_v55 = vadd.f32 %v8033_v35, %v1077_v34  ;;  %v1002_v19 = vadd.f32 %v6710_v7, %v897_v37  ;;  %v6766_v18 = vadd.f32 %v6765_v56, %v6764_v12  ;;  %v1448_v12 = vld [vmem:[%s13161_s3 + $0x3f0] sm:$0xff]  ;;  %v1427_v56 = vld [vmem:[%s13161_s3 + $0x348] sm:$0xff] }
 0x141   : > { %v1176_v9 = vpop.f32.mrf.mxu0  ;;  %v1428_v7 = vld [vmem:[%s13161_s3 + $0x350] sm:$0xff] }
 0x142   : > { %vm1216_vm0 = vcmp.ge.f32.partialorder %v1182_v55, 0.0  ;;  %v1224_v59 = vmul.f32 0.1, %v1182_v55  ;;  %v1177_v10 = vadd.f32 %v1176_v9, %v1072_v2  ;;  %v1107_v42 = vadd.f32 %v6766_v18, %v1002_v19  ;;  %v1429_v2 = vld [vmem:[%s13161_s3 + $0x358] sm:$0xff]  ;;  %v1443_v9 = vld [vmem:[%s13161_s3 + $0x3c8] sm:$0xff]  ;;  %v1438_v18 = vld [vmem:[%s13161_s3 + $0x3a0] sm:$0xff] }
 0x143   : > { %v8036_v0 = vpop.f32.mrf.mxu0 }
 0x144   : > { %v9698_v17 = vsel %vm1216_vm0, %v1182_v55, %v1224_v59  ;;  %vm1215_vm1 = vcmp.ge.f32.partialorder %v1177_v10, 0.0  ;;  %v1223_v23 = vmul.f32 0.1, %v1177_v10  ;;  %v1192_v57 = vadd.f32 %v8036_v0, %v1087_v11  ;;  %v1445_v55 = vld [vmem:[%s13161_s3 + $0x3d8] sm:$0xff]  ;;  %v1440_v0 = vld [vmem:[%s13161_s3 + $0x3b0] sm:$0xff] }
 0x145   : > { %1241 = vst [vmem:[#allocation2 + $0xc1] sm:$0xff] %v9698_v17  ;;  %v1186_v22 = vpop.f32.mrf.mxu0  ;;  %vm319_vm0 = vcmask 523264  }
 0x146   : > { %v9701_v24 = vsel %vm1215_vm1, %v1177_v10, %v1223_v23  ;;  %vm1218_vm2 = vcmp.ge.f32.partialorder %v1192_v57, 0.0  ;;  %v1226_v27 = vmul.f32 0.1, %v1192_v57  ;;  %v1187_v8 = vadd.f32 %v1186_v22, %v1082_v16  ;;  %v1442_v10 = vld [vmem:[%s13161_s3 + $0x3c0] sm:$0xff]  ;;  %v1424_v23 = vld [vmem:[%s13161_s3 + $0x330] sm:$0xff] }
 0x147   : > { %1240 = vst [vmem:[#allocation2 + $0xb1] sm:$0xff] %v9701_v24  ;;  %v8039_v5 = vpop.f32.mrf.mxu0  ;;  %1542 = vmatprep.mubr.f32.mxu1 %v9701_v24  ;;  %vm321_vm1 = vcmask 517120  }
 0x148   : > { %v9706_v60 = vsel %vm1218_vm2, %v1192_v57, %v1226_v27  ;;  %vm1217_vm3 = vcmp.ge.f32.partialorder %v1187_v8, 0.0  ;;  %v1225_v33 = vmul.f32 0.1, %v1187_v8  ;;  %v1202_v30 = vadd.f32 %v8039_v5, %v1097_v63  ;;  %v1439_v57 = vld [vmem:[%s13161_s3 + $0x3a8] sm:$0xff]  ;;  %v1422_v63 = vld [vmem:[%s13161_s3 + $0x320] sm:$0xff]  ;;  %v1437_v27 = vld [vmem:[%s13161_s3 + $0x398] sm:$0xff] }
 0x149   : > { %1243 = vst [vmem:[#allocation2 + $0xe1] sm:$0xff] %v9706_v60  ;;  %v1196_v62 = vpop.f32.mrf.mxu0 }
 0x14a   : > { %v9709_v20 = vsel %vm1217_vm3, %v1187_v8, %v1225_v33  ;;  %vm1220_vm4 = vcmp.ge.f32.partialorder %v1202_v30, 0.0  ;;  %v1228_v39 = vmul.f32 0.1, %v1202_v30  ;;  %v1197_v26 = vadd.f32 %v1196_v62, %v1092_v44  ;;  %v1421_v8 = vld [vmem:[%s13161_s3 + $0x318] sm:$0xff]  ;;  %v1420_v44 = vld [vmem:[%s13161_s3 + $0x310] sm:$0xff]  ;;  %v1435_v33 = vld [vmem:[%s13161_s3 + $0x388] sm:$0xff] }
 0x14b   : > { %1242 = vst [vmem:[#allocation2 + $0xd1] sm:$0xff] %v9709_v20  ;;  %v8042_v48 = vpop.f32.mrf.mxu0 }
 0x14c   : > { %v9712_v29 = vsel %vm1220_vm4, %v1202_v30, %v1228_v39  ;;  %vm1219_vm5 = vcmp.ge.f32.partialorder %v1197_v26, 0.0  ;;  %v1227_v1 = vmul.f32 0.1, %v1197_v26  ;;  %v1212_v21 = vadd.f32 %v8042_v48, %v1107_v42  ;;  %v9727_v50 = vld [vmem:[#allocation2 + $0xc0] sm:$0xff]  ;;  %v1419_v30 = vld [vmem:[%s13161_s3 + $0x308] sm:$0xff] }
 0x14d   : > { %1245 = vst [vmem:[#allocation2 + $0x101] sm:$0xff] %v9712_v29  ;;  %v1206_v40 = vpop.f32.mrf.mxu0  ;;  %v9764_v37 = vld [vmem:[#allocation2 + $0xc2] sm:$0xff] }
 0x14e   : > { %v9715_v15 = vsel %vm1219_vm5, %v1197_v26, %v1227_v1  ;;  %vm1222_vm6 = vcmp.ge.f32.partialorder %v1212_v21, 0.0  ;;  %v1230_v45 = vmul.f32 0.1, %v1212_v21  ;;  %v1207_v46 = vadd.f32 %v1206_v40, %v1102_v28  ;;  %v1273_v31 = vld [vmem:[#allocation2 + $0xb0] sm:$0xff]  ;;  %v1434_v42 = vld [vmem:[%s13161_s3 + $0x380] sm:$0xff]  ;;  %v13227_v26 = vld [vmem:[#allocation5_spill] sm:$0xff] }
 0x14f   : > { %1244 = vst [vmem:[#allocation2 + $0xf1] sm:$0xff] %v9715_v15  ;;  %1642 = vmatprep.mubr.f32.mxu0 %v1273_v31  ;;  %1543 = vmatmul.mubr.f32.gmra.mxu1 %v1273_v31  ;;  %v9741_v35 = vld [vmem:[#allocation2 + $0xb2] sm:$0xff]  ;;  %v1418_v39 = vld [vmem:[%s13161_s3 + $0x300] sm:$0xff]  ;;  %v1463_v48 = vld [vmem:[%s13161_s3 + $0x468] sm:$0xff] }
 0x150   : > { %v9724_v34 = vsel %vm1222_vm6, %v1212_v21, %v1230_v45  ;;  %vm1221_vm7 = vcmp.ge.f32.partialorder %v1207_v46, 0.0  ;;  %v1229_v49 = vmul.f32 0.1, %v1207_v46  ;;  %1643 = vmatmul.mubr.f32.vlgmr.msra.gmra.mxu0 %v1265_v14  ;;  %1547 = vmatprep.mubr.f32.mxu1 %v9698_v17  ;;  %v9771_v4 = vld [vmem:[#allocation2 + $0xe0] sm:$0xff]  ;;  %v1461_v1 = vld [vmem:[%s13161_s3 + $0x458] sm:$0xff]  ;;  %v1459_v21 = vld [vmem:[%s13161_s3 + $0x448] sm:$0xff] }
 0x151   : > { %1247 = vst [vmem:[#allocation2 + $0x121] sm:$0xff] %v9724_v34  ;;  %1647 = vmatprep.mubr.f32.mxu0 %v9727_v50  ;;  %6960 = vmatpush3.msra.mxu0 %v1433_v47  ;;  %v9804_v61 = vld [vmem:[#allocation2 + $0xe2] sm:$0xff]  ;;  %v1456_v14 = vld [vmem:[%s13161_s3 + $0x430] sm:$0xff] }
 0x152   : > { %v9737_v53 = vsel %vm1221_vm7, %v1207_v46, %v1229_v49  ;;  %6961 = vmatprep.subr.mxu0 %v1448_v12  ;;  %v9747_v6 = vld [vmem:[#allocation2 + $0xd0] sm:$0xff]  ;;  %v1462_v28 = vld [vmem:[%s13161_s3 + $0x460] sm:$0xff]  ;;  %v1451_v47 = vld [vmem:[%s13161_s3 + $0x408] sm:$0xff] }
 0x153   : > { %1246 = vst [vmem:[#allocation2 + $0x111] sm:$0xff] %v9737_v53  ;;  %6962 = vmatpush3.msra.mxu0 %v1432_v38  ;;  %1548 = vmatmul.mubr.f32.gmra.mxu1 %v9727_v50  ;;  %v9784_v59 = vld [vmem:[#allocation2 + $0xd2] sm:$0xff]  ;;  %v1458_v40 = vld [vmem:[%s13161_s3 + $0x440] sm:$0xff] }
 0x154   : > { %1648 = vmatmul.mubr.f32.gmra.mxu0 %v9741_v35  ;;  %6963 = vmatprep.subr.mxu0 %v1447_v51  ;;  %v9811_v16 = vld [vmem:[#allocation2 + $0x100] sm:$0xff]  ;;  %v1452_v46 = vld [vmem:[%s13161_s3 + $0x410] sm:$0xff]  ;;  %v2077_v38 = vld [vmem:[%s13163_s5 + $0x78] sm:$0xff] }
 0x155   : > { %1552 = vmatprep.mubr.f32.mxu1 %v9709_v20  ;;  %1652 = vmatprep.mubr.f32.mxu0 %v9747_v6  ;;  %v9844_v52 = vld [vmem:[#allocation2 + $0x102] sm:$0xff]  ;;  %v1313_v31 = vld [vmem:[#allocation2 + $0x131] sm:$0xff] }
 0x156   : > { %6964 = vmatpush3.msra.mxu0 %v1431_v36  ;;  %v9791_v11 = vld [vmem:[#allocation2 + $0xf0] sm:$0xff]  ;;  %v1454_v45 = vld [vmem:[%s13161_s3 + $0x420] sm:$0xff]  ;;  %v2075_v36 = vld [vmem:[%s13163_s5 + $0x68] sm:$0xff] }
 0x157   : > { %6965 = vmatprep.subr.mxu0 %v1446_v41  ;;  %1553 = vmatmul.mubr.f32.gmra.mxu1 %v9747_v6  ;;  %v9824_v19 = vld [vmem:[#allocation2 + $0xf2] sm:$0xff]  ;;  %v1450_v12 = vld [vmem:[%s13161_s3 + $0x400] sm:$0xff] }
 0x158   : > { %6966 = vmatpush3.msra.mxu0 %v1430_v43  ;;  %1557 = vmatprep.mubr.f32.mxu1 %v9706_v60  ;;  %v9851_v5 = vld [vmem:[#allocation2 + $0x120] sm:$0xff]  ;;  %v2092_v51 = vld [vmem:[%s13163_s5 + $0xf0] sm:$0xff]  ;;  %v2089_v43 = vld [vmem:[%s13163_s5 + $0xd8] sm:$0xff] }
 0x159   : > { %1653 = vmatmul.mubr.f32.gmra.mxu0 %v9764_v37  ;;  %6967 = vmatprep.subr.mxu0 %v1445_v55  ;;  %v13228_v49 = vld [vmem:[#allocation4_spill] sm:$0xff]  ;;  %v2125_v55 = vld [vmem:[%s13163_s5 + $0x1f8] sm:$0xff] }
 0x15a   : > { %1657 = vmatprep.mubr.f32.mxu0 %v9771_v4  ;;  %6968 = vmatpush3.msra.mxu0 %v1429_v2  ;;  %v9831_v22 = vld [vmem:[#allocation2 + $0x110] sm:$0xff]  ;;  %v2074_v41 = vld [vmem:[%s13163_s5 + $0x60] sm:$0xff]  ;;  %v2073_v2 = vld [vmem:[%s13163_s5 + $0x58] sm:$0xff] }
 0x15b   : > { %6969 = vmatprep.subr.mxu0 %v1444_v3  ;;  %1558 = vmatmul.mubr.f32.gmra.mxu1 %v9771_v4  ;;  %v9864_v62 = vld [vmem:[#allocation2 + $0x112] sm:$0xff] }
 0x15c   : > { %6970 = vmatpush3.msra.mxu0 %v1428_v7  ;;  %1562 = vmatprep.mubr.f32.mxu1 %v9715_v15  ;;  %v2088_v3 = vld [vmem:[%s13163_s5 + $0xd0] sm:$0xff] }
 0x15d   : > { %1658 = vmatmul.mubr.f32.gmra.mxu0 %v9784_v59  ;;  %6971 = vmatprep.subr.mxu0 %v1443_v9  ;;  %v2072_v7 = vld [vmem:[%s13163_s5 + $0x50] sm:$0xff] }
 0x15e   : > { %1662 = vmatprep.mubr.f32.mxu0 %v9791_v11  ;;  %6972 = vmatpush3.msra.mxu0 %v1427_v56  ;;  %v2108_v9 = vld [vmem:[%s13163_s5 + $0x170] sm:$0xff]  ;;  %v2087_v56 = vld [vmem:[%s13163_s5 + $0xc8] sm:$0xff] }
 0x15f   : > { %6973 = vmatprep.subr.mxu0 %v1442_v10  ;;  %1563 = vmatmul.mubr.f32.gmra.mxu1 %v9791_v11  ;;  %v2071_v10 = vld [vmem:[%s13163_s5 + $0x48] sm:$0xff] }
 0x160   : > { %6974 = vmatpush3.msra.mxu0 %v1426_v13  ;;  %1567 = vmatprep.mubr.f32.mxu1 %v9712_v29  ;;  %v2086_v13 = vld [vmem:[%s13163_s5 + $0xc0] sm:$0xff] }
 0x161   : > { %1663 = vmatmul.mubr.f32.gmra.mxu0 %v9804_v61  ;;  %6975 = vmatprep.subr.mxu0 %v1441_v54  ;;  %v2122_v54 = vld [vmem:[%s13163_s5 + $0x1e0] sm:$0xff] }
 0x162   : > { %1667 = vmatprep.mubr.f32.mxu0 %v9811_v16  ;;  %6976 = vmatpush3.msra.mxu0 %v1425_v58  ;;  %v2070_v58 = vld [vmem:[%s13163_s5 + $0x40] sm:$0xff] }
 0x163   : > { %6977 = vmatprep.subr.mxu0 %v1440_v0  ;;  %1568 = vmatmul.mubr.f32.gmra.mxu1 %v9811_v16  ;;  %v2085_v0 = vld [vmem:[%s13163_s5 + $0xb8] sm:$0xff] }
 0x164   : > { %6978 = vmatpush3.msra.mxu0 %v1424_v23  ;;  %1572 = vmatprep.mubr.f32.mxu1 %v9737_v53  ;;  %v2069_v23 = vld [vmem:[%s13163_s5 + $0x38] sm:$0xff] }
 0x165   : > { %1668 = vmatmul.mubr.f32.gmra.mxu0 %v9824_v19  ;;  %6979 = vmatprep.subr.mxu0 %v1439_v57  ;;  %v2105_v57 = vld [vmem:[%s13163_s5 + $0x158] sm:$0xff] }
 0x166   : > { %1672 = vmatprep.mubr.f32.mxu0 %v9831_v22  ;;  %6980 = vmatpush3.msra.mxu0 %v1423_v32  ;;  %v2084_v32 = vld [vmem:[%s13163_s5 + $0xb0] sm:$0xff] }
 0x167   : > { %6981 = vmatprep.subr.mxu0 %v1438_v18  ;;  %1573 = vmatmul.mubr.f32.gmra.mxu1 %v9831_v22  ;;  %v2068_v18 = vld [vmem:[%s13163_s5 + $0x30] sm:$0xff] }
 0x168   : > { %6982 = vmatpush3.msra.mxu0 %v1422_v63  ;;  %1747 = vmatprep.mubr.f32.mxu1 %v9741_v35  ;;  %v2091_v35 = vld [vmem:[%s13163_s5 + $0xe8] sm:$0xff] }
 0x169   : > { %1673 = vmatmul.mubr.f32.gmra.mxu0 %v9844_v52  ;;  %6983 = vmatprep.subr.mxu0 %v1437_v27  ;;  %v2083_v63 = vld [vmem:[%s13163_s5 + $0xa8] sm:$0xff] }
 0x16a   : > { %1677 = vmatprep.mubr.f32.mxu0 %v9851_v5  ;;  %6984 = vmatpush3.msra.mxu0 %v1421_v8  ;;  %v2119_v27 = vld [vmem:[%s13163_s5 + $0x1c8] sm:$0xff] }
 0x16b   : > { %6985 = vmatprep.subr.mxu0 %v1436_v25  ;;  %1748 = vmatmul.mubr.f32.vlgmr.msra.gmra.mxu1 %v9701_v24  ;;  %v1464_v24 = vld [vmem:[%s13161_s3 + $0x470] sm:$0xff]  ;;  %v2067_v8 = vld [vmem:[%s13163_s5 + $0x28] sm:$0xff]  ;;  %v2082_v25 = vld [vmem:[%s13163_s5 + $0xa0] sm:$0xff] }
 0x16c   : > { %6986 = vmatpush3.msra.mxu0 %v1420_v44  ;;  %1752 = vmatprep.mubr.f32.mxu1 %v9764_v37  ;;  %v2066_v44 = vld [vmem:[%s13163_s5 + $0x20] sm:$0xff] }
 0x16d   : > { %1678 = vmatmul.mubr.f32.gmra.mxu0 %v9864_v62  ;;  %6987 = vmatprep.subr.mxu0 %v1435_v33  ;;  %v2102_v33 = vld [vmem:[%s13163_s5 + $0x140] sm:$0xff] }
 0x16e   : > { %6988 = vmatpush3.msra.mxu0 %v1419_v30  ;;  %1852 = vmatprep.mubr.f32.mxu0 %v9698_v17  ;;  %v2081_v30 = vld [vmem:[%s13163_s5 + $0x98] sm:$0xff] }
 0x16f   : > { %8044 = vmatpush3.msra.mxu1 %v13227_v26  ;;  %6989 = vmatprep.subr.mxu0 %v1434_v42  ;;  %v2065_v42 = vld [vmem:[%s13163_s5 + $0x18] sm:$0xff]  ;;  %v2116_v26 = vld [vmem:[%s13163_s5 + $0x1b0] sm:$0xff] }
 0x170   : > { %8045 = vmatprep.subr.mxu1 %v1464_v24  ;;  %6990 = vmatpush3.msra.mxu0 %v1418_v39  ;;  %v2080_v39 = vld [vmem:[%s13163_s5 + $0x90] sm:$0xff] }
 0x171   : > { %8046 = vmatpush3.msra.mxu1 %v1464_v24  ;;  %1853 = vmatmul.mubr.f32.vlgmr.msra.gmra.mxu0 %v9727_v50  ;;  %v2093_v50 = vld [vmem:[%s13163_s5 + $0xf8] sm:$0xff] }
 0x172   : > { %1753 = vmatmul.mubr.f32.gmra.mxu1 %v9698_v17  ;;  %8047 = vmatprep.subr.mxu1 %v1463_v48  ;;  %v1460_v17 = vld [vmem:[%s13161_s3 + $0x450] sm:$0xff]  ;;  %v2101_v24 = vld [vmem:[%s13163_s5 + $0x138] sm:$0xff] }
 0x173   : > { %1757 = vmatprep.mubr.f32.mxu1 %v9784_v59  ;;  %1857 = vmatprep.mubr.f32.mxu0 %v9709_v20 }
 0x174   : > { %8048 = vmatpush3.msra.mxu1 %v1463_v48  ;;  %7039 = vmatprep.subr.mxu0 %v2093_v50  ;;  %v2064_v48 = vld [vmem:[%s13163_s5 + $0x10] sm:$0xff]  ;;  %v2095_v50 = vld [vmem:[%s13163_s5 + $0x108] sm:$0xff] }
 0x175   : > { %8049 = vmatprep.subr.mxu1 %v1462_v28  ;;  %1858 = vmatmul.mubr.f32.gmra.mxu0 %v9747_v6  ;;  %v2090_v6 = vld [vmem:[%s13163_s5 + $0xe0] sm:$0xff] }
 0x176   : > { %8050 = vmatpush3.msra.mxu1 %v1462_v28  ;;  %1862 = vmatprep.mubr.f32.mxu0 %v9706_v60  ;;  %v2100_v28 = vld [vmem:[%s13163_s5 + $0x130] sm:$0xff] }
 0x177   : > { %1758 = vmatmul.mubr.f32.gmra.mxu1 %v9709_v20  ;;  %8051 = vmatprep.subr.mxu1 %v1461_v1  ;;  %v1457_v20 = vld [vmem:[%s13161_s3 + $0x438] sm:$0xff] }
 0x178   : > { %1762 = vmatprep.mubr.f32.mxu1 %v9804_v61  ;;  %8052 = vmatpush3.msra.mxu1 %v1461_v1  ;;  %v2079_v1 = vld [vmem:[%s13163_s5 + $0x88] sm:$0xff] }
 0x179   : > { %8053 = vmatprep.subr.mxu1 %v1460_v17  ;;  %1863 = vmatmul.mubr.f32.gmra.mxu0 %v9771_v4  ;;  %v2124_v4 = vld [vmem:[%s13163_s5 + $0x1f0] sm:$0xff] }
 0x17a   : > { %8054 = vmatpush3.msra.mxu1 %v1460_v17  ;;  %1867 = vmatprep.mubr.f32.mxu0 %v9715_v15  ;;  %v2115_v17 = vld [vmem:[%s13163_s5 + $0x1a8] sm:$0xff] }
 0x17b   : > { %1763 = vmatmul.mubr.f32.gmra.mxu1 %v9706_v60  ;;  %8055 = vmatprep.subr.mxu1 %v1459_v21  ;;  %v1455_v60 = vld [vmem:[%s13161_s3 + $0x428] sm:$0xff] }
 0x17c   : > { %1767 = vmatprep.mubr.f32.mxu1 %v9824_v19  ;;  %8056 = vmatpush3.msra.mxu1 %v1459_v21  ;;  %v2063_v21 = vld [vmem:[%s13163_s5 + $0x8] sm:$0xff] }
 0x17d   : > { %8057 = vmatprep.subr.mxu1 %v1458_v40  ;;  %1868 = vmatmul.mubr.f32.gmra.mxu0 %v9791_v11  ;;  %v2107_v11 = vld [vmem:[%s13163_s5 + $0x168] sm:$0xff] }
 0x17e   : > { %8058 = vmatpush3.msra.mxu1 %v1458_v40  ;;  %1872 = vmatprep.mubr.f32.mxu0 %v9712_v29  ;;  %v2099_v40 = vld [vmem:[%s13163_s5 + $0x128] sm:$0xff] }
 0x17f   : > { %1768 = vmatmul.mubr.f32.gmra.mxu1 %v9715_v15  ;;  %8059 = vmatprep.subr.mxu1 %v1457_v20  ;;  %v1453_v15 = vld [vmem:[%s13161_s3 + $0x418] sm:$0xff] }
 0x180   : > { %1772 = vmatprep.mubr.f32.mxu1 %v9844_v52  ;;  %8060 = vmatpush3.msra.mxu1 %v1457_v20  ;;  %v2078_v20 = vld [vmem:[%s13163_s5 + $0x80] sm:$0xff] }
 0x181   : > { %8061 = vmatprep.subr.mxu1 %v1456_v14  ;;  %1873 = vmatmul.mubr.f32.gmra.mxu0 %v9811_v16  ;;  %v2121_v16 = vld [vmem:[%s13163_s5 + $0x1d8] sm:$0xff] }
 0x182   : > { %8062 = vmatpush3.msra.mxu1 %v1456_v14  ;;  %1877 = vmatprep.mubr.f32.mxu0 %v9737_v53  ;;  %v2114_v14 = vld [vmem:[%s13163_s5 + $0x1a0] sm:$0xff] }
 0x183   : > { %1773 = vmatmul.mubr.f32.gmra.mxu1 %v9712_v29  ;;  %8063 = vmatprep.subr.mxu1 %v1455_v60  ;;  %v1296_v29 = vld [vmem:[#allocation2 + $0x122] sm:$0xff] }
 0x184   : > { %1777 = vmatprep.mubr.f32.mxu1 %v9864_v62  ;;  %8064 = vmatpush3.msra.mxu1 %v1455_v60  ;;  %v2062_v60 = vld [vmem:[%s13163_s5] sm:$0xff] }
 0x185   : > { %8065 = vmatprep.subr.mxu1 %v1454_v45  ;;  %1878 = vmatmul.mubr.f32.gmra.mxu0 %v9831_v22  ;;  %v2104_v22 = vld [vmem:[%s13163_s5 + $0x150] sm:$0xff] }
 0x186   : > { %8066 = vmatpush3.msra.mxu1 %v1454_v45  ;;  %1882 = vmatprep.mubr.f32.mxu0 %v9724_v34  ;;  %v10118_v45 = vld [vmem:[#allocation2 + $0x1] sm:$0xff] }
 0x187   : > { %1778 = vmatmul.mubr.f32.gmra.mxu1 %v9737_v53  ;;  %8067 = vmatprep.subr.mxu1 %v1453_v15  ;;  %v2076_v53 = vld [vmem:[%s13163_s5 + $0x70] sm:$0xff]  ;;  %13229 = vst [vmem:[#allocation8_spill] sm:$0xff] %v10118_v45 }
 0x188   : > { %1782 = vmatprep.mubr.f32.mxu1 %v1296_v29  ;;  %8068 = vmatpush3.msra.mxu1 %v1453_v15  ;;  %v2098_v15 = vld [vmem:[%s13163_s5 + $0x120] sm:$0xff] }
 0x189   : > { %8069 = vmatprep.subr.mxu1 %v1452_v46  ;;  %1883 = vmatmul.mubr.f32.gmra.mxu0 %v9851_v5  ;;  %v2118_v5 = vld [vmem:[%s13163_s5 + $0x1c0] sm:$0xff] }
 0x18a   : > { %8070 = vmatpush3.msra.mxu1 %v1452_v46  ;;  %1887 = vmatprep.mubr.f32.mxu0 %v1313_v31  ;;  %v2113_v46 = vld [vmem:[%s13163_s5 + $0x198] sm:$0xff]  ;;  %v10130_v31 = vld [vmem:[#allocation2] sm:$0xff] }
 0x18b   : > { %1783 = vmatmul.mubr.f32.gmra.mxu1 %v9724_v34  ;;  %8071 = vmatprep.subr.mxu1 %v1451_v47  ;;  %v1321_v34 = vld [vmem:[#allocation2 + $0x132] sm:$0xff]  ;;  %13230 = vst [vmem:[#allocation9_spill] sm:$0xff] %v10130_v31 }
 0x18c   : > { %8072 = vmatpush3.msra.mxu1 %v1451_v47  ;;  %8075 = vmatprep.mubr.f32.mxu1 %v9764_v37  ;;  %v2109_v37 = vld [vmem:[%s13163_s5 + $0x178] sm:$0xff]  ;;  %v2112_v47 = vld [vmem:[%s13163_s5 + $0x190] sm:$0xff] }
 0x18d   : > { %8073 = vmatprep.subr.mxu1 %v1450_v12  ;;  %1888 = vmatmul.mubr.f32.gmra.mxu0 %v13228_v49  ;;  %v2111_v49 = vld [vmem:[%s13163_s5 + $0x188] sm:$0xff] }
 0x18e   : > { %8074 = vmatpush3.msra.mxu1 %v1450_v12  ;;  %7040 = vmatpush3.msra.mxu0 %v2077_v38  ;;  %v2096_v12 = vld [vmem:[%s13163_s5 + $0x110] sm:$0xff]  ;;  %v6306_v38 = vld [vmem:[%s13163_s5 + $0x278] sm:$0xff] }
 0x18f   : > { %8076 = vmatmul.mubr.f32.vlgmr.msra.gmra.mxu1 %v9784_v59  ;;  %7041 = vmatprep.subr.mxu0 %v2092_v51  ;;  %v2123_v59 = vld [vmem:[%s13163_s5 + $0x1e8] sm:$0xff]  ;;  %v2110_v51 = vld [vmem:[%s13163_s5 + $0x180] sm:$0xff] }
 0x190   : > { %8078 = vmatprep.mubr.f32.mxu1 %v9804_v61  ;;  %7042 = vmatpush3.msra.mxu0 %v2076_v53  ;;  %v2106_v61 = vld [vmem:[%s13163_s5 + $0x160] sm:$0xff]  ;;  %v6321_v53 = vld [vmem:[%s13163_s5 + $0x2f0] sm:$0xff] }
 0x191   : > { %7043 = vmatprep.subr.mxu0 %v2091_v35  ;;  %7095 = vmatprep.subr.mxu1 %v2125_v55  ;;  %v2094_v35 = vld [vmem:[%s13163_s5 + $0x100] sm:$0xff] }
 0x192   : > { %7044 = vmatpush3.msra.mxu0 %v2075_v36  ;;  %7096 = vmatpush3.msra.mxu1 %v2109_v37  ;;  %v6305_v36 = vld [vmem:[%s13163_s5 + $0x270] sm:$0xff]  ;;  %v6319_v55 = vld [vmem:[%s13163_s5 + $0x2e0] sm:$0xff]  ;;  %v6318_v37 = vld [vmem:[%s13163_s5 + $0x2d8] sm:$0xff] }
 0x193   : > { %8079 = vmatmul.mubr.f32.gmra.mxu1 %v9824_v19  ;;  %7045 = vmatprep.subr.mxu0 %v2090_v6  ;;  %v2120_v19 = vld [vmem:[%s13163_s5 + $0x1d0] sm:$0xff]  ;;  %v6320_v6 = vld [vmem:[%s13163_s5 + $0x2e8] sm:$0xff] }
 0x194   : > { %8081 = vmatprep.mubr.f32.mxu1 %v9844_v52  ;;  %7046 = vmatpush3.msra.mxu0 %v2074_v41  ;;  %v2103_v52 = vld [vmem:[%s13163_s5 + $0x148] sm:$0xff]  ;;  %v6354_v41 = vld [vmem:[%s13163_s5 + $0x3f8] sm:$0xff] }
 0x195   : > { %7047 = vmatprep.subr.mxu0 %v2089_v43  ;;  %7097 = vmatprep.subr.mxu1 %v2124_v4  ;;  %v6304_v43 = vld [vmem:[%s13163_s5 + $0x268] sm:$0xff]  ;;  %v6317_v4 = vld [vmem:[%s13163_s5 + $0x2d0] sm:$0xff] }
 0x196   : > { %7048 = vmatpush3.msra.mxu0 %v2073_v2  ;;  %7098 = vmatpush3.msra.mxu1 %v2108_v9  ;;  %v6303_v2 = vld [vmem:[%s13163_s5 + $0x260] sm:$0xff]  ;;  %v6316_v9 = vld [vmem:[%s13163_s5 + $0x2c8] sm:$0xff] }
 0x197   : > { %8082 = vmatmul.mubr.f32.gmra.mxu1 %v9864_v62  ;;  %7049 = vmatprep.subr.mxu0 %v2088_v3  ;;  %v2117_v62 = vld [vmem:[%s13163_s5 + $0x1b8] sm:$0xff] }
 0x198   : > { %8084 = vmatprep.mubr.f32.mxu1 %v1296_v29  ;;  %7050 = vmatpush3.msra.mxu0 %v2072_v7  ;;  %v2097_v29 = vld [vmem:[%s13163_s5 + $0x118] sm:$0xff]  ;;  %v6301_v7 = vld [vmem:[%s13163_s5 + $0x250] sm:$0xff] }
 0x199   : > { %7051 = vmatprep.subr.mxu0 %v2087_v56  ;;  %7099 = vmatprep.subr.mxu1 %v2123_v59  ;;  %v6302_v3 = vld [vmem:[%s13163_s5 + $0x258] sm:$0xff]  ;;  %v6300_v56 = vld [vmem:[%s13163_s5 + $0x248] sm:$0xff]  ;;  %v6315_v59 = vld [vmem:[%s13163_s5 + $0x2c0] sm:$0xff] }
 0x19a   : > { %7052 = vmatpush3.msra.mxu0 %v2071_v10  ;;  %7100 = vmatpush3.msra.mxu1 %v2107_v11  ;;  %v6299_v10 = vld [vmem:[%s13163_s5 + $0x240] sm:$0xff]  ;;  %v6314_v11 = vld [vmem:[%s13163_s5 + $0x2b8] sm:$0xff] }
 0x19b   : > { %8085 = vmatmul.mubr.f32.gmra.mxu1 %v1321_v34  ;;  %7053 = vmatprep.subr.mxu0 %v2086_v13  ;;  %v6322_v34 = vld [vmem:[%s13163_s5 + $0x2f8] sm:$0xff] }
 0x19c   : > { %7101 = vmatprep.subr.mxu1 %v2122_v54  ;;  %7054 = vmatpush3.msra.mxu0 %v2070_v58  ;;  %v6298_v13 = vld [vmem:[%s13163_s5 + $0x238] sm:$0xff]  ;;  %v6313_v54 = vld [vmem:[%s13163_s5 + $0x2b0] sm:$0xff] }
 0x19d   : > { %7102 = vmatpush3.msra.mxu1 %v2106_v61  ;;  %7055 = vmatprep.subr.mxu0 %v2085_v0  ;;  %v6297_v58 = vld [vmem:[%s13163_s5 + $0x230] sm:$0xff]  ;;  %v6312_v61 = vld [vmem:[%s13163_s5 + $0x2a8] sm:$0xff] }
 0x19e   : > { %7103 = vmatprep.subr.mxu1 %v2121_v16  ;;  %7056 = vmatpush3.msra.mxu0 %v2069_v23  ;;  %v6296_v0 = vld [vmem:[%s13163_s5 + $0x228] sm:$0xff]  ;;  %v6311_v16 = vld [vmem:[%s13163_s5 + $0x2a0] sm:$0xff] }
 0x19f   : > { %7104 = vmatpush3.msra.mxu1 %v2105_v57  ;;  %7057 = vmatprep.subr.mxu0 %v2084_v32  ;;  %v6295_v23 = vld [vmem:[%s13163_s5 + $0x220] sm:$0xff]  ;;  %v6310_v57 = vld [vmem:[%s13163_s5 + $0x298] sm:$0xff] }
 0x1a0   : > { %7105 = vmatprep.subr.mxu1 %v2120_v19  ;;  %7058 = vmatpush3.msra.mxu0 %v2068_v18  ;;  %v6294_v32 = vld [vmem:[%s13163_s5 + $0x218] sm:$0xff]  ;;  %v6309_v19 = vld [vmem:[%s13163_s5 + $0x290] sm:$0xff] }
 0x1a1   : > { %7106 = vmatpush3.msra.mxu1 %v2104_v22  ;;  %7059 = vmatprep.subr.mxu0 %v2083_v63  ;;  %v6293_v18 = vld [vmem:[%s13163_s5 + $0x210] sm:$0xff]  ;;  %v6308_v22 = vld [vmem:[%s13163_s5 + $0x288] sm:$0xff] }
 0x1a2   : > { %7107 = vmatprep.subr.mxu1 %v2119_v27  ;;  %7060 = vmatpush3.msra.mxu0 %v2067_v8  ;;  %v6292_v63 = vld [vmem:[%s13163_s5 + $0x208] sm:$0xff]  ;;  %v6307_v27 = vld [vmem:[%s13163_s5 + $0x280] sm:$0xff] }
 0x1a3   : > { %7108 = vmatpush3.msra.mxu1 %v2103_v52  ;;  %7061 = vmatprep.subr.mxu0 %v2082_v25  ;;  %v6291_v8 = vld [vmem:[%s13163_s5 + $0x200] sm:$0xff]  ;;  %v6386_v52 = vld [vmem:[%s13163_s5 + $0x4f8] sm:$0xff]  ;;  %v6823_v25 = vpop.f32.mrf.mxu1 }
 0x1a4   : > { %7109 = vmatprep.subr.mxu1 %v2118_v5  ;;  %7062 = vmatpush3.msra.mxu0 %v2066_v44 }
 0x1a5   : > { %7110 = vmatpush3.msra.mxu1 %v2102_v33  ;;  %7063 = vmatprep.subr.mxu0 %v2081_v30  ;;  %v6824_v5 = vpop.f32.mrf.mxu1 }
 0x1a6   : > { %7111 = vmatprep.subr.mxu1 %v2117_v62  ;;  %7064 = vmatpush3.msra.mxu0 %v2065_v42 }
 0x1a7   : > { %7112 = vmatpush3.msra.mxu1 %v2101_v24  ;;  %7065 = vmatprep.subr.mxu0 %v2080_v39 }
 0x1a8   : > { %7113 = vmatprep.subr.mxu1 %v2116_v26  ;;  %7066 = vmatpush3.msra.mxu0 %v2064_v48 }
 0x1a9   : > { %7114 = vmatpush3.msra.mxu1 %v2100_v28  ;;  %7067 = vmatprep.subr.mxu0 %v2079_v1 }
 0x1aa   : > { %7115 = vmatprep.subr.mxu1 %v2115_v17  ;;  %7068 = vmatpush3.msra.mxu0 %v2063_v21 }
 0x1ab   : > { %7116 = vmatpush3.msra.mxu1 %v2099_v40  ;;  %7069 = vmatprep.subr.mxu0 %v2078_v20 }
 0x1ac   : > { %7117 = vmatprep.subr.mxu1 %v2114_v14  ;;  %7070 = vmatpush3.msra.mxu0 %v2062_v60 }
 0x1ad   : > { %7118 = vmatpush3.msra.mxu1 %v2098_v15  ;;  %2190 = vmatprep.mubr.f32.mxu0 %v10118_v45 }
 0x1ae   : > { %7119 = vmatprep.subr.mxu1 %v2113_v46  ;;  %2191 = vmatmul.mubr.f32.vlgmr.msra.gmra.mxu0 %v10130_v31 }
 0x1af   : > { %7120 = vmatpush3.msra.mxu1 %v2097_v29  ;;  %7151 = vmatprep.subr.mxu0 %v6322_v34 }
 0x1b0   : > { %7121 = vmatprep.subr.mxu1 %v2112_v47  ;;  %7152 = vmatpush3.msra.mxu0 %v6306_v38 }
 0x1b1   : > { %7122 = vmatpush3.msra.mxu1 %v2096_v12  ;;  %7153 = vmatprep.subr.mxu0 %v6321_v53 }
 0x1b2   : > { %7123 = vmatprep.subr.mxu1 %v2111_v49  ;;  %7154 = vmatpush3.msra.mxu0 %v6305_v36 }
 0x1b3   : > { %7124 = vmatpush3.msra.mxu1 %v2095_v50  ;;  %7155 = vmatprep.subr.mxu0 %v6320_v6 }
 0x1b4   : > { %7125 = vmatprep.subr.mxu1 %v2110_v51  ;;  %7156 = vmatpush3.msra.mxu0 %v6304_v43 }
 0x1b5   : > { %7126 = vmatpush3.msra.mxu1 %v2094_v35  ;;  %7157 = vmatprep.subr.mxu0 %v6319_v55 }
 0x1b6   : > { %7207 = vmatprep.subr.mxu1 %v6354_v41  ;;  %7158 = vmatpush3.msra.mxu0 %v6303_v2 }
 0x1b7   : > { %7159 = vmatprep.subr.mxu0 %v6318_v37 }
 0x1b8   : > { %7160 = vmatpush3.msra.mxu0 %v6302_v3 }
 0x1b9   : > { %7161 = vmatprep.subr.mxu0 %v6317_v4 }
 0x1ba   : > { %7162 = vmatpush3.msra.mxu0 %v6301_v7 }
 0x1bb   : > { %7163 = vmatprep.subr.mxu0 %v6316_v9 }
 0x1bc   : > { %7164 = vmatpush3.msra.mxu0 %v6300_v56 }
 0x1bd   : > { %7165 = vmatprep.subr.mxu0 %v6315_v59 }
 0x1be   : > { %7166 = vmatpush3.msra.mxu0 %v6299_v10 }
 0x1bf   : > { %7167 = vmatprep.subr.mxu0 %v6314_v11 }
 0x1c0   : > { %7168 = vmatpush3.msra.mxu0 %v6298_v13 }
 0x1c1   : > { %7169 = vmatprep.subr.mxu0 %v6313_v54 }
 0x1c2   : > { %7170 = vmatpush3.msra.mxu0 %v6297_v58 }
 0x1c3   : > { %7171 = vmatprep.subr.mxu0 %v6312_v61 }
 0x1c4   : > { %7172 = vmatpush3.msra.mxu0 %v6296_v0 }
 0x1c5   : > { %7173 = vmatprep.subr.mxu0 %v6311_v16  ;;  %v6825_v16 = vadd.f32 %v6824_v5, %v6823_v25 }
 0x1c6   : > { %7174 = vmatpush3.msra.mxu0 %v6295_v23  ;;  %v6290_v23 = vld [vmem:[%s13162_s4] ss:$0 sm:$0xff] }
 0x1c7   : > { %7175 = vmatprep.subr.mxu0 %v6310_v57  ;;  %v1540_v31 = vadd.f32 %v6825_v16, %v6290_v23 }
 0x1c8   : > { %7176 = vmatpush3.msra.mxu0 %v6294_v32 }
 0x1c9   : > { %7177 = vmatprep.subr.mxu0 %v6309_v19 }
 0x1ca   : > { %7178 = vmatpush3.msra.mxu0 %v6293_v18 }
 0x1cb   : > { %7179 = vmatprep.subr.mxu0 %v6308_v22 }
 0x1cc   : > { %7180 = vmatpush3.msra.mxu0 %v6292_v63 }
 0x1cd   : > { %7181 = vmatprep.subr.mxu0 %v6307_v27 }
 0x1ce   : > { %7182 = vmatpush3.msra.mxu0 %v6291_v8 }
 0x1cf   : > { %7263 = vmatprep.subr.mxu0 %v6386_v52 }
 0x20f   : > { %v6826_v44 = vpop.f32.mrf.mxu1 }
 0x210   : > { %v6879_v33 = vpop.f32.mrf.mxu0 }
 0x211   : > { %v6827_v30 = vpop.f32.mrf.mxu1 }
 0x212   : > { %v6880_v62 = vpop.f32.mrf.mxu0  ;;  %v6828_v57 = vadd.f32 %v6827_v30, %v6826_v44 }
 0x213   : > { %v6829_v42 = vpop.f32.mrf.mxu1  ;;  %v6881_v18 = vadd.f32 %v6880_v62, %v6879_v33 }
 0x214   : > { %v6882_v24 = vpop.f32.mrf.mxu0 }
 0x215   : > { %v6830_v39 = vpop.f32.mrf.mxu1 }
 0x216   : > { %v6883_v26 = vpop.f32.mrf.mxu0  ;;  %v6831_v22 = vadd.f32 %v6830_v39, %v6829_v42 }
 0x217   : > { %v6832_v48 = vpop.f32.mrf.mxu1  ;;  %v6884_v63 = vadd.f32 %v6883_v26, %v6882_v24 }
 0x218   : > { %v1550_v30 = vadd.f32 %v6831_v22, %v6290_v23 }
 0x219   : > { %v6885_v28 = vpop.f32.mrf.mxu0  ;;  %v6833_v1 = vpop.f32.mrf.mxu1 }
 0x21a   : > { %v6834_v27 = vadd.f32 %v6833_v1, %v6832_v48 }
 0x21b   : > { %v6886_v17 = vpop.f32.mrf.mxu0  ;;  %v6835_v21 = vpop.f32.mrf.mxu1 }
 0x21c   : > { %v6887_v45 = vadd.f32 %v6886_v17, %v6885_v28  ;;  %v1555_v33 = vadd.f32 %v6834_v27, %v6290_v23 }
 0x21d   : > { %v6888_v40 = vpop.f32.mrf.mxu0  ;;  %v6836_v20 = vpop.f32.mrf.mxu1 }
 0x21e   : > { %v1655_v26 = vadd.f32 %v6887_v45, %v1550_v30 }
 0x21f   : > { %v6889_v14 = vpop.f32.mrf.mxu0  ;;  %v6838_v60 = vpop.f32.mrf.mxu1 }
 0x221   : > { %v6891_v15 = vpop.f32.mrf.mxu0  ;;  %v6839_v46 = vpop.f32.mrf.mxu1 }
 0x222   : > { %v6840_v62 = vadd.f32 %v6839_v46, %v6838_v60 }
 0x223   : > { %v6892_v29 = vpop.f32.mrf.mxu0  ;;  %v6841_v47 = vpop.f32.mrf.mxu1 }
 0x224   : > { %v6893_v39 = vadd.f32 %v6892_v29, %v6891_v15 }
 0x225   : > { %v6894_v12 = vpop.f32.mrf.mxu0  ;;  %v6842_v49 = vpop.f32.mrf.mxu1 }
 0x226   : > { %v6843_v48 = vadd.f32 %v6842_v49, %v6841_v47 }
 0x227   : > { %v6895_v34 = vpop.f32.mrf.mxu0  ;;  %v6844_v50 = vpop.f32.mrf.mxu1 }
 0x228   : > { %v1570_v45 = vadd.f32 %v6843_v48, %v6290_v23 }
 0x229   : > { %v6897_v38 = vpop.f32.mrf.mxu0  ;;  %v6845_v51 = vpop.f32.mrf.mxu1 }
 0x22b   : > { %v6898_v53 = vpop.f32.mrf.mxu0  ;;  %v6935_v35 = vpop.f32.mrf.mxu1 }
 0x22d   : > { %v10253_v36 = vpop.f32.mrf.mxu0  ;;  %v6936_v6 = vpop.f32.mrf.mxu1 }
 0x22e   : > { %13231 = vst [vmem:[#allocation6_spill] sm:$0xff] %v10253_v36  ;;  %v1645_v36 = vadd.f32 %v6881_v18, %v1540_v31  ;;  %v6937_v1 = vadd.f32 %v6936_v6, %v6935_v35  ;;  %v6899_v31 = vadd.f32 %v6898_v53, %v6897_v38 }
 0x22f   : > { %v6901_v41 = vpop.f32.mrf.mxu0 }
 0x230   : > { %v1750_v47 = vadd.f32 %v6937_v1, %v1645_v36  ;;  %v1675_v38 = vadd.f32 %v6899_v31, %v1570_v45 }
 0x231   : > { %v6991_v43 = vpop.f32.mrf.mxu0 }
 0x232   : > { %v6938_v55 = vpop.f32.mrf.mxu1 }
 0x233   : > { %v6992_v2 = vpop.f32.mrf.mxu0 }
 0x234   : > { %v6939_v37 = vpop.f32.mrf.mxu1 }
 0x235   : > { %v6994_v3 = vpop.f32.mrf.mxu0  ;;  %v6940_v44 = vadd.f32 %v6939_v37, %v6938_v55  ;;  %v6993_v55 = vadd.f32 %v6992_v2, %v6991_v43  ;;  %v13236_v15 = vld [vmem:[#allocation6_spill] sm:$0xff] }
 0x236   : > { %v6902_v46 = vadd.f32 %v6901_v41, %v13236_v15 }
 0x237   : > { %v6941_v4 = vpop.f32.mrf.mxu1  ;;  %v6995_v7 = vpop.f32.mrf.mxu0  ;;  %v1855_v2 = vadd.f32 %v6993_v55, %v1750_v47 }
 0x238   : > { %v6996_v28 = vadd.f32 %v6995_v7, %v6994_v3 }
 0x239   : > { %v6942_v9 = vpop.f32.mrf.mxu1  ;;  %v6997_v56 = vpop.f32.mrf.mxu0 }
 0x23a   : > { %v6943_v29 = vadd.f32 %v6942_v9, %v6941_v4 }
 0x23b   : > { %v6944_v59 = vpop.f32.mrf.mxu1  ;;  %v6998_v10 = vpop.f32.mrf.mxu0 }
 0x23d   : > { %v6945_v11 = vpop.f32.mrf.mxu1  ;;  %v7000_v13 = vpop.f32.mrf.mxu0 }
 0x23e   : > { %v6946_v37 = vadd.f32 %v6945_v11, %v6944_v59  ;;  %v1760_v59 = vadd.f32 %v6943_v29, %v1655_v26 }
 0x23f   : > { %v10255_v54 = vpop.f32.mrf.mxu1  ;;  %v7001_v58 = vpop.f32.mrf.mxu0 }
 0x240   : > { %13232 = vst [vmem:[#allocation7_spill] sm:$0xff] %v10255_v54  ;;  %v6837_v54 = vadd.f32 %v6836_v20, %v6835_v21  ;;  %v6846_v20 = vadd.f32 %v6845_v51, %v6844_v50  ;;  %v7002_v49 = vadd.f32 %v7001_v58, %v7000_v13 }
 0x241   : > { %v10257_v61 = vpop.f32.mrf.mxu1  ;;  %v10259_v0 = vpop.f32.mrf.mxu0 }
 0x242   : > { %13233 = vst [vmem:[#allocation10_spill] sm:$0xff] %v10257_v61  ;;  %13234 = vst [vmem:[#allocation5_spill] sm:$0xff] %v10259_v0  ;;  %v1545_v61 = vadd.f32 %v6828_v57, %v6290_v23  ;;  %v6890_v0 = vadd.f32 %v6889_v14, %v6888_v40  ;;  %v1560_v17 = vadd.f32 %v6837_v54, %v6290_v23 }
 0x243   : > { %v6950_v32 = vpop.f32.mrf.mxu1  ;;  %v10264_v19 = vpop.f32.mrf.mxu0  ;;  %v6896_v40 = vadd.f32 %v6895_v34, %v6894_v12  ;;  %v1575_v12 = vadd.f32 %v6846_v20, %v6290_v23  ;;  %v6999_v34 = vadd.f32 %v6998_v10, %v6997_v56 }
 0x244   : > { %13235 = vst [vmem:[#allocation4_spill] sm:$0xff] %v10264_v19  ;;  %v1650_v19 = vadd.f32 %v6884_v63, %v1545_v61  ;;  %v1660_v21 = vadd.f32 %v6890_v0, %v1555_v33  ;;  %v1565_v61 = vadd.f32 %v6840_v62, %v6290_v23  ;;  %v1665_v60 = vadd.f32 %v6893_v39, %v1560_v17 }
 0x245   : > { %v6951_v8 = vpop.f32.mrf.mxu1  ;;  %v7006_v52 = vpop.f32.mrf.mxu0  ;;  %v1680_v7 = vadd.f32 %v6902_v46, %v1575_v12  ;;  %v1865_v63 = vadd.f32 %v6999_v34, %v1760_v59  ;;  %v6337_v12 = vld [vmem:[%s13163_s5 + $0x370] sm:$0xff]  ;;  %v6352_v34 = vld [vmem:[%s13163_s5 + $0x3e8] sm:$0xff]  ;;  %v6334_v59 = vld [vmem:[%s13163_s5 + $0x358] sm:$0xff] }
 0x246   : > { %v1755_v57 = vadd.f32 %v6940_v44, %v1650_v19  ;;  %v1670_v3 = vadd.f32 %v6896_v40, %v1565_v61  ;;  %v6952_v50 = vadd.f32 %v6951_v8, %v6950_v32  ;;  %v1765_v53 = vadd.f32 %v6946_v37, %v1660_v21 }
 0x247   : > { %v10266_v25 = vpop.f32.mrf.mxu1  ;;  %v7007_v5 = vpop.f32.mrf.mxu0  ;;  %v13237_v11 = vld [vmem:[#allocation7_spill] sm:$0xff] }
 0x248   : > { %v1860_v6 = vadd.f32 %v6996_v28, %v1755_v57  ;;  %v7008_v9 = vadd.f32 %v7007_v5, %v7006_v52  ;;  %v1870_v0 = vadd.f32 %v7002_v49, %v1765_v53  ;;  %v1775_v23 = vadd.f32 %v6952_v50, %v1670_v3  ;;  %v6338_v49 = vld [vmem:[%s13163_s5 + $0x378] sm:$0xff]  ;;  %v6351_v53 = vld [vmem:[%s13163_s5 + $0x3e0] sm:$0xff] }
 0x249   : > { %v6954_v42 = vpop.f32.mrf.mxu1  ;;  %v10268_v24 = vpop.f32.mrf.mxu0  ;;  %v13238_v41 = vld [vmem:[#allocation10_spill] sm:$0xff]  ;;  %v13239_v56 = vld [vmem:[#allocation5_spill] sm:$0xff] }
 0x24a   : > { %v6949_v4 = vadd.f32 %v13238_v41, %v13237_v11  ;;  %v6955_v52 = vadd.f32 %v6954_v42, %v10266_v25  ;;  %v1880_v62 = vadd.f32 %v7008_v9, %v1775_v23  ;;  %v6349_v11 = vld [vmem:[%s13163_s5 + $0x3d0] sm:$0xff]  ;;  %v6348_v9 = vld [vmem:[%s13163_s5 + $0x3c8] sm:$0xff]  ;;  %v6330_v23 = vld [vmem:[%s13163_s5 + $0x338] sm:$0xff] }
 0x24b   : > { %v6956_v14 = vpop.f32.mrf.mxu1  ;;  %v7010_v16 = vpop.f32.mrf.mxu0  ;;  %v13240_v10 = vld [vmem:[#allocation4_spill] sm:$0xff]  ;;  %v6333_v41 = vld [vmem:[%s13163_s5 + $0x350] sm:$0xff] }
 0x24c   : > { %v7005_v32 = vadd.f32 %v13240_v10, %v13239_v56  ;;  %v1770_v44 = vadd.f32 %v6949_v4, %v1665_v60  ;;  %v7011_v28 = vadd.f32 %v7010_v16, %v10268_v24  ;;  %v1780_v20 = vadd.f32 %v6955_v52, %v1675_v38  ;;  %v6336_v38 = vld [vmem:[%s13163_s5 + $0x368] sm:$0xff]  ;;  %v6345_v56 = vld [vmem:[%s13163_s5 + $0x3b0] sm:$0xff]  ;;  %v6342_v52 = vld [vmem:[%s13163_s5 + $0x398] sm:$0xff] }
 0x24d   : > { %v6957_v18 = vpop.f32.mrf.mxu1  ;;  %v7012_v35 = vpop.f32.mrf.mxu0  ;;  %v6329_v10 = vld [vmem:[%s13163_s5 + $0x330] sm:$0xff] }
 0x24e   : > { %v6958_v19 = vadd.f32 %v6957_v18, %v6956_v14  ;;  %v1875_v21 = vadd.f32 %v7005_v32, %v1770_v44  ;;  %v1885_v37 = vadd.f32 %v7011_v28, %v1780_v20  ;;  %v6324_v28 = vld [vmem:[%s13163_s5 + $0x308] sm:$0xff]  ;;  %v6323_v20 = vld [vmem:[%s13163_s5 + $0x300] sm:$0xff] }
 0x24f   : > { %v8077_v51 = vpop.f32.mrf.mxu1  ;;  %v7013_v13 = vpop.f32.mrf.mxu0 }
 0x250   : > { %v1965_v43 = vadd.f32 %v8077_v51, %v1860_v6  ;;  %v7014_v5 = vadd.f32 %v7013_v13, %v7012_v35  ;;  %v1785_v1 = vadd.f32 %v6958_v19, %v1680_v7  ;;  %v6353_v35 = vld [vmem:[%s13163_s5 + $0x3f0] sm:$0xff]  ;;  %v6350_v7 = vld [vmem:[%s13163_s5 + $0x3d8] sm:$0xff]  ;;  %v6331_v13 = vld [vmem:[%s13163_s5 + $0x340] sm:$0xff] }
 0x251   : > { %v1959_v54 = vpop.f32.mrf.mxu1  ;;  %v6344_v19 = vld [vmem:[%s13163_s5 + $0x3a8] sm:$0xff] }
 0x252   : > { %vm1999_vm8 = vcmp.ge.f32.partialorder %v1965_v43, 0.0  ;;  %v2007_v36 = vmul.f32 0.1, %v1965_v43  ;;  %v1960_v58 = vadd.f32 %v1959_v54, %v1855_v2  ;;  %v1890_v31 = vadd.f32 %v7014_v5, %v1785_v1  ;;  %v6332_v54 = vld [vmem:[%s13163_s5 + $0x348] sm:$0xff]  ;;  %v6326_v5 = vld [vmem:[%s13163_s5 + $0x318] sm:$0xff] }
 0x253   : > { %v8080_v22 = vpop.f32.mrf.mxu1 }
 0x254   : > { %v10275_v27 = vsel %vm1999_vm8, %v1965_v43, %v2007_v36  ;;  %vm1998_vm9 = vcmp.ge.f32.partialorder %v1960_v58, 0.0  ;;  %v2006_v8 = vmul.f32 0.1, %v1960_v58  ;;  %v1975_v30 = vadd.f32 %v8080_v22, %v1870_v0  ;;  %v6335_v43 = vld [vmem:[%s13163_s5 + $0x360] sm:$0xff]  ;;  %v6346_v0 = vld [vmem:[%s13163_s5 + $0x3b8] sm:$0xff]  ;;  %v6328_v22 = vld [vmem:[%s13163_s5 + $0x328] sm:$0xff] }
 0x255   : > { %2023 = vst [vmem:[#allocation2 + $0x21] sm:$0xff] %v10275_v27  ;;  %v1969_v33 = vpop.f32.mrf.mxu1  ;;  %v6347_v36 = vld [vmem:[%s13163_s5 + $0x3c0] sm:$0xff] }
 0x256   : > { %v10279_v39 = vsel %vm1998_vm9, %v1960_v58, %v2006_v8  ;;  %vm2001_vm10 = vcmp.ge.f32.partialorder %v1975_v30, 0.0  ;;  %v2009_v26 = vmul.f32 0.1, %v1975_v30  ;;  %v1970_v48 = vadd.f32 %v1969_v33, %v1865_v63  ;;  %v6343_v63 = vld [vmem:[%s13163_s5 + $0x3a0] sm:$0xff]  ;;  %v6341_v33 = vld [vmem:[%s13163_s5 + $0x390] sm:$0xff] }
 0x257   : > { %2022 = vst [vmem:[#allocation2 + $0x11] sm:$0xff] %v10279_v39  ;;  %v8083_v17 = vpop.f32.mrf.mxu1  ;;  %2195 = vmatprep.mubr.f32.mxu0 %v10279_v39  ;;  %2295 = vmatprep.mubr.f32.mxu1 %v10279_v39  ;;  %v6327_v8 = vld [vmem:[%s13163_s5 + $0x320] sm:$0xff] }
 0x258   : > { %v10285_v25 = vsel %vm2001_vm10, %v1975_v30, %v2009_v26  ;;  %vm2000_vm11 = vcmp.ge.f32.partialorder %v1970_v48, 0.0  ;;  %v2008_v42 = vmul.f32 0.1, %v1970_v48  ;;  %v1985_v40 = vadd.f32 %v8083_v17, %v1880_v62  ;;  %v2377_v30 = vld [vmem:[#allocation2 + $0x2] sm:$0xff]  ;;  %v6325_v62 = vld [vmem:[%s13163_s5 + $0x310] sm:$0xff] }
 0x259   : > { %2025 = vst [vmem:[#allocation2 + $0x41] sm:$0xff] %v10285_v25  ;;  %v1979_v14 = vpop.f32.mrf.mxu1  ;;  %v6340_v26 = vld [vmem:[%s13163_s5 + $0x388] sm:$0xff] }
 0x25a   : > { %v10288_v57 = vsel %vm2000_vm11, %v1970_v48, %v2008_v42  ;;  %vm2003_vm12 = vcmp.ge.f32.partialorder %v1985_v40, 0.0  ;;  %v2011_v24 = vmul.f32 0.1, %v1985_v40  ;;  %v1980_v16 = vadd.f32 %v1979_v14, %v1875_v21  ;;  %v13241_v48 = vld [vmem:[#allocation8_spill] sm:$0xff]  ;;  %v6370_v21 = vld [vmem:[%s13163_s5 + $0x478] sm:$0xff]  ;;  %v6369_v14 = vld [vmem:[%s13163_s5 + $0x470] sm:$0xff] }
 0x25b   : > { %2024 = vst [vmem:[#allocation2 + $0x31] sm:$0xff] %v10288_v57  ;;  %v8086_v55 = vpop.f32.mrf.mxu1  ;;  %v6339_v42 = vld [vmem:[%s13163_s5 + $0x380] sm:$0xff] }
 0x25c   : > { %v10291_v61 = vsel %vm2003_vm12, %v1985_v40, %v2011_v24  ;;  %vm2002_vm13 = vcmp.ge.f32.partialorder %v1980_v16, 0.0  ;;  %v2010_v60 = vmul.f32 0.1, %v1980_v16  ;;  %v1995_v15 = vadd.f32 %v8086_v55, %v1890_v31  ;;  %v10320_v51 = vld [vmem:[#allocation2 + $0x20] sm:$0xff]  ;;  %v6385_v40 = vld [vmem:[%s13163_s5 + $0x4f0] sm:$0xff]  ;;  %v6384_v31 = vld [vmem:[%s13163_s5 + $0x4e8] sm:$0xff] }
 0x25d   : > { %2027 = vst [vmem:[#allocation2 + $0x61] sm:$0xff] %v10291_v61  ;;  %v1989_v46 = vpop.f32.mrf.mxu1  ;;  %v6418_v24 = vld [vmem:[%s13163_s5 + $0x5f8] sm:$0xff]  ;;  %v10465_v55 = vld [vmem:[#allocation2 + $0x22] sm:$0xff] }
 0x25e   : > { %v10294_v29 = vsel %vm2002_vm13, %v1980_v16, %v2010_v60  ;;  %vm2005_vm14 = vcmp.ge.f32.partialorder %v1995_v15, 0.0  ;;  %v2013_v18 = vmul.f32 0.1, %v1995_v15  ;;  %v1990_v45 = vadd.f32 %v1989_v46, %v1885_v37  ;;  %v10296_v47 = vld [vmem:[#allocation2 + $0x10] sm:$0xff]  ;;  %v6368_v16 = vld [vmem:[%s13163_s5 + $0x468] sm:$0xff]  ;;  %v6402_v37 = vld [vmem:[%s13163_s5 + $0x578] sm:$0xff] }
 0x25f   : > { %2026 = vst [vmem:[#allocation2 + $0x51] sm:$0xff] %v10294_v29  ;;  %2196 = vmatmul.mubr.f32.gmra.mxu0 %v10296_v47  ;;  %2296 = vmatmul.mubr.f32.vlgmr.msra.gmra.mxu1 %v10296_v47  ;;  %v10429_v1 = vld [vmem:[#allocation2 + $0x12] sm:$0xff]  ;;  %v6383_v60 = vld [vmem:[%s13163_s5 + $0x4e0] sm:$0xff] }
 0x260   : > { %v10307_v6 = vsel %vm2005_vm14, %v1995_v15, %v2013_v18  ;;  %vm2004_vm15 = vcmp.ge.f32.partialorder %v1990_v45, 0.0  ;;  %v2012_v3 = vmul.f32 0.1, %v1990_v45  ;;  %2200 = vmatprep.mubr.f32.mxu0 %v10275_v27  ;;  %2300 = vmatprep.mubr.f32.mxu1 %v10275_v27  ;;  %v10354_v4 = vld [vmem:[#allocation2 + $0x40] sm:$0xff]  ;;  %v6417_v15 = vld [vmem:[%s13163_s5 + $0x5f0] sm:$0xff] }
 0x261   : > { %2029 = vst [vmem:[#allocation2 + $0x81] sm:$0xff] %v10307_v6  ;;  %7208 = vmatpush3.msra.mxu1 %v6338_v49  ;;  %v6367_v46 = vld [vmem:[%s13163_s5 + $0x460] sm:$0xff]  ;;  %v6401_v18 = vld [vmem:[%s13163_s5 + $0x570] sm:$0xff]  ;;  %v6416_v49 = vld [vmem:[%s13163_s5 + $0x5e8] sm:$0xff] }
 0x262   : > { %v10318_v50 = vsel %vm2004_vm15, %v1990_v45, %v2012_v3  ;;  %7209 = vmatprep.subr.mxu1 %v6353_v35  ;;  %v10336_v2 = vld [vmem:[#allocation2 + $0x30] sm:$0xff]  ;;  %v6382_v45 = vld [vmem:[%s13163_s5 + $0x4d8] sm:$0xff] }
 0x263   : > { %2028 = vst [vmem:[#allocation2 + $0x71] sm:$0xff] %v10318_v50  ;;  %7210 = vmatpush3.msra.mxu1 %v6337_v12  ;;  %2201 = vmatmul.mubr.f32.gmra.mxu0 %v10320_v51  ;;  %v6366_v35 = vld [vmem:[%s13163_s5 + $0x458] sm:$0xff]  ;;  %v6400_v12 = vld [vmem:[%s13163_s5 + $0x568] sm:$0xff] }
 0x264   : > { %2301 = vmatmul.mubr.f32.gmra.mxu1 %v10320_v51  ;;  %7211 = vmatprep.subr.mxu1 %v6352_v34  ;;  %v10390_v32 = vld [vmem:[#allocation2 + $0x60] sm:$0xff]  ;;  %v10495_v3 = vld [vmem:[#allocation2 + $0x32] sm:$0xff] }
 0x265   : > { %2205 = vmatprep.mubr.f32.mxu0 %v10288_v57  ;;  %2305 = vmatprep.mubr.f32.mxu1 %v10288_v57  ;;  %v6381_v34 = vld [vmem:[%s13163_s5 + $0x4d0] sm:$0xff] }
 0x266   : > { %7212 = vmatpush3.msra.mxu1 %v6336_v38  ;;  %v10372_v58 = vld [vmem:[#allocation2 + $0x50] sm:$0xff]  ;;  %v6415_v38 = vld [vmem:[%s13163_s5 + $0x5e0] sm:$0xff] }
 0x267   : > { %7213 = vmatprep.subr.mxu1 %v6351_v53  ;;  %2206 = vmatmul.mubr.f32.gmra.mxu0 %v10336_v2  ;;  %v6365_v53 = vld [vmem:[%s13163_s5 + $0x450] sm:$0xff] }
 0x268   : > { %7214 = vmatpush3.msra.mxu1 %v6335_v43  ;;  %2210 = vmatprep.mubr.f32.mxu0 %v10285_v25  ;;  %v10434_v17 = vld [vmem:[#allocation2 + $0x80] sm:$0xff] }
 0x269   : > { %2306 = vmatmul.mubr.f32.gmra.mxu1 %v10336_v2  ;;  %7215 = vmatprep.subr.mxu1 %v6350_v7  ;;  %v6399_v43 = vld [vmem:[%s13163_s5 + $0x560] sm:$0xff]  ;;  %v6380_v7 = vld [vmem:[%s13163_s5 + $0x4c8] sm:$0xff] }
 0x26a   : > { %2310 = vmatprep.mubr.f32.mxu1 %v10285_v25  ;;  %7216 = vmatpush3.msra.mxu1 %v6334_v59  ;;  %v10408_v44 = vld [vmem:[#allocation2 + $0x70] sm:$0xff]  ;;  %v6414_v59 = vld [vmem:[%s13163_s5 + $0x5d8] sm:$0xff] }
 0x26b   : > { %7217 = vmatprep.subr.mxu1 %v6349_v11  ;;  %2211 = vmatmul.mubr.f32.gmra.mxu0 %v10354_v4  ;;  %v6364_v11 = vld [vmem:[%s13163_s5 + $0x448] sm:$0xff] }
 0x26c   : > { %7218 = vmatpush3.msra.mxu1 %v6333_v41  ;;  %2215 = vmatprep.mubr.f32.mxu0 %v10294_v29  ;;  %v10525_v41 = vld [vmem:[#allocation2 + $0x42] sm:$0xff] }
 0x26d   : > { %2311 = vmatmul.mubr.f32.gmra.mxu1 %v10354_v4  ;;  %7219 = vmatprep.subr.mxu1 %v6348_v9  ;;  %v6398_v9 = vld [vmem:[%s13163_s5 + $0x558] sm:$0xff] }
 0x26e   : > { %2315 = vmatprep.mubr.f32.mxu1 %v10294_v29  ;;  %7220 = vmatpush3.msra.mxu1 %v6332_v54  ;;  %v6379_v54 = vld [vmem:[%s13163_s5 + $0x4c0] sm:$0xff] }
 0x26f   : > { %7221 = vmatprep.subr.mxu1 %v6347_v36  ;;  %2216 = vmatmul.mubr.f32.gmra.mxu0 %v10372_v58  ;;  %v6413_v36 = vld [vmem:[%s13163_s5 + $0x5d0] sm:$0xff] }
 0x270   : > { %7222 = vmatpush3.msra.mxu1 %v6331_v13  ;;  %2220 = vmatprep.mubr.f32.mxu0 %v10291_v61  ;;  %v6363_v13 = vld [vmem:[%s13163_s5 + $0x440] sm:$0xff] }
 0x271   : > { %2316 = vmatmul.mubr.f32.gmra.mxu1 %v10372_v58  ;;  %7223 = vmatprep.subr.mxu1 %v6346_v0  ;;  %v6397_v0 = vld [vmem:[%s13163_s5 + $0x550] sm:$0xff] }
 0x272   : > { %2320 = vmatprep.mubr.f32.mxu1 %v10291_v61  ;;  %7224 = vmatpush3.msra.mxu1 %v6330_v23  ;;  %v6378_v23 = vld [vmem:[%s13163_s5 + $0x4b8] sm:$0xff] }
 0x273   : > { %7225 = vmatprep.subr.mxu1 %v6345_v56  ;;  %2221 = vmatmul.mubr.f32.gmra.mxu0 %v10390_v32  ;;  %v6412_v56 = vld [vmem:[%s13163_s5 + $0x5c8] sm:$0xff] }
 0x274   : > { %7226 = vmatpush3.msra.mxu1 %v6329_v10  ;;  %2225 = vmatprep.mubr.f32.mxu0 %v10318_v50  ;;  %v6362_v10 = vld [vmem:[%s13163_s5 + $0x438] sm:$0xff] }
 0x275   : > { %2321 = vmatmul.mubr.f32.gmra.mxu1 %v10390_v32  ;;  %7227 = vmatprep.subr.mxu1 %v6344_v19  ;;  %v10555_v19 = vld [vmem:[#allocation2 + $0x52] sm:$0xff] }
 0x276   : > { %2325 = vmatprep.mubr.f32.mxu1 %v10318_v50  ;;  %7228 = vmatpush3.msra.mxu1 %v6328_v22  ;;  %v6396_v22 = vld [vmem:[%s13163_s5 + $0x548] sm:$0xff] }
 0x277   : > { %7229 = vmatprep.subr.mxu1 %v6343_v63  ;;  %2226 = vmatmul.mubr.f32.gmra.mxu0 %v10408_v44  ;;  %v6377_v63 = vld [vmem:[%s13163_s5 + $0x4b0] sm:$0xff] }
 0x278   : > { %7230 = vmatpush3.msra.mxu1 %v6327_v8  ;;  %2530 = vmatprep.mubr.f32.mxu0 %v2377_v30  ;;  %v6411_v8 = vld [vmem:[%s13163_s5 + $0x5c0] sm:$0xff]  ;;  %v6361_v30 = vld [vmem:[%s13163_s5 + $0x430] sm:$0xff] }
 0x279   : > { %2326 = vmatmul.mubr.f32.gmra.mxu1 %v10408_v44  ;;  %7231 = vmatprep.subr.mxu1 %v6342_v52  ;;  %v6395_v52 = vld [vmem:[%s13163_s5 + $0x540] sm:$0xff] }
 0x27a   : > { %2330 = vmatprep.mubr.f32.mxu1 %v10307_v6  ;;  %7232 = vmatpush3.msra.mxu1 %v6326_v5  ;;  %v6376_v5 = vld [vmem:[%s13163_s5 + $0x4a8] sm:$0xff] }
 0x27b   : > { %7233 = vmatprep.subr.mxu1 %v6341_v33  ;;  %2531 = vmatmul.mubr.f32.vlgmr.msra.gmra.mxu0 %v13241_v48  ;;  %v6410_v33 = vld [vmem:[%s13163_s5 + $0x5b8] sm:$0xff] }
 0x27c   : > { %7234 = vmatpush3.msra.mxu1 %v6325_v62  ;;  %2535 = vmatprep.mubr.f32.mxu0 %v10429_v1  ;;  %v6360_v62 = vld [vmem:[%s13163_s5 + $0x428] sm:$0xff]  ;;  %v6394_v48 = vld [vmem:[%s13163_s5 + $0x538] sm:$0xff] }
 0x27d   : > { %2331 = vmatmul.mubr.f32.gmra.mxu1 %v10434_v17  ;;  %7235 = vmatprep.subr.mxu1 %v6340_v26  ;;  %v10585_v26 = vld [vmem:[#allocation2 + $0x62] sm:$0xff] }
 0x27e   : > { %7236 = vmatpush3.msra.mxu1 %v6324_v28  ;;  %2635 = vmatprep.mubr.f32.mxu1 %v10429_v1  ;;  %v6375_v28 = vld [vmem:[%s13163_s5 + $0x4a0] sm:$0xff] }
 0x27f   : > { %7264 = vmatpush3.msra.mxu0 %v6370_v21  ;;  %7237 = vmatprep.subr.mxu1 %v6339_v42  ;;  %v6409_v21 = vld [vmem:[%s13163_s5 + $0x5b0] sm:$0xff]  ;;  %v6359_v42 = vld [vmem:[%s13163_s5 + $0x420] sm:$0xff] }
 0x280   : > { %7265 = vmatprep.subr.mxu0 %v6385_v40  ;;  %7238 = vmatpush3.msra.mxu1 %v6323_v20  ;;  %v6393_v40 = vld [vmem:[%s13163_s5 + $0x530] sm:$0xff]  ;;  %v6374_v20 = vld [vmem:[%s13163_s5 + $0x498] sm:$0xff] }
 0x281   : > { %7266 = vmatpush3.msra.mxu0 %v6369_v14  ;;  %2636 = vmatmul.mubr.f32.vlgmr.msra.gmra.mxu1 %v10279_v39  ;;  %v6408_v14 = vld [vmem:[%s13163_s5 + $0x5a8] sm:$0xff] }
 0x282   : > { %2536 = vmatmul.mubr.f32.gmra.mxu0 %v10279_v39  ;;  %7267 = vmatprep.subr.mxu0 %v6384_v31  ;;  %v6358_v31 = vld [vmem:[%s13163_s5 + $0x418] sm:$0xff] }
 0x283   : > { %7319 = vmatprep.subr.mxu1 %v6418_v24  ;;  %2540 = vmatprep.mubr.f32.mxu0 %v10465_v55  ;;  %v10615_v24 = vld [vmem:[#allocation2 + $0x72] sm:$0xff] }
 0x284   : > { %2640 = vmatprep.mubr.f32.mxu1 %v10465_v55  ;;  %7268 = vmatpush3.msra.mxu0 %v6368_v16  ;;  %v6392_v16 = vld [vmem:[%s13163_s5 + $0x528] sm:$0xff] }
 0x285   : > { %7320 = vmatpush3.msra.mxu1 %v6402_v37  ;;  %7269 = vmatprep.subr.mxu0 %v6383_v60  ;;  %v6373_v37 = vld [vmem:[%s13163_s5 + $0x490] sm:$0xff]  ;;  %v10627_v60 = vld [vmem:[%s13163_s5 + $0x5a0] sm:$0xff] }
 0x286   : > { %7321 = vmatprep.subr.mxu1 %v6417_v15  ;;  %7270 = vmatpush3.msra.mxu0 %v6367_v46  ;;  %v10638_v15 = vld [vmem:[%s13163_s5 + $0x520] sm:$0xff]  ;;  %v10643_v46 = vld [vmem:[%s13163_s5 + $0x488] sm:$0xff] }
 0x287   : > { %7322 = vmatpush3.msra.mxu1 %v6401_v18  ;;  %2541 = vmatmul.mubr.f32.gmra.mxu0 %v10275_v27  ;;  %v13242_v18 = vld [vmem:[#allocation9_spill] sm:$0xff] }
 0x288   : > { %2641 = vmatmul.mubr.f32.gmra.mxu1 %v10275_v27  ;;  %7271 = vmatprep.subr.mxu0 %v6382_v45  ;;  %323 = vst.msk [vmem:[#allocation3 + $0x10] sm:$0xff] %vm319_vm0, %v13242_v18  ;;  %325 = vst.msk [vmem:[#allocation3 + $0x20] sm:$0xff] %vm319_vm0, %v13242_v18  ;;  %v10671_v45 = vld [vmem:[#allocation2] sm:$0xff] }
 0x289   : > { %7323 = vmatprep.subr.mxu1 %v6416_v49  ;;  %2545 = vmatprep.mubr.f32.mxu0 %v10495_v3  ;;  %324 = vst.msk [vmem:[#allocation3 + $0x18] sm:$0x3] %vm321_vm1, %v13242_v18  ;;  %326 = vst.msk [vmem:[#allocation3 + $0x28] sm:$0x3] %vm321_vm1, %v13242_v18  ;;  %v6406_v49 = vld [vmem:[%s13163_s5 + $0x598] sm:$0xff] }
 0x28a   : > { %2645 = vmatprep.mubr.f32.mxu1 %v10495_v3  ;;  %7272 = vmatpush3.msra.mxu0 %v6366_v35  ;;  %327 = vst.msk [vmem:[#allocation3 + $0x30] sm:$0xff] %vm319_vm0, %v13242_v18  ;;  %329 = vst.msk [vmem:[#allocation3 + $0x40] sm:$0xff] %vm319_vm0, %v13242_v18  ;;  %v6356_v35 = vld [vmem:[%s13163_s5 + $0x408] sm:$0xff] }
 0x28b   : > { %7324 = vmatpush3.msra.mxu1 %v6400_v12  ;;  %7273 = vmatprep.subr.mxu0 %v6381_v34  ;;  %328 = vst.msk [vmem:[#allocation3 + $0x38] sm:$0x3] %vm321_vm1, %v13242_v18  ;;  %330 = vst.msk [vmem:[#allocation3 + $0x48] sm:$0x3] %vm321_vm1, %v13242_v18  ;;  %v10803_v12 = vld [vmem:[#allocation2 + $0x82] sm:$0xff]  ;;  %v6390_v34 = vld [vmem:[%s13163_s5 + $0x518] sm:$0xff] }
 0x28c   : > { %7325 = vmatprep.subr.mxu1 %v6415_v38  ;;  %7274 = vmatpush3.msra.mxu0 %v6365_v53  ;;  %331 = vst.msk [vmem:[#allocation3 + $0x50] sm:$0xff] %vm319_vm0, %v13242_v18  ;;  %333 = vst.msk [vmem:[#allocation3 + $0x60] sm:$0xff] %vm319_vm0, %v13242_v18  ;;  %v6371_v38 = vld [vmem:[%s13163_s5 + $0x480] sm:$0xff]  ;;  %v6405_v53 = vld [vmem:[%s13163_s5 + $0x590] sm:$0xff] }
 0x28d   : > { %7326 = vmatpush3.msra.mxu1 %v6399_v43  ;;  %2546 = vmatmul.mubr.f32.gmra.mxu0 %v10288_v57  ;;  %332 = vst.msk [vmem:[#allocation3 + $0x58] sm:$0x3] %vm321_vm1, %v13242_v18  ;;  %334 = vst.msk [vmem:[#allocation3 + $0x68] sm:$0x3] %vm321_vm1, %v13242_v18  ;;  %v6355_v43 = vld [vmem:[%s13163_s5 + $0x400] sm:$0xff] }
 0x28e   : > { %2646 = vmatmul.mubr.f32.gmra.mxu1 %v10288_v57  ;;  %7275 = vmatprep.subr.mxu0 %v6380_v7  ;;  %335 = vst.msk [vmem:[#allocation3 + $0x70] sm:$0xff] %vm319_vm0, %v13242_v18  ;;  %337 = vst.msk [vmem:[#allocation3 + $0x80] sm:$0xff] %vm319_vm0, %v10671_v45  ;;  %v6389_v7 = vld [vmem:[%s13163_s5 + $0x510] sm:$0xff]  ;;  %v6474_v18 = vld [vmem:[%s13163_s5 + $0x7b8] sm:$0xff] }
 0x28f   : > { %7327 = vmatprep.subr.mxu1 %v6414_v59  ;;  %2550 = vmatprep.mubr.f32.mxu0 %v10525_v41  ;;  %336 = vst.msk [vmem:[#allocation3 + $0x78] sm:$0x3] %vm321_vm1, %v10671_v45  ;;  %338 = vst.msk [vmem:[#allocation3 + $0x88] sm:$0x3] %vm321_vm1, %v10671_v45  ;;  %v6404_v59 = vld [vmem:[%s13163_s5 + $0x588] sm:$0xff] }
 0x290   : > { %2650 = vmatprep.mubr.f32.mxu1 %v10525_v41  ;;  %7276 = vmatpush3.msra.mxu0 %v6364_v11  ;;  %339 = vst.msk [vmem:[#allocation3 + $0x90] sm:$0xff] %vm319_vm0, %v10671_v45  ;;  %343 = vst.msk [vmem:[#allocation3 + $0xb0] sm:$0xff] %vm319_vm0, %v10671_v45  ;;  %v6450_v11 = vld [vmem:[%s13163_s5 + $0x6f8] sm:$0xff] }
 0x291   : > { %7328 = vmatpush3.msra.mxu1 %v6398_v9  ;;  %7277 = vmatprep.subr.mxu0 %v6379_v54  ;;  %340 = vst.msk [vmem:[#allocation3 + $0x98] sm:$0x3] %vm321_vm1, %v10671_v45  ;;  %344 = vst.msk [vmem:[#allocation3 + $0xb8] sm:$0x3] %vm321_vm1, %v10671_v45  ;;  %v6434_v9 = vld [vmem:[%s13163_s5 + $0x678] sm:$0xff]  ;;  %v6403_v54 = vld [vmem:[%s13163_s5 + $0x580] sm:$0xff] }
 0x292   : > { %7329 = vmatprep.subr.mxu1 %v6413_v36  ;;  %7278 = vmatpush3.msra.mxu0 %v6363_v13  ;;  %345 = vst.msk [vmem:[#allocation3 + $0xc0] sm:$0xff] %vm319_vm0, %v10671_v45  ;;  %347 = vst.msk [vmem:[#allocation3 + $0xd0] sm:$0xff] %vm319_vm0, %v10671_v45  ;;  %v6433_v36 = vld [vmem:[%s13163_s5 + $0x670] sm:$0xff]  ;;  %v6448_v13 = vld [vmem:[%s13163_s5 + $0x6e8] sm:$0xff] }
 0x293   : > { %7330 = vmatpush3.msra.mxu1 %v6397_v0  ;;  %2551 = vmatmul.mubr.f32.gmra.mxu0 %v10285_v25  ;;  %346 = vst.msk [vmem:[#allocation3 + $0xc8] sm:$0x3] %vm321_vm1, %v10671_v45  ;;  %348 = vst.msk [vmem:[#allocation3 + $0xd8] sm:$0x3] %vm321_vm1, %v10671_v45  ;;  %v6482_v0 = vld [vmem:[%s13163_s5 + $0x7f8] sm:$0xff] }
 0x294   : > { %2651 = vmatmul.mubr.f32.gmra.mxu1 %v10285_v25  ;;  %7279 = vmatprep.subr.mxu0 %v6378_v23  ;;  %349 = vst.msk [vmem:[#allocation3 + $0xe0] sm:$0xff] %vm319_vm0, %v10671_v45  ;;  %351 = vst.msk [vmem:[#allocation3 + $0xf0] sm:$0xff] %vm319_vm0, %v10671_v45  ;;  %v6466_v23 = vld [vmem:[%s13163_s5 + $0x778] sm:$0xff] }
 0x295   : > { %7331 = vmatprep.subr.mxu1 %v6412_v56  ;;  %2555 = vmatprep.mubr.f32.mxu0 %v10555_v19  ;;  %350 = vst.msk [vmem:[#allocation3 + $0xe8] sm:$0x3] %vm321_vm1, %v10671_v45  ;;  %352 = vst.msk [vmem:[#allocation3 + $0xf8] sm:$0x3] %vm321_vm1, %v10671_v45  ;;  %v6447_v56 = vld [vmem:[%s13163_s5 + $0x6e0] sm:$0xff] }
 0x296   : > { %2655 = vmatprep.mubr.f32.mxu1 %v10555_v19  ;;  %7280 = vmatpush3.msra.mxu0 %v6362_v10  ;;  %353 = vst.msk [vmem:[#allocation3 + $0x100] sm:$0xff] %vm319_vm0, %v10671_v45  ;;  %355 = vst.msk [vmem:[#allocation3 + $0x110] sm:$0xff] %vm319_vm0, %v10671_v45  ;;  %v6481_v10 = vld [vmem:[%s13163_s5 + $0x7f0] sm:$0xff] }
 0x297   : > { %7332 = vmatpush3.msra.mxu1 %v6396_v22  ;;  %7281 = vmatprep.subr.mxu0 %v6377_v63  ;;  %354 = vst.msk [vmem:[#allocation3 + $0x108] sm:$0x3] %vm321_vm1, %v10671_v45  ;;  %356 = vst.msk [vmem:[#allocation3 + $0x118] sm:$0x3] %vm321_vm1, %v10671_v45  ;;  %v6465_v22 = vld [vmem:[%s13163_s5 + $0x770] sm:$0xff]  ;;  %v6446_v63 = vld [vmem:[%s13163_s5 + $0x6d8] sm:$0xff] }
 0x298   : > { %7333 = vmatprep.subr.mxu1 %v6411_v8  ;;  %7282 = vmatpush3.msra.mxu0 %v6361_v30  ;;  %357 = vst.msk [vmem:[#allocation3 + $0x120] sm:$0xff] %vm319_vm0, %v10671_v45  ;;  %359 = vst.msk [vmem:[#allocation3 + $0x130] sm:$0xff] %vm319_vm0, %v10671_v45  ;;  %v6480_v8 = vld [vmem:[%s13163_s5 + $0x7e8] sm:$0xff] }
 0x299   : > { %7334 = vmatpush3.msra.mxu1 %v6395_v52  ;;  %2556 = vmatmul.mubr.f32.gmra.mxu0 %v10294_v29  ;;  %358 = vst.msk [vmem:[#allocation3 + $0x128] sm:$0x3] %vm321_vm1, %v10671_v45  ;;  %360 = vst.msk [vmem:[#allocation3 + $0x138] sm:$0x3] %vm321_vm1, %v10671_v45  ;;  %v6464_v30 = vld [vmem:[%s13163_s5 + $0x768] sm:$0xff]  ;;  %v6445_v52 = vld [vmem:[%s13163_s5 + $0x6d0] sm:$0xff] }
 0x29a   : > { %2656 = vmatmul.mubr.f32.gmra.mxu1 %v10294_v29  ;;  %7283 = vmatprep.subr.mxu0 %v6376_v5  ;;  %361 = vst.msk [vmem:[#allocation3 + $0x140] sm:$0xff] %vm319_vm0, %v10671_v45  ;;  %363 = vst.msk [vmem:[#allocation3 + $0x150] sm:$0xff] %vm319_vm0, %v10671_v45  ;;  %v10896_v5 = vld [vmem:[#allocation2 + $0x41] sm:$0xff] }
 0x29b   : > { %7335 = vmatprep.subr.mxu1 %v6410_v33  ;;  %2560 = vmatprep.mubr.f32.mxu0 %v10585_v26  ;;  %362 = vst.msk [vmem:[#allocation3 + $0x148] sm:$0x3] %vm321_vm1, %v10671_v45  ;;  %364 = vst.msk [vmem:[#allocation3 + $0x158] sm:$0x3] %vm321_vm1, %v10671_v45  ;;  %v6479_v33 = vld [vmem:[%s13163_s5 + $0x7e0] sm:$0xff] }
 0x29c   : > { %2660 = vmatprep.mubr.f32.mxu1 %v10585_v26  ;;  %7284 = vmatpush3.msra.mxu0 %v6360_v62  ;;  %365 = vst.msk [vmem:[#allocation3 + $0x160] sm:$0xff] %vm319_vm0, %v10671_v45  ;;  %367 = vst.msk [vmem:[#allocation3 + $0x170] sm:$0xff] %vm319_vm0, %v10671_v45  ;;  %v6463_v62 = vld [vmem:[%s13163_s5 + $0x760] sm:$0xff] }
 0x29d   : > { %7336 = vmatpush3.msra.mxu1 %v6394_v48  ;;  %7285 = vmatprep.subr.mxu0 %v6375_v28  ;;  %366 = vst.msk [vmem:[#allocation3 + $0x168] sm:$0x3] %vm321_vm1, %v10671_v45  ;;  %368 = vst.msk [vmem:[#allocation3 + $0x178] sm:$0x3] %vm321_vm1, %v10671_v45  ;;  %v6478_v48 = vld [vmem:[%s13163_s5 + $0x7d8] sm:$0xff]  ;;  %v6428_v28 = vld [vmem:[%s13163_s5 + $0x648] sm:$0xff] }
 0x29e   : > { %7337 = vmatprep.subr.mxu1 %v6409_v21  ;;  %7286 = vmatpush3.msra.mxu0 %v6359_v42  ;;  %369 = vst.msk [vmem:[#allocation3 + $0x180] sm:$0xff] %vm319_vm0, %v10671_v45  ;;  %371 = vst.msk [vmem:[#allocation3 + $0x190] sm:$0xff] %vm319_vm0, %v10671_v45  ;;  %v6462_v21 = vld [vmem:[%s13163_s5 + $0x758] sm:$0xff]  ;;  %v6443_v42 = vld [vmem:[%s13163_s5 + $0x6c0] sm:$0xff] }
 0x29f   : > { %7338 = vmatpush3.msra.mxu1 %v6393_v40  ;;  %2561 = vmatmul.mubr.f32.gmra.mxu0 %v10291_v61  ;;  %370 = vst.msk [vmem:[#allocation3 + $0x188] sm:$0x3] %vm321_vm1, %v10671_v45  ;;  %372 = vst.msk [vmem:[#allocation3 + $0x198] sm:$0x3] %vm321_vm1, %v10671_v45  ;;  %v6477_v40 = vld [vmem:[%s13163_s5 + $0x7d0] sm:$0xff] }
 0x2a0   : > { %2661 = vmatmul.mubr.f32.gmra.mxu1 %v10291_v61  ;;  %7287 = vmatprep.subr.mxu0 %v6374_v20  ;;  %v10632_v61 = vld [vmem:[%s13163_s5 + $0x410] sm:$0xff]  ;;  %373 = vst.msk [vmem:[#allocation3 + $0x1a0] sm:$0xff] %vm319_vm0, %v10671_v45  ;;  %375 = vst.msk [vmem:[#allocation3 + $0x1b0] sm:$0xff] %vm319_vm0, %v10671_v45 }
 0x2a1   : > { %7339 = vmatprep.subr.mxu1 %v6408_v14  ;;  %2565 = vmatprep.mubr.f32.mxu0 %v10615_v24  ;;  %374 = vst.msk [vmem:[#allocation3 + $0x1a8] sm:$0x3] %vm321_vm1, %v10671_v45  ;;  %376 = vst.msk [vmem:[#allocation3 + $0x1b8] sm:$0x3] %vm321_vm1, %v10671_v45  ;;  %v6461_v20 = vld [vmem:[%s13163_s5 + $0x750] sm:$0xff]  ;;  %v6442_v14 = vld [vmem:[%s13163_s5 + $0x6b8] sm:$0xff] }
 0x2a2   : > { %2665 = vmatprep.mubr.f32.mxu1 %v10615_v24  ;;  %7288 = vmatpush3.msra.mxu0 %v6358_v31  ;;  %377 = vst.msk [vmem:[#allocation3 + $0x1c0] sm:$0xff] %vm319_vm0, %v10671_v45  ;;  %381 = vst.msk [vmem:[#allocation3 + $0x1e0] sm:$0xff] %vm319_vm0, %v10671_v45  ;;  %v6476_v31 = vld [vmem:[%s13163_s5 + $0x7c8] sm:$0xff] }
 0x2a3   : > { %7340 = vmatpush3.msra.mxu1 %v6392_v16  ;;  %7289 = vmatprep.subr.mxu0 %v6373_v37  ;;  %378 = vst.msk [vmem:[#allocation3 + $0x1c8] sm:$0x3] %vm321_vm1, %v10671_v45  ;;  %382 = vst.msk [vmem:[#allocation3 + $0x1e8] sm:$0x3] %vm321_vm1, %v10671_v45  ;;  %v10947_v16 = vld [vmem:[#allocation2 + $0x61] sm:$0xff] }
 0x2a4   : > { %383 = vst.msk [vmem:[#allocation3 + $0x1f0] sm:$0xff] %vm319_vm0, %v10671_v45  ;;  %385 = vst.msk [vmem:[#allocation3 + $0x200] sm:$0xff] %vm319_vm0, %v10671_v45  ;;  %7341 = vmatprep.subr.mxu1 %v10627_v60  ;;  %7290 = vmatpush3.msra.mxu0 %v10632_v61  ;;  %v6460_v37 = vld [vmem:[%s13163_s5 + $0x748] sm:$0xff]  ;;  %v6441_v60 = vld [vmem:[%s13163_s5 + $0x6b0] sm:$0xff] }
 0x2a5   : > { %384 = vst.msk [vmem:[#allocation3 + $0x1f8] sm:$0x3] %vm321_vm1, %v10671_v45  ;;  %386 = vst.msk [vmem:[#allocation3 + $0x208] sm:$0x3] %vm321_vm1, %v10671_v45  ;;  %7342 = vmatpush3.msra.mxu1 %v10638_v15  ;;  %2566 = vmatmul.mubr.f32.gmra.mxu0 %v10318_v50  ;;  %v6475_v61 = vld [vmem:[%s13163_s5 + $0x7c0] sm:$0xff] }
 0x2a6   : > { %387 = vst.msk [vmem:[#allocation3 + $0x210] sm:$0xff] %vm319_vm0, %v10671_v45  ;;  %389 = vst.msk [vmem:[#allocation3 + $0x220] sm:$0xff] %vm319_vm0, %v10671_v45  ;;  %2666 = vmatmul.mubr.f32.gmra.mxu1 %v10318_v50  ;;  %7291 = vmatprep.subr.mxu0 %v10643_v46  ;;  %v6459_v15 = vld [vmem:[%s13163_s5 + $0x740] sm:$0xff]  ;;  %v6440_v46 = vld [vmem:[%s13163_s5 + $0x6a8] sm:$0xff] }
 0x2a7   : > { %388 = vst.msk [vmem:[#allocation3 + $0x218] sm:$0x3] %vm321_vm1, %v10671_v45  ;;  %390 = vst.msk [vmem:[#allocation3 + $0x228] sm:$0x3] %vm321_vm1, %v10671_v45  ;;  %7343 = vmatprep.subr.mxu1 %v6406_v49  ;;  %2670 = vmatprep.mubr.f32.mxu1 %v10803_v12  ;;  %v6424_v49 = vld [vmem:[%s13163_s5 + $0x628] sm:$0xff] }
 0x2a8   : > { %391 = vst.msk [vmem:[#allocation3 + $0x230] sm:$0xff] %vm319_vm0, %v10671_v45  ;;  %393 = vst.msk [vmem:[#allocation3 + $0x240] sm:$0xff] %vm319_vm0, %v10671_v45  ;;  %7292 = vmatpush3.msra.mxu0 %v6356_v35  ;;  %2870 = vmatprep.mubr.f32.mxu0 %v10279_v39  ;;  %v6388_v39 = vld [vmem:[%s13163_s5 + $0x508] sm:$0xff]  ;;  %v6458_v35 = vld [vmem:[%s13163_s5 + $0x738] sm:$0xff] }
 0x2a9   : > { %392 = vst.msk [vmem:[#allocation3 + $0x238] sm:$0x3] %vm321_vm1, %v10671_v45  ;;  %394 = vst.msk [vmem:[#allocation3 + $0x248] sm:$0x3] %vm321_vm1, %v10671_v45  ;;  %7344 = vmatpush3.msra.mxu1 %v6390_v34  ;;  %7293 = vmatprep.subr.mxu0 %v6371_v38  ;;  %v6439_v34 = vld [vmem:[%s13163_s5 + $0x6a0] sm:$0xff]  ;;  %v6473_v38 = vld [vmem:[%s13163_s5 + $0x7b0] sm:$0xff] }
 0x2aa   : > { %395 = vst.msk [vmem:[#allocation3 + $0x250] sm:$0xff] %vm319_vm0, %v10671_v45  ;;  %397 = vst.msk [vmem:[#allocation3 + $0x260] sm:$0xff] %vm319_vm0, %v10671_v45  ;;  %7345 = vmatprep.subr.mxu1 %v6405_v53  ;;  %7294 = vmatpush3.msra.mxu0 %v6355_v43  ;;  %v6457_v53 = vld [vmem:[%s13163_s5 + $0x730] sm:$0xff]  ;;  %v6438_v43 = vld [vmem:[%s13163_s5 + $0x698] sm:$0xff] }
 0x2ab   : > { %396 = vst.msk [vmem:[#allocation3 + $0x258] sm:$0x3] %vm321_vm1, %v10671_v45  ;;  %398 = vst.msk [vmem:[#allocation3 + $0x268] sm:$0x3] %vm321_vm1, %v10671_v45  ;;  %7346 = vmatpush3.msra.mxu1 %v6389_v7  ;;  %2871 = vmatmul.mubr.f32.vlgmr.msra.gmra.mxu0 %v10296_v47  ;;  %v6449_v47 = vld [vmem:[%s13163_s5 + $0x6f0] sm:$0xff]  ;;  %v6472_v7 = vld [vmem:[%s13163_s5 + $0x7a8] sm:$0xff] }
 0x2ac   : > { %2671 = vmatmul.mubr.f32.gmra.mxu1 %v10307_v6  ;;  %7347 = vmatprep.subr.mxu1 %v6404_v59  ;;  %v6387_v6 = vld [vmem:[%s13163_s5 + $0x500] sm:$0xff] }
 0x2ad   : > { %7375 = vmatprep.subr.mxu0 %v6450_v11  ;;  %2875 = vmatprep.mubr.f32.mxu0 %v10275_v27  ;;  %v11005_v59 = vld [vmem:[#allocation2 + $0x81] sm:$0xff] }
 0x2ae   : > { %7348 = vmatpush3.msra.mxu1 %v6388_v39  ;;  %2975 = vmatprep.mubr.f32.mxu1 %v10275_v27  ;;  %v6432_v27 = vld [vmem:[%s13163_s5 + $0x668] sm:$0xff]  ;;  %v6437_v39 = vld [vmem:[%s13163_s5 + $0x690] sm:$0xff] }
 0x2af   : > { %7376 = vmatpush3.msra.mxu0 %v6434_v9  ;;  %7349 = vmatprep.subr.mxu1 %v6403_v54  ;;  %v6456_v11 = vld [vmem:[%s13163_s5 + $0x728] sm:$0xff]  ;;  %v6471_v9 = vld [vmem:[%s13163_s5 + $0x7a0] sm:$0xff] }
 0x2b0   : > { %7377 = vmatprep.subr.mxu0 %v6449_v47  ;;  %7350 = vmatpush3.msra.mxu1 %v6387_v6  ;;  %v6455_v54 = vld [vmem:[%s13163_s5 + $0x720] sm:$0xff]  ;;  %v6436_v47 = vld [vmem:[%s13163_s5 + $0x688] sm:$0xff]  ;;  %v6470_v6 = vld [vmem:[%s13163_s5 + $0x798] sm:$0xff] }
 0x2b1   : > { %7378 = vmatpush3.msra.mxu0 %v6433_v36  ;;  %2976 = vmatmul.mubr.f32.vlgmr.msra.gmra.mxu1 %v10320_v51  ;;  %v6420_v36 = vld [vmem:[%s13163_s5 + $0x608] sm:$0xff] }
 0x2b2   : > { %2876 = vmatmul.mubr.f32.gmra.mxu0 %v10320_v51  ;;  %7379 = vmatprep.subr.mxu0 %v6448_v13  ;;  %v6431_v51 = vld [vmem:[%s13163_s5 + $0x660] sm:$0xff]  ;;  %v6454_v13 = vld [vmem:[%s13163_s5 + $0x718] sm:$0xff] }
 0x2b3   : > { %7431 = vmatprep.subr.mxu1 %v6482_v0  ;;  %2880 = vmatprep.mubr.f32.mxu0 %v10288_v57  ;;  %v6435_v0 = vld [vmem:[%s13163_s5 + $0x680] sm:$0xff] }
 0x2b4   : > { %2980 = vmatprep.mubr.f32.mxu1 %v10288_v57  ;;  %7380 = vmatpush3.msra.mxu0 %v6432_v27  ;;  %v6430_v57 = vld [vmem:[%s13163_s5 + $0x658] sm:$0xff]  ;;  %v6469_v27 = vld [vmem:[%s13163_s5 + $0x790] sm:$0xff] }
 0x2b5   : > { %7432 = vmatpush3.msra.mxu1 %v6466_v23  ;;  %7381 = vmatprep.subr.mxu0 %v6447_v56  ;;  %v2740_v23 = vld [vmem:[#allocation2 + $0x91] sm:$0xff]  ;;  %v6419_v56 = vld [vmem:[%s13163_s5 + $0x600] sm:$0xff] }
 0x2b6   : > { %7433 = vmatprep.subr.mxu1 %v6481_v10  ;;  %7382 = vmatpush3.msra.mxu0 %v6431_v51  ;;  %v6468_v10 = vld [vmem:[%s13163_s5 + $0x788] sm:$0xff]  ;;  %v3049_v51 = vld [vmem:[#allocation2 + $0x11] sm:$0xff] }
 0x2b7   : > { %7434 = vmatpush3.msra.mxu1 %v6465_v22  ;;  %2881 = vmatmul.mubr.f32.gmra.mxu0 %v10336_v2  ;;  %v6452_v22 = vld [vmem:[%s13163_s5 + $0x708] sm:$0xff] }
 0x2b8   : > { %2981 = vmatmul.mubr.f32.gmra.mxu1 %v10336_v2  ;;  %7383 = vmatprep.subr.mxu0 %v6446_v63  ;;  %v6429_v2 = vld [vmem:[%s13163_s5 + $0x650] sm:$0xff]  ;;  %v6451_v63 = vld [vmem:[%s13163_s5 + $0x700] sm:$0xff] }
 0x2b9   : > { %7435 = vmatprep.subr.mxu1 %v6480_v8  ;;  %2885 = vmatprep.mubr.f32.mxu0 %v10285_v25  ;;  %v6444_v25 = vld [vmem:[%s13163_s5 + $0x6c8] sm:$0xff] }
 0x2ba   : > { %2985 = vmatprep.mubr.f32.mxu1 %v10896_v5  ;;  %7384 = vmatpush3.msra.mxu0 %v6430_v57  ;;  %v3050_v8 = vld [vmem:[#allocation2 + $0x21] sm:$0xff] }
 0x2bb   : > { %7436 = vmatpush3.msra.mxu1 %v6464_v30  ;;  %7385 = vmatprep.subr.mxu0 %v6445_v52 }
 0x2bc   : > { %7437 = vmatprep.subr.mxu1 %v6479_v33  ;;  %7386 = vmatpush3.msra.mxu0 %v6429_v2 }
 0x2bd   : > { %7438 = vmatpush3.msra.mxu1 %v6463_v62  ;;  %2886 = vmatmul.mubr.f32.gmra.mxu0 %v10354_v4 }
 0x2be   : > { %2986 = vmatmul.mubr.f32.gmra.mxu1 %v10354_v4  ;;  %7387 = vmatprep.subr.mxu0 %v6444_v25  ;;  %v6427_v4 = vld [vmem:[%s13163_s5 + $0x640] sm:$0xff] }
 0x2bf   : > { %7439 = vmatprep.subr.mxu1 %v6478_v48  ;;  %2890 = vmatprep.mubr.f32.mxu0 %v10294_v29 }
 0x2c0   : > { %2990 = vmatprep.mubr.f32.mxu1 %v10294_v29  ;;  %7388 = vmatpush3.msra.mxu0 %v6428_v28  ;;  %v6426_v29 = vld [vmem:[%s13163_s5 + $0x638] sm:$0xff] }
 0x2c1   : > { %7440 = vmatpush3.msra.mxu1 %v6462_v21  ;;  %7389 = vmatprep.subr.mxu0 %v6443_v42 }
 0x2c2   : > { %7441 = vmatprep.subr.mxu1 %v6477_v40  ;;  %7390 = vmatpush3.msra.mxu0 %v6427_v4 }
 0x2c3   : > { %7442 = vmatpush3.msra.mxu1 %v6461_v20  ;;  %2891 = vmatmul.mubr.f32.gmra.mxu0 %v10372_v58 }
 0x2c4   : > { %2991 = vmatmul.mubr.f32.gmra.mxu1 %v10372_v58  ;;  %7391 = vmatprep.subr.mxu0 %v6442_v14  ;;  %v6425_v58 = vld [vmem:[%s13163_s5 + $0x630] sm:$0xff] }
 0x2c5   : > { %7443 = vmatprep.subr.mxu1 %v6476_v31  ;;  %2895 = vmatprep.mubr.f32.mxu0 %v10947_v16 }
 0x2c6   : > { %2995 = vmatprep.mubr.f32.mxu1 %v10947_v16  ;;  %7392 = vmatpush3.msra.mxu0 %v6426_v29 }
 0x2c7   : > { %7444 = vmatpush3.msra.mxu1 %v6460_v37  ;;  %7393 = vmatprep.subr.mxu0 %v6441_v60 }
 0x2c8   : > { %7445 = vmatprep.subr.mxu1 %v6475_v61  ;;  %7394 = vmatpush3.msra.mxu0 %v6425_v58 }
 0x2c9   : > { %7446 = vmatpush3.msra.mxu1 %v6459_v15  ;;  %2896 = vmatmul.mubr.f32.gmra.mxu0 %v10390_v32 }
 0x2ca   : > { %2996 = vmatmul.mubr.f32.gmra.mxu1 %v10390_v32  ;;  %7395 = vmatprep.subr.mxu0 %v6440_v46  ;;  %v6423_v32 = vld [vmem:[%s13163_s5 + $0x620] sm:$0xff] }
 0x2cb   : > { %7447 = vmatprep.subr.mxu1 %v6474_v18  ;;  %2900 = vmatprep.mubr.f32.mxu0 %v10318_v50 }
 0x2cc   : > { %3000 = vmatprep.mubr.f32.mxu1 %v10318_v50  ;;  %7396 = vmatpush3.msra.mxu0 %v6424_v49  ;;  %v6422_v50 = vld [vmem:[%s13163_s5 + $0x618] sm:$0xff] }
 0x2cd   : > { %7448 = vmatpush3.msra.mxu1 %v6458_v35  ;;  %7397 = vmatprep.subr.mxu0 %v6439_v34 }
 0x2ce   : > { %7449 = vmatprep.subr.mxu1 %v6473_v38  ;;  %7398 = vmatpush3.msra.mxu0 %v6423_v32 }
 0x2cf   : > { %7450 = vmatpush3.msra.mxu1 %v6457_v53  ;;  %2901 = vmatmul.mubr.f32.gmra.mxu0 %v10408_v44 }
 0x2d0   : > { %3001 = vmatmul.mubr.f32.gmra.mxu1 %v10408_v44  ;;  %7399 = vmatprep.subr.mxu0 %v6438_v43  ;;  %v6421_v44 = vld [vmem:[%s13163_s5 + $0x610] sm:$0xff] }
 0x2d1   : > { %7451 = vmatprep.subr.mxu1 %v6472_v7  ;;  %2905 = vmatprep.mubr.f32.mxu0 %v11005_v59 }
 0x2d2   : > { %3005 = vmatprep.mubr.f32.mxu1 %v11005_v59  ;;  %7400 = vmatpush3.msra.mxu0 %v6422_v50 }
 0x2d3   : > { %7452 = vmatpush3.msra.mxu1 %v6456_v11  ;;  %7401 = vmatprep.subr.mxu0 %v6437_v39 }
 0x2d4   : > { %7453 = vmatprep.subr.mxu1 %v6471_v9  ;;  %7402 = vmatpush3.msra.mxu0 %v6421_v44 }
 0x2d5   : > { %7454 = vmatpush3.msra.mxu1 %v6455_v54  ;;  %2906 = vmatmul.mubr.f32.gmra.mxu0 %v10434_v17 }
 0x2d6   : > { %3006 = vmatmul.mubr.f32.gmra.mxu1 %v10434_v17  ;;  %7403 = vmatprep.subr.mxu0 %v6436_v47  ;;  %v6453_v17 = vld [vmem:[%s13163_s5 + $0x710] sm:$0xff] }
 0x2d7   : > { %7455 = vmatprep.subr.mxu1 %v6470_v6  ;;  %7404 = vmatpush3.msra.mxu0 %v6420_v36 }
 0x2d8   : > { %3210 = vmatprep.mubr.f32.mxu0 %v10429_v1  ;;  %7456 = vmatpush3.msra.mxu1 %v6454_v13  ;;  %v6467_v1 = vld [vmem:[%s13163_s5 + $0x780] sm:$0xff] }
 0x2d9   : > { %7405 = vmatprep.subr.mxu0 %v6435_v0  ;;  %7457 = vmatprep.subr.mxu1 %v6469_v27 }
 0x2da   : > { %3010 = vmatprep.mubr.f32.mxu1 %v2740_v23  ;;  %7406 = vmatpush3.msra.mxu0 %v6419_v56 }
 0x2db   : > { %7458 = vmatpush3.msra.mxu1 %v6453_v17  ;;  %3211 = vmatmul.mubr.f32.vlgmr.msra.gmra.mxu0 %v3049_v51 }
 0x2dc   : > { %3011 = vmatmul.mubr.f32.gmra.mxu1 %v10671_v45  ;;  %7459 = vmatprep.subr.mxu1 %v6468_v10  ;;  %v3051_v45 = vld [vmem:[#allocation2 + $0x31] sm:$0xff] }
 0x2dd   : > { %3215 = vmatprep.mubr.f32.mxu0 %v10465_v55  ;;  %7460 = vmatpush3.msra.mxu1 %v6452_v22 }
 0x2de   : > { %3315 = vmatprep.mubr.f32.mxu1 %v10465_v55  ;;  %7461 = vmatprep.subr.mxu1 %v6467_v1  ;;  %v3053_v55 = vld [vmem:[#allocation2 + $0x51] sm:$0xff] }
 0x2df   : > { %7462 = vmatpush3.msra.mxu1 %v6451_v63  ;;  %3216 = vmatmul.mubr.f32.gmra.mxu0 %v3050_v8 }
 0x2e0   : > { %3316 = vmatmul.mubr.f32.vlgmr.msra.gmra.mxu1 %v3050_v8  ;;  %3220 = vmatprep.mubr.f32.mxu0 %v10495_v3 }
 0x2e1   : > { %3320 = vmatprep.mubr.f32.mxu1 %v10495_v3  ;;  %v3055_v3 = vld [vmem:[#allocation2 + $0x71] sm:$0xff] }
 0x2e3   : > { %3221 = vmatmul.mubr.f32.gmra.mxu0 %v3051_v45 }
 0x2e4   : > { %3321 = vmatmul.mubr.f32.gmra.mxu1 %v3051_v45  ;;  %3225 = vmatprep.mubr.f32.mxu0 %v10525_v41 }
 0x2e5   : > { %3325 = vmatprep.mubr.f32.mxu1 %v10525_v41  ;;  %v3080_v41 = vld [vmem:[#allocation2 + $0x92] sm:$0xff] }
 0x2e7   : > { %3226 = vmatmul.mubr.f32.gmra.mxu0 %v10896_v5 }
 0x2e8   : > { %3326 = vmatmul.mubr.f32.gmra.mxu1 %v10896_v5  ;;  %3230 = vmatprep.mubr.f32.mxu0 %v10555_v19 }
 0x2e9   : > { %3330 = vmatprep.mubr.f32.mxu1 %v10555_v19  ;;  %v7071_v19 = vpop.f32.mrf.mxu0 }
 0x2eb   : > { %3231 = vmatmul.mubr.f32.gmra.mxu0 %v3053_v55 }
 0x2ec   : > { %3331 = vmatmul.mubr.f32.gmra.mxu1 %v3053_v55  ;;  %3235 = vmatprep.mubr.f32.mxu0 %v10585_v26 }
 0x2ed   : > { %3335 = vmatprep.mubr.f32.mxu1 %v10585_v26  ;;  %v7072_v26 = vpop.f32.mrf.mxu0 }
 0x2ee   : > { %v7073_v5 = vadd.f32 %v7072_v26, %v7071_v19 }
 0x2ef   : > { %3236 = vmatmul.mubr.f32.gmra.mxu0 %v10947_v16 }
 0x2f0   : > { %3336 = vmatmul.mubr.f32.gmra.mxu1 %v10947_v16  ;;  %3240 = vmatprep.mubr.f32.mxu0 %v10615_v24 }
 0x2f1   : > { %3340 = vmatprep.mubr.f32.mxu1 %v10615_v24 }
 0x2f3   : > { %3241 = vmatmul.mubr.f32.gmra.mxu0 %v3055_v3 }
 0x2f4   : > { %3341 = vmatmul.mubr.f32.gmra.mxu1 %v3055_v3  ;;  %3245 = vmatprep.mubr.f32.mxu0 %v10803_v12 }
 0x2f5   : > { %3345 = vmatprep.mubr.f32.mxu1 %v10803_v12 }
 0x2f7   : > { %3246 = vmatmul.mubr.f32.gmra.mxu0 %v11005_v59 }
 0x2f8   : > { %3346 = vmatmul.mubr.f32.gmra.mxu1 %v11005_v59 }
 0x2f9   : > { %3350 = vmatprep.mubr.f32.mxu1 %v3080_v41 }
 0x2fc   : > { %3351 = vmatmul.mubr.f32.gmra.mxu1 %v2740_v23 }
 0x31f   : > { %v7074_v57 = vpop.f32.mrf.mxu0  ;;  %v7127_v30 = vpop.f32.mrf.mxu1 }
 0x321   : > { %v7075_v52 = vpop.f32.mrf.mxu0  ;;  %v7128_v24 = vpop.f32.mrf.mxu1 }
 0x322   : > { %v7129_v33 = vadd.f32 %v7128_v24, %v7127_v30  ;;  %v7076_v21 = vadd.f32 %v7075_v52, %v7074_v57 }
 0x323   : > { %v7077_v2 = vpop.f32.mrf.mxu0 }
 0x324   : > { %v2298_v62 = vadd.f32 %v7129_v33, %v7073_v5  ;;  %v7130_v25 = vpop.f32.mrf.mxu1 }
 0x325   : > { %v7078_v48 = vpop.f32.mrf.mxu0 }
 0x326   : > { %vm2336_vm2 = vcmp.ge.f32.partialorder %v2298_v62, 0.0  ;;  %v2344_v12 = vmul.f32 0.1, %v2298_v62  ;;  %v7131_v28 = vpop.f32.mrf.mxu1  ;;  %v7079_v60 = vadd.f32 %v7078_v48, %v7077_v2 }
 0x327   : > { %v7132_v42 = vadd.f32 %v7131_v28, %v7130_v25  ;;  %v7080_v40 = vpop.f32.mrf.mxu0 }
 0x328   : > { %v2352_v4 = vsel %vm2336_vm2, %v2298_v62, %v2344_v12 }
 0x329   : > { %2361 = vst.msk [vmem:[#allocation3 + $0x11] sm:$0xff] %vm319_vm0, %v2352_v4  ;;  %v2303_v20 = vadd.f32 %v7132_v42, %v7076_v21  ;;  %v7133_v14 = vpop.f32.mrf.mxu1  ;;  %v7081_v31 = vpop.f32.mrf.mxu0  ;;  %v11094_v4 = vld [vmem:[%s13164_s6 + $0xf8] sm:$0xff] }
 0x32a   : > { %v7082_v34 = vadd.f32 %v7081_v31, %v7080_v40  ;;  %7487 = vmatprep.subr.mxu0 %v11094_v4 }
 0x32b   : > { %vm2337_vm3 = vcmp.ge.f32.partialorder %v2303_v20, 0.0  ;;  %v2345_v29 = vmul.f32 0.1, %v2303_v20  ;;  %v7134_v16 = vpop.f32.mrf.mxu1  ;;  %v7083_v37 = vpop.f32.mrf.mxu0 }
 0x32c   : > { %v7135_v61 = vadd.f32 %v7134_v16, %v7133_v14 }
 0x32d   : > { %v2353_v58 = vsel %vm2337_vm3, %v2303_v20, %v2345_v29  ;;  %v7136_v15 = vpop.f32.mrf.mxu1  ;;  %v7084_v46 = vpop.f32.mrf.mxu0  ;;  %v3638_v20 = vld [vmem:[%s13164_s6 + $0x78] sm:$0xff] }
 0x32e   : > { %2362 = vst.msk [vmem:[#allocation3 + $0x21] sm:$0xff] %vm319_vm0, %v2353_v58  ;;  %v2308_v18 = vadd.f32 %v7135_v61, %v7079_v60  ;;  %v7085_v39 = vadd.f32 %v7084_v46, %v7083_v37  ;;  %7488 = vmatpush3.msra.mxu0 %v3638_v20  ;;  %v3653_v61 = vld [vmem:[%s13164_s6 + $0xf0] sm:$0xff] }
 0x32f   : > { %v7137_v49 = vpop.f32.mrf.mxu1  ;;  %v7086_v35 = vpop.f32.mrf.mxu0  ;;  %v3637_v58 = vld [vmem:[%s13164_s6 + $0x70] sm:$0xff]  ;;  %7489 = vmatprep.subr.mxu0 %v3653_v61 }
 0x330   : > { %vm2338_vm4 = vcmp.ge.f32.partialorder %v2308_v18, 0.0  ;;  %v2346_v38 = vmul.f32 0.1, %v2308_v18  ;;  %v7138_v32 = vadd.f32 %v7137_v49, %v7136_v15  ;;  %v3636_v49 = vld [vmem:[%s13164_s6 + $0x68] sm:$0xff]  ;;  %7490 = vmatpush3.msra.mxu0 %v3637_v58  ;;  %v3625_v61 = vld [vmem:[%s13164_s6 + $0x10] sm:$0xff] }
 0x331   : > { %v7139_v53 = vpop.f32.mrf.mxu1  ;;  %v7087_v43 = vpop.f32.mrf.mxu0 }
 0x332   : > { %v2354_v7 = vsel %vm2338_vm4, %v2308_v18, %v2346_v38  ;;  %v2313_v50 = vadd.f32 %v7138_v32, %v7082_v34  ;;  %v7088_v27 = vadd.f32 %v7087_v43, %v7086_v35  ;;  %v3652_v18 = vld [vmem:[%s13164_s6 + $0xe8] sm:$0xff]  ;;  %v3651_v32 = vld [vmem:[%s13164_s6 + $0xe0] sm:$0xff] }
 0x333   : > { %2363 = vst.msk [vmem:[#allocation3 + $0x31] sm:$0xff] %vm319_vm0, %v2354_v7  ;;  %v7140_v59 = vpop.f32.mrf.mxu1  ;;  %v7089_v11 = vpop.f32.mrf.mxu0  ;;  %7491 = vmatprep.subr.mxu0 %v3652_v18  ;;  %v3640_v18 = vld [vmem:[%s13164_s6 + $0x88] sm:$0xff] }
 0x334   : > { %vm2339_vm5 = vcmp.ge.f32.partialorder %v2313_v50, 0.0  ;;  %v2347_v9 = vmul.f32 0.1, %v2313_v50  ;;  %v7141_v44 = vadd.f32 %v7140_v59, %v7139_v53  ;;  %7492 = vmatpush3.msra.mxu0 %v3636_v49  ;;  %v3635_v53 = vld [vmem:[%s13164_s6 + $0x60] sm:$0xff]  ;;  %v3634_v59 = vld [vmem:[%s13164_s6 + $0x58] sm:$0xff]  ;;  %v3624_v49 = vld [vmem:[%s13164_s6 + $0x8] sm:$0xff] }
 0x335   : > { %v7142_v54 = vpop.f32.mrf.mxu1  ;;  %v7090_v47 = vpop.f32.mrf.mxu0  ;;  %7493 = vmatprep.subr.mxu0 %v3651_v32  ;;  %v3639_v32 = vld [vmem:[%s13164_s6 + $0x80] sm:$0xff] }
 0x336   : > { %v2355_v6 = vsel %vm2339_vm5, %v2313_v50, %v2347_v9  ;;  %v2318_v36 = vadd.f32 %v7141_v44, %v7085_v39  ;;  %v7091_v8 = vadd.f32 %v7090_v47, %v7089_v11  ;;  %v3650_v50 = vld [vmem:[%s13164_s6 + $0xd8] sm:$0xff]  ;;  %v3399_v39 = vld [vmem:[#allocation3 + $0x141] sm:$0xff]  ;;  %7494 = vmatpush3.msra.mxu0 %v3635_v53 }
 0x337   : > { %2364 = vst.msk [vmem:[#allocation3 + $0x41] sm:$0xff] %vm319_vm0, %v2355_v6  ;;  %v7143_v13 = vpop.f32.mrf.mxu1  ;;  %v7092_v0 = vpop.f32.mrf.mxu0  ;;  %7495 = vmatprep.subr.mxu0 %v3650_v50  ;;  %v3649_v6 = vld [vmem:[%s13164_s6 + $0xd0] sm:$0xff]  ;;  %v3623_v53 = vld [vmem:[%s13164_s6] sm:$0xff] }
 0x338   : > { %vm2340_vm6 = vcmp.ge.f32.partialorder %v2318_v36, 0.0  ;;  %v2348_v23 = vmul.f32 0.1, %v2318_v36  ;;  %v7144_v56 = vadd.f32 %v7143_v13, %v7142_v54  ;;  %7496 = vmatpush3.msra.mxu0 %v3634_v59 }
 0x339   : > { %v7145_v17 = vpop.f32.mrf.mxu1  ;;  %v7093_v10 = vpop.f32.mrf.mxu0  ;;  %7497 = vmatprep.subr.mxu0 %v3649_v6 }
 0x33a   : > { %v2356_v51 = vsel %vm2340_vm6, %v2318_v36, %v2348_v23  ;;  %v2323_v22 = vadd.f32 %v7144_v56, %v7088_v27  ;;  %v7094_v30 = vadd.f32 %v7093_v10, %v7092_v0  ;;  %v3633_v27 = vld [vmem:[%s13164_s6 + $0x50] sm:$0xff]  ;;  %v3648_v23 = vld [vmem:[%s13164_s6 + $0xc8] sm:$0xff] }
 0x33b   : > { %2365 = vst.msk [vmem:[#allocation3 + $0x51] sm:$0xff] %vm319_vm0, %v2356_v51  ;;  %v7146_v1 = vpop.f32.mrf.mxu1  ;;  %v7183_v63 = vpop.f32.mrf.mxu0  ;;  %v3632_v56 = vld [vmem:[%s13164_s6 + $0x48] sm:$0xff]  ;;  %7498 = vmatpush3.msra.mxu0 %v3633_v27 }
 0x33c   : > { %vm2341_vm7 = vcmp.ge.f32.partialorder %v2323_v22, 0.0  ;;  %v2349_v45 = vmul.f32 0.1, %v2323_v22  ;;  %v7147_v55 = vadd.f32 %v7146_v1, %v7145_v17  ;;  %7499 = vmatprep.subr.mxu0 %v3648_v23  ;;  %v3647_v1 = vld [vmem:[%s13164_s6 + $0xc0] sm:$0xff] }
 0x33d   : > { %v7148_v3 = vpop.f32.mrf.mxu1  ;;  %v7184_v26 = vpop.f32.mrf.mxu0  ;;  %7500 = vmatpush3.msra.mxu0 %v3632_v56 }
 0x33e   : > { %v2357_v41 = vsel %vm2341_vm7, %v2323_v22, %v2349_v45  ;;  %v2328_v19 = vadd.f32 %v7147_v55, %v7091_v8  ;;  %v7185_v12 = vadd.f32 %v7184_v26, %v7183_v63  ;;  %v3631_v63 = vld [vmem:[%s13164_s6 + $0x40] sm:$0xff]  ;;  %v3646_v8 = vld [vmem:[%s13164_s6 + $0xb8] sm:$0xff]  ;;  %7501 = vmatprep.subr.mxu0 %v3647_v1 }
 0x33f   : > { %2366 = vst.msk [vmem:[#allocation3 + $0x61] sm:$0xff] %vm319_vm0, %v2357_v41  ;;  %v7149_v57 = vpop.f32.mrf.mxu1  ;;  %v3630_v41 = vld [vmem:[%s13164_s6 + $0x38] sm:$0xff]  ;;  %7502 = vmatpush3.msra.mxu0 %v3631_v63 }
 0x340   : > { %vm2342_vm8 = vcmp.ge.f32.partialorder %v2328_v19, 0.0  ;;  %v2350_v52 = vmul.f32 0.1, %v2328_v19  ;;  %v7150_v24 = vadd.f32 %v7149_v57, %v7148_v3  ;;  %7503 = vmatprep.subr.mxu0 %v3646_v8 }
 0x341   : > { %v7239_v5 = vpop.f32.mrf.mxu1  ;;  %7504 = vmatpush3.msra.mxu0 %v3630_v41  ;;  %v3685_v41 = vld [vmem:[%s13164_s6 + $0x1f0] sm:$0xff] }
 0x342   : > { %v2358_v33 = vsel %vm2342_vm8, %v2328_v19, %v2350_v52  ;;  %v2333_v2 = vadd.f32 %v7150_v24, %v7094_v30  ;;  %v7186_v62 = vpop.f32.mrf.mxu0  ;;  %v3645_v30 = vld [vmem:[%s13164_s6 + $0xb0] sm:$0xff]  ;;  %v3644_v24 = vld [vmem:[%s13164_s6 + $0xa8] sm:$0xff] }
 0x343   : > { %2367 = vst.msk [vmem:[#allocation3 + $0x71] sm:$0xff] %vm319_vm0, %v2358_v33  ;;  %v7240_v25 = vpop.f32.mrf.mxu1  ;;  %v3629_v52 = vld [vmem:[%s13164_s6 + $0x30] sm:$0xff]  ;;  %7505 = vmatprep.subr.mxu0 %v3645_v30 }
 0x344   : > { %vm2343_vm9 = vcmp.ge.f32.partialorder %v2333_v2, 0.0  ;;  %v2351_v48 = vmul.f32 0.1, %v2333_v2  ;;  %v7187_v28 = vpop.f32.mrf.mxu0  ;;  %v7241_v21 = vadd.f32 %v7240_v25, %v7239_v5  ;;  %7506 = vmatpush3.msra.mxu0 %v3629_v52 }
 0x345   : > { %v7188_v15 = vadd.f32 %v7187_v28, %v7186_v62  ;;  %7507 = vmatprep.subr.mxu0 %v3644_v24  ;;  %v3643_v28 = vld [vmem:[%s13164_s6 + $0xa0] sm:$0xff] }
 0x346   : > { %v2359_v42 = vsel %vm2343_vm9, %v2333_v2, %v2351_v48  ;;  %v2638_v40 = vadd.f32 %v7241_v21, %v7185_v12  ;;  %v3628_v2 = vld [vmem:[%s13164_s6 + $0x28] sm:$0xff]  ;;  %v3627_v21 = vld [vmem:[%s13164_s6 + $0x20] sm:$0xff] }
 0x347   : > { %2368 = vst.msk [vmem:[#allocation3 + $0x81] sm:$0xff] %vm319_vm0, %v2359_v42  ;;  %v7189_v14 = vpop.f32.mrf.mxu0  ;;  %7508 = vmatpush3.msra.mxu0 %v3628_v2  ;;  %v3642_v42 = vld [vmem:[%s13164_s6 + $0x98] sm:$0xff]  ;;  %v3668_v2 = vld [vmem:[%s13164_s6 + $0x168] sm:$0xff] }
 0x348   : > { %vm2676_vm10 = vcmp.ge.f32.partialorder %v2638_v40, 0.0  ;;  %v2684_v31 = vmul.f32 0.1, %v2638_v40  ;;  %v7242_v29 = vpop.f32.mrf.mxu1  ;;  %7509 = vmatprep.subr.mxu0 %v3643_v28 }
 0x349   : > { %v7190_v16 = vpop.f32.mrf.mxu0  ;;  %7510 = vmatpush3.msra.mxu0 %v3627_v21 }
 0x34a   : > { %v2692_v37 = vsel %vm2676_vm10, %v2638_v40, %v2684_v31  ;;  %v7243_v60 = vpop.f32.mrf.mxu1  ;;  %v7191_v9 = vadd.f32 %v7190_v16, %v7189_v14  ;;  %v3626_v14 = vld [vmem:[%s13164_s6 + $0x18] sm:$0xff]  ;;  %7511 = vmatprep.subr.mxu0 %v3642_v42  ;;  %v3667_v42 = vld [vmem:[%s13164_s6 + $0x160] sm:$0xff] }
 0x34b   : > { %2701 = vst.msk [vmem:[#allocation3 + $0xb1] sm:$0xff] %vm319_vm0, %v2692_v37  ;;  %v7244_v46 = vadd.f32 %v7243_v60, %v7242_v29  ;;  %7512 = vmatpush3.msra.mxu0 %v3626_v14  ;;  %v3641_v60 = vld [vmem:[%s13164_s6 + $0x90] sm:$0xff] }
 0x34c   : > { %7513 = vmatprep.subr.mxu0 %v3641_v60 }
 0x34d   : > { %v2643_v35 = vadd.f32 %v7244_v46, %v7188_v15  ;;  %v7192_v34 = vpop.f32.mrf.mxu0  ;;  %7514 = vmatpush3.msra.mxu0 %v3625_v61 }
 0x34e   : > { %v7245_v38 = vpop.f32.mrf.mxu1  ;;  %7515 = vmatprep.subr.mxu0 %v3640_v18  ;;  %v3665_v18 = vld [vmem:[%s13164_s6 + $0x150] sm:$0xff] }
 0x34f   : > { %vm2677_vm11 = vcmp.ge.f32.partialorder %v2643_v35, 0.0  ;;  %v2685_v43 = vmul.f32 0.1, %v2643_v35  ;;  %v7193_v7 = vpop.f32.mrf.mxu0  ;;  %7516 = vmatpush3.msra.mxu0 %v3624_v49 }
 0x350   : > { %v7246_v11 = vpop.f32.mrf.mxu1  ;;  %v7194_v45 = vadd.f32 %v7193_v7, %v7192_v34  ;;  %7517 = vmatprep.subr.mxu0 %v3639_v32  ;;  %v3680_v32 = vld [vmem:[%s13164_s6 + $0x1c8] sm:$0xff] }
 0x351   : > { %v2693_v44 = vsel %vm2677_vm11, %v2643_v35, %v2685_v43  ;;  %v7247_v54 = vadd.f32 %v7246_v11, %v7245_v38  ;;  %7518 = vmatpush3.msra.mxu0 %v3623_v53  ;;  %v3664_v53 = vld [vmem:[%s13164_s6 + $0x148] sm:$0xff] }
 0x352   : > { %2702 = vst.msk [vmem:[#allocation3 + $0xc1] sm:$0xff] %vm319_vm0, %v2693_v44  ;;  %v3415_v47 = vld [vmem:[#allocation3 + $0xb0] sm:$0xff] }
 0x353   : > { %v2648_v36 = vadd.f32 %v7247_v54, %v7191_v9  ;;  %v7195_v13 = vpop.f32.mrf.mxu0  ;;  %v8209_v0 = vpack.i.bf16 %v3399_v39, %v3415_v47 }
 0x354   : > { %v7248_v17 = vpop.f32.mrf.mxu1 }
 0x355   : > { %vm2678_vm12 = vcmp.ge.f32.partialorder %v2648_v36, 0.0  ;;  %v2686_v10 = vmul.f32 0.1, %v2648_v36  ;;  %v7196_v51 = vpop.f32.mrf.mxu0  ;;  %8210 = vrot.lane.b32.xlu0 %v8209_v0, %s8668_s8 }
 0x356   : > { %v7249_v22 = vpop.f32.mrf.mxu1  ;;  %v7197_v25 = vadd.f32 %v7196_v51, %v7195_v13 }
 0x357   : > { %v2694_v55 = vsel %vm2678_vm12, %v2648_v36, %v2686_v10  ;;  %v7250_v3 = vadd.f32 %v7249_v22, %v7248_v17 }
 0x358   : > { %2703 = vst.msk [vmem:[#allocation3 + $0xd1] sm:$0xff] %vm319_vm0, %v2694_v55  ;;  %v11203_v55 = vld [vmem:[%s13164_s6 + $0x1f8] sm:$0xff] }
 0x359   : > { %v2653_v19 = vadd.f32 %v7250_v3, %v7194_v45  ;;  %v7198_v26 = vpop.f32.mrf.mxu0  ;;  %v3670_v3 = vld [vmem:[%s13164_s6 + $0x178] sm:$0xff]  ;;  %7543 = vmatprep.subr.mxu1 %v11203_v55 }
 0x35a   : > { %v7251_v57 = vpop.f32.mrf.mxu1  ;;  %7544 = vmatpush3.msra.mxu1 %v3670_v3 }
 0x35b   : > { %vm2679_vm13 = vcmp.ge.f32.partialorder %v2653_v19, 0.0  ;;  %v2687_v5 = vmul.f32 0.1, %v2653_v19  ;;  %v7199_v33 = vpop.f32.mrf.mxu0  ;;  %7545 = vmatprep.subr.mxu1 %v3685_v41  ;;  %v3675_v41 = vld [vmem:[%s13164_s6 + $0x1a0] sm:$0xff] }
 0x35c   : > { %v7252_v62 = vpop.f32.mrf.mxu1  ;;  %v7200_v58 = vadd.f32 %v7199_v33, %v7198_v26  ;;  %v3684_v33 = vld [vmem:[%s13164_s6 + $0x1e8] sm:$0xff] }
 0x35d   : > { %v2695_v48 = vsel %vm2679_vm13, %v2653_v19, %v2687_v5  ;;  %v7253_v12 = vadd.f32 %v7252_v62, %v7251_v57  ;;  %v3669_v5 = vld [vmem:[%s13164_s6 + $0x170] sm:$0xff] }
 0x35e   : > { %2704 = vst.msk [vmem:[#allocation3 + $0xe1] sm:$0xff] %vm319_vm0, %v2695_v48  ;;  %7546 = vmatpush3.msra.mxu1 %v3669_v5  ;;  %v3683_v48 = vld [vmem:[%s13164_s6 + $0x1e0] sm:$0xff]  ;;  %v3658_v5 = vld [vmem:[%s13164_s6 + $0x118] sm:$0xff] }
 0x35f   : > { %v2658_v40 = vadd.f32 %v7253_v12, %v7197_v25  ;;  %v7201_v20 = vpop.f32.mrf.mxu0  ;;  %7547 = vmatprep.subr.mxu1 %v3684_v33 }
 0x360   : > { %v7254_v31 = vpop.f32.mrf.mxu1  ;;  %7548 = vmatpush3.msra.mxu1 %v3668_v2 }
 0x361   : > { %vm2680_vm14 = vcmp.ge.f32.partialorder %v2658_v40, 0.0  ;;  %v2688_v29 = vmul.f32 0.1, %v2658_v40  ;;  %v7202_v16 = vpop.f32.mrf.mxu0  ;;  %7549 = vmatprep.subr.mxu1 %v3683_v48  ;;  %v11309_v48 = vld [vmem:[#allocation3 + $0xd1] sm:$0xff] }
 0x362   : > { %v7255_v37 = vpop.f32.mrf.mxu1  ;;  %v7203_v59 = vadd.f32 %v7202_v16, %v7201_v20  ;;  %v3666_v20 = vld [vmem:[%s13164_s6 + $0x158] sm:$0xff]  ;;  %7550 = vmatpush3.msra.mxu1 %v3667_v42  ;;  %v3673_v42 = vld [vmem:[%s13164_s6 + $0x190] sm:$0xff] }
 0x363   : > { %v2696_v15 = vsel %vm2680_vm14, %v2658_v40, %v2688_v29  ;;  %v7256_v46 = vadd.f32 %v7255_v37, %v7254_v31  ;;  %v3682_v40 = vld [vmem:[%s13164_s6 + $0x1d8] sm:$0xff]  ;;  %v3681_v29 = vld [vmem:[%s13164_s6 + $0x1d0] sm:$0xff] }
 0x364   : > { %2705 = vst.msk [vmem:[#allocation3 + $0xf1] sm:$0xff] %vm319_vm0, %v2696_v15  ;;  %7551 = vmatprep.subr.mxu1 %v3682_v40 }
 0x365   : > { %v2663_v35 = vadd.f32 %v7256_v46, %v7200_v58  ;;  %v7204_v34 = vpop.f32.mrf.mxu0  ;;  %v11237_v58 = vld [vmem:[#allocation3 + $0xb1] sm:$0xff]  ;;  %7552 = vmatpush3.msra.mxu1 %v3666_v20  ;;  %v3416_v46 = vld [vmem:[#allocation3 + $0xc0] sm:$0xff] }
 0x366   : > { %v7257_v38 = vpop.f32.mrf.mxu1  ;;  %7553 = vmatprep.subr.mxu1 %v3681_v29  ;;  %v3672_v29 = vld [vmem:[%s13164_s6 + $0x188] sm:$0xff] }
 0x367   : > { %vm2681_vm15 = vcmp.ge.f32.partialorder %v2663_v35, 0.0  ;;  %v2689_v43 = vmul.f32 0.1, %v2663_v35  ;;  %v7205_v7 = vpop.f32.mrf.mxu0  ;;  %7554 = vmatpush3.msra.mxu1 %v3665_v18 }
 0x368   : > { %v7258_v50 = vpop.f32.mrf.mxu1  ;;  %v7206_v13 = vadd.f32 %v7205_v7, %v7204_v34  ;;  %7555 = vmatprep.subr.mxu1 %v3680_v32 }
 0x369   : > { %v2697_v11 = vsel %vm2681_vm15, %v2663_v35, %v2689_v43  ;;  %v7259_v39 = vadd.f32 %v7258_v50, %v7257_v38  ;;  %v11257_v43 = vld [vmem:[%s13164_s6 + $0x238] sm:$0xff]  ;;  %v3679_v50 = vld [vmem:[%s13164_s6 + $0x1c0] sm:$0xff]  ;;  %7556 = vmatpush3.msra.mxu1 %v3664_v53 }
 0x36a   : > { %2706 = vst.msk [vmem:[#allocation3 + $0x101] sm:$0xff] %vm319_vm0, %v2697_v11  ;;  %8087 = vmatprep.subr.mxu0 %v11257_v43  ;;  %7557 = vmatprep.subr.mxu1 %v3679_v50 }
 0x36b   : > { %v2668_v9 = vadd.f32 %v7259_v39, %v7203_v59  ;;  %v7295_v44 = vpop.f32.mrf.mxu0  ;;  %v3419_v53 = vld [vmem:[#allocation3 + $0xf0] sm:$0xff] }
 0x36c   : > { %v7260_v54 = vpop.f32.mrf.mxu1 }
 0x36d   : > { %vm2682_vm1 = vcmp.ge.f32.partialorder %v2668_v9, 0.0  ;;  %v2690_v47 = vmul.f32 0.1, %v2668_v9  ;;  %v7296_v36 = vpop.f32.mrf.mxu0 }
 0x36e   : > { %v7261_v6 = vpop.f32.mrf.mxu1  ;;  %v7297_v22 = vadd.f32 %v7296_v36, %v7295_v44  ;;  %v3678_v44 = vld [vmem:[%s13164_s6 + $0x1b8] sm:$0xff] }
 0x36f   : > { %v2698_v0 = vsel %vm2682_vm1, %v2668_v9, %v2690_v47  ;;  %v7262_v27 = vadd.f32 %v7261_v6, %v7260_v54  ;;  %v3663_v9 = vld [vmem:[%s13164_s6 + $0x140] sm:$0xff]  ;;  %v3662_v54 = vld [vmem:[%s13164_s6 + $0x138] sm:$0xff] }
 0x370   : > { %2707 = vst.msk [vmem:[#allocation3 + $0x111] sm:$0xff] %vm319_vm0, %v2698_v0  ;;  %7558 = vmatpush3.msra.mxu1 %v3663_v9 }
 0x371   : > { %v2673_v23 = vadd.f32 %v7262_v27, %v7206_v13  ;;  %v7351_v56 = vpop.f32.mrf.mxu1  ;;  %v3677_v13 = vld [vmem:[%s13164_s6 + $0x1b0] sm:$0xff]  ;;  %7559 = vmatprep.subr.mxu1 %v3678_v44 }
 0x372   : > { %v7298_v17 = vpop.f32.mrf.mxu0  ;;  %7560 = vmatpush3.msra.mxu1 %v3662_v54 }
 0x373   : > { %vm2683_vm2 = vcmp.ge.f32.partialorder %v2673_v23, 0.0  ;;  %v2691_v10 = vmul.f32 0.1, %v2673_v23  ;;  %v7352_v51 = vpop.f32.mrf.mxu1  ;;  %7561 = vmatprep.subr.mxu1 %v3677_v13 }
 0x374   : > { %v7299_v1 = vpop.f32.mrf.mxu0  ;;  %v7353_v63 = vadd.f32 %v7352_v51, %v7351_v56  ;;  %v3417_v56 = vld [vmem:[#allocation3 + $0xd0] sm:$0xff] }
 0x375   : > { %v2699_v8 = vsel %vm2683_vm2, %v2673_v23, %v2691_v10  ;;  %v7300_v62 = vadd.f32 %v7299_v1, %v7298_v17  ;;  %v11279_v17 = vld [vmem:[#allocation3 + $0xc1] sm:$0xff]  ;;  %v3661_v1 = vld [vmem:[%s13164_s6 + $0x130] sm:$0xff] }
 0x376   : > { %2708 = vst.msk [vmem:[#allocation3 + $0x121] sm:$0xff] %vm319_vm0, %v2699_v8  ;;  %v2978_v45 = vadd.f32 %v7353_v63, %v7297_v22  ;;  %v3676_v63 = vld [vmem:[%s13164_s6 + $0x1a8] sm:$0xff]  ;;  %7562 = vmatpush3.msra.mxu1 %v3661_v1 }
 0x377   : > { %v7301_v19 = vpop.f32.mrf.mxu0  ;;  %v3660_v8 = vld [vmem:[%s13164_s6 + $0x128] sm:$0xff]  ;;  %7563 = vmatprep.subr.mxu1 %v3676_v63  ;;  %v3421_v44 = vld [vmem:[#allocation3 + $0x110] sm:$0xff] }
 0x378   : > { %vm3016_vm3 = vcmp.ge.f32.partialorder %v2978_v45, 0.0  ;;  %v3024_v26 = vmul.f32 0.1, %v2978_v45  ;;  %v7354_v57 = vpop.f32.mrf.mxu1  ;;  %7564 = vmatpush3.msra.mxu1 %v3660_v8 }
 0x379   : > { %v7302_v30 = vpop.f32.mrf.mxu0  ;;  %7565 = vmatprep.subr.mxu1 %v3675_v41 }
 0x37a   : > { %v3032_v52 = vsel %vm3016_vm3, %v2978_v45, %v3024_v26  ;;  %v7355_v24 = vpop.f32.mrf.mxu1  ;;  %v7303_v37 = vadd.f32 %v7302_v30, %v7301_v19 }
 0x37b   : > { %3041 = vst.msk [vmem:[#allocation3 + $0x151] sm:$0xff] %vm319_vm0, %v3032_v52  ;;  %v7356_v25 = vadd.f32 %v7355_v24, %v7354_v57  ;;  %v3659_v52 = vld [vmem:[%s13164_s6 + $0x120] sm:$0xff]  ;;  %v3674_v24 = vld [vmem:[%s13164_s6 + $0x198] sm:$0xff] }
 0x37c   : > { %7566 = vmatpush3.msra.mxu1 %v3659_v52 }
 0x37d   : > { %v2983_v12 = vadd.f32 %v7356_v25, %v7300_v62  ;;  %v7304_v28 = vpop.f32.mrf.mxu0  ;;  %v3418_v25 = vld [vmem:[#allocation3 + $0xe0] sm:$0xff]  ;;  %7567 = vmatprep.subr.mxu1 %v3674_v24 }
 0x37e   : > { %v7357_v21 = vpop.f32.mrf.mxu1  ;;  %7568 = vmatpush3.msra.mxu1 %v3658_v5 }
 0x37f   : > { %vm3017_vm4 = vcmp.ge.f32.partialorder %v2983_v12, 0.0  ;;  %v3025_v14 = vmul.f32 0.1, %v2983_v12  ;;  %v7305_v31 = vpop.f32.mrf.mxu0  ;;  %7569 = vmatprep.subr.mxu1 %v3673_v42 }
 0x380   : > { %v7358_v16 = vpop.f32.mrf.mxu1  ;;  %v7306_v47 = vadd.f32 %v7305_v31, %v7304_v28  ;;  %v3657_v31 = vld [vmem:[%s13164_s6 + $0x110] sm:$0xff] }
 0x381   : > { %v3033_v60 = vsel %vm3017_vm4, %v2983_v12, %v3025_v14  ;;  %v7359_v61 = vadd.f32 %v7358_v16, %v7357_v21  ;;  %7570 = vmatpush3.msra.mxu1 %v3657_v31  ;;  %v11367_v31 = vld [vmem:[#allocation3 + $0x101] sm:$0xff]  ;;  %vm4042_vm4 = vcmask 23552  }
 0x382   : > { %3042 = vst.msk [vmem:[#allocation3 + $0x161] sm:$0xff] %vm319_vm0, %v3033_v60  ;;  %v11240_v15 = vld [vmem:[#allocation3 + $0x151] sm:$0xff]  ;;  %7571 = vmatprep.subr.mxu1 %v3672_v29 }
 0x383   : > { %v2988_v49 = vadd.f32 %v7359_v61, %v7303_v37  ;;  %v7307_v35 = vpop.f32.mrf.mxu0  ;;  %v8214_v34 = vpack.i.bf16 %v11240_v15, %v3416_v46  ;;  %v8449_v38 = vpack.i.bf16 %v11237_v58, %v11240_v15  ;;  %v3420_v61 = vld [vmem:[#allocation3 + $0x100] sm:$0xff]  ;;  %v3656_v46 = vld [vmem:[%s13164_s6 + $0x108] sm:$0xff] }
 0x384   : > { %v7360_v7 = vpop.f32.mrf.mxu1  ;;  %v8229_v18 = vpack.i.bf16 %v3420_v61, %v11240_v15  ;;  %7572 = vmatpush3.msra.mxu1 %v3656_v46 }
 0x385   : > { %vm3018_vm5 = vcmp.ge.f32.partialorder %v2988_v49, 0.0  ;;  %v3026_v59 = vmul.f32 0.1, %v2988_v49  ;;  %v7308_v11 = vpop.f32.mrf.mxu0  ;;  %8215 = vrot.lane.b32.xlu0 %v8214_v34, %s8668_s8 }
 0x386   : > { %v7361_v39 = vpop.f32.mrf.mxu1  ;;  %v7309_v26 = vadd.f32 %v7308_v11, %v7307_v35 }
 0x387   : > { %v3034_v6 = vsel %vm3018_vm5, %v2988_v49, %v3026_v59  ;;  %v7362_v36 = vadd.f32 %v7361_v39, %v7360_v7  ;;  %v3671_v49 = vld [vmem:[%s13164_s6 + $0x180] sm:$0xff] }
 0x388   : > { %3043 = vst.msk [vmem:[#allocation3 + $0x171] sm:$0xff] %vm319_vm0, %v3034_v6  ;;  %v3655_v7 = vld [vmem:[%s13164_s6 + $0x100] sm:$0xff]  ;;  %7573 = vmatprep.subr.mxu1 %v3671_v49 }
 0x389   : > { %v2993_v0 = vadd.f32 %v7362_v36, %v7306_v47  ;;  %v7310_v27 = vpop.f32.mrf.mxu0  ;;  %v11277_v23 = vld [vmem:[#allocation3 + $0x161] sm:$0xff]  ;;  %7574 = vmatpush3.msra.mxu1 %v3655_v7  ;;  %v11376_v7 = vld [vmem:[#allocation3 + $0xf1] sm:$0xff] }
 0x38a   : > { %v7363_v10 = vpop.f32.mrf.mxu1  ;;  %v8219_v51 = vpack.i.bf16 %v11277_v23, %v3417_v56  ;;  %v8454_v22 = vpack.i.bf16 %v11279_v17, %v11277_v23  ;;  %v8234_v47 = vpack.i.bf16 %v3421_v44, %v11277_v23  ;;  %7615 = vmatprep.subr.mxu1 %v11094_v4 }
 0x38b   : > { %vm3019_vm6 = vcmp.ge.f32.partialorder %v2993_v0, 0.0  ;;  %v3027_v45 = vmul.f32 0.1, %v2993_v0  ;;  %v7311_v3 = vpop.f32.mrf.mxu0 }
 0x38c   : > { %v7364_v19 = vpop.f32.mrf.mxu1  ;;  %8220 = vrot.lane.b32.xlu1 %v8219_v51, %s8668_s8  ;;  %v7312_v16 = vadd.f32 %v7311_v3, %v7310_v27 }
 0x38d   : > { %v3035_v57 = vsel %vm3019_vm6, %v2993_v0, %v3027_v45  ;;  %v7365_v30 = vadd.f32 %v7364_v19, %v7363_v10  ;;  %v3422_v10 = vld [vmem:[#allocation3 + $0x120] sm:$0xff] }
 0x38e   : > { %3044 = vst.msk [vmem:[#allocation3 + $0x181] sm:$0xff] %vm319_vm0, %v3035_v57 }
 0x38f   : > { %v2998_v33 = vadd.f32 %v7365_v30, %v7309_v26  ;;  %v7313_v2 = vpop.f32.mrf.mxu0  ;;  %v11307_v62 = vld [vmem:[#allocation3 + $0x171] sm:$0xff]  ;;  %v11355_v30 = vld [vmem:[#allocation3 + $0xe1] sm:$0xff] }
 0x390   : > { %v7366_v12 = vpop.f32.mrf.mxu1  ;;  %v8224_v28 = vpack.i.bf16 %v11307_v62, %v3418_v25  ;;  %v8459_v21 = vpack.i.bf16 %v11309_v48, %v11307_v62  ;;  %v8239_v63 = vpack.i.bf16 %v3422_v10, %v11307_v62 }
 0x391   : > { %vm3020_vm7 = vcmp.ge.f32.partialorder %v2998_v33, 0.0  ;;  %v3028_v40 = vmul.f32 0.1, %v2998_v33  ;;  %v7314_v20 = vpop.f32.mrf.mxu0 }
 0x392   : > { %v7367_v14 = vpop.f32.mrf.mxu1  ;;  %8225 = vrot.lane.b32.xlu1 %v8224_v28, %s8668_s8  ;;  %v7315_v6 = vadd.f32 %v7314_v20, %v7313_v2 }
 0x393   : > { %v3036_v37 = vsel %vm3020_vm7, %v2998_v33, %v3028_v40  ;;  %v7368_v60 = vadd.f32 %v7367_v14, %v7366_v12 }
 0x394   : > { %3045 = vst.msk [vmem:[#allocation3 + $0x191] sm:$0xff] %vm319_vm0, %v3036_v37 }
 0x395   : > { %v3003_v35 = vadd.f32 %v7368_v60, %v7312_v16  ;;  %v7316_v34 = vpop.f32.mrf.mxu0  ;;  %v11332_v32 = vld [vmem:[#allocation3 + $0x181] sm:$0xff] }
 0x396   : > { %v7369_v50 = vpop.f32.mrf.mxu1  ;;  %8230 = vrot.lane.b32.xlu1 %v8229_v18, %s8668_s8  ;;  %v8244_v59 = vpack.i.bf16 %v11332_v32, %v3419_v53  ;;  %v8464_v11 = vpack.i.bf16 %v11279_v17, %v11332_v32  ;;  %v8264_v24 = vpack.i.bf16 %v11355_v30, %v11332_v32  ;;  %v11636_v32 = vld [vmem:[#allocation3 + $0x172] sm:$0xff] }
 0x397   : > { %vm3021_vm8 = vcmp.ge.f32.partialorder %v3003_v35, 0.0  ;;  %v3029_v39 = vmul.f32 0.1, %v3003_v35  ;;  %v7317_v9 = vpop.f32.mrf.mxu0 }
 0x398   : > { %v7370_v54 = vpop.f32.mrf.mxu1  ;;  %8245 = vrot.lane.b32.xlu0 %v8244_v59, %s8668_s8  ;;  %v7318_v41 = vadd.f32 %v7317_v9, %v7316_v34 }
 0x399   : > { %v3037_v36 = vsel %vm3021_vm8, %v3003_v35, %v3029_v39  ;;  %v7371_v13 = vadd.f32 %v7370_v54, %v7369_v50 }
 0x39a   : > { %3046 = vst.msk [vmem:[#allocation3 + $0x1a1] sm:$0xff] %vm319_vm0, %v3037_v36  ;;  %8235 = vrot.lane.b32.xlu1 %v8234_v47, %s8668_s8 }
 0x39b   : > { %v3008_v0 = vadd.f32 %v7371_v13, %v7315_v6  ;;  %v7407_v27 = vpop.f32.mrf.mxu0  ;;  %v11346_v56 = vld [vmem:[#allocation3 + $0x191] sm:$0xff] }
 0x39c   : > { %v7372_v51 = vpop.f32.mrf.mxu1  ;;  %v8249_v1 = vpack.i.bf16 %v11346_v56, %v11237_v58  ;;  %v8474_v8 = vpack.i.bf16 %v11309_v48, %v11346_v56  ;;  %v8269_v10 = vpack.i.bf16 %v11376_v7, %v11346_v56  ;;  %v8489_v56 = vpack.i.bf16 %v11636_v32, %v11367_v31 }
 0x39d   : > { %vm3022_vm9 = vcmp.ge.f32.partialorder %v3008_v0, 0.0  ;;  %v3030_v4 = vmul.f32 0.1, %v3008_v0  ;;  %v7408_v45 = vpop.f32.mrf.mxu0 }
 0x39e   : > { %v7373_v3 = vpop.f32.mrf.mxu1  ;;  %8250 = vrot.lane.b32.xlu0 %v8249_v1, %s8668_s8  ;;  %8240 = vrot.lane.b32.xlu1 %v8239_v63, %s8668_s8  ;;  %v7409_v40 = vadd.f32 %v7408_v45, %v7407_v27 }
 0x39f   : > { %v3038_v19 = vsel %vm3022_vm9, %v3008_v0, %v3030_v4  ;;  %v7374_v26 = vadd.f32 %v7373_v3, %v7372_v51  ;;  %v7410_v57 = vpop.f32.mrf.mxu0  ;;  %v11386_v4 = vld [vmem:[#allocation3 + $0x121] sm:$0xff] }
 0x3a0   : > { %3047 = vst.msk [vmem:[#allocation3 + $0x1b1] sm:$0xff] %vm319_vm0, %v3038_v19  ;;  %v7463_v52 = vpop.f32.mrf.mxu1 }
 0x3a1   : > { %v3013_v5 = vadd.f32 %v7374_v26, %v7318_v41  ;;  %v7411_v33 = vpop.f32.mrf.mxu0  ;;  %v11360_v2 = vld [vmem:[#allocation3 + $0x1a1] sm:$0xff] }
 0x3a2   : > { %v7464_v25 = vpop.f32.mrf.mxu1  ;;  %v8254_v12 = vpack.i.bf16 %v11360_v2, %v11279_v17  ;;  %8265 = vrot.lane.b32.xlu1 %v8264_v24, %s8668_s8  ;;  %v8484_v28 = vpack.i.bf16 %v11355_v30, %v11360_v2  ;;  %v8274_v16 = vpack.i.bf16 %v11367_v31, %v11360_v2  ;;  %v7412_v18 = vadd.f32 %v7411_v33, %v7410_v57 }
 0x3a3   : > { %vm3023_vm10 = vcmp.ge.f32.partialorder %v3013_v5, 0.0  ;;  %v3031_v42 = vmul.f32 0.1, %v3013_v5  ;;  %v7465_v20 = vadd.f32 %v7464_v25, %v7463_v52  ;;  %v7413_v14 = vpop.f32.mrf.mxu0 }
 0x3a4   : > { %v7466_v29 = vpop.f32.mrf.mxu1  ;;  %8255 = vrot.lane.b32.xlu0 %v8254_v12, %s8668_s8  ;;  %v11401_v12 = vld [vmem:[#allocation3 + $0x1e1] sm:$0xff] }
 0x3a5   : > { %v3039_v37 = vsel %vm3023_vm10, %v3013_v5, %v3031_v42  ;;  %v3318_v60 = vadd.f32 %v7465_v20, %v7409_v40  ;;  %v7414_v61 = vpop.f32.mrf.mxu0  ;;  %v11396_v5 = vld [vmem:[#allocation3 + $0x111] sm:$0xff] }
 0x3a6   : > { %3048 = vst.msk [vmem:[#allocation3 + $0x1c1] sm:$0xff] %vm319_vm0, %v3039_v37  ;;  %v7467_v46 = vpop.f32.mrf.mxu1  ;;  %8275 = vrot.lane.b32.xlu1 %v8274_v16, %s8668_s8  ;;  %v7415_v6 = vadd.f32 %v7414_v61, %v7413_v14  ;;  %v11407_v16 = vld [vmem:[#allocation3 + $0x11] sm:$0xff] }
 0x3a7   : > { %vm3356_vm11 = vcmp.ge.f32.partialorder %v3318_v60, 0.0  ;;  %v3364_v49 = vmul.f32 0.1, %v3318_v60  ;;  %v7468_v35 = vadd.f32 %v7467_v46, %v7466_v29  ;;  %v7416_v34 = vpop.f32.mrf.mxu0  ;;  %v11374_v53 = vld [vmem:[#allocation3 + $0x1b1] sm:$0xff]  ;;  %v11405_v29 = vld [vmem:[#allocation3 + $0x21] sm:$0xff] }
 0x3a8   : > { %v7469_v50 = vpop.f32.mrf.mxu1  ;;  %v8259_v59 = vpack.i.bf16 %v11374_v53, %v11309_v48  ;;  %v8494_v39 = vpack.i.bf16 %v11376_v7, %v11374_v53  ;;  %v8279_v25 = vpack.i.bf16 %v11396_v5, %v11374_v53 }
 0x3a9   : > { %v3372_v9 = vsel %vm3356_vm11, %v3318_v60, %v3364_v49  ;;  %v3323_v44 = vadd.f32 %v7468_v35, %v7412_v18  ;;  %v7417_v54 = vpop.f32.mrf.mxu0 }
 0x3aa   : > { %3381 = vst.msk [vmem:[#allocation3 + $0x1f1] sm:$0xff] %vm319_vm0, %v3372_v9  ;;  %v7470_v47 = vpop.f32.mrf.mxu1  ;;  %8260 = vrot.lane.b32.xlu0 %v8259_v59, %s8668_s8  ;;  %v7418_v26 = vadd.f32 %v7417_v54, %v7416_v34  ;;  %v8289_v34 = vpack.i.bf16 %v11401_v12, %v11407_v16  ;;  %v11418_v54 = vld [vmem:[#allocation3 + $0x41] sm:$0xff] }
 0x3ab   : > { %vm3357_vm12 = vcmp.ge.f32.partialorder %v3323_v44, 0.0  ;;  %v3365_v36 = vmul.f32 0.1, %v3323_v44  ;;  %v7471_v13 = vadd.f32 %v7470_v47, %v7469_v50  ;;  %v7419_v0 = vpop.f32.mrf.mxu0 }
 0x3ac   : > { %v7472_v27 = vpop.f32.mrf.mxu1 }
 0x3ad   : > { %v3373_v51 = vsel %vm3357_vm12, %v3323_v44, %v3365_v36  ;;  %v3328_v1 = vadd.f32 %v7471_v13, %v7415_v6  ;;  %v7420_v63 = vpop.f32.mrf.mxu0  ;;  %v11388_v45 = vld [vmem:[#allocation3 + $0x1c1] sm:$0xff] }
 0x3ae   : > { %3382 = vst.msk [vmem:[#allocation3 + $0x201] sm:$0xff] %vm319_vm0, %v3373_v51  ;;  %v7473_v3 = vpop.f32.mrf.mxu1  ;;  %8270 = vrot.lane.b32.xlu0 %v8269_v10, %s8668_s8  ;;  %v8284_v41 = vpack.i.bf16 %v11386_v4, %v11388_v45  ;;  %v8504_v19 = vpack.i.bf16 %v11367_v31, %v11388_v45  ;;  %v7421_v61 = vadd.f32 %v7420_v63, %v7419_v0 }
 0x3af   : > { %vm3358_vm13 = vcmp.ge.f32.partialorder %v3328_v1, 0.0  ;;  %v3366_v57 = vmul.f32 0.1, %v3328_v1  ;;  %v7474_v52 = vadd.f32 %v7473_v3, %v7472_v27  ;;  %v7422_v24 = vpop.f32.mrf.mxu0  ;;  %v11424_v27 = vld [vmem:[#allocation3 + $0x31] sm:$0xff] }
 0x3b0   : > { %v7475_v33 = vpop.f32.mrf.mxu1  ;;  %8285 = vrot.lane.b32.xlu1 %v8284_v41, %s8668_s8 }
 0x3b1   : > { %v3374_v42 = vsel %vm3358_vm13, %v3328_v1, %v3366_v57  ;;  %v3333_v40 = vadd.f32 %v7474_v52, %v7418_v26  ;;  %v7423_v20 = vpop.f32.mrf.mxu0  ;;  %v11403_v14 = vld [vmem:[#allocation3 + $0x1f1] sm:$0xff] }
 0x3b2   : > { %3383 = vst.msk [vmem:[#allocation3 + $0x211] sm:$0xff] %vm319_vm0, %v3374_v42  ;;  %v7476_v37 = vpop.f32.mrf.mxu1  ;;  %8280 = vrot.lane.b32.xlu0 %v8279_v25, %s8668_s8  ;;  %v8294_v60 = vpack.i.bf16 %v11403_v14, %v11405_v29  ;;  %v8304_v6 = vpack.i.bf16 %v11403_v14, %v11418_v54  ;;  %v7424_v36 = vadd.f32 %v7423_v20, %v7422_v24  ;;  %v11431_v26 = vld [vmem:[#allocation3 + $0x51] sm:$0xff] }
 0x3b3   : > { %vm3359_vm14 = vcmp.ge.f32.partialorder %v3333_v40, 0.0  ;;  %v3367_v46 = vmul.f32 0.1, %v3333_v40  ;;  %v7477_v18 = vadd.f32 %v7476_v37, %v7475_v33  ;;  %v7425_v49 = vpop.f32.mrf.mxu0  ;;  %v4139_v42 = vld [vmem:[#allocation3 + $0x12] sm:$0xff] }
 0x3b4   : > { %v7478_v35 = vpop.f32.mrf.mxu1  ;;  %8295 = vrot.lane.b32.xlu1 %v8294_v60, %s8668_s8 }
 0x3b5   : > { %v3375_v50 = vsel %vm3359_vm14, %v3333_v40, %v3367_v46  ;;  %v3338_v59 = vadd.f32 %v7477_v18, %v7421_v61  ;;  %v7426_v9 = vpop.f32.mrf.mxu0  ;;  %v11416_v44 = vld [vmem:[#allocation3 + $0x201] sm:$0xff] }
 0x3b6   : > { %3384 = vst.msk [vmem:[#allocation3 + $0x221] sm:$0xff] %vm319_vm0, %v3375_v50  ;;  %v7479_v47 = vpop.f32.mrf.mxu1  ;;  %8290 = vrot.lane.b32.xlu0 %v8289_v34, %s8668_s8  ;;  %v8299_v1 = vpack.i.bf16 %v11416_v44, %v11424_v27  ;;  %v8309_v52 = vpack.i.bf16 %v11416_v44, %v11431_v26  ;;  %v7427_v24 = vadd.f32 %v7426_v9, %v7425_v49  ;;  %v11441_v18 = vld [vmem:[#allocation3 + $0x61] sm:$0xff] }
 0x3b7   : > { %vm3360_vm15 = vcmp.ge.f32.partialorder %v3338_v59, 0.0  ;;  %v3368_v13 = vmul.f32 0.1, %v3338_v59  ;;  %v7480_v0 = vadd.f32 %v7479_v47, %v7478_v35  ;;  %v7428_v10 = vpop.f32.mrf.mxu0  ;;  %v4140_v9 = vld [vmem:[#allocation3 + $0x22] sm:$0xff] }
 0x3b8   : > { %v7481_v51 = vpop.f32.mrf.mxu1  ;;  %8305 = vrot.lane.b32.xlu1 %v8304_v6, %s8668_s8 }
 0x3b9   : > { %v3376_v63 = vsel %vm3360_vm15, %v3338_v59, %v3368_v13  ;;  %v3343_v3 = vadd.f32 %v7480_v0, %v7424_v36  ;;  %v11429_v41 = vld [vmem:[#allocation3 + $0x211] sm:$0xff]  ;;  %v7429_v40 = vpop.f32.mrf.mxu0 }
 0x3ba   : > { %3385 = vst.msk [vmem:[#allocation3 + $0x231] sm:$0xff] %vm319_vm0, %v3376_v63  ;;  %v7482_v57 = vpop.f32.mrf.mxu1  ;;  %8300 = vrot.lane.b32.xlu0 %v8299_v1, %s8668_s8  ;;  %v8314_v37 = vpack.i.bf16 %v4139_v42, %v11429_v41  ;;  %v8319_v49 = vpack.i.bf16 %v11429_v41, %v11441_v18  ;;  %v7430_v34 = vadd.f32 %v7429_v40, %v7428_v10  ;;  %v11451_v0 = vld [vmem:[#allocation3 + $0x71] sm:$0xff] }
 0x3bb   : > { %vm3361_vm1 = vcmp.ge.f32.partialorder %v3343_v3, 0.0  ;;  %v3369_v33 = vmul.f32 0.1, %v3343_v3  ;;  %v7483_v25 = vadd.f32 %v7482_v57, %v7481_v51  ;;  %v4141_v1 = vld [vmem:[#allocation3 + $0x32] sm:$0xff] }
 0x3bc   : > { %v7484_v20 = vpop.f32.mrf.mxu1  ;;  %8310 = vrot.lane.b32.xlu1 %v8309_v52, %s8668_s8  ;;  %v11461_v52 = vld [vmem:[#allocation3 + $0x81] sm:$0xff] }
 0x3bd   : > { %v3377_v60 = vsel %vm3361_vm1, %v3343_v3, %v3369_v33  ;;  %v3348_v61 = vadd.f32 %v7483_v25, %v7427_v24  ;;  %v11439_v46 = vld [vmem:[#allocation3 + $0x221] sm:$0xff] }
 0x3be   : > { %3386 = vst.msk [vmem:[#allocation3 + $0x241] sm:$0xff] %vm319_vm0, %v3377_v60  ;;  %v7485_v35 = vpop.f32.mrf.mxu1  ;;  %8315 = vrot.lane.b32.xlu0 %v8314_v37, %s8668_s8  ;;  %v8324_v47 = vpack.i.bf16 %v4140_v9, %v11439_v46  ;;  %v8329_v10 = vpack.i.bf16 %v11439_v46, %v11451_v0  ;;  %v4142_v33 = vld [vmem:[#allocation3 + $0x42] sm:$0xff]  ;;  %v11481_v9 = vld [vmem:[%s13164_s6 + $0x230] sm:$0xff] }
 0x3bf   : > { %vm3362_vm2 = vcmp.ge.f32.partialorder %v3348_v61, 0.0  ;;  %v3370_v50 = vmul.f32 0.1, %v3348_v61  ;;  %v7486_v59 = vadd.f32 %v7485_v35, %v7484_v20  ;;  %v3390_v25 = vld [vmem:[#allocation3 + $0x1e0] sm:$0xff] }
 0x3c0   : > { %8320 = vrot.lane.b32.xlu1 %v8319_v49, %s8668_s8 }
 0x3c1   : > { %v3378_v6 = vsel %vm3362_vm2, %v3348_v61, %v3370_v50  ;;  %v3353_v36 = vadd.f32 %v7486_v59, %v7430_v34  ;;  %v11449_v13 = vld [vmem:[#allocation3 + $0x231] sm:$0xff]  ;;  %v4144_v61 = vld [vmem:[#allocation3 + $0x62] sm:$0xff] }
 0x3c2   : > { %3387 = vst.msk [vmem:[#allocation3 + $0x251] sm:$0xff] %vm319_vm0, %v3378_v6  ;;  %8325 = vrot.lane.b32.xlu0 %v8324_v47, %s8668_s8  ;;  %v8334_v63 = vpack.i.bf16 %v4141_v1, %v11449_v13  ;;  %v8339_v24 = vpack.i.bf16 %v11449_v13, %v11461_v52  ;;  %v4143_v34 = vld [vmem:[#allocation3 + $0x52] sm:$0xff]  ;;  %v4146_v47 = vld [vmem:[#allocation3 + $0x82] sm:$0xff] }
 0x3c3   : > { %vm3363_vm3 = vcmp.ge.f32.partialorder %v3353_v36, 0.0  ;;  %v3371_v51 = vmul.f32 0.1, %v3353_v36 }
 0x3c4   : > { %8330 = vrot.lane.b32.xlu1 %v8329_v10, %s8668_s8  ;;  %v4145_v10 = vld [vmem:[#allocation3 + $0x72] sm:$0xff] }
 0x3c5   : > { %v3379_v3 = vsel %vm3363_vm3, %v3353_v36, %v3371_v51  ;;  %v11459_v57 = vld [vmem:[#allocation3 + $0x241] sm:$0xff] }
 0x3c6   : > { %3388 = vst.msk [vmem:[#allocation3 + $0x261] sm:$0xff] %vm319_vm0, %v3379_v3  ;;  %8335 = vrot.lane.b32.xlu0 %v8334_v63, %s8668_s8  ;;  %v8344_v40 = vpack.i.bf16 %v4142_v33, %v11459_v57  ;;  %v8354_v35 = vpack.i.bf16 %v4144_v61, %v11459_v57  ;;  %v11493_v51 = vld [vmem:[#allocation3 + $0x200] sm:$0xff]  ;;  %v11504_v63 = vld [vmem:[#allocation3 + $0x1f0] sm:$0xff] }
 0x3c7   : > { %v8211_v42 = vpop.permute.xlu0 %8210  ;;  %v8374_v3 = vpack.i.bf16 %v11405_v29, %v11493_v51  ;;  %v11516_v33 = vld [vmem:[#allocation3 + $0x220] sm:$0xff] }
 0x3c8   : > { %8340 = vrot.lane.b32.xlu1 %v8339_v24, %s8668_s8  ;;  %v8213_v20 = vunpack.i.h.bf16 %v8211_v42  ;;  %v8212_v37 = vunpack.i.l.bf16 %v8211_v42  ;;  %v11514_v24 = vld [vmem:[%s13164_s6 + $0x218] sm:$0xff]  ;;  %v11526_v42 = vld [vmem:[%s13164_s6 + $0x210] sm:$0xff]  ;;  %v11540_v61 = vld [vmem:[#allocation3 + $0x240] sm:$0xff] }
 0x3c9   : > { %v11469_v60 = vld [vmem:[#allocation3 + $0x251] sm:$0xff] }
 0x3ca   : > { %8345 = vrot.lane.b32.xlu0 %v8344_v40, %s8668_s8  ;;  %v3591_v49 = vsel %vm319_vm0, %v3390_v25, %v8213_v20  ;;  %v3599_v50 = vsel %vm319_vm0, %v11401_v12, %v8212_v37  ;;  %v8349_v59 = vpack.i.bf16 %v4143_v34, %v11469_v60  ;;  %v11491_v12 = vld [vmem:[%s13164_s6 + $0x228] sm:$0xff]  ;;  %v8359_v1 = vpack.i.bf16 %v4145_v10, %v11469_v60  ;;  %v11528_v40 = vld [vmem:[#allocation3 + $0x210] sm:$0xff] }
 0x3cb   : > { %3783 = vmatprep.mubr.f32.mxu0 %v3599_v50  ;;  %v8369_v25 = vpack.i.bf16 %v11407_v16, %v11504_v63  ;;  %v8384_v20 = vpack.i.bf16 %v11418_v54, %v11516_v33  ;;  %v11538_v37 = vld [vmem:[%s13164_s6 + $0x208] sm:$0xff]  ;;  %v11552_v34 = vld [vmem:[#allocation3 + $0x230] sm:$0xff]  ;;  %v8394_v50 = vpack.i.bf16 %v11540_v61, %v11405_v29 }
 0x3cc   : > { %8355 = vrot.lane.b32.xlu1 %v8354_v35, %s8668_s8  ;;  %3784 = vmatmul.mubr.f32.vlgmr.msra.gmra.mxu0 %v3591_v49  ;;  %v8379_v35 = vpack.i.bf16 %v11424_v27, %v11528_v40  ;;  %v11550_v49 = vld [vmem:[%s13164_s6 + $0x200] sm:$0xff] }
 0x3cd   : > { %v11483_v6 = vld [vmem:[#allocation3 + $0x261] sm:$0xff]  ;;  %8088 = vmatpush3.msra.mxu0 %v11257_v43 }
 0x3ce   : > { %8350 = vrot.lane.b32.xlu0 %v8349_v59, %s8668_s8  ;;  %v8364_v36 = vpack.i.bf16 %v4146_v47, %v11483_v6  ;;  %8089 = vmatprep.subr.mxu0 %v11481_v9  ;;  %v11502_v43 = vld [vmem:[%s13164_s6 + $0x220] sm:$0xff]  ;;  %v11559_v59 = vld [vmem:[#allocation3 + $0x250] sm:$0xff]  ;;  %v8389_v47 = vpack.i.bf16 %v11431_v26, %v11552_v34 }
 0x3cf   : > { %8090 = vmatpush3.msra.mxu0 %v11481_v9  ;;  %v11570_v10 = vld [vmem:[#allocation3 + $0x260] sm:$0xff] }
 0x3d0   : > { %8365 = vrot.lane.b32.xlu1 %v8364_v36, %s8668_s8  ;;  %8091 = vmatprep.subr.mxu0 %v11491_v12  ;;  %v8404_v36 = vpack.i.bf16 %v11559_v59, %v11424_v27 }
 0x3d1   : > { %8092 = vmatpush3.msra.mxu0 %v11491_v12 }
 0x3d2   : > { %8360 = vrot.lane.b32.xlu0 %v8359_v1, %s8668_s8  ;;  %8093 = vmatprep.subr.mxu0 %v11502_v43  ;;  %v8399_v1 = vpack.i.bf16 %v11441_v18, %v11403_v14 }
 0x3d3   : > { %8094 = vmatpush3.msra.mxu0 %v11502_v43 }
 0x3d4   : > { %8375 = vrot.lane.b32.xlu1 %v8374_v3, %s8668_s8  ;;  %8095 = vmatprep.subr.mxu0 %v11514_v24  ;;  %v8419_v3 = vpack.i.bf16 %v11570_v10, %v11418_v54 }
 0x3d5   : > { %8096 = vmatpush3.msra.mxu0 %v11514_v24 }
 0x3d6   : > { %8370 = vrot.lane.b32.xlu0 %v8369_v25, %s8668_s8  ;;  %8097 = vmatprep.subr.mxu0 %v11526_v42  ;;  %v8424_v25 = vpack.i.bf16 %v11439_v46, %v11431_v26 }
 0x3d7   : > { %8098 = vmatpush3.msra.mxu0 %v11526_v42 }
 0x3d8   : > { %8385 = vrot.lane.b32.xlu1 %v8384_v20, %s8668_s8  ;;  %8099 = vmatprep.subr.mxu0 %v11538_v37  ;;  %v8414_v20 = vpack.i.bf16 %v11461_v52, %v11429_v41 }
 0x3d9   : > { %8100 = vmatpush3.msra.mxu0 %v11538_v37 }
 0x3da   : > { %8380 = vrot.lane.b32.xlu0 %v8379_v35, %s8668_s8  ;;  %8101 = vmatprep.subr.mxu0 %v11550_v49  ;;  %v8434_v35 = vpack.i.bf16 %v11459_v57, %v11451_v0 }
 0x3db   : > { %8102 = vmatpush3.msra.mxu0 %v11550_v49 }
 0x3dc   : > { %8395 = vrot.lane.b32.xlu1 %v8394_v50, %s8668_s8  ;;  %7671 = vmatprep.subr.mxu0 %v11203_v55  ;;  %v8409_v55 = vpack.i.bf16 %v11451_v0, %v11416_v44  ;;  %v4872_v50 = vld [vmem:[#allocation3 + $0x91] sm:$0xff] }
 0x3de   : > { %8390 = vrot.lane.b32.xlu0 %v8389_v47, %s8668_s8  ;;  %v8429_v47 = vpack.i.bf16 %v11449_v13, %v11441_v18 }
 0x3e0   : > { %8405 = vrot.lane.b32.xlu1 %v8404_v36, %s8668_s8  ;;  %v8444_v36 = vpack.i.bf16 %v11483_v6, %v4872_v50  ;;  %v11611_v6 = vld [vmem:[#allocation3 + $0x152] sm:$0xff] }
 0x3e1   : > { %v8469_v15 = vpack.i.bf16 %v11611_v6, %v11355_v30  ;;  %v11649_v30 = vld [vmem:[#allocation3 + $0x182] sm:$0xff] }
 0x3e2   : > { %8400 = vrot.lane.b32.xlu0 %v8399_v1, %s8668_s8  ;;  %v8439_v1 = vpack.i.bf16 %v11469_v60, %v11461_v52 }
 0x3e4   : > { %8420 = vrot.lane.b32.xlu1 %v8419_v3, %s8668_s8  ;;  %v11652_v3 = vld [vmem:[#allocation3 + $0x1a2] sm:$0xff] }
 0x3e6   : > { %8410 = vrot.lane.b32.xlu0 %v8409_v55, %s8668_s8 }
 0x3e8   : > { %8425 = vrot.lane.b32.xlu1 %v8424_v25, %s8668_s8 }
 0x3ea   : > { %8415 = vrot.lane.b32.xlu0 %v8414_v20, %s8668_s8  ;;  %v8499_v20 = vpack.i.bf16 %v11649_v30, %v11396_v5 }
 0x3ec   : > { %8435 = vrot.lane.b32.xlu1 %v8434_v35, %s8668_s8  ;;  %v8514_v35 = vpack.i.bf16 %v11652_v3, %v11396_v5 }
 0x3ee   : > { %8430 = vrot.lane.b32.xlu0 %v8429_v47, %s8668_s8 }
 0x3f0   : > { %8445 = vrot.lane.b32.xlu1 %v8444_v36, %s8668_s8 }
 0x3f2   : > { %8440 = vrot.lane.b32.xlu0 %v8439_v1, %s8668_s8 }
 0x3f4   : > { %8455 = vrot.lane.b32.xlu1 %v8454_v22, %s8668_s8 }
 0x3f6   : > { %8450 = vrot.lane.b32.xlu0 %v8449_v38, %s8668_s8  ;;  %v11627_v38 = vld [vmem:[#allocation3 + $0x162] sm:$0xff] }
 0x3f7   : > { %v8216_v18 = vpop.permute.xlu0 %8215 }
 0x3f8   : > { %8465 = vrot.lane.b32.xlu1 %v8464_v11, %s8668_s8  ;;  %v8218_v0 = vunpack.i.h.bf16 %v8216_v18  ;;  %v8217_v52 = vunpack.i.l.bf16 %v8216_v18  ;;  %v5564_v18 = vld [vmem:[#allocation3 + $0x1c2] sm:$0xff] }
 0x3fa   : > { %8460 = vrot.lane.b32.xlu0 %v8459_v21, %s8668_s8  ;;  %v3600_v23 = vsel %vm319_vm0, %v11403_v14, %v8217_v52  ;;  %v3592_v58 = vsel %vm319_vm0, %v11504_v63, %v8218_v0  ;;  %v8479_v21 = vpack.i.bf16 %v11627_v38, %v11376_v7  ;;  %v11664_v7 = vld [vmem:[#allocation3 + $0x192] sm:$0xff] }
 0x3fb   : > { %3788 = vmatprep.mubr.f32.mxu0 %v3600_v23  ;;  %v5580_v0 = vld [vmem:[#allocation3 + $0x131] sm:$0xff]  ;;  %v8509_v45 = vpack.i.bf16 %v11664_v7, %v11386_v4 }
 0x3fc   : > { %8475 = vrot.lane.b32.xlu1 %v8474_v8, %s8668_s8  ;;  %3789 = vmatmul.mubr.f32.gmra.mxu0 %v3592_v58  ;;  %v11674_v52 = vld [vmem:[#allocation3 + $0x1b2] sm:$0xff]  ;;  %v8524_v58 = vpack.i.bf16 %v5564_v18, %v5580_v0 }
 0x3fe   : > { %8470 = vrot.lane.b32.xlu0 %v8469_v15, %s8668_s8  ;;  %v8221_v17 = vpop.permute.xlu1 %8220 }
 0x3ff   : > { %v8223_v22 = vunpack.i.h.bf16 %v8221_v17  ;;  %v8222_v62 = vunpack.i.l.bf16 %v8221_v17  ;;  %v8519_v17 = vpack.i.bf16 %v11674_v52, %v11386_v4 }
 0x400   : > { %8485 = vrot.lane.b32.xlu1 %v8484_v28, %s8668_s8 }
 0x401   : > { %v3601_v48 = vsel %vm319_vm0, %v11416_v44, %v8222_v62  ;;  %v3593_v11 = vsel %vm319_vm0, %v11493_v51, %v8223_v22 }
 0x402   : > { %8480 = vrot.lane.b32.xlu0 %v8479_v21, %s8668_s8  ;;  %3793 = vmatprep.mubr.f32.mxu0 %v3601_v48 }
 0x403   : > { %3794 = vmatmul.mubr.f32.gmra.mxu0 %v3593_v11 }
 0x404   : > { %8495 = vrot.lane.b32.xlu1 %v8494_v39, %s8668_s8  ;;  %v8226_v8 = vpop.permute.xlu1 %8225 }
 0x405   : > { %v8228_v2 = vunpack.i.h.bf16 %v8226_v8  ;;  %v8227_v28 = vunpack.i.l.bf16 %v8226_v8 }
 0x406   : > { %8490 = vrot.lane.b32.xlu0 %v8489_v56, %s8668_s8 }
 0x407   : > { %v3602_v55 = vsel %vm319_vm0, %v11429_v41, %v8227_v28  ;;  %v3594_v25 = vsel %vm319_vm0, %v11528_v40, %v8228_v2  ;;  %v8596_v28 = vld [vmem:[%s13164_s6 + $0x78] sm:$0xff] }
 0x408   : > { %8505 = vrot.lane.b32.xlu1 %v8504_v19, %s8668_s8  ;;  %v8231_v53 = vpop.permute.xlu1 %8230  ;;  %3798 = vmatprep.mubr.f32.mxu0 %v3602_v55 }
 0x409   : > { %v8232_v39 = vunpack.i.l.bf16 %v8231_v53  ;;  %3799 = vmatmul.mubr.f32.gmra.mxu0 %v3594_v25  ;;  %v8233_v47 = vunpack.i.h.bf16 %v8231_v53 }
 0x40a   : > { %8500 = vrot.lane.b32.xlu0 %v8499_v20, %s8668_s8  ;;  %v8246_v50 = vpop.permute.xlu0 %8245 }
 0x40b   : > { %v8248_v36 = vunpack.i.h.bf16 %v8246_v50  ;;  %v8247_v1 = vunpack.i.l.bf16 %v8246_v50  ;;  %v3615_v31 = vsel %vm319_vm0, %v11504_v63, %v8232_v39  ;;  %v3604_v63 = vsel %vm319_vm0, %v11449_v13, %v8233_v47  ;;  %v8598_v39 = vld [vmem:[%s13164_s6 + $0x70] sm:$0xff] }
 0x40c   : > { %8515 = vrot.lane.b32.xlu1 %v8514_v35, %s8668_s8  ;;  %v8236_v19 = vpop.permute.xlu1 %8235  ;;  %3888 = vmatprep.mubr.f32.mxu1 %v3615_v31 }
 0x40d   : > { %v3603_v5 = vsel %vm319_vm0, %v11439_v46, %v8247_v1  ;;  %v3595_v23 = vsel %vm319_vm0, %v11516_v33, %v8248_v36  ;;  %v8237_v15 = vunpack.i.l.bf16 %v8236_v19  ;;  %v8238_v62 = vunpack.i.h.bf16 %v8236_v19  ;;  %v8600_v1 = vld [vmem:[%s13164_s6 + $0x68] sm:$0xff]  ;;  %v8602_v19 = vld [vmem:[%s13164_s6 + $0x60] sm:$0xff] }
 0x40e   : > { %8510 = vrot.lane.b32.xlu0 %v8509_v45, %s8668_s8  ;;  %3803 = vmatprep.mubr.f32.mxu0 %v3603_v5  ;;  %v8603_v5 = vld [vmem:[%s13164_s6 + $0xd8] sm:$0xff] }
 0x40f   : > { %3804 = vmatmul.mubr.f32.gmra.mxu0 %v3595_v23  ;;  %v3616_v56 = vsel %vm319_vm0, %v11493_v51, %v8237_v15  ;;  %v3605_v55 = vsel %vm319_vm0, %v11459_v57, %v8238_v62  ;;  %v8599_v57 = vld [vmem:[%s13164_s6 + $0xe8] sm:$0xff] }
 0x410   : > { %8525 = vrot.lane.b32.xlu1 %v8524_v58, %s8668_s8  ;;  %v8251_v22 = vpop.permute.xlu0 %8250  ;;  %3808 = vmatprep.mubr.f32.mxu0 %v3604_v63  ;;  %v8241_v11 = vpop.permute.xlu1 %8240 }
 0x411   : > { %v8253_v21 = vunpack.i.h.bf16 %v8251_v22  ;;  %v8252_v48 = vunpack.i.l.bf16 %v8251_v22  ;;  %v8242_v4 = vunpack.i.l.bf16 %v8241_v11  ;;  %v8243_v25 = vunpack.i.h.bf16 %v8241_v11 }
 0x412   : > { %8520 = vrot.lane.b32.xlu0 %v8519_v17, %s8668_s8  ;;  %v8604_v17 = vld [vmem:[%s13164_s6 + $0x58] sm:$0xff] }
 0x413   : > { %v3607_v8 = vsel %vm319_vm0, %v11407_v16, %v8252_v48  ;;  %v3596_v2 = vsel %vm319_vm0, %v11552_v34, %v8253_v21  ;;  %v8597_v16 = vld [vmem:[%s13164_s6 + $0xf0] sm:$0xff]  ;;  %v3617_v50 = vsel %vm319_vm0, %v11528_v40, %v8242_v4  ;;  %v3606_v0 = vsel %vm319_vm0, %v11469_v60, %v8243_v25 }
 0x414   : > { %3889 = vmatmul.mubr.f32.vlgmr.msra.gmra.mxu1 %v3607_v8  ;;  %3809 = vmatmul.mubr.f32.gmra.mxu0 %v3596_v2  ;;  %v8266_v35 = vpop.permute.xlu1 %8265  ;;  %v8611_v4 = vld [vmem:[%s13164_s6 + $0x1f0] sm:$0xff] }
 0x415   : > { %3893 = vmatprep.mubr.f32.mxu1 %v3616_v56  ;;  %7616 = vmatpush3.msra.mxu1 %v8596_v28  ;;  %v8267_v18 = vunpack.i.l.bf16 %v8266_v35  ;;  %v8268_v58 = vunpack.i.h.bf16 %v8266_v35  ;;  %v8612_v28 = vld [vmem:[%s13164_s6 + $0x40] sm:$0xff]  ;;  %v8616_v35 = vld [vmem:[%s13164_s6 + $0x38] sm:$0xff] }
 0x416   : > { %v8256_v51 = vpop.permute.xlu0 %8255  ;;  %3813 = vmatprep.mubr.f32.mxu0 %v3605_v55  ;;  %7617 = vmatprep.subr.mxu1 %v8597_v16  ;;  %v8615_v16 = vld [vmem:[%s13164_s6 + $0x1e8] sm:$0xff] }
 0x417   : > { %v8258_v20 = vunpack.i.h.bf16 %v8256_v51  ;;  %v8257_v53 = vunpack.i.l.bf16 %v8256_v51  ;;  %7618 = vmatpush3.msra.mxu1 %v8598_v39  ;;  %v3618_v23 = vsel %vm319_vm0, %v11516_v33, %v8267_v18  ;;  %v8606_v33 = vld [vmem:[%s13164_s6 + $0x50] sm:$0xff]  ;;  %v3610_v48 = vsel %vm319_vm0, %v11418_v54, %v8268_v58  ;;  %v8608_v54 = vld [vmem:[%s13164_s6 + $0x48] sm:$0xff]  ;;  %v8614_v51 = vld [vmem:[%s13164_s6 + $0xb8] sm:$0xff] }
 0x418   : > { %7619 = vmatprep.subr.mxu1 %v8599_v57  ;;  %v11736_v22 = vpop.permute.xlu1 %8275  ;;  %v8617_v57 = vld [vmem:[%s13164_s6 + $0x168] sm:$0xff]  ;;  %v8623_v18 = vld [vmem:[%s13164_s6 + $0x1d8] sm:$0xff]  ;;  %v8627_v58 = vld [vmem:[%s13164_s6 + $0x1d0] sm:$0xff] }
 0x419   : > { %v3608_v47 = vsel %vm319_vm0, %v11405_v29, %v8257_v53  ;;  %v3597_v36 = vsel %vm319_vm0, %v11540_v61, %v8258_v20  ;;  %7620 = vmatpush3.msra.mxu1 %v8600_v1  ;;  %v8601_v29 = vld [vmem:[%s13164_s6 + $0xe0] sm:$0xff]  ;;  %v8277_v8 = vunpack.i.l.bf16 %v11736_v22  ;;  %v8278_v20 = vunpack.i.h.bf16 %v11736_v22  ;;  %v8630_v22 = vld [vmem:[%s13164_s6 + $0x98] sm:$0xff] }
 0x41a   : > { %3894 = vmatmul.mubr.f32.gmra.mxu1 %v3608_v47  ;;  %3814 = vmatmul.mubr.f32.gmra.mxu0 %v3597_v36  ;;  %v3428_v47 = vld [vmem:[#allocation3 + $0x61] sm:$0xff] }
 0x41b   : > { %3898 = vmatprep.mubr.f32.mxu1 %v3617_v50  ;;  %3818 = vmatprep.mubr.f32.mxu0 %v3606_v0  ;;  %v8620_v50 = vld [vmem:[%s13164_s6 + $0x30] sm:$0xff]  ;;  %v8622_v36 = vld [vmem:[%s13164_s6 + $0xa8] sm:$0xff]  ;;  %v3612_v1 = vsel %vm319_vm0, %v3428_v47, %v8278_v20  ;;  %v8644_v47 = vld [vmem:[%s13164_s6] sm:$0xff] }
 0x41c   : > { %v8261_v40 = vpop.permute.xlu0 %8260  ;;  %7621 = vmatprep.subr.mxu1 %v8601_v29 }
 0x41d   : > { %v8263_v31 = vunpack.i.h.bf16 %v8261_v40  ;;  %v8262_v45 = vunpack.i.l.bf16 %v8261_v40  ;;  %7622 = vmatpush3.msra.mxu1 %v8602_v19  ;;  %v3460_v40 = vld [vmem:[#allocation3 + $0x241] sm:$0xff] }
 0x41e   : > { %7623 = vmatprep.subr.mxu1 %v8603_v5  ;;  %v8624_v19 = vld [vmem:[%s13164_s6 + $0x28] sm:$0xff]  ;;  %v8625_v5 = vld [vmem:[%s13164_s6 + $0x158] sm:$0xff] }
 0x41f   : > { %v3609_v15 = vsel %vm319_vm0, %v11424_v27, %v8262_v45  ;;  %v3598_v63 = vsel %vm319_vm0, %v11559_v59, %v8263_v31  ;;  %7624 = vmatpush3.msra.mxu1 %v8604_v17  ;;  %v8605_v27 = vld [vmem:[%s13164_s6 + $0xd0] sm:$0xff] }
 0x420   : > { %v8271_v62 = vpop.permute.xlu0 %8270  ;;  %3899 = vmatmul.mubr.f32.gmra.mxu1 %v3609_v15  ;;  %3819 = vmatmul.mubr.f32.gmra.mxu0 %v3598_v63  ;;  %v8628_v15 = vld [vmem:[%s13164_s6 + $0x20] sm:$0xff]  ;;  %v3429_v63 = vld [vmem:[#allocation3 + $0x71] sm:$0xff] }
 0x421   : > { %v8272_v21 = vunpack.i.l.bf16 %v8271_v62  ;;  %3903 = vmatprep.mubr.f32.mxu1 %v3618_v23  ;;  %8103 = vmatprep.mubr.msk.f32.mxu0 %vm319_vm0, %v11403_v14  ;;  %v8273_v56 = vunpack.i.h.bf16 %v8271_v62  ;;  %v8607_v14 = vld [vmem:[%s13164_s6 + $0xc8] sm:$0xff]  ;;  %v8626_v23 = vld [vmem:[%s13164_s6 + $0xa0] sm:$0xff] }
 0x422   : > { %7625 = vmatprep.subr.mxu1 %v8605_v27  ;;  %v11756_v2 = vpop.permute.xlu1 %8285 }
 0x423   : > { %7626 = vmatpush3.msra.mxu1 %v8606_v33  ;;  %v3619_v11 = vsel %vm319_vm0, %v11552_v34, %v8272_v21  ;;  %v8609_v34 = vld [vmem:[%s13164_s6 + $0x178] sm:$0xff]  ;;  %v3611_v55 = vsel %vm319_vm0, %v11431_v26, %v8273_v56  ;;  %v3620_v26 = vsel %vm319_vm0, %v11540_v61, %v8277_v8  ;;  %v8619_v61 = vld [vmem:[%s13164_s6 + $0x1e0] sm:$0xff]  ;;  %v8287_v31 = vunpack.i.l.bf16 %v11756_v2  ;;  %v8631_v21 = vld [vmem:[%s13164_s6 + $0x1c8] sm:$0xff] }
 0x424   : > { %3904 = vmatmul.mubr.f32.gmra.mxu1 %v3610_v48  ;;  %7627 = vmatprep.subr.mxu1 %v8607_v14  ;;  %v8281_v25 = vpop.permute.xlu0 %8280  ;;  %v3462_v33 = vld [vmem:[#allocation3 + $0x261] sm:$0xff]  ;;  %v8288_v48 = vunpack.i.h.bf16 %v11756_v2  ;;  %v8632_v56 = vld [vmem:[%s13164_s6 + $0x18] sm:$0xff]  ;;  %v8634_v2 = vld [vmem:[%s13164_s6 + $0x90] sm:$0xff] }
 0x425   : > { %3908 = vmatprep.mubr.f32.mxu1 %v3619_v11  ;;  %8104 = vmatmul.mubr.msk.f32.vlgmr.msra.gmra.mxu0 %vm319_vm0, %v11416_v44  ;;  %v8610_v44 = vld [vmem:[%s13164_s6 + $0xc0] sm:$0xff]  ;;  %v8282_v53 = vunpack.i.l.bf16 %v8281_v25  ;;  %v8283_v29 = vunpack.i.h.bf16 %v8281_v25  ;;  %v3622_v27 = vsel %vm319_vm0, %v11570_v10, %v8287_v31  ;;  %v8633_v14 = vld [vmem:[%s13164_s6 + $0x148] sm:$0xff]  ;;  %v11867_v8 = vld [vmem:[#allocation3 + $0x151] sm:$0xff] }
 0x426   : > { %7628 = vmatpush3.msra.mxu1 %v8608_v54  ;;  %7672 = vmatpush3.msra.mxu0 %v8609_v34  ;;  %v11791_v39 = vpop.permute.xlu1 %8295  ;;  %v8635_v54 = vld [vmem:[%s13164_s6 + $0x1c0] sm:$0xff]  ;;  %v8638_v25 = vld [vmem:[%s13164_s6 + $0x88] sm:$0xff] }
 0x427   : > { %8106 = vmatprep.mubr.msk.f32.mxu0 %vm319_vm0, %v11429_v41  ;;  %7629 = vmatprep.subr.mxu1 %v8610_v44  ;;  %v8613_v41 = vld [vmem:[%s13164_s6 + $0x170] sm:$0xff]  ;;  %v3621_v0 = vsel %vm319_vm0, %v11559_v59, %v8282_v53  ;;  %v3613_v62 = vsel %vm319_vm0, %v3429_v63, %v8283_v29  ;;  %v4115_v44 = vld [vmem:[#allocation3 + $0x142] sm:$0xff]  ;;  %v8297_v20 = vunpack.i.l.bf16 %v11791_v39 }
 0x428   : > { %7673 = vmatprep.subr.mxu0 %v8611_v4  ;;  %7630 = vmatpush3.msra.mxu1 %v8612_v28  ;;  %v11832_v59 = vpop.permute.xlu0 %8290  ;;  %v8636_v4 = vld [vmem:[%s13164_s6 + $0x10] sm:$0xff]  ;;  %v3430_v28 = vld [vmem:[#allocation3 + $0x81] sm:$0xff] }
 0x429   : > { %7674 = vmatpush3.msra.mxu0 %v8613_v41  ;;  %3909 = vmatmul.mubr.f32.gmra.mxu1 %v3611_v55  ;;  %v8292_v11 = vunpack.i.l.bf16 %v11832_v59  ;;  %v8637_v55 = vld [vmem:[%s13164_s6 + $0x140] sm:$0xff]  ;;  %v3614_v41 = vsel %vm319_vm0, %v3430_v28, %v8288_v48  ;;  %v8648_v31 = vld [vmem:[%s13164_s6 + $0x128] sm:$0xff] }
 0x42a   : > { %7631 = vmatprep.subr.mxu1 %v8614_v51  ;;  %7675 = vmatprep.subr.mxu0 %v8615_v16  ;;  %v11824_v45 = vpop.permute.xlu1 %8305  ;;  %v8293_v51 = vunpack.i.h.bf16 %v11832_v59  ;;  %v8639_v16 = vld [vmem:[%s13164_s6 + $0x1b8] sm:$0xff]  ;;  %v4099_v53 = vld [vmem:[#allocation3 + $0x141] sm:$0xff] }
 0x42b   : > { %3913 = vmatprep.mubr.f32.mxu1 %v3620_v26  ;;  %8107 = vmatmul.mubr.msk.f32.gmra.mxu0 %vm319_vm0, %v11439_v46  ;;  %v8618_v46 = vld [vmem:[%s13164_s6 + $0xb0] sm:$0xff]  ;;  %v8308_v17 = vunpack.i.h.bf16 %v11824_v45  ;;  %v4307_v26 = vsel %vm319_vm0, %v4115_v44, %v8292_v11  ;;  %v8658_v44 = vld [vmem:[%s13164_s6 + $0x100] sm:$0xff] }
 0x42c   : > { %7632 = vmatpush3.msra.mxu1 %v8616_v35  ;;  %7676 = vmatpush3.msra.mxu0 %v8617_v57  ;;  %v11869_v10 = vpop.permute.xlu0 %8300  ;;  %v8640_v35 = vld [vmem:[%s13164_s6 + $0x8] sm:$0xff]  ;;  %v8641_v57 = vld [vmem:[%s13164_s6 + $0x138] sm:$0xff] }
 0x42d   : > { %8109 = vmatprep.mubr.msk.f32.mxu0 %vm319_vm0, %v11449_v13  ;;  %7633 = vmatprep.subr.mxu1 %v8618_v46  ;;  %v8621_v13 = vld [vmem:[%s13164_s6 + $0x160] sm:$0xff]  ;;  %v4323_v34 = vsel %vm319_vm0, %v11867_v8, %v8308_v17  ;;  %v8652_v17 = vld [vmem:[%s13164_s6 + $0x118] sm:$0xff] }
 0x42e   : > { %7677 = vmatprep.subr.mxu0 %v8619_v61  ;;  %7634 = vmatpush3.msra.mxu1 %v8620_v50  ;;  %v8642_v46 = vld [vmem:[%s13164_s6 + $0x80] sm:$0xff]  ;;  %v8643_v50 = vld [vmem:[%s13164_s6 + $0x1b0] sm:$0xff]  ;;  %v11926_v29 = vpop.permute.xlu1 %8310 }
 0x42f   : > { %7678 = vmatpush3.msra.mxu0 %v8621_v13  ;;  %7635 = vmatprep.subr.mxu1 %v8622_v36  ;;  %v8298_v13 = vunpack.i.h.bf16 %v11791_v39  ;;  %v4299_v36 = vsel %vm319_vm0, %v4099_v53, %v8293_v51  ;;  %v4308_v39 = vsel %vm319_vm0, %v11611_v6, %v8297_v20  ;;  %v8650_v6 = vld [vmem:[%s13164_s6 + $0x120] sm:$0xff]  ;;  %v8313_v11 = vunpack.i.h.bf16 %v11926_v29  ;;  %v12024_v20 = vld [vmem:[%s13164_s6 + $0x70] sm:$0xff] }
 0x430   : > { %7679 = vmatprep.subr.mxu0 %v8623_v18  ;;  %3914 = vmatmul.mubr.f32.gmra.mxu1 %v3612_v1  ;;  %v11904_v61 = vpop.permute.xlu0 %8315  ;;  %v8645_v1 = vld [vmem:[%s13164_s6 + $0x130] sm:$0xff]  ;;  %v8646_v18 = vld [vmem:[%s13164_s6 + $0x238] sm:$0xff]  ;;  %v12026_v53 = vld [vmem:[#allocation3 + $0x181] sm:$0xff] }
 0x431   : > { %3918 = vmatprep.mubr.f32.mxu1 %v3621_v0  ;;  %8110 = vmatmul.mubr.msk.f32.gmra.mxu0 %vm319_vm0, %v3460_v40  ;;  %v8302_v0 = vunpack.i.l.bf16 %v11869_v10  ;;  %v8647_v40 = vld [vmem:[%s13164_s6 + $0x1a8] sm:$0xff]  ;;  %v4300_v59 = vsel %vm319_vm0, %v11867_v8, %v8298_v13 }
 0x432   : > { %7636 = vmatpush3.msra.mxu1 %v8624_v19  ;;  %7680 = vmatpush3.msra.mxu0 %v8625_v5  ;;  %v8649_v19 = vld [vmem:[%s13164_s6 + $0x1a0] sm:$0xff]  ;;  %v8303_v5 = vunpack.i.h.bf16 %v11869_v10 }
 0x433   : > { %8112 = vmatprep.mubr.msk.f32.mxu0 %vm319_vm0, %v11469_v60  ;;  %7637 = vmatprep.subr.mxu1 %v8626_v23  ;;  %v8629_v60 = vld [vmem:[%s13164_s6 + $0x150] sm:$0xff]  ;;  %v8307_v23 = vunpack.i.l.bf16 %v11824_v45  ;;  %v4309_v63 = vsel %vm319_vm0, %v11627_v38, %v8302_v0 }
 0x434   : > { %7681 = vmatprep.subr.mxu0 %v8627_v58  ;;  %7638 = vmatpush3.msra.mxu1 %v8628_v15  ;;  %v11942_v58 = vpop.permute.xlu0 %8325  ;;  %v8651_v15 = vld [vmem:[%s13164_s6 + $0x198] sm:$0xff]  ;;  %v8653_v45 = vld [vmem:[%s13164_s6 + $0x190] sm:$0xff] }
 0x435   : > { %7682 = vmatpush3.msra.mxu0 %v8629_v60  ;;  %7639 = vmatprep.subr.mxu1 %v8630_v22  ;;  %v11956_v60 = vld [vmem:[#allocation3 + $0x161] sm:$0xff]  ;;  %v8317_v22 = vunpack.i.l.bf16 %v11904_v61  ;;  %v8654_v38 = vld [vmem:[%s13164_s6 + $0x110] sm:$0xff]  ;;  %v4310_v48 = vsel %vm319_vm0, %v11636_v32, %v8307_v23 }
 0x436   : > { %7683 = vmatprep.subr.mxu0 %v8631_v21  ;;  %3919 = vmatmul.mubr.f32.gmra.mxu1 %v3613_v62  ;;  %v11959_v62 = vpop.permute.xlu1 %8320  ;;  %v4301_v21 = vsel %vm319_vm0, %v11956_v60, %v8303_v5  ;;  %v8657_v32 = vld [vmem:[%s13164_s6 + $0x180] sm:$0xff]  ;;  %v12060_v0 = vld [vmem:[#allocation3 + $0x191] sm:$0xff] }
 0x437   : > { %3923 = vmatprep.mubr.f32.mxu1 %v3622_v27  ;;  %8113 = vmatmul.mubr.msk.f32.gmra.mxu0 %vm319_vm0, %v3462_v33  ;;  %v8312_v27 = vunpack.i.l.bf16 %v11926_v29  ;;  %v8655_v33 = vld [vmem:[%s13164_s6 + $0x188] sm:$0xff]  ;;  %v8322_v28 = vunpack.i.l.bf16 %v11959_v62  ;;  %v12066_v29 = vld [vmem:[%s13164_s6 + $0x60] sm:$0xff]  ;;  %v12074_v5 = vld [vmem:[%s13164_s6 + $0xd8] sm:$0xff] }
 0x438   : > { %7640 = vmatpush3.msra.mxu1 %v8632_v56  ;;  %7684 = vmatpush3.msra.mxu0 %v8633_v14  ;;  %v8656_v56 = vld [vmem:[%s13164_s6 + $0x108] sm:$0xff]  ;;  %v11981_v14 = vld [vmem:[%s13164_s6 + $0xf8] sm:$0xff]  ;;  %v11983_v10 = vpop.permute.xlu0 %8335 }
 0x439   : > { %7641 = vmatprep.subr.mxu1 %v8634_v2  ;;  %7685 = vmatprep.subr.mxu0 %v8635_v54  ;;  %v11989_v2 = vld [vmem:[#allocation3 + $0x171] sm:$0xff] }
 0x43a   : > { %4596 = vmatprep.mubr.f32.mxu0 %v4323_v34  ;;  %7642 = vmatpush3.msra.mxu1 %v8636_v4  ;;  %v11991_v54 = vld [vmem:[#allocation3 + $0xb1] sm:$0xff]  ;;  %v8327_v34 = vunpack.i.l.bf16 %v11942_v58  ;;  %v4302_v4 = vsel %vm319_vm0, %v11989_v2, %v8317_v22  ;;  %v8331_v51 = vpop.permute.xlu1 %8330 }
 0x43b   : > { %7686 = vmatpush3.msra.mxu0 %v8637_v55  ;;  %7643 = vmatprep.subr.mxu1 %v8638_v25  ;;  %v4311_v55 = vsel %vm319_vm0, %v11649_v30, %v8312_v27  ;;  %v12009_v25 = vld [vmem:[%s13164_s6 + $0x78] sm:$0xff]  ;;  %v8323_v30 = vunpack.i.h.bf16 %v11959_v62  ;;  %v12104_v62 = vld [vmem:[%s13164_s6 + $0x50] sm:$0xff] }
 0x43c   : > { %7687 = vmatprep.subr.mxu0 %v8639_v16  ;;  %3924 = vmatmul.mubr.f32.gmra.mxu1 %v3614_v41  ;;  %v8328_v41 = vunpack.i.h.bf16 %v11942_v58  ;;  %v4324_v16 = vsel %vm319_vm0, %v11956_v60, %v8313_v11  ;;  %v12126_v11 = vld [vmem:[%s13164_s6 + $0x48] sm:$0xff] }
 0x43d   : > { %7644 = vmatpush3.msra.mxu1 %v8640_v35  ;;  %4491 = vmatprep.mubr.f32.mxu1 %v4307_v26  ;;  %v12017_v26 = vld [vmem:[%s13164_s6 + $0xf0] sm:$0xff]  ;;  %v8337_v35 = vunpack.i.l.bf16 %v11983_v10 }
 0x43e   : > { %7688 = vmatpush3.msra.mxu0 %v8641_v57  ;;  %7645 = vmatprep.subr.mxu1 %v8642_v46  ;;  %v4303_v57 = vsel %vm319_vm0, %v12026_v53, %v8327_v34  ;;  %v8346_v46 = vpop.permute.xlu0 %8345 }
 0x43f   : > { %7689 = vmatprep.subr.mxu0 %v8643_v50  ;;  %7646 = vmatpush3.msra.mxu1 %v8644_v47  ;;  %v4312_v50 = vsel %vm319_vm0, %v11664_v7, %v8322_v28  ;;  %v8332_v47 = vunpack.i.l.bf16 %v8331_v51  ;;  %v4325_v7 = vsel %vm319_vm0, %v11989_v2, %v8323_v30 }
 0x440   : > { %7690 = vmatpush3.msra.mxu0 %v8645_v1  ;;  %8115 = vmatprep.subr.mxu1 %v8646_v18  ;;  %v8338_v1 = vunpack.i.h.bf16 %v11983_v10 }
 0x441   : > { %7691 = vmatprep.subr.mxu0 %v8647_v40  ;;  %4492 = vmatmul.mubr.f32.vlgmr.msra.gmra.mxu1 %v4299_v36  ;;  %v12049_v36 = vld [vmem:[%s13164_s6 + $0x68] sm:$0xff]  ;;  %v8333_v40 = vunpack.i.h.bf16 %v8331_v51  ;;  %v12165_v51 = vld [vmem:[%s13164_s6 + $0x38] sm:$0xff] }
 0x442   : > { %4496 = vmatprep.mubr.f32.mxu1 %v4308_v39  ;;  %7692 = vmatpush3.msra.mxu0 %v8648_v31  ;;  %v8341_v39 = vpop.permute.xlu1 %8340  ;;  %v4304_v31 = vsel %vm319_vm0, %v12060_v0, %v8337_v35  ;;  %v8351_v23 = vpop.permute.xlu0 %8350 }
 0x443   : > { %8116 = vmatpush3.msra.mxu1 %v8646_v18  ;;  %7693 = vmatprep.subr.mxu0 %v8649_v19  ;;  %v12058_v18 = vld [vmem:[%s13164_s6 + $0xe0] sm:$0xff]  ;;  %v8347_v19 = vunpack.i.l.bf16 %v8346_v46  ;;  %v8343_v22 = vunpack.i.h.bf16 %v8341_v39 }
 0x444   : > { %7694 = vmatpush3.msra.mxu0 %v8650_v6  ;;  %8117 = vmatprep.subr.mxu1 %v11481_v9  ;;  %v4313_v6 = vsel %vm319_vm0, %v11652_v3, %v8332_v47  ;;  %v4326_v3 = vsel %vm319_vm0, %v12026_v53, %v8333_v40  ;;  %v12189_v47 = vld [vmem:[%s13164_s6 + $0x178] sm:$0xff] }
 0x445   : > { %7695 = vmatprep.subr.mxu0 %v8651_v15  ;;  %4497 = vmatmul.mubr.f32.gmra.mxu1 %v4300_v59  ;;  %v8342_v59 = vunpack.i.l.bf16 %v8341_v39  ;;  %v12088_v15 = vld [vmem:[%s13164_s6 + $0x58] sm:$0xff]  ;;  %v4327_v10 = vsel %vm319_vm0, %v12060_v0, %v8343_v22  ;;  %v12209_v39 = vld [vmem:[%s13164_s6 + $0x28] sm:$0xff] }
 0x446   : > { %4501 = vmatprep.mubr.f32.mxu1 %v4309_v63  ;;  %7696 = vmatpush3.msra.mxu0 %v8652_v17  ;;  %v8348_v63 = vunpack.i.h.bf16 %v8346_v46  ;;  %v12096_v17 = vld [vmem:[%s13164_s6 + $0xd0] sm:$0xff]  ;;  %v8356_v27 = vpop.permute.xlu1 %8355  ;;  %v8361_v28 = vpop.permute.xlu0 %8360  ;;  %v12240_v22 = vld [vmem:[%s13164_s6 + $0x1e8] sm:$0xff] }
 0x447   : > { %8118 = vmatpush3.msra.mxu1 %v11481_v9  ;;  %7697 = vmatprep.subr.mxu0 %v8653_v45  ;;  %v8318_v9 = vunpack.i.h.bf16 %v11904_v61  ;;  %v12039_v61 = vld [vmem:[#allocation3 + $0xc1] sm:$0xff]  ;;  %v8357_v34 = vunpack.i.l.bf16 %v8356_v27  ;;  %v8358_v30 = vunpack.i.h.bf16 %v8356_v27  ;;  %v8362_v46 = vunpack.i.l.bf16 %v8361_v28  ;;  %v12252_v27 = vld [vmem:[%s13164_s6 + $0x98] sm:$0xff] }
 0x448   : > { %7698 = vmatpush3.msra.mxu0 %v8654_v38  ;;  %8119 = vmatprep.subr.mxu1 %v11491_v12  ;;  %v4316_v13 = vsel %vm319_vm0, %v12039_v61, %v8328_v41  ;;  %v12098_v45 = vld [vmem:[#allocation3 + $0x1a1] sm:$0xff]  ;;  %13246 = vst [vmem:[#allocation5_spill] sm:$0xff] %v12252_v27 }
 0x449   : > { %7699 = vmatprep.subr.mxu0 %v8655_v33  ;;  %4502 = vmatmul.mubr.f32.gmra.mxu1 %v4301_v21  ;;  %v4305_v38 = vsel %vm319_vm0, %v12098_v45, %v8347_v19  ;;  %v8352_v21 = vunpack.i.l.bf16 %v8351_v23  ;;  %v4314_v33 = vsel %vm319_vm0, %v11674_v52, %v8342_v59  ;;  %v12134_v52 = vld [vmem:[%s13164_s6 + $0xc0] sm:$0xff]  ;;  %v4328_v35 = vsel %vm319_vm0, %v12098_v45, %v8357_v34  ;;  %v12269_v34 = vld [vmem:[%s13164_s6 + $0x18] sm:$0xff] }
 0x44a   : > { %4506 = vmatprep.mubr.f32.mxu1 %v4310_v48  ;;  %7700 = vmatpush3.msra.mxu0 %v8656_v56  ;;  %v8353_v56 = vunpack.i.h.bf16 %v8351_v23  ;;  %v8363_v19 = vunpack.i.h.bf16 %v8361_v28  ;;  %v4165_v23 = vld [vmem:[#allocation3 + $0x172] sm:$0xff]  ;;  %13248 = vst [vmem:[#allocation8_spill] sm:$0xff] %v12269_v34 }
 0x44b   : > { %8120 = vmatpush3.msra.mxu1 %v11491_v12  ;;  %7701 = vmatprep.subr.mxu0 %v8657_v32  ;;  %v4315_v12 = vsel %vm319_vm0, %v11991_v54, %v8318_v9  ;;  %v12112_v9 = vld [vmem:[%s13164_s6 + $0xc8] sm:$0xff]  ;;  %v12136_v32 = vld [vmem:[#allocation3 + $0x1b1] sm:$0xff] }
 0x44c   : > { %7702 = vmatpush3.msra.mxu0 %v8658_v44  ;;  %8121 = vmatprep.subr.mxu1 %v11502_v43  ;;  %13243 = vst [vmem:[#allocation6_spill] sm:$0xff] %v12136_v32  ;;  %v12142_v44 = vld [vmem:[%s13164_s6 + $0x40] sm:$0xff]  ;;  %v4329_v59 = vsel %vm319_vm0, %v12136_v32, %v8362_v46  ;;  %v12286_v46 = vld [vmem:[%s13164_s6 + $0x90] sm:$0xff] }
 0x44d   : > { %7743 = vmatprep.subr.mxu0 %v11981_v14  ;;  %4507 = vmatmul.mubr.f32.gmra.mxu1 %v4302_v4  ;;  %v4306_v4 = vsel %vm319_vm0, %v12136_v32, %v8352_v21  ;;  %v12247_v21 = vld [vmem:[#allocation3 + $0x111] sm:$0xff]  ;;  %13249 = vst [vmem:[#allocation9_spill] sm:$0xff] %v12286_v46 }
 0x44e   : > { %4597 = vmatmul.mubr.f32.vlgmr.msra.gmra.mxu0 %v4315_v12  ;;  %4511 = vmatprep.mubr.f32.mxu1 %v4311_v55  ;;  %v12150_v12 = vld [vmem:[%s13164_s6 + $0xb8] sm:$0xff]  ;;  %v12156_v55 = vpop.permute.xlu1 %8365 }
 0x44f   : > { %4601 = vmatprep.mubr.f32.mxu0 %v4324_v16  ;;  %8122 = vmatpush3.msra.mxu1 %v11502_v43  ;;  %v12036_v43 = vld [vmem:[%s13164_s6 + $0xe8] sm:$0xff]  ;;  %v12170_v16 = vld [vmem:[%s13164_s6 + $0x1f8] sm:$0xff]  ;;  %v8368_v28 = vunpack.i.h.bf16 %v12156_v55 }
 0x450   : > { %7744 = vmatpush3.msra.mxu0 %v12009_v25  ;;  %8123 = vmatprep.subr.mxu1 %v11514_v24 }
 0x451   : > { %7745 = vmatprep.subr.mxu0 %v12017_v26  ;;  %4512 = vmatmul.mubr.f32.gmra.mxu1 %v4303_v57  ;;  %v4163_v57 = vld [vmem:[#allocation3 + $0x152] sm:$0xff] }
 0x452   : > { %7746 = vmatpush3.msra.mxu0 %v12024_v20  ;;  %4516 = vmatprep.mubr.f32.mxu1 %v4312_v50  ;;  %v12184_v50 = vld [vmem:[%s13164_s6 + $0x30] sm:$0xff] }
 0x453   : > { %4602 = vmatmul.mubr.f32.gmra.mxu0 %v4316_v13  ;;  %7747 = vmatprep.subr.mxu0 %v12036_v43  ;;  %v4164_v13 = vld [vmem:[#allocation3 + $0x162] sm:$0xff] }
 0x454   : > { %4606 = vmatprep.mubr.f32.mxu0 %v4325_v7  ;;  %8124 = vmatpush3.msra.mxu1 %v11514_v24  ;;  %v12077_v24 = vld [vmem:[#allocation3 + $0xd1] sm:$0xff]  ;;  %v12199_v7 = vld [vmem:[#allocation3 + $0x101] sm:$0xff] }
 0x455   : > { %7748 = vmatpush3.msra.mxu0 %v12049_v36  ;;  %4517 = vmatmul.mubr.f32.gmra.mxu1 %v4304_v31  ;;  %v4317_v58 = vsel %vm319_vm0, %v12077_v24, %v8338_v1  ;;  %v12196_v1 = vld [vmem:[%s13164_s6 + $0xa8] sm:$0xff]  ;;  %v4320_v40 = vsel %vm319_vm0, %v12199_v7, %v8358_v30  ;;  %v12214_v31 = vld [vmem:[%s13164_s6 + $0x1f0] sm:$0xff] }
 0x456   : > { %7749 = vmatprep.subr.mxu0 %v12058_v18  ;;  %8125 = vmatprep.subr.mxu1 %v11526_v42 }
 0x457   : > { %7750 = vmatpush3.msra.mxu0 %v12066_v29  ;;  %4521 = vmatprep.mubr.f32.mxu1 %v4313_v6  ;;  %v12216_v6 = vpop.permute.xlu1 %8375 }
 0x458   : > { %4607 = vmatmul.mubr.f32.gmra.mxu0 %v4317_v58  ;;  %7751 = vmatprep.subr.mxu0 %v12074_v5  ;;  %v12224_v58 = vld [vmem:[%s13164_s6 + $0xa0] sm:$0xff]  ;;  %v8378_v32 = vunpack.i.h.bf16 %v12216_v6 }
 0x459   : > { %4611 = vmatprep.mubr.f32.mxu0 %v4326_v3  ;;  %8126 = vmatpush3.msra.mxu1 %v11526_v42  ;;  %v12115_v42 = vld [vmem:[#allocation3 + $0xe1] sm:$0xff]  ;;  %13244 = vst [vmem:[#allocation7_spill] sm:$0xff] %v12224_v58 }
 0x45a   : > { %7752 = vmatpush3.msra.mxu0 %v12088_v15  ;;  %4522 = vmatmul.mubr.f32.gmra.mxu1 %v4305_v38  ;;  %v4318_v48 = vsel %vm319_vm0, %v12115_v42, %v8348_v63  ;;  %v12229_v63 = vld [vmem:[%s13164_s6 + $0x170] sm:$0xff]  ;;  %v12235_v3 = vld [vmem:[%s13164_s6 + $0x20] sm:$0xff]  ;;  %v8367_v38 = vunpack.i.l.bf16 %v12156_v55 }
 0x45b   : > { %7753 = vmatprep.subr.mxu0 %v12096_v17  ;;  %8127 = vmatprep.subr.mxu1 %v11538_v37  ;;  %13245 = vst [vmem:[#allocation10_spill] sm:$0xff] %v12235_v3  ;;  %v12277_v30 = vpop.permute.xlu1 %8385  ;;  %v12291_v55 = vld [vmem:[%s13164_s6 + $0x160] sm:$0xff] }
 0x45c   : > { %7754 = vmatpush3.msra.mxu0 %v12104_v62  ;;  %4526 = vmatprep.mubr.f32.mxu1 %v4314_v33  ;;  %v12257_v33 = vld [vmem:[%s13164_s6 + $0x168] sm:$0xff] }
 0x45d   : > { %4612 = vmatmul.mubr.f32.gmra.mxu0 %v4318_v48  ;;  %7755 = vmatprep.subr.mxu0 %v12112_v9  ;;  %v4321_v48 = vsel %vm319_vm0, %v12247_v21, %v8363_v19 }
 0x45e   : > { %4616 = vmatprep.mubr.f32.mxu0 %v4327_v10  ;;  %8128 = vmatpush3.msra.mxu1 %v11538_v37  ;;  %v12153_v37 = vld [vmem:[#allocation3 + $0xf1] sm:$0xff]  ;;  %v12264_v10 = vld [vmem:[#allocation3 + $0x1c1] sm:$0xff] }
 0x45f   : > { %7756 = vmatpush3.msra.mxu0 %v12126_v11  ;;  %4527 = vmatmul.mubr.f32.gmra.mxu1 %v4306_v4  ;;  %v4319_v41 = vsel %vm319_vm0, %v12153_v37, %v8353_v56  ;;  %v4166_v56 = vld [vmem:[#allocation3 + $0x182] sm:$0xff]  ;;  %13247 = vst [vmem:[#allocation4_spill] sm:$0xff] %v12264_v10 }
 0x460   : > { %7757 = vmatprep.subr.mxu0 %v12134_v52  ;;  %8129 = vmatprep.subr.mxu1 %v11550_v49  ;;  %v12274_v4 = vld [vmem:[%s13164_s6 + $0x1e0] sm:$0xff] }
 0x461   : > { %7758 = vmatpush3.msra.mxu0 %v12142_v44  ;;  %8130 = vmatpush3.msra.mxu1 %v11550_v49  ;;  %v12178_v49 = vld [vmem:[%s13164_s6 + $0xb0] sm:$0xff] }
 0x462   : > { %4617 = vmatmul.mubr.f32.gmra.mxu0 %v4319_v41  ;;  %7759 = vmatprep.subr.mxu0 %v12150_v12  ;;  %v8371_v41 = vpop.permute.xlu0 %8370 }
 0x463   : > { %4621 = vmatprep.mubr.f32.mxu0 %v4328_v35  ;;  %8131 = vmatprep.mubr.msk.f32.mxu1 %vm319_vm0, %v4163_v57  ;;  %v4330_v35 = vsel %vm319_vm0, %v12264_v10, %v8367_v38  ;;  %v4167_v57 = vld [vmem:[#allocation3 + $0x192] sm:$0xff]  ;;  %v8372_v19 = vunpack.i.l.bf16 %v8371_v41  ;;  %v8373_v10 = vunpack.i.h.bf16 %v8371_v41 }
 0x464   : > { %7760 = vmatpush3.msra.mxu0 %v12165_v51  ;;  %7799 = vmatprep.subr.mxu1 %v12170_v16  ;;  %v12318_v38 = vld [vmem:[%s13164_s6 + $0x158] sm:$0xff] }
 0x465   : > { %7761 = vmatprep.subr.mxu0 %v12178_v49  ;;  %8132 = vmatmul.mubr.msk.f32.vlgmr.msra.gmra.mxu1 %vm319_vm0, %v4164_v13  ;;  %v12297_v13 = vld [vmem:[%s13164_s6 + $0x10] sm:$0xff]  ;;  %v5017_v41 = vsel %vm319_vm0, %v11991_v54, %v8372_v19  ;;  %v12371_v54 = vld [vmem:[%s13164_s6 + $0x148] sm:$0xff]  ;;  %v12376_v19 = vld [vmem:[%s13164_s6 + $0x238] sm:$0xff] }
 0x466   : > { %7762 = vmatpush3.msra.mxu0 %v12184_v50  ;;  %7800 = vmatpush3.msra.mxu1 %v12189_v47  ;;  %13250 = vst [vmem:[#allocation11_spill] sm:$0xff] %v12297_v13  ;;  %13258 = vst [vmem:[#allocation19_spill] sm:$0xff] %v12371_v54 }
 0x467   : > { %4622 = vmatmul.mubr.f32.gmra.mxu0 %v4320_v40  ;;  %7763 = vmatprep.subr.mxu0 %v12196_v1  ;;  %v12302_v40 = vld [vmem:[%s13164_s6 + $0x1d8] sm:$0xff]  ;;  %13259 = vst [vmem:[#allocation20_spill] sm:$0xff] %v12376_v19 }
 0x468   : > { %4626 = vmatprep.mubr.f32.mxu0 %v4329_v59  ;;  %8134 = vmatprep.mubr.msk.f32.mxu1 %vm319_vm0, %v4165_v23  ;;  %v12308_v59 = vld [vmem:[#allocation3 + $0x121] sm:$0xff] }
 0x469   : > { %7764 = vmatpush3.msra.mxu0 %v12209_v39  ;;  %7801 = vmatprep.subr.mxu1 %v12214_v31  ;;  %v12313_v23 = vld [vmem:[%s13164_s6 + $0x88] sm:$0xff] }
 0x46a   : > { %7765 = vmatprep.subr.mxu0 %v12224_v58  ;;  %7802 = vmatpush3.msra.mxu1 %v12229_v63  ;;  %13251 = vst [vmem:[#allocation12_spill] sm:$0xff] %v12313_v23 }
 0x46b   : > { %7766 = vmatpush3.msra.mxu0 %v12235_v3  ;;  %7803 = vmatprep.subr.mxu1 %v12240_v22 }
 0x46c   : > { %4627 = vmatmul.mubr.f32.gmra.mxu0 %v4321_v48  ;;  %8135 = vmatmul.mubr.msk.f32.gmra.mxu1 %vm319_vm0, %v4166_v56  ;;  %v4322_v48 = vsel %vm319_vm0, %v12308_v59, %v8368_v28  ;;  %v4168_v56 = vld [vmem:[#allocation3 + $0x1a2] sm:$0xff]  ;;  %v4169_v28 = vld [vmem:[#allocation3 + $0x1b2] sm:$0xff] }
 0x46d   : > { %7767 = vmatprep.subr.mxu0 %v12252_v27  ;;  %7804 = vmatpush3.msra.mxu1 %v12257_v33 }
 0x46e   : > { %4631 = vmatprep.mubr.f32.mxu0 %v4330_v35  ;;  %8137 = vmatprep.mubr.msk.f32.mxu1 %vm319_vm0, %v4167_v57  ;;  %v12327_v35 = vld [vmem:[%s13164_s6 + $0x8] sm:$0xff]  ;;  %v12333_v57 = vld [vmem:[%s13164_s6 + $0x1d0] sm:$0xff] }
 0x46f   : > { %7768 = vmatpush3.msra.mxu0 %v12269_v34  ;;  %7805 = vmatprep.subr.mxu1 %v12274_v4  ;;  %13252 = vst [vmem:[#allocation13_spill] sm:$0xff] %v12327_v35  ;;  %13253 = vst [vmem:[#allocation14_spill] sm:$0xff] %v12333_v57  ;;  %v8377_v34 = vunpack.i.l.bf16 %v12216_v6 }
 0x470   : > { %7769 = vmatprep.subr.mxu0 %v12286_v46  ;;  %7806 = vmatpush3.msra.mxu1 %v12291_v55  ;;  %v12342_v46 = vld [vmem:[%s13164_s6 + $0x80] sm:$0xff] }
 0x471   : > { %7770 = vmatpush3.msra.mxu0 %v12297_v13  ;;  %7807 = vmatprep.subr.mxu1 %v12302_v40  ;;  %v12335_v13 = vpop.permute.xlu1 %8395  ;;  %13254 = vst [vmem:[#allocation15_spill] sm:$0xff] %v12342_v46  ;;  %v5018_v6 = vsel %vm319_vm0, %v12039_v61, %v8377_v34  ;;  %v12407_v34 = vld [vmem:[%s13164_s6 + $0x230] sm:$0xff] }
 0x472   : > { %4632 = vmatmul.mubr.f32.gmra.mxu0 %v4322_v48  ;;  %8138 = vmatmul.mubr.msk.f32.gmra.mxu1 %vm319_vm0, %v4168_v56  ;;  %v12347_v48 = vld [vmem:[%s13164_s6 + $0x150] sm:$0xff]  ;;  %v12356_v56 = vld [vmem:[%s13164_s6] sm:$0xff]  ;;  %v8397_v27 = vunpack.i.l.bf16 %v12335_v13  ;;  %13263 = vst [vmem:[#allocation24_spill] sm:$0xff] %v12407_v34 }
 0x473   : > { %7771 = vmatprep.subr.mxu0 %v12313_v23  ;;  %7808 = vmatpush3.msra.mxu1 %v12318_v38  ;;  %13255 = vst [vmem:[#allocation16_spill] sm:$0xff] %v12347_v48  ;;  %13256 = vst [vmem:[#allocation17_spill] sm:$0xff] %v12356_v56  ;;  %v12361_v23 = vld [vmem:[%s13164_s6 + $0x1c8] sm:$0xff] }
 0x474   : > { %8140 = vmatprep.mubr.msk.f32.mxu1 %vm319_vm0, %v4169_v28  ;;  %7772 = vmatpush3.msra.mxu0 %v12327_v35  ;;  %13257 = vst [vmem:[#allocation18_spill] sm:$0xff] %v12361_v23  ;;  %v4807_v28 = vld [vmem:[#allocation3 + $0xb0] sm:$0xff]  ;;  %v8381_v35 = vpop.permute.xlu0 %8380 }
 0x475   : > { %5201 = vmatprep.mubr.f32.mxu0 %v5017_v41  ;;  %7809 = vmatprep.subr.mxu1 %v12333_v57  ;;  %v5009_v41 = vsel %vm319_vm0, %v4807_v28, %v8373_v10  ;;  %v8382_v3 = vunpack.i.l.bf16 %v8381_v35  ;;  %v4856_v10 = vld [vmem:[#allocation3 + $0xc0] sm:$0xff] }
 0x476   : > { %7773 = vmatprep.subr.mxu0 %v12342_v46  ;;  %7810 = vmatpush3.msra.mxu1 %v12347_v48  ;;  %v4170_v46 = vld [vmem:[#allocation3 + $0x1c2] sm:$0xff] }
 0x477   : > { %7774 = vmatpush3.msra.mxu0 %v12356_v56  ;;  %7811 = vmatprep.subr.mxu1 %v12361_v23  ;;  %v12385_v48 = vld [vmem:[%s13164_s6 + $0x1c0] sm:$0xff]  ;;  %v8383_v56 = vunpack.i.h.bf16 %v8381_v35  ;;  %v8387_v35 = vunpack.i.l.bf16 %v12277_v30 }
 0x478   : > { %13260 = vst [vmem:[#allocation21_spill] sm:$0xff] %v12385_v48  ;;  %8141 = vmatmul.mubr.msk.f32.gmra.mxu1 %vm319_vm0, %v4170_v46  ;;  %5202 = vmatmul.mubr.f32.vlgmr.msra.gmra.mxu0 %v5009_v41  ;;  %v12395_v28 = vld [vmem:[%s13164_s6 + $0x140] sm:$0xff]  ;;  %v5033_v46 = vsel %vm319_vm0, %v4856_v10, %v8397_v27  ;;  %v12402_v41 = vld [vmem:[%s13164_s6 + $0x1b8] sm:$0xff] }
 0x479   : > { %7812 = vmatpush3.msra.mxu1 %v12371_v54  ;;  %8143 = vmatprep.subr.mxu0 %v12376_v19  ;;  %13261 = vst [vmem:[#allocation22_spill] sm:$0xff] %v12395_v28  ;;  %13262 = vst [vmem:[#allocation23_spill] sm:$0xff] %v12402_v41  ;;  %v12414_v27 = vld [vmem:[%s13164_s6 + $0x138] sm:$0xff]  ;;  %v12420_v54 = vld [vmem:[%s13164_s6 + $0x1b0] sm:$0xff] }
 0x47a   : > { %5206 = vmatprep.mubr.f32.mxu0 %v5018_v6  ;;  %7813 = vmatprep.subr.mxu1 %v12385_v48  ;;  %v5010_v6 = vsel %vm319_vm0, %v4856_v10, %v8378_v32  ;;  %13264 = vst [vmem:[#allocation25_spill] sm:$0xff] %v12414_v27  ;;  %v8391_v48 = vpop.permute.xlu0 %8390  ;;  %13265 = vst [vmem:[#allocation26_spill] sm:$0xff] %v12420_v54  ;;  %v5019_v32 = vsel %vm319_vm0, %v12077_v24, %v8382_v3  ;;  %v12430_v10 = vld [vmem:[%s13164_s6 + $0x130] sm:$0xff]  ;;  %v8388_v3 = vunpack.i.h.bf16 %v12277_v30  ;;  %v12534_v57 = vld [vmem:[%s13164_s6 + $0x180] sm:$0xff] }
 0x47b   : > { %5306 = vmatprep.mubr.f32.mxu1 %v5033_v46  ;;  %8144 = vmatpush3.msra.mxu0 %v12376_v19  ;;  %13266 = vst [vmem:[#allocation27_spill] sm:$0xff] %v12430_v10  ;;  %v12436_v46 = vld [vmem:[%s13164_s6 + $0x1a8] sm:$0xff]  ;;  %v8392_v30 = vunpack.i.l.bf16 %v8391_v48  ;;  %13280 = vst [vmem:[#allocation41_spill] sm:$0xff] %v12534_v57 }
 0x47c   : > { %7814 = vmatpush3.msra.mxu1 %v12395_v28  ;;  %5207 = vmatmul.mubr.f32.gmra.mxu0 %v5010_v6  ;;  %13267 = vst [vmem:[#allocation28_spill] sm:$0xff] %v12436_v46  ;;  %v12438_v6 = vld [vmem:[#allocation3 + $0xd0] sm:$0xff]  ;;  %v12443_v19 = vld [vmem:[%s13164_s6 + $0x228] sm:$0xff]  ;;  %v8406_v28 = vpop.permute.xlu1 %8405 }
 0x47d   : > { %7815 = vmatprep.subr.mxu1 %v12402_v41  ;;  %8145 = vmatprep.subr.mxu0 %v12407_v34  ;;  %13268 = vst [vmem:[#allocation29_spill] sm:$0xff] %v12443_v19  ;;  %v12459_v41 = vld [vmem:[%s13164_s6 + $0x1a0] sm:$0xff] }
 0x47e   : > { %7816 = vmatpush3.msra.mxu1 %v12414_v27  ;;  %5211 = vmatprep.mubr.f32.mxu0 %v5019_v32  ;;  %v5011_v32 = vsel %vm319_vm0, %v12438_v6, %v8383_v56  ;;  %v12453_v27 = vld [vmem:[%s13164_s6 + $0x128] sm:$0xff]  ;;  %13270 = vst [vmem:[#allocation31_spill] sm:$0xff] %v12459_v41  ;;  %v5020_v56 = vsel %vm319_vm0, %v12115_v42, %v8387_v35  ;;  %v12481_v35 = vld [vmem:[%s13164_s6 + $0x220] sm:$0xff] }
 0x47f   : > { %7817 = vmatprep.subr.mxu1 %v12420_v54  ;;  %8146 = vmatpush3.msra.mxu0 %v12407_v34  ;;  %13269 = vst [vmem:[#allocation30_spill] sm:$0xff] %v12453_v27  ;;  %v12468_v34 = vld [vmem:[%s13164_s6 + $0x120] sm:$0xff]  ;;  %13273 = vst [vmem:[#allocation34_spill] sm:$0xff] %v12481_v35  ;;  %v8393_v54 = vunpack.i.h.bf16 %v8391_v48  ;;  %v12496_v48 = vld [vmem:[%s13164_s6 + $0x190] sm:$0xff] }
 0x480   : > { %7818 = vmatpush3.msra.mxu1 %v12430_v10  ;;  %5212 = vmatmul.mubr.f32.gmra.mxu0 %v5011_v32  ;;  %13271 = vst [vmem:[#allocation32_spill] sm:$0xff] %v12468_v34  ;;  %v8401_v10 = vpop.permute.xlu0 %8400  ;;  %v12474_v32 = vld [vmem:[%s13164_s6 + $0x198] sm:$0xff]  ;;  %13275 = vst [vmem:[#allocation36_spill] sm:$0xff] %v12496_v48 }
 0x481   : > { %7819 = vmatprep.subr.mxu1 %v12436_v46  ;;  %8147 = vmatprep.subr.mxu0 %v12443_v19  ;;  %13272 = vst [vmem:[#allocation33_spill] sm:$0xff] %v12474_v32  ;;  %v12476_v46 = vld [vmem:[#allocation3 + $0xe0] sm:$0xff] }
 0x482   : > { %7820 = vmatpush3.msra.mxu1 %v12453_v27  ;;  %5216 = vmatprep.mubr.f32.mxu0 %v5020_v56  ;;  %v5012_v56 = vsel %vm319_vm0, %v12476_v46, %v8388_v3  ;;  %v12490_v27 = vld [vmem:[%s13164_s6 + $0x118] sm:$0xff]  ;;  %v5021_v3 = vsel %vm319_vm0, %v12153_v37, %v8392_v30  ;;  %v8403_v30 = vunpack.i.h.bf16 %v8401_v10 }
 0x483   : > { %7821 = vmatprep.subr.mxu1 %v12459_v41  ;;  %8148 = vmatpush3.msra.mxu0 %v12443_v19  ;;  %13274 = vst [vmem:[#allocation35_spill] sm:$0xff] %v12490_v27  ;;  %v8398_v41 = vunpack.i.h.bf16 %v12335_v13  ;;  %v12506_v19 = vld [vmem:[%s13164_s6 + $0x110] sm:$0xff] }
 0x484   : > { %7822 = vmatpush3.msra.mxu1 %v12468_v34  ;;  %5217 = vmatmul.mubr.f32.gmra.mxu0 %v5012_v56  ;;  %13276 = vst [vmem:[#allocation37_spill] sm:$0xff] %v12506_v19  ;;  %v12512_v56 = vld [vmem:[%s13164_s6 + $0x188] sm:$0xff]  ;;  %v12514_v13 = vld [vmem:[#allocation3 + $0xf0] sm:$0xff]  ;;  %v8402_v34 = vunpack.i.l.bf16 %v8401_v10  ;;  %v8411_v23 = vpop.permute.xlu0 %8410  ;;  %v12543_v10 = vld [vmem:[%s13164_s6 + $0x100] sm:$0xff] }
 0x485   : > { %7823 = vmatprep.subr.mxu1 %v12474_v32  ;;  %8149 = vmatprep.subr.mxu0 %v12481_v35  ;;  %13277 = vst [vmem:[#allocation38_spill] sm:$0xff] %v12512_v56  ;;  %v12519_v32 = vld [vmem:[%s13164_s6 + $0x218] sm:$0xff]  ;;  %v8413_v58 = vunpack.i.h.bf16 %v8411_v23 }
 0x486   : > { %7824 = vmatpush3.msra.mxu1 %v12490_v27  ;;  %5221 = vmatprep.mubr.f32.mxu0 %v5021_v3  ;;  %13278 = vst [vmem:[#allocation39_spill] sm:$0xff] %v12519_v32  ;;  %v5013_v3 = vsel %vm319_vm0, %v12514_v13, %v8393_v54  ;;  %v12528_v27 = vld [vmem:[%s13164_s6 + $0x108] sm:$0xff]  ;;  %v5022_v54 = vsel %vm319_vm0, %v12199_v7, %v8398_v41  ;;  %v12555_v41 = vld [vmem:[%s13164_s6 + $0x210] sm:$0xff] }
 0x487   : > { %7825 = vmatprep.subr.mxu1 %v12496_v48  ;;  %8150 = vmatpush3.msra.mxu0 %v12481_v35  ;;  %13279 = vst [vmem:[#allocation40_spill] sm:$0xff] %v12528_v27  ;;  %v8407_v48 = vunpack.i.l.bf16 %v8406_v28  ;;  %v8408_v35 = vunpack.i.h.bf16 %v8406_v28  ;;  %v5025_v28 = vsel %vm319_vm0, %v11867_v8, %v8402_v34  ;;  %v12567_v34 = vld [vmem:[#allocation3 + $0x110] sm:$0xff] }
 0x488   : > { %7826 = vmatpush3.msra.mxu1 %v12506_v19  ;;  %5222 = vmatmul.mubr.f32.gmra.mxu0 %v5013_v3  ;;  %v8421_v3 = vpop.permute.xlu1 %8420  ;;  %v12546_v19 = vld [vmem:[#allocation3 + $0x100] sm:$0xff] }
 0x489   : > { %7827 = vmatprep.subr.mxu1 %v12512_v56  ;;  %8151 = vmatprep.subr.mxu0 %v12519_v32  ;;  %v5014_v56 = vsel %vm319_vm0, %v12546_v19, %v8403_v30  ;;  %v8422_v30 = vunpack.i.l.bf16 %v8421_v3  ;;  %v8423_v8 = vunpack.i.h.bf16 %v8421_v3  ;;  %v13292_v3 = vld [vmem:[#allocation11_spill] sm:$0xff] }
 0x48a   : > { %7828 = vmatpush3.msra.mxu1 %v12528_v27  ;;  %5226 = vmatprep.mubr.f32.mxu0 %v5022_v54  ;;  %v8412_v54 = vunpack.i.l.bf16 %v8411_v23  ;;  %v5023_v27 = vsel %vm319_vm0, %v12247_v21, %v8408_v35 }
 0x48b   : > { %7829 = vmatprep.subr.mxu1 %v12534_v57  ;;  %8152 = vmatpush3.msra.mxu0 %v12519_v32  ;;  %v5034_v32 = vsel %vm319_vm0, %v12438_v6, %v8407_v48  ;;  %v8416_v57 = vpop.permute.xlu0 %8415  ;;  %v12576_v6 = vld [vmem:[%s13164_s6 + $0x208] sm:$0xff]  ;;  %v5024_v35 = vsel %vm319_vm0, %v12308_v59, %v8423_v8  ;;  %v13294_v8 = vld [vmem:[#allocation22_spill] sm:$0xff] }
 0x48c   : > { %7830 = vmatpush3.msra.mxu1 %v12543_v10  ;;  %5227 = vmatmul.mubr.f32.gmra.mxu0 %v5014_v56  ;;  %v8426_v23 = vpop.permute.xlu1 %8425 }
 0x48d   : > { %5307 = vmatmul.mubr.f32.vlgmr.msra.gmra.mxu1 %v5025_v28  ;;  %7871 = vmatprep.subr.mxu1 %v11981_v14  ;;  %v5015_v14 = vsel %vm319_vm0, %v12567_v34, %v8413_v58  ;;  %v8427_v58 = vunpack.i.l.bf16 %v8426_v23  ;;  %v13293_v28 = vld [vmem:[#allocation4_spill] sm:$0xff] }
 0x48e   : > { %5311 = vmatprep.mubr.f32.mxu1 %v5034_v32  ;;  %8153 = vmatprep.subr.mxu0 %v12555_v41  ;;  %v8418_v32 = vunpack.i.h.bf16 %v8416_v57 }
 0x48f   : > { %7872 = vmatpush3.msra.mxu1 %v12009_v25  ;;  %5231 = vmatprep.mubr.f32.mxu0 %v5023_v27  ;;  %v5026_v25 = vsel %vm319_vm0, %v11956_v60, %v8412_v54  ;;  %v8417_v27 = vunpack.i.l.bf16 %v8416_v57  ;;  %v8431_v60 = vpop.permute.xlu0 %8430  ;;  %v12597_v57 = vld [vmem:[%s13164_s6 + $0x200] sm:$0xff] }
 0x490   : > { %8154 = vmatpush3.msra.mxu0 %v12555_v41  ;;  %7873 = vmatprep.subr.mxu1 %v12017_v26  ;;  %v5035_v26 = vsel %vm319_vm0, %v12476_v46, %v8422_v30  ;;  %v8428_v46 = vunpack.i.h.bf16 %v8426_v23  ;;  %v8432_v48 = vunpack.i.l.bf16 %v8431_v60  ;;  %v8436_v56 = vpop.permute.xlu1 %8435 }
 0x491   : > { %7874 = vmatpush3.msra.mxu1 %v12024_v20  ;;  %5232 = vmatmul.mubr.f32.gmra.mxu0 %v5015_v14  ;;  %v12588_v20 = vld [vmem:[#allocation3 + $0x120] sm:$0xff] }
 0x492   : > { %5312 = vmatmul.mubr.f32.gmra.mxu1 %v5026_v25  ;;  %7875 = vmatprep.subr.mxu1 %v12036_v43  ;;  %v5016_v43 = vsel %vm319_vm0, %v12588_v20, %v8418_v32  ;;  %v13295_v14 = vld [vmem:[#allocation12_spill] sm:$0xff]  ;;  %v13296_v32 = vld [vmem:[#allocation23_spill] sm:$0xff] }
 0x493   : > { %5316 = vmatprep.mubr.f32.mxu1 %v5035_v26  ;;  %8155 = vmatprep.subr.mxu0 %v12576_v6  ;;  %v13297_v26 = vld [vmem:[#allocation13_spill] sm:$0xff] }
 0x494   : > { %7876 = vmatpush3.msra.mxu1 %v12049_v36  ;;  %5236 = vmatprep.mubr.f32.mxu0 %v5024_v35  ;;  %v5027_v36 = vsel %vm319_vm0, %v11989_v2, %v8417_v27  ;;  %v5028_v2 = vsel %vm319_vm0, %v12026_v53, %v8428_v46 }
 0x495   : > { %8156 = vmatpush3.msra.mxu0 %v12576_v6  ;;  %7877 = vmatprep.subr.mxu1 %v12058_v18  ;;  %v5036_v18 = vsel %vm319_vm0, %v12514_v13, %v8427_v58  ;;  %v5517_v58 = vld [vmem:[#allocation3 + $0x11] sm:$0xff] }
 0x496   : > { %7878 = vmatpush3.msra.mxu1 %v12066_v29  ;;  %5237 = vmatmul.mubr.f32.gmra.mxu0 %v5016_v43  ;;  %v8433_v29 = vunpack.i.h.bf16 %v8431_v60  ;;  %v13299_v60 = vld [vmem:[#allocation15_spill] sm:$0xff]  ;;  %v12697_v43 = vpop.f32.mrf.mxu0 }
 0x497   : > { %5317 = vmatmul.mubr.f32.gmra.mxu1 %v5027_v36  ;;  %7879 = vmatprep.subr.mxu1 %v12074_v5  ;;  %v5037_v5 = vsel %vm319_vm0, %v12546_v19, %v8432_v48  ;;  %v13291_v19 = vld [vmem:[#allocation21_spill] sm:$0xff] }
 0x498   : > { %5321 = vmatprep.mubr.f32.mxu1 %v5036_v18  ;;  %8157 = vmatprep.subr.mxu0 %v12597_v57  ;;  %v5029_v53 = vsel %vm319_vm0, %v12060_v0, %v8433_v29  ;;  %v13300_v18 = vld [vmem:[#allocation26_spill] sm:$0xff]  ;;  %v13301_v48 = vld [vmem:[#allocation17_spill] sm:$0xff] }
 0x499   : > { %7880 = vmatpush3.msra.mxu1 %v12088_v15  ;;  %8158 = vmatpush3.msra.mxu0 %v12597_v57  ;;  %v12620_v15 = vpop.permute.xlu1 %8445 }
 0x49a   : > { %8159 = vmatprep.mubr.msk.f32.mxu0 %vm319_vm0, %v12039_v61  ;;  %7881 = vmatprep.subr.mxu1 %v12096_v17  ;;  %v8437_v61 = vunpack.i.l.bf16 %v8436_v56  ;;  %v8438_v17 = vunpack.i.h.bf16 %v8436_v56  ;;  %v13302_v56 = vld [vmem:[#allocation27_spill] sm:$0xff] }
 0x49b   : > { %7882 = vmatpush3.msra.mxu1 %v12104_v62  ;;  %7927 = vmatprep.subr.mxu0 %v12170_v16  ;;  %v13282_v16 = vld [vmem:[#allocation14_spill] sm:$0xff] }
 0x49c   : > { %5322 = vmatmul.mubr.f32.gmra.mxu1 %v5028_v2  ;;  %7883 = vmatprep.subr.mxu1 %v12112_v9  ;;  %v5038_v62 = vsel %vm319_vm0, %v12567_v34, %v8437_v61  ;;  %v5030_v0 = vsel %vm319_vm0, %v12098_v45, %v8438_v17  ;;  %v13281_v45 = vld [vmem:[#allocation7_spill] sm:$0xff]  ;;  %v12704_v2 = vld [vmem:[#allocation3 + $0x22] sm:$0xff]  ;;  %v12714_v17 = vpop.f32.mrf.mxu0 }
 0x49d   : > { %5326 = vmatprep.mubr.f32.mxu1 %v5037_v5  ;;  %8160 = vmatmul.mubr.msk.f32.vlgmr.msra.gmra.mxu0 %vm319_vm0, %v12077_v24  ;;  %v8441_v24 = vpop.permute.xlu0 %8440  ;;  %v5533_v34 = vld [vmem:[#allocation3 + $0x12] sm:$0xff]  ;;  %v13303_v5 = vld [vmem:[#allocation28_spill] sm:$0xff] }
 0x49e   : > { %7884 = vmatpush3.msra.mxu1 %v12126_v11  ;;  %7928 = vmatpush3.msra.mxu0 %v12189_v47  ;;  %v8442_v9 = vunpack.i.l.bf16 %v8441_v24  ;;  %v8443_v11 = vunpack.i.h.bf16 %v8441_v24  ;;  %v13304_v61 = vld [vmem:[#allocation20_spill] sm:$0xff]  ;;  %v13305_v24 = vld [vmem:[#allocation30_spill] sm:$0xff] }
 0x49f   : > { %8162 = vmatprep.mubr.msk.f32.mxu0 %vm319_vm0, %v12115_v42  ;;  %7885 = vmatprep.subr.mxu1 %v12134_v52  ;;  %v12638_v42 = vpop.permute.xlu1 %8455 }
 0x4a0   : > { %7929 = vmatprep.subr.mxu0 %v12214_v31  ;;  %7886 = vmatpush3.msra.mxu1 %v12142_v44  ;;  %v5039_v44 = vsel %vm319_vm0, %v12588_v20, %v8442_v9  ;;  %v13285_v31 = vld [vmem:[#allocation16_spill] sm:$0xff]  ;;  %v8457_v27 = vunpack.i.l.bf16 %v12638_v42  ;;  %v13298_v20 = vld [vmem:[#allocation25_spill] sm:$0xff]  ;;  %v8458_v46 = vunpack.i.h.bf16 %v12638_v42  ;;  %v13306_v9 = vld [vmem:[#allocation31_spill] sm:$0xff] }
 0x4a1   : > { %7930 = vmatpush3.msra.mxu0 %v12229_v63  ;;  %5327 = vmatmul.mubr.f32.gmra.mxu1 %v5029_v53  ;;  %v8451_v52 = vpop.permute.xlu0 %8450 }
 0x4a2   : > { %7887 = vmatprep.subr.mxu1 %v12150_v12  ;;  %7931 = vmatprep.subr.mxu0 %v12240_v22  ;;  %v8447_v12 = vunpack.i.l.bf16 %v12620_v15  ;;  %v13286_v22 = vld [vmem:[#allocation5_spill] sm:$0xff]  ;;  %v8453_v30 = vunpack.i.h.bf16 %v8451_v52 }
 0x4a3   : > { %5331 = vmatprep.mubr.f32.mxu1 %v5038_v62  ;;  %8163 = vmatmul.mubr.msk.f32.gmra.mxu0 %vm319_vm0, %v12153_v37  ;;  %v12657_v37 = vpop.permute.xlu1 %8465 }
 0x4a4   : > { %7888 = vmatpush3.msra.mxu1 %v12165_v51  ;;  %7932 = vmatpush3.msra.mxu0 %v12257_v33  ;;  %v4863_v51 = vld [vmem:[#allocation3 + $0x130] sm:$0xff]  ;;  %v5717_v36 = vsel %vm319_vm0, %v5517_v58, %v8453_v30 }
 0x4a5   : > { %8165 = vmatprep.mubr.msk.f32.mxu0 %vm319_vm0, %v12199_v7  ;;  %7889 = vmatprep.subr.mxu1 %v12178_v49  ;;  %v13283_v49 = vld [vmem:[#allocation10_spill] sm:$0xff]  ;;  %v8468_v7 = vunpack.i.h.bf16 %v12657_v37  ;;  %v12671_v63 = vpop.permute.xlu0 %8460  ;;  %v5040_v33 = vsel %vm319_vm0, %v4863_v51, %v8447_v12  ;;  %v8467_v12 = vunpack.i.l.bf16 %v12657_v37  ;;  %v13309_v51 = vld [vmem:[#allocation24_spill] sm:$0xff] }
 0x4a6   : > { %7933 = vmatprep.subr.mxu0 %v12274_v4  ;;  %7890 = vmatpush3.msra.mxu1 %v12184_v50  ;;  %v13284_v50 = vld [vmem:[#allocation6_spill] sm:$0xff]  ;;  %v8452_v4 = vunpack.i.l.bf16 %v8451_v52  ;;  %v8462_v29 = vunpack.i.l.bf16 %v12671_v63  ;;  %v8463_v62 = vunpack.i.h.bf16 %v12671_v63  ;;  %v13312_v63 = vld [vmem:[#allocation37_spill] sm:$0xff] }
 0x4a7   : > { %7934 = vmatpush3.msra.mxu0 %v12291_v55  ;;  %5332 = vmatmul.mubr.f32.gmra.mxu1 %v5030_v0  ;;  %v5031_v47 = vsel %vm319_vm0, %v13284_v50, %v8443_v11  ;;  %v13288_v55 = vld [vmem:[#allocation8_spill] sm:$0xff]  ;;  %v12693_v35 = vpop.permute.xlu1 %8475  ;;  %v12723_v52 = vld [vmem:[#allocation3 + $0x32] sm:$0xff] }
 0x4a8   : > { %7891 = vmatprep.subr.mxu1 %v12196_v1  ;;  %7935 = vmatprep.subr.mxu0 %v12302_v40  ;;  %v4880_v1 = vld [vmem:[#allocation3 + $0x131] sm:$0xff]  ;;  %v5725_v25 = vsel %vm319_vm0, %v5533_v34, %v8452_v4  ;;  %v13307_v11 = vld [vmem:[#allocation32_spill] sm:$0xff] }
 0x4a9   : > { %5336 = vmatprep.mubr.f32.mxu1 %v5039_v44  ;;  %8166 = vmatmul.mubr.msk.f32.gmra.mxu0 %vm319_vm0, %v12247_v21  ;;  %v13287_v21 = vld [vmem:[#allocation18_spill] sm:$0xff]  ;;  %v13289_v40 = vld [vmem:[#allocation19_spill] sm:$0xff]  ;;  %v12686_v23 = vpop.permute.xlu0 %8470 }
 0x4aa   : > { %7892 = vmatpush3.msra.mxu1 %v12209_v39  ;;  %7936 = vmatpush3.msra.mxu0 %v12318_v38  ;;  %v8448_v39 = vunpack.i.h.bf16 %v12620_v15  ;;  %v13290_v38 = vld [vmem:[#allocation9_spill] sm:$0xff]  ;;  %v5726_v15 = vsel %vm319_vm0, %v12704_v2, %v8457_v27  ;;  %v5519_v50 = vld [vmem:[#allocation3 + $0x31] sm:$0xff] }
 0x4ab   : > { %8168 = vmatprep.mubr.msk.f32.mxu0 %vm319_vm0, %v12308_v59  ;;  %7893 = vmatprep.subr.mxu1 %v13281_v45  ;;  %v5565_v59 = vld [vmem:[#allocation3 + $0x21] sm:$0xff]  ;;  %v12720_v0 = vpop.permute.xlu1 %8485  ;;  %v13313_v4 = vld [vmem:[#allocation38_spill] sm:$0xff] }
 0x4ac   : > { %7937 = vmatprep.subr.mxu0 %v13282_v16  ;;  %7894 = vmatpush3.msra.mxu1 %v13283_v49  ;;  %v5741_v13 = vsel %vm319_vm0, %v5565_v59, %v8468_v7  ;;  %v5032_v54 = vsel %vm319_vm0, %v13293_v28, %v8448_v39  ;;  %v5718_v42 = vsel %vm319_vm0, %v5565_v59, %v8458_v46  ;;  %v13308_v45 = vld [vmem:[#allocation33_spill] sm:$0xff]  ;;  %v13310_v49 = vld [vmem:[#allocation35_spill] sm:$0xff] }
 0x4ad   : > { %7938 = vmatpush3.msra.mxu0 %v13285_v31  ;;  %5337 = vmatmul.mubr.f32.gmra.mxu1 %v5031_v47  ;;  %v12711_v53 = vpop.permute.xlu0 %8480  ;;  %v5727_v16 = vsel %vm319_vm0, %v12723_v52, %v8462_v29  ;;  %v8472_v47 = vunpack.i.l.bf16 %v12686_v23  ;;  %v5719_v7 = vsel %vm319_vm0, %v5519_v50, %v8463_v62  ;;  %v8473_v31 = vunpack.i.h.bf16 %v12686_v23  ;;  %v13316_v28 = vld [vmem:[#allocation41_spill] sm:$0xff] }
 0x4ae   : > { %7895 = vmatprep.subr.mxu1 %v13286_v22  ;;  %7939 = vmatprep.subr.mxu0 %v13287_v21  ;;  %v12743_v22 = vld [vmem:[#allocation3 + $0x42] sm:$0xff]  ;;  %v8478_v21 = vunpack.i.h.bf16 %v12693_v35  ;;  %v8483_v34 = vunpack.i.h.bf16 %v12711_v53  ;;  %v8487_v23 = vunpack.i.l.bf16 %v12720_v0 }
 0x4af   : > { %5341 = vmatprep.mubr.f32.mxu1 %v5040_v33  ;;  %8169 = vmatmul.mubr.msk.f32.gmra.mxu0 %vm319_vm0, %v4880_v1  ;;  %v13311_v1 = vld [vmem:[#allocation36_spill] sm:$0xff]  ;;  %v8477_v33 = vunpack.i.l.bf16 %v12693_v35  ;;  %v12751_v59 = vpop.permute.xlu1 %8495 }
 0x4b0   : > { %7896 = vmatpush3.msra.mxu1 %v13288_v55  ;;  %7940 = vmatpush3.msra.mxu0 %v13289_v40  ;;  %v13314_v55 = vld [vmem:[#allocation29_spill] sm:$0xff]  ;;  %v5728_v40 = vsel %vm319_vm0, %v12743_v22, %v8467_v12 }
 0x4b1   : > { %7897 = vmatprep.subr.mxu1 %v13290_v38  ;;  %7941 = vmatprep.subr.mxu0 %v13291_v19  ;;  %v12740_v39 = vpop.permute.xlu0 %8490  ;;  %v13315_v38 = vld [vmem:[#allocation40_spill] sm:$0xff] }
 0x4b2   : > { %6014 = vmatprep.mubr.f32.mxu0 %v5741_v13  ;;  %7898 = vmatpush3.msra.mxu1 %v13292_v3  ;;  %v5520_v19 = vld [vmem:[#allocation3 + $0x41] sm:$0xff]  ;;  %v5549_v13 = vld [vmem:[#allocation3 + $0x1f1] sm:$0xff]  ;;  %v8482_v3 = vunpack.i.l.bf16 %v12711_v53 }
 0x4b3   : > { %7942 = vmatpush3.msra.mxu0 %v13294_v8  ;;  %5342 = vmatmul.mubr.f32.gmra.mxu1 %v5032_v54  ;;  %v5720_v54 = vsel %vm319_vm0, %v5520_v19, %v8472_v47  ;;  %v5733_v8 = vsel %vm319_vm0, %v5549_v13, %v8473_v31  ;;  %v12776_v46 = vld [vmem:[#allocation3 + $0x62] sm:$0xff]  ;;  %v5523_v31 = vld [vmem:[#allocation3 + $0x71] sm:$0xff] }
 0x4b4   : > { %7899 = vmatprep.subr.mxu1 %v13295_v14  ;;  %7943 = vmatprep.subr.mxu0 %v13296_v32  ;;  %v12764_v14 = vld [vmem:[#allocation3 + $0x52] sm:$0xff]  ;;  %v8488_v32 = vunpack.i.h.bf16 %v12720_v0  ;;  %v5522_v62 = vld [vmem:[#allocation3 + $0x61] sm:$0xff] }
 0x4b5   : > { %7900 = vmatpush3.msra.mxu1 %v13297_v26  ;;  %5909 = vmatprep.mubr.f32.mxu1 %v5725_v25  ;;  %v13317_v25 = vld [vmem:[#allocation34_spill] sm:$0xff]  ;;  %v5729_v27 = vsel %vm319_vm0, %v12764_v14, %v8477_v33  ;;  %v5742_v26 = vsel %vm319_vm0, %v5519_v50, %v8478_v21  ;;  %v8501_v35 = vpop.permute.xlu0 %8500  ;;  %v5552_v21 = vld [vmem:[#allocation3 + $0x221] sm:$0xff] }
 0x4b6   : > { %7944 = vmatpush3.msra.mxu0 %v13298_v20  ;;  %7901 = vmatprep.subr.mxu1 %v13299_v60  ;;  %v5521_v20 = vld [vmem:[#allocation3 + $0x51] sm:$0xff]  ;;  %v5743_v53 = vsel %vm319_vm0, %v5520_v19, %v8488_v32  ;;  %v5540_v33 = vld [vmem:[#allocation3 + $0x82] sm:$0xff] }
 0x4b7   : > { %7945 = vmatprep.subr.mxu0 %v13300_v18  ;;  %7902 = vmatpush3.msra.mxu1 %v13301_v48  ;;  %v5721_v60 = vsel %vm319_vm0, %v5521_v20, %v8482_v3  ;;  %v8493_v18 = vunpack.i.h.bf16 %v12740_v39  ;;  %v8497_v48 = vunpack.i.l.bf16 %v12751_v59  ;;  %v5551_v0 = vld [vmem:[#allocation3 + $0x211] sm:$0xff]  ;;  %v5524_v3 = vld [vmem:[#allocation3 + $0x81] sm:$0xff] }
 0x4b8   : > { %7946 = vmatpush3.msra.mxu0 %v13302_v56  ;;  %5910 = vmatmul.mubr.f32.vlgmr.msra.gmra.mxu1 %v5717_v36  ;;  %v5550_v36 = vld [vmem:[#allocation3 + $0x201] sm:$0xff]  ;;  %v8506_v56 = vpop.permute.xlu1 %8505 }
 0x4b9   : > { %7947 = vmatprep.subr.mxu0 %v13303_v5  ;;  %8171 = vmatprep.subr.mxu1 %v13304_v61  ;;  %v5734_v29 = vsel %vm319_vm0, %v5550_v36, %v8483_v34  ;;  %v13318_v5 = vld [vmem:[#allocation39_spill] sm:$0xff]  ;;  %v8508_v47 = vunpack.i.h.bf16 %v8506_v56 }
 0x4ba   : > { %5914 = vmatprep.mubr.f32.mxu1 %v5726_v15  ;;  %7948 = vmatpush3.msra.mxu0 %v13305_v24  ;;  %v8498_v15 = vunpack.i.h.bf16 %v12751_v59 }
 0x4bb   : > { %8172 = vmatpush3.msra.mxu1 %v13304_v61  ;;  %7949 = vmatprep.subr.mxu0 %v13306_v9  ;;  %v5730_v61 = vsel %vm319_vm0, %v12776_v46, %v8487_v23  ;;  %v8502_v9 = vunpack.i.l.bf16 %v8501_v35 }
 0x4bc   : > { %7950 = vmatpush3.msra.mxu0 %v13307_v11  ;;  %5915 = vmatmul.mubr.f32.gmra.mxu1 %v5718_v42  ;;  %v12725_v44 = vpop.f32.mrf.mxu0  ;;  %v12791_v11 = vld [vmem:[#allocation3 + $0x72] sm:$0xff] }
 0x4bd   : > { %7951 = vmatprep.subr.mxu0 %v13308_v45  ;;  %8173 = vmatprep.subr.mxu1 %v13309_v51  ;;  %v8503_v45 = vunpack.i.h.bf16 %v8501_v35  ;;  %v5731_v50 = vsel %vm319_vm0, %v12791_v11, %v8497_v48 }
 0x4be   : > { %5919 = vmatprep.mubr.f32.mxu1 %v5727_v16  ;;  %7952 = vmatpush3.msra.mxu0 %v13310_v49  ;;  %v12737_v37 = vpop.f32.mrf.mxu0  ;;  %v8511_v16 = vpop.permute.xlu0 %8510  ;;  %v5735_v49 = vsel %vm319_vm0, %v5551_v0, %v8493_v18 }
 0x4bf   : > { %8174 = vmatpush3.msra.mxu1 %v13309_v51  ;;  %7953 = vmatprep.subr.mxu0 %v13311_v1  ;;  %v8507_v51 = vunpack.i.l.bf16 %v8506_v56  ;;  %v5744_v1 = vsel %vm319_vm0, %v5521_v20, %v8498_v15  ;;  %v5554_v20 = vld [vmem:[#allocation3 + $0x241] sm:$0xff]  ;;  %v5555_v56 = vld [vmem:[#allocation3 + $0x251] sm:$0xff]  ;;  %v7524_v0 = vadd.f32 %v12737_v37, %v12725_v44 }
 0x4c0   : > { %7954 = vmatpush3.msra.mxu0 %v13312_v63  ;;  %5920 = vmatmul.mubr.f32.gmra.mxu1 %v5719_v7  ;;  %v8516_v7 = vpop.permute.xlu1 %8515  ;;  %v5723_v63 = vsel %vm319_vm0, %v5523_v31, %v8502_v9 }
 0x4c1   : > { %7955 = vmatprep.subr.mxu0 %v13313_v4  ;;  %8175 = vmatprep.subr.mxu1 %v13314_v55  ;;  %v5732_v59 = vsel %vm319_vm0, %v5540_v33, %v8507_v51 }
 0x4c2   : > { %5924 = vmatprep.mubr.f32.mxu1 %v5728_v40  ;;  %7956 = vmatpush3.msra.mxu0 %v13315_v38  ;;  %v5736_v40 = vsel %vm319_vm0, %v5552_v21, %v8503_v45  ;;  %v8517_v38 = vunpack.i.l.bf16 %v8516_v7  ;;  %v8521_v13 = vpop.permute.xlu0 %8520 }
 0x4c3   : > { %8176 = vmatpush3.msra.mxu1 %v13314_v55  ;;  %7957 = vmatprep.subr.mxu0 %v13316_v28  ;;  %v12758_v30 = vpop.f32.mrf.mxu0  ;;  %v8513_v55 = vunpack.i.h.bf16 %v8511_v16 }
 0x4c4   : > { %7958 = vmatpush3.msra.mxu0 %v12543_v10  ;;  %5925 = vmatmul.mubr.f32.gmra.mxu1 %v5720_v54  ;;  %v8492_v10 = vunpack.i.l.bf16 %v12740_v39  ;;  %v8512_v39 = vunpack.i.l.bf16 %v8511_v16  ;;  %v5553_v54 = vld [vmem:[#allocation3 + $0x231] sm:$0xff]  ;;  %v7521_v16 = vadd.f32 %v12714_v17, %v12697_v43 }
 0x4c5   : > { %6015 = vmatmul.mubr.f32.vlgmr.msra.gmra.mxu0 %v5733_v8  ;;  %8177 = vmatprep.subr.mxu1 %v13317_v25  ;;  %v12771_v58 = vpop.f32.mrf.mxu0  ;;  %v8518_v8 = vunpack.i.h.bf16 %v8516_v7  ;;  %v5737_v34 = vsel %vm319_vm0, %v5553_v54, %v8513_v55 }
 0x4c6   : > { %5929 = vmatprep.mubr.f32.mxu1 %v5729_v27  ;;  %6019 = vmatprep.mubr.f32.mxu0 %v5742_v26  ;;  %v5722_v42 = vsel %vm319_vm0, %v5522_v62, %v8492_v10  ;;  %v5724_v28 = vsel %vm319_vm0, %v5524_v3, %v8512_v39  ;;  %v8526_v27 = vpop.permute.xlu1 %8525  ;;  %v5746_v26 = vsel %vm319_vm0, %v5523_v31, %v8517_v38  ;;  %v8523_v10 = vunpack.i.h.bf16 %v8521_v13 }
 0x4c7   : > { %8178 = vmatpush3.msra.mxu1 %v13317_v25  ;;  %v8522_v25 = vunpack.i.l.bf16 %v8521_v13  ;;  %v8527_v36 = vunpack.i.l.bf16 %v8526_v27 }
 0x4c8   : > { %5930 = vmatmul.mubr.f32.gmra.mxu1 %v5721_v60  ;;  %8179 = vmatprep.subr.mxu1 %v13318_v5  ;;  %v5738_v60 = vsel %vm319_vm0, %v5554_v20, %v8518_v8 }
 0x4c9   : > { %6020 = vmatmul.mubr.f32.gmra.mxu0 %v5734_v29  ;;  %5934 = vmatprep.mubr.f32.mxu1 %v5730_v61  ;;  %v12786_v24 = vpop.f32.mrf.mxu0  ;;  %v5747_v18 = vsel %vm319_vm0, %v5524_v3, %v8522_v25  ;;  %v8528_v29 = vunpack.i.h.bf16 %v8526_v27 }
 0x4ca   : > { %6024 = vmatprep.mubr.f32.mxu0 %v5743_v53  ;;  %8180 = vmatpush3.msra.mxu1 %v13318_v5  ;;  %v5739_v5 = vsel %vm319_vm0, %v5555_v56, %v8523_v10 }
 0x4cb   : > { %8181 = vmatprep.subr.mxu1 %v12555_v41  ;;  %v12793_v12 = vpop.f32.mrf.mxu0 }
 0x4cc   : > { %5935 = vmatmul.mubr.f32.gmra.mxu1 %v5722_v42  ;;  %v7530_v31 = vadd.f32 %v12793_v12, %v12786_v24 }
 0x4cd   : > { %6025 = vmatmul.mubr.f32.gmra.mxu0 %v5735_v49  ;;  %5939 = vmatprep.mubr.f32.mxu1 %v5731_v50 }
 0x4ce   : > { %6029 = vmatprep.mubr.f32.mxu0 %v5744_v1  ;;  %8182 = vmatpush3.msra.mxu1 %v12555_v41  ;;  %v5745_v41 = vsel %vm319_vm0, %v5522_v62, %v8508_v47 }
 0x4cf   : > { %8183 = vmatprep.subr.mxu1 %v12576_v6  ;;  %v12802_v4 = vpop.f32.mrf.mxu0 }
 0x4d0   : > { %5940 = vmatmul.mubr.f32.gmra.mxu1 %v5723_v63 }
 0x4d1   : > { %6030 = vmatmul.mubr.f32.gmra.mxu0 %v5736_v40  ;;  %5944 = vmatprep.mubr.f32.mxu1 %v5732_v59  ;;  %v12807_v19 = vpop.f32.mrf.mxu0 }
 0x4d2   : > { %6034 = vmatprep.mubr.f32.mxu0 %v5745_v41  ;;  %8184 = vmatpush3.msra.mxu1 %v12576_v6 }
 0x4d3   : > { %8185 = vmatprep.subr.mxu1 %v12597_v57 }
 0x4d4   : > { %5945 = vmatmul.mubr.f32.gmra.mxu1 %v5724_v28  ;;  %v7575_v23 = vpop.f32.mrf.mxu1  ;;  %v12813_v32 = vpop.f32.mrf.mxu0  ;;  %v7533_v28 = vadd.f32 %v12807_v19, %v12802_v4 }
 0x4d5   : > { %6035 = vmatmul.mubr.f32.gmra.mxu0 %v5737_v34  ;;  %8186 = vmatpush3.msra.mxu1 %v12597_v57  ;;  %v5572_v57 = vld [vmem:[#allocation3 + $0x91] sm:$0xff] }
 0x4d6   : > { %6039 = vmatprep.mubr.f32.mxu0 %v5746_v26  ;;  %8187 = vmatprep.mubr.msk.f32.mxu1 %vm319_vm0, %v12704_v2  ;;  %v7576_v6 = vpop.f32.mrf.mxu1  ;;  %v12819_v35 = vpop.f32.mrf.mxu0  ;;  %v5748_v15 = vsel %vm319_vm0, %v5572_v57, %v8527_v36 }
 0x4d7   : > { %v7577_v45 = vadd.f32 %v7576_v6, %v7575_v23  ;;  %v7536_v26 = vadd.f32 %v12819_v35, %v12813_v32 }
 0x4d8   : > { %8188 = vmatmul.mubr.msk.f32.vlgmr.msra.gmra.mxu1 %vm319_vm0, %v12723_v52 }
 0x4d9   : > { %6040 = vmatmul.mubr.f32.gmra.mxu0 %v5738_v60  ;;  %8190 = vmatprep.mubr.msk.f32.mxu1 %vm319_vm0, %v12743_v22  ;;  %v5556_v22 = vld [vmem:[#allocation3 + $0x261] sm:$0xff]  ;;  %v3891_v7 = vadd.f32 %v7577_v45, %v7521_v16 }
 0x4da   : > { %6044 = vmatprep.mubr.f32.mxu0 %v5747_v18  ;;  %v7578_v2 = vpop.f32.mrf.mxu1  ;;  %v12827_v48 = vpop.f32.mrf.mxu0  ;;  %v5740_v53 = vsel %vm319_vm0, %v5556_v22, %v8528_v29 }
 0x4dc   : > { %8191 = vmatmul.mubr.msk.f32.gmra.mxu1 %vm319_vm0, %v12764_v14  ;;  %v7579_v52 = vpop.f32.mrf.mxu1  ;;  %v12832_v61 = vpop.f32.mrf.mxu0  ;;  %v5588_v14 = vld [vmem:[#allocation3 + $0x92] sm:$0xff] }
 0x4dd   : > { %6045 = vmatmul.mubr.f32.gmra.mxu0 %v5739_v5  ;;  %8193 = vmatprep.mubr.msk.f32.mxu1 %vm319_vm0, %v12776_v46  ;;  %v7580_v62 = vadd.f32 %v7579_v52, %v7578_v2  ;;  %v7539_v32 = vadd.f32 %v12832_v61, %v12827_v48 }
 0x4de   : > { %6049 = vmatprep.mubr.f32.mxu0 %v5748_v15 }
 0x4df   : > { %v3896_v49 = vadd.f32 %v7580_v62, %v7524_v0 }
 0x4e0   : > { %8194 = vmatmul.mubr.msk.f32.gmra.mxu1 %vm319_vm0, %v12791_v11  ;;  %v7581_v9 = vpop.f32.mrf.mxu1  ;;  %v12840_v42 = vpop.f32.mrf.mxu0 }
 0x4e1   : > { %6050 = vmatmul.mubr.f32.gmra.mxu0 %v5740_v53  ;;  %8196 = vmatprep.mubr.msk.f32.mxu1 %vm319_vm0, %v5540_v33  ;;  %v7527_v33 = vadd.f32 %v12771_v58, %v12758_v30 }
 0x4e2   : > { %v7582_v46 = vpop.f32.mrf.mxu1  ;;  %v12845_v51 = vpop.f32.mrf.mxu0 }
 0x4e3   : > { %v7583_v39 = vadd.f32 %v7582_v46, %v7581_v9  ;;  %v7542_v9 = vadd.f32 %v12845_v51, %v12840_v42 }
 0x4e4   : > { %8197 = vmatmul.mubr.msk.f32.gmra.mxu1 %vm319_vm0, %v5588_v14  ;;  %v7584_v11 = vpop.f32.mrf.mxu1 }
 0x4e5   : > { %v8105_v50 = vpop.f32.mrf.mxu0  ;;  %v3901_v41 = vadd.f32 %v7583_v39, %v7527_v33 }
 0x4e6   : > { %v12850_v47 = vadd.f32 %v8105_v50, %v3896_v49  ;;  %v7585_v1 = vpop.f32.mrf.mxu1 }
 0x4e7   : > { %v7586_v44 = vadd.f32 %v7585_v1, %v7584_v11  ;;  %v3995_v37 = vpop.f32.mrf.mxu0 }
 0x4e8   : > { %v12854_v63 = vadd.f32 %v3995_v37, %v3891_v7  ;;  %v4035_v43 = vmul.f32 %v12850_v47, %v12850_v47 }
 0x4e9   : > { %v7587_v17 = vpop.f32.mrf.mxu1  ;;  %v3906_v21 = vadd.f32 %v7586_v44, %v7530_v31 }
 0x4ea   : > { %v4046_v55 = vsel %vm4042_vm4, %v4035_v43, 0.0  ;;  %v4034_v40 = vmul.f32 %v12854_v63, %v12854_v63 }
 0x4eb   : > { %v8108_v24 = vpop.f32.mrf.mxu0  ;;  %v7588_v12 = vpop.f32.mrf.mxu1  ;;  %4047 = vadd.xlane.f32.xlu1 %v4046_v55 }
 0x4ec   : > { %v12863_v59 = vadd.f32 %v8108_v24, %v3906_v21  ;;  %v7589_v38 = vadd.f32 %v7588_v12, %v7587_v17  ;;  %v4043_v13 = vsel %vm4042_vm4, %v4034_v40, 0.0 }
 0x4ed   : > { %v4005_v3 = vpop.f32.mrf.mxu0  ;;  %4044 = vadd.xlane.f32.xlu0 %v4043_v13 }
 0x4ee   : > { %v12868_v30 = vadd.f32 %v4005_v3, %v3901_v41  ;;  %v4037_v58 = vmul.f32 %v12863_v59, %v12863_v59  ;;  %v3911_v8 = vadd.f32 %v7589_v38, %v7533_v28 }
 0x4f0   : > { %v7590_v54 = vpop.f32.mrf.mxu1  ;;  %v4052_v34 = vsel %vm4042_vm4, %v4037_v58, 0.0  ;;  %v4036_v23 = vmul.f32 %v12868_v30, %v12868_v30 }
 0x4f1   : > { %v8111_v25 = vpop.f32.mrf.mxu0  ;;  %4053 = vadd.xlane.f32.xlu0 %v4052_v34 }
 0x4f2   : > { %v7591_v27 = vpop.f32.mrf.mxu1  ;;  %v4049_v20 = vsel %vm4042_vm4, %v4036_v23, 0.0 }
 0x4f3   : > { %v7592_v6 = vadd.f32 %v7591_v27, %v7590_v54  ;;  %v4015_v4 = vpop.f32.mrf.mxu0 }
 0x4f4   : > { %v12877_v19 = vadd.f32 %v4015_v4, %v3911_v8 }
 0x4f5   : > { %v3916_v10 = vadd.f32 %v7592_v6, %v7536_v26  ;;  %4050 = vadd.xlane.f32.xlu0 %v4049_v20 }
 0x4f6   : > { %v7593_v60 = vpop.f32.mrf.mxu1  ;;  %v4038_v36 = vmul.f32 %v12877_v19, %v12877_v19 }
 0x4f7   : > { %v12882_v18 = vadd.f32 %v8111_v25, %v3916_v10  ;;  %v8114_v57 = vpop.f32.mrf.mxu0 }
 0x4f8   : > { %v7594_v2 = vpop.f32.mrf.mxu1  ;;  %v4055_v56 = vsel %vm4042_vm4, %v4038_v36, 0.0 }
 0x4f9   : > { %v7595_v35 = vadd.f32 %v7594_v2, %v7593_v60  ;;  %4056 = vadd.xlane.f32.xlu1 %v4055_v56  ;;  %v4039_v29 = vmul.f32 %v12882_v18, %v12882_v18  ;;  %v4025_v15 = vpop.f32.mrf.mxu0 }
 0x4fb   : > { %v3921_v5 = vadd.f32 %v7595_v35, %v7539_v32  ;;  %v4058_v52 = vsel %vm4042_vm4, %v4039_v29, 0.0 }
 0x4fc   : > { %v7596_v22 = vpop.f32.mrf.mxu1  ;;  %4059 = vadd.xlane.f32.xlu0 %v4058_v52 }
 0x4fd   : > { %v12890_v53 = vadd.f32 %v4025_v15, %v3921_v5 }
 0x4fe   : > { %v7597_v62 = vpop.f32.mrf.mxu1 }
 0x4ff   : > { %v7598_v14 = vadd.f32 %v7597_v62, %v7596_v22  ;;  %v4040_v48 = vmul.f32 %v12890_v53, %v12890_v53 }
 0x501   : > { %v3926_v61 = vadd.f32 %v7598_v14, %v7542_v9  ;;  %v7647_v0 = vpop.f32.mrf.mxu1  ;;  %v4061_v45 = vsel %vm4042_vm4, %v4040_v48, 0.0 }
 0x502   : > { %4062 = vadd.xlane.f32.xlu1 %v4061_v45 }
 0x503   : > { %v7648_v46 = vpop.f32.mrf.mxu1  ;;  %v12897_v16 = vadd.f32 %v8114_v57, %v3926_v61 }
 0x504   : > { %v7649_v23 = vadd.f32 %v7648_v46, %v7647_v0 }
 0x505   : > { %v7650_v11 = vpop.f32.mrf.mxu1  ;;  %v4041_v49 = vmul.f32 %v12897_v16, %v12897_v16 }
 0x507   : > { %v7651_v50 = vpop.f32.mrf.mxu1  ;;  %v4064_v1 = vsel %vm4042_vm4, %v4041_v49, 0.0 }
 0x508   : > { %4065 = vadd.xlane.f32.xlu0 %v4064_v1  ;;  %v7652_v54 = vadd.f32 %v7651_v50, %v7650_v11 }
 0x509   : > { %v7653_v42 = vpop.f32.mrf.mxu1 }
 0x50b   : > { %v7654_v51 = vpop.f32.mrf.mxu1 }
 0x50c   : > { %v7655_v5 = vadd.f32 %v7654_v51, %v7653_v42 }
 0x50d   : > { %v7656_v7 = vpop.f32.mrf.mxu1 }
 0x50e   : > { %v7703_v31 = vpop.f32.mrf.mxu0 }
 0x50f   : > { %v7657_v44 = vpop.f32.mrf.mxu1 }
 0x510   : > { %v7704_v37 = vpop.f32.mrf.mxu0  ;;  %v7658_v2 = vadd.f32 %v7657_v44, %v7656_v7 }
 0x511   : > { %v7659_v39 = vpop.f32.mrf.mxu1  ;;  %v7705_v8 = vadd.f32 %v7704_v37, %v7703_v31 }
 0x513   : > { %v7706_v43 = vpop.f32.mrf.mxu0  ;;  %v7660_v17 = vpop.f32.mrf.mxu1  ;;  %v4599_v4 = vadd.f32 %v7705_v8, %v7649_v23 }
 0x514   : > { %v7661_v50 = vadd.f32 %v7660_v17, %v7659_v39 }
 0x515   : > { %v7707_v21 = vpop.f32.mrf.mxu0  ;;  %v7662_v33 = vpop.f32.mrf.mxu1 }
 0x516   : > { %v7708_v28 = vadd.f32 %v7707_v21, %v7706_v43 }
 0x517   : > { %v7663_v55 = vpop.f32.mrf.mxu1 }
 0x518   : > { %v7709_v40 = vpop.f32.mrf.mxu0  ;;  %v4604_v27 = vadd.f32 %v7708_v28, %v7652_v54  ;;  %v7664_v45 = vadd.f32 %v7663_v55, %v7662_v33 }
 0x51a   : > { %v7710_v24 = vpop.f32.mrf.mxu0  ;;  %v7665_v12 = vpop.f32.mrf.mxu1 }
 0x51b   : > { %v7711_v56 = vadd.f32 %v7710_v24, %v7709_v40 }
 0x51c   : > { %v7666_v38 = vpop.f32.mrf.mxu1 }
 0x51d   : > { %v7712_v41 = vpop.f32.mrf.mxu0  ;;  %v4609_v48 = vadd.f32 %v7711_v56, %v7655_v5 }
 0x51f   : > { %v7713_v13 = vpop.f32.mrf.mxu0  ;;  %v7668_v3 = vpop.f32.mrf.mxu1 }
 0x520   : > { %v7714_v20 = vadd.f32 %v7713_v13, %v7712_v41  ;;  %v7667_v41 = vadd.f32 %v7666_v38, %v7665_v12 }
 0x521   : > { %v7669_v58 = vpop.f32.mrf.mxu1 }
 0x522   : > { %v7715_v34 = vpop.f32.mrf.mxu0  ;;  %v4614_v52 = vadd.f32 %v7714_v20, %v7658_v2  ;;  %v7670_v21 = vadd.f32 %v7669_v58, %v7668_v3 }
 0x524   : > { %v7716_v25 = vpop.f32.mrf.mxu0 }
 0x525   : > { %v8133_v26 = vpop.f32.mrf.mxu1  ;;  %v7717_v46 = vadd.f32 %v7716_v25, %v7715_v34 }
 0x526   : > { %v12902_v6 = vadd.f32 %v8133_v26, %v4604_v27 }
 0x527   : > { %v7718_v10 = vpop.f32.mrf.mxu0  ;;  %v4703_v60 = vpop.f32.mrf.mxu1  ;;  %v4619_v37 = vadd.f32 %v7717_v46, %v7661_v50 }
 0x528   : > { %v12904_v36 = vadd.f32 %v4703_v60, %v4599_v4  ;;  %v4743_v57 = vmul.f32 %v12902_v6, %v12902_v6 }
 0x529   : > { %v7719_v32 = vpop.f32.mrf.mxu0 }
 0x52a   : > { %v4753_v35 = vsel %vm4042_vm4, %v4743_v57, 0.0  ;;  %v4742_v29 = vmul.f32 %v12904_v36, %v12904_v36  ;;  %v7720_v9 = vadd.f32 %v7719_v32, %v7718_v10 }
 0x52b   : > { %4754 = vadd.xlane.f32.xlu0 %v4753_v35 }
 0x52c   : > { %v7721_v15 = vpop.f32.mrf.mxu0  ;;  %v8136_v22 = vpop.f32.mrf.mxu1  ;;  %v4750_v62 = vsel %vm4042_vm4, %v4742_v29, 0.0  ;;  %v4624_v1 = vadd.f32 %v7720_v9, %v7664_v45 }
 0x52d   : > { %v12912_v14 = vadd.f32 %v8136_v22, %v4614_v52  ;;  %4751 = vadd.xlane.f32.xlu1 %v4750_v62 }
 0x52e   : > { %v7722_v61 = vpop.f32.mrf.mxu0  ;;  %v4713_v0 = vpop.f32.mrf.mxu1 }
 0x52f   : > { %v12914_v11 = vadd.f32 %v4713_v0, %v4609_v48  ;;  %v4745_v49 = vmul.f32 %v12912_v14, %v12912_v14  ;;  %v7723_v40 = vadd.f32 %v7722_v61, %v7721_v15 }
 0x531   : > { %v4759_v42 = vsel %vm4042_vm4, %v4745_v49, 0.0  ;;  %v4744_v51 = vmul.f32 %v12914_v11, %v12914_v11  ;;  %v4629_v58 = vadd.f32 %v7723_v40, %v7667_v41 }
 0x532   : > { %v7724_v7 = vpop.f32.mrf.mxu0  ;;  %v8139_v31 = vpop.f32.mrf.mxu1  ;;  %4760 = vadd.xlane.f32.xlu0 %v4759_v42 }
 0x533   : > { %v12921_v44 = vadd.f32 %v8139_v31, %v4624_v1  ;;  %v4756_v43 = vsel %vm4042_vm4, %v4744_v51, 0.0 }
 0x534   : > { %v7725_v33 = vpop.f32.mrf.mxu0  ;;  %v4723_v55 = vpop.f32.mrf.mxu1  ;;  %4757 = vadd.xlane.f32.xlu1 %v4756_v43 }
 0x535   : > { %v7726_v39 = vadd.f32 %v7725_v33, %v7724_v7  ;;  %v12924_v17 = vadd.f32 %v4723_v55, %v4619_v37  ;;  %v4747_v24 = vmul.f32 %v12921_v44, %v12921_v44 }
 0x537   : > { %v4634_v13 = vadd.f32 %v7726_v39, %v7670_v21  ;;  %v4765_v28 = vsel %vm4042_vm4, %v4747_v24, 0.0  ;;  %v4746_v54 = vmul.f32 %v12924_v17, %v12924_v17 }
 0x538   : > { %v8142_v8 = vpop.f32.mrf.mxu1  ;;  %v7775_v34 = vpop.f32.mrf.mxu0  ;;  %4766 = vadd.xlane.f32.xlu0 %v4765_v28 }
 0x539   : > { %v12931_v3 = vadd.f32 %v8142_v8, %v4634_v13  ;;  %v4762_v23 = vsel %vm4042_vm4, %v4746_v54, 0.0 }
 0x53a   : > { %v4733_v25 = vpop.f32.mrf.mxu1  ;;  %v7776_v27 = vpop.f32.mrf.mxu0  ;;  %4763 = vadd.xlane.f32.xlu1 %v4762_v23 }
 0x53b   : > { %v12934_v26 = vadd.f32 %v4733_v25, %v4629_v58  ;;  %v4749_v12 = vmul.f32 %v12931_v3, %v12931_v3  ;;  %v7777_v51 = vadd.f32 %v7776_v27, %v7775_v34 }
 0x53c   : > { %v7778_v38 = vpop.f32.mrf.mxu0 }
 0x53d   : > { %v4748_v4 = vmul.f32 %v12934_v26, %v12934_v26  ;;  %v4771_v20 = vsel %vm4042_vm4, %v4749_v12, 0.0 }
 0x53e   : > { %v7779_v10 = vpop.f32.mrf.mxu0  ;;  %4772 = vadd.xlane.f32.xlu0 %v4771_v20 }
 0x53f   : > { %v4768_v60 = vsel %vm4042_vm4, %v4748_v4, 0.0  ;;  %v7780_v1 = vadd.f32 %v7779_v10, %v7778_v38 }
 0x540   : > { %v7781_v57 = vpop.f32.mrf.mxu0  ;;  %4769 = vadd.xlane.f32.xlu1 %v4768_v60 }
 0x542   : > { %v7782_v2 = vpop.f32.mrf.mxu0 }
 0x543   : > { %v7783_v8 = vadd.f32 %v7782_v2, %v7781_v57 }
 0x544   : > { %v7784_v56 = vpop.f32.mrf.mxu0 }
 0x546   : > { %v7785_v32 = vpop.f32.mrf.mxu0 }
 0x547   : > { %v7786_v55 = vadd.f32 %v7785_v32, %v7784_v56 }
 0x548   : > { %v7787_v35 = vpop.f32.mrf.mxu0 }
 0x54a   : > { %v7788_v29 = vpop.f32.mrf.mxu0 }
 0x54b   : > { %v7789_v10 = vadd.f32 %v7788_v29, %v7787_v35 }
 0x54c   : > { %v7790_v5 = vpop.f32.mrf.mxu0 }
 0x54d   : > { %v7831_v52 = vpop.f32.mrf.mxu1 }
 0x54e   : > { %v7791_v15 = vpop.f32.mrf.mxu0 }
 0x54f   : > { %v7832_v22 = vpop.f32.mrf.mxu1 }
 0x550   : > { %v7833_v42 = vadd.f32 %v7832_v22, %v7831_v52 }
 0x551   : > { %v7793_v62 = vpop.f32.mrf.mxu0 }
 0x552   : > { %v7834_v9 = vpop.f32.mrf.mxu1  ;;  %v5309_v33 = vadd.f32 %v7833_v42, %v7777_v51 }
 0x553   : > { %v7794_v48 = vpop.f32.mrf.mxu0 }
 0x554   : > { %v7835_v61 = vpop.f32.mrf.mxu1 }
 0x555   : > { %v7836_v46 = vadd.f32 %v7835_v61, %v7834_v9  ;;  %v7792_v61 = vadd.f32 %v7791_v15, %v7790_v5 }
 0x556   : > { %v12942_v0 = vpop.f32.mrf.mxu0 }
 0x557   : > { %v7837_v45 = vpop.f32.mrf.mxu1  ;;  %v5314_v31 = vadd.f32 %v7836_v46, %v7780_v1 }
 0x558   : > { %v12944_v50 = vpop.f32.mrf.mxu0 }
 0x559   : > { %v7838_v49 = vpop.f32.mrf.mxu1 }
 0x55a   : > { %v7839_v24 = vadd.f32 %v7838_v49, %v7837_v45 }
 0x55c   : > { %v7840_v7 = vpop.f32.mrf.mxu1  ;;  %v5319_v38 = vadd.f32 %v7839_v24, %v7783_v8 }
 0x55d   : > { %v8161_v37 = vpop.f32.mrf.mxu0 }
 0x55e   : > { %v12946_v43 = vadd.f32 %v8161_v37, %v5314_v31  ;;  %v7841_v21 = vpop.f32.mrf.mxu1  ;;  %v7795_v37 = vadd.f32 %v7794_v48, %v7793_v62  ;;  %v7798_v62 = vadd.f32 %v12944_v50, %v12942_v0 }
 0x55f   : > { %v7842_v40 = vadd.f32 %v7841_v21, %v7840_v7  ;;  %v5413_v39 = vpop.f32.mrf.mxu0 }
 0x560   : > { %v12948_v41 = vadd.f32 %v5413_v39, %v5309_v33  ;;  %v5453_v13 = vmul.f32 %v12946_v43, %v12946_v43 }
 0x561   : > { %v7843_v28 = vpop.f32.mrf.mxu1  ;;  %v5324_v54 = vadd.f32 %v7842_v40, %v7786_v55 }
 0x562   : > { %v5463_v34 = vsel %vm4042_vm4, %v5453_v13, 0.0  ;;  %v5452_v58 = vmul.f32 %v12948_v41, %v12948_v41 }
 0x563   : > { %v8164_v23 = vpop.f32.mrf.mxu0  ;;  %v7844_v25 = vpop.f32.mrf.mxu1  ;;  %5464 = vadd.xlane.f32.xlu0 %v5463_v34 }
 0x564   : > { %v12955_v27 = vadd.f32 %v8164_v23, %v5324_v54  ;;  %v7845_v12 = vadd.f32 %v7844_v25, %v7843_v28  ;;  %v5460_v4 = vsel %vm4042_vm4, %v5452_v58, 0.0 }
 0x565   : > { %v5423_v20 = vpop.f32.mrf.mxu0  ;;  %5461 = vadd.xlane.f32.xlu1 %v5460_v4 }
 0x566   : > { %v12958_v60 = vadd.f32 %v5423_v20, %v5319_v38  ;;  %v5455_v57 = vmul.f32 %v12955_v27, %v12955_v27  ;;  %v5329_v56 = vadd.f32 %v7845_v12, %v7789_v10 }
 0x567   : > { %v7846_v2 = vpop.f32.mrf.mxu1 }
 0x568   : > { %v5469_v32 = vsel %vm4042_vm4, %v5455_v57, 0.0  ;;  %v5454_v52 = vmul.f32 %v12958_v60, %v12958_v60 }
 0x569   : > { %v8167_v22 = vpop.f32.mrf.mxu0  ;;  %v7847_v9 = vpop.f32.mrf.mxu1  ;;  %5470 = vadd.xlane.f32.xlu0 %v5469_v32 }
 0x56a   : > { %v7848_v45 = vadd.f32 %v7847_v9, %v7846_v2  ;;  %v5466_v46 = vsel %vm4042_vm4, %v5454_v52, 0.0 }
 0x56b   : > { %v5433_v35 = vpop.f32.mrf.mxu0  ;;  %5467 = vadd.xlane.f32.xlu1 %v5466_v46 }
 0x56c   : > { %v5334_v29 = vadd.f32 %v7848_v45, %v7792_v61  ;;  %v12966_v49 = vadd.f32 %v5433_v35, %v5329_v56 }
 0x56d   : > { %v7849_v1 = vpop.f32.mrf.mxu1 }
 0x56e   : > { %v5456_v42 = vmul.f32 %v12966_v49, %v12966_v49  ;;  %v12970_v51 = vadd.f32 %v8167_v22, %v5334_v29 }
 0x56f   : > { %v7850_v7 = vpop.f32.mrf.mxu1  ;;  %v8170_v31 = vpop.f32.mrf.mxu0 }
 0x570   : > { %v7851_v21 = vadd.f32 %v7850_v7, %v7849_v1  ;;  %v5472_v5 = vsel %vm4042_vm4, %v5456_v42, 0.0  ;;  %v5457_v15 = vmul.f32 %v12970_v51, %v12970_v51 }
 0x571   : > { %5473 = vadd.xlane.f32.xlu1 %v5472_v5  ;;  %v5443_v33 = vpop.f32.mrf.mxu0 }
 0x572   : > { %v5339_v55 = vadd.f32 %v7851_v21, %v7795_v37  ;;  %v5475_v40 = vsel %vm4042_vm4, %v5457_v15, 0.0 }
 0x573   : > { %v7852_v39 = vpop.f32.mrf.mxu1  ;;  %5476 = vadd.xlane.f32.xlu0 %v5475_v40 }
 0x574   : > { %v12976_v24 = vadd.f32 %v5443_v33, %v5339_v55  ;;  %v4048_v13 = vpop.xlane.xlu1 %4047 }
 0x575   : > { %v7853_v28 = vpop.f32.mrf.mxu1  ;;  %v4068_v54 = vmax.f32 %v4048_v13, 1e-24 }
 0x576   : > { %v7854_v48 = vadd.f32 %v7853_v28, %v7852_v39  ;;  %v5458_v8 = vmul.f32 %v12976_v24, %v12976_v24  ;;  %v4045_v34 = vpop.xlane.xlu0 %4044 }
 0x577   : > { %8529 = vrsqrt.f32 %v4068_v54  ;;  %v4067_v58 = vmax.f32 %v4045_v34, 1e-24 }
 0x578   : > { %v5344_v23 = vadd.f32 %v7854_v48, %v7798_v62  ;;  %v12982_v25 = vpop.f32.mrf.mxu1  ;;  %v5478_v12 = vsel %vm4042_vm4, %v5458_v8, 0.0 }
 0x579   : > { %5479 = vadd.xlane.f32.xlu1 %v5478_v12  ;;  %8531 = vrsqrt.f32 %v4067_v58 }
 0x57a   : > { %v12985_v38 = vpop.f32.mrf.mxu1  ;;  %v12987_v4 = vadd.f32 %v8170_v31, %v5344_v23  ;;  %v4054_v20 = vpop.xlane.xlu0 %4053 }
 0x57b   : > { %v4070_v0 = vmax.f32 %v4054_v20, 1e-24 }
 0x57c   : > { %v7906_v50 = vpop.f32.mrf.mxu1  ;;  %v5459_v10 = vmul.f32 %v12987_v4, %v12987_v4 }
 0x57d   : > { %8533 = vrsqrt.f32 %v4070_v0 }
 0x57e   : > { %v7907_v57 = vpop.f32.mrf.mxu1  ;;  %v5481_v2 = vsel %vm4042_vm4, %v5459_v10, 0.0  ;;  %v4051_v56 = vpop.xlane.xlu0 %4050 }
 0x57f   : > { %5482 = vadd.xlane.f32.xlu0 %v5481_v2  ;;  %v4069_v32 = vmax.f32 %v4051_v56, 1e-24 }
 0x580   : > { %v12992_v52 = vpop.f32.mrf.mxu1 }
 0x581   : > { %8535 = vrsqrt.f32 %v4069_v32  ;;  %v7908_v32 = vadd.f32 %v7907_v57, %v7906_v50 }
 0x582   : > { %v12994_v22 = vpop.f32.mrf.mxu1  ;;  %v4057_v9 = vpop.xlane.xlu1 %4056 }
 0x583   : > { %v4071_v61 = vmax.f32 %v4057_v9, 1e-24 }
 0x584   : > { %v8530_v45 = vpop.eup %8529  ;;  %v7912_v46 = vpop.f32.mrf.mxu1 }
 0x585   : > { %v7959_v35 = vpop.f32.mrf.mxu0  ;;  %v4084_v29 = vmul.f32 %v8530_v45, %v12850_v47  ;;  %8537 = vrsqrt.f32 %v4071_v61  ;;  %v4060_v1 = vpop.xlane.xlu0 %4059 }
 0x586   : > { %v8532_v42 = vpop.eup %8531  ;;  %v7913_v7 = vpop.f32.mrf.mxu1  ;;  %v4072_v31 = vmax.f32 %v4060_v1, 1e-24  ;;  %v7905_v1 = vadd.f32 %v12985_v38, %v12982_v25 }
 0x587   : > { %v7960_v37 = vpop.f32.mrf.mxu0  ;;  %4092 = vst.msk [vmem:[%s13001_s27 + $0x8] sm:$0xff] %vm4042_vm4, %v4084_v29  ;;  %v4083_v21 = vmul.f32 %v8532_v42, %v12854_v63 }
 0x588   : > { %v13007_v5 = vpop.f32.mrf.mxu1  ;;  %8539 = vrsqrt.f32 %v4072_v31  ;;  %v7961_v9 = vadd.f32 %v7960_v37, %v7959_v35 }
 0x589   : > { %v7962_v15 = vpop.f32.mrf.mxu0  ;;  %4091 = vst.msk [vmem:[%s13001_s27] sm:$0xff] %vm4042_vm4, %v4083_v21 }
 0x58a   : > { %v8534_v33 = vpop.eup %8533  ;;  %v7916_v47 = vpop.f32.mrf.mxu1  ;;  %v6017_v57 = vadd.f32 %v7961_v9, %v7905_v1 }
 0x58b   : > { %v7963_v55 = vpop.f32.mrf.mxu0  ;;  %v4086_v40 = vmul.f32 %v8534_v33, %v12863_v59  ;;  %v4063_v39 = vpop.xlane.xlu1 %4062 }
 0x58c   : > { %v7918_v13 = vpop.f32.mrf.mxu1  ;;  %v4073_v28 = vmax.f32 %v4063_v39, 1e-24  ;;  %v7964_v0 = vadd.f32 %v7963_v55, %v7962_v15 }
 0x58d   : > { %v7965_v54 = vpop.f32.mrf.mxu0  ;;  %4094 = vst.msk [vmem:[%s13001_s27 + $0x18] sm:$0xff] %vm4042_vm4, %v4086_v40 }
 0x58e   : > { %v8536_v62 = vpop.eup %8535  ;;  %v7919_v63 = vpop.f32.mrf.mxu1  ;;  %8541 = vrsqrt.f32 %v4073_v28  ;;  %v6022_v21 = vadd.f32 %v7964_v0, %v7908_v32 }
 0x58f   : > { %v7966_v48 = vpop.f32.mrf.mxu0  ;;  %v4085_v8 = vmul.f32 %v8536_v62, %v12868_v30  ;;  %v7920_v28 = vadd.f32 %v7919_v63, %v7918_v13 }
 0x590   : > { %v13015_v34 = vpop.f32.mrf.mxu1  ;;  %v7967_v33 = vadd.f32 %v7966_v48, %v7965_v54 }
 0x591   : > { %v7968_v58 = vpop.f32.mrf.mxu0  ;;  %4093 = vst.msk [vmem:[%s13001_s27 + $0x10] sm:$0xff] %vm4042_vm4, %v4085_v8  ;;  %v4066_v23 = vpop.xlane.xlu0 %4065 }
 0x592   : > { %v8538_v59 = vpop.eup %8537  ;;  %v13019_v12 = vpop.f32.mrf.mxu1  ;;  %v4074_v20 = vmax.f32 %v4066_v23, 1e-24  ;;  %v7917_v23 = vadd.f32 %v7916_v47, %v13007_v5 }
 0x593   : > { %v7969_v10 = vpop.f32.mrf.mxu0  ;;  %v4087_v2 = vmul.f32 %v8538_v59, %v12877_v19  ;;  %v7914_v19 = vadd.f32 %v7913_v7, %v7912_v46 }
 0x594   : > { %v13022_v56 = vpop.f32.mrf.mxu1  ;;  %8543 = vrsqrt.f32 %v4074_v20  ;;  %v7970_v42 = vadd.f32 %v7969_v10, %v7968_v58 }
 0x595   : > { %v8540_v30 = vpop.eup %8539  ;;  %v7971_v61 = vpop.f32.mrf.mxu0  ;;  %4095 = vst.msk [vmem:[%s13001_s27 + $0x20] sm:$0xff] %vm4042_vm4, %v4087_v2 }
 0x596   : > { %v7925_v45 = vpop.f32.mrf.mxu1  ;;  %v4088_v29 = vmul.f32 %v8540_v30, %v12882_v18  ;;  %v7911_v18 = vadd.f32 %v12994_v22, %v12992_v52  ;;  %v6032_v25 = vadd.f32 %v7970_v42, %v7914_v19  ;;  %v7923_v42 = vadd.f32 %v13019_v12, %v13015_v34 }
 0x597   : > { %v7972_v31 = vpop.f32.mrf.mxu0 }
 0x598   : > { %v8189_v15 = vpop.f32.mrf.mxu1  ;;  %4096 = vst.msk [vmem:[%s13001_s27 + $0x28] sm:$0xff] %vm4042_vm4, %v4088_v29  ;;  %v7973_v46 = vadd.f32 %v7972_v31, %v7971_v61  ;;  %v6027_v58 = vadd.f32 %v7967_v33, %v7911_v18  ;;  %v7926_v33 = vadd.f32 %v7925_v45, %v13022_v56 }
 0x599   : > { %v7974_v55 = vpop.f32.mrf.mxu0  ;;  %v13031_v50 = vadd.f32 %v8189_v15, %v6022_v21 }
 0x59a   : > { %v6121_v35 = vpop.f32.mrf.mxu1  ;;  %v6037_v2 = vadd.f32 %v7973_v46, %v7917_v23 }
 0x59b   : > { %v8542_v37 = vpop.eup %8541  ;;  %v7975_v40 = vpop.f32.mrf.mxu0  ;;  %v13035_v39 = vadd.f32 %v6121_v35, %v6017_v57  ;;  %v6161_v38 = vmul.f32 %v13031_v50, %v13031_v50 }
 0x59c   : > { %v7976_v7 = vadd.f32 %v7975_v40, %v7974_v55  ;;  %v8192_v54 = vpop.f32.mrf.mxu1  ;;  %v4089_v62 = vmul.f32 %v8542_v37, %v12890_v53 }
 0x59d   : > { %v7977_v48 = vpop.f32.mrf.mxu0  ;;  %v13040_v8 = vadd.f32 %v8192_v54, %v6032_v25  ;;  %v6171_v52 = vsel %vm4042_vm4, %v6161_v38, 0.0  ;;  %v6160_v22 = vmul.f32 %v13035_v39, %v13035_v39 }
 0x59e   : > { %v6131_v59 = vpop.f32.mrf.mxu1  ;;  %6172 = vadd.xlane.f32.xlu0 %v6171_v52  ;;  %4097 = vst.msk [vmem:[%s13001_s27 + $0x30] sm:$0xff] %vm4042_vm4, %v4089_v62  ;;  %v6042_v20 = vadd.f32 %v7976_v7, %v7920_v28 }
 0x59f   : > { %v7978_v13 = vpop.f32.mrf.mxu0  ;;  %v13048_v63 = vadd.f32 %v6131_v59, %v6027_v58  ;;  %v6168_v53 = vsel %vm4042_vm4, %v6160_v22, 0.0  ;;  %v6163_v0 = vmul.f32 %v13040_v8, %v13040_v8 }
 0x5a0   : > { %v8195_v10 = vpop.f32.mrf.mxu1  ;;  %6169 = vadd.xlane.f32.xlu1 %v6168_v53  ;;  %v7979_v32 = vadd.f32 %v7978_v13, %v7977_v48 }
 0x5a1   : > { %v8544_v30 = vpop.eup %8543  ;;  %v7980_v9 = vpop.f32.mrf.mxu0  ;;  %v13053_v5 = vadd.f32 %v8195_v10, %v6042_v20  ;;  %v6177_v47 = vsel %vm4042_vm4, %v6163_v0, 0.0  ;;  %v6162_v61 = vmul.f32 %v13048_v63, %v13048_v63 }
 0x5a2   : > { %v6141_v29 = vpop.f32.mrf.mxu1  ;;  %6178 = vadd.xlane.f32.xlu0 %v6177_v47  ;;  %v4090_v1 = vmul.f32 %v8544_v30, %v12897_v16  ;;  %v6047_v35 = vadd.f32 %v7979_v32, %v7923_v42 }
 0x5a3   : > { %v7981_v31 = vpop.f32.mrf.mxu0  ;;  %v13061_v21 = vadd.f32 %v6141_v29, %v6037_v2  ;;  %v6174_v15 = vsel %vm4042_vm4, %v6162_v61, 0.0  ;;  %v6165_v19 = vmul.f32 %v13053_v5, %v13053_v5 }
 0x5a4   : > { %v7982_v55 = vadd.f32 %v7981_v31, %v7980_v9  ;;  %v8198_v57 = vpop.f32.mrf.mxu1  ;;  %6175 = vadd.xlane.f32.xlu1 %v6174_v15  ;;  %4098 = vst.msk [vmem:[%s13001_s27 + $0x38] sm:$0xff] %vm4042_vm4, %v4090_v1 }
 0x5a5   : > { %v6183_v16 = vsel %vm4042_vm4, %v6165_v19, 0.0  ;;  %v6164_v34 = vmul.f32 %v13061_v21, %v13061_v21 }
 0x5a6   : > { %v6052_v12 = vadd.f32 %v7982_v55, %v7926_v33  ;;  %v6151_v37 = vpop.f32.mrf.mxu1  ;;  %6184 = vadd.xlane.f32.xlu0 %v6183_v16 }
 0x5a7   : > { %v13072_v18 = vadd.f32 %v6151_v37, %v6047_v35  ;;  %v6180_v40 = vsel %vm4042_vm4, %v6164_v34, 0.0 }
 0x5a8   : > { %v13075_v25 = vadd.f32 %v8198_v57, %v6052_v12  ;;  %6181 = vadd.xlane.f32.xlu1 %v6180_v40 }
 0x5a9   : > { %v6166_v56 = vmul.f32 %v13072_v18, %v13072_v18 }
 0x5aa   : > { %v6167_v45 = vmul.f32 %v13075_v25, %v13075_v25 }
 0x5ab   : > { %v6186_v38 = vsel %vm4042_vm4, %v6166_v56, 0.0 }
 0x5ac   : > { %6187 = vadd.xlane.f32.xlu1 %v6186_v38  ;;  %v6189_v28 = vsel %vm4042_vm4, %v6167_v45, 0.0 }
 0x5ad   : > { %6190 = vadd.xlane.f32.xlu0 %v6189_v28 }
 0x5b4   : > { %v4755_v46 = vpop.xlane.xlu0 %4754 }
 0x5b5   : > { %v4775_v7 = vmax.f32 %v4755_v46, 1e-24 }
 0x5b6   : > { %v4752_v54 = vpop.xlane.xlu1 %4751 }
 0x5b7   : > { %8545 = vrsqrt.f32 %v4775_v7  ;;  %v4774_v62 = vmax.f32 %v4752_v54, 1e-24 }
 0x5b9   : > { %8547 = vrsqrt.f32 %v4774_v62 }
 0x5bb   : > { %v4761_v48 = vpop.xlane.xlu0 %4760 }
 0x5bc   : > { %v4777_v58 = vmax.f32 %v4761_v48, 1e-24 }
 0x5bd   : > { %v4758_v52 = vpop.xlane.xlu1 %4757 }
 0x5be   : > { %8549 = vrsqrt.f32 %v4777_v58  ;;  %v4776_v22 = vmax.f32 %v4758_v52, 1e-24 }
 0x5c0   : > { %8551 = vrsqrt.f32 %v4776_v22 }
 0x5c1   : > { %v4767_v23 = vpop.xlane.xlu0 %4766 }
 0x5c2   : > { %v4779_v59 = vmax.f32 %v4767_v23, 1e-24 }
 0x5c3   : > { %v4764_v13 = vpop.xlane.xlu1 %4763 }
 0x5c4   : > { %v8546_v20 = vpop.eup %8545  ;;  %8553 = vrsqrt.f32 %v4779_v59  ;;  %v4778_v53 = vmax.f32 %v4764_v13, 1e-24 }
 0x5c5   : > { %v4791_v0 = vmul.f32 %v8546_v20, %v12902_v6 }
 0x5c6   : > { %v8548_v10 = vpop.eup %8547  ;;  %8555 = vrsqrt.f32 %v4778_v53 }
 0x5c7   : > { %6500 = vst.msk [vmem:[%s13001_s27 + $0x48] sm:$0xff] %vm4042_vm4, %v4791_v0  ;;  %v4790_v2 = vmul.f32 %v8548_v10, %v12904_v36  ;;  %v4773_v30 = vpop.xlane.xlu0 %4772 }
 0x5c8   : > { %v4781_v32 = vmax.f32 %v4773_v30, 1e-24 }
 0x5c9   : > { %6499 = vst.msk [vmem:[%s13001_s27 + $0x40] sm:$0xff] %vm4042_vm4, %v4790_v2  ;;  %v4770_v9 = vpop.xlane.xlu1 %4769 }
 0x5ca   : > { %v4780_v47 = vmax.f32 %v4770_v9, 1e-24  ;;  %8557 = vrsqrt.f32 %v4781_v32 }
 0x5cb   : > { %v8550_v61 = vpop.eup %8549 }
 0x5cc   : > { %v4793_v29 = vmul.f32 %v8550_v61, %v12912_v14  ;;  %8559 = vrsqrt.f32 %v4780_v47 }
 0x5cd   : > { %v8552_v6 = vpop.eup %8551 }
 0x5ce   : > { %6502 = vst.msk [vmem:[%s13001_s27 + $0x58] sm:$0xff] %vm4042_vm4, %v4793_v29  ;;  %v4792_v36 = vmul.f32 %v8552_v6, %v12914_v11 }
 0x5d0   : > { %6501 = vst.msk [vmem:[%s13001_s27 + $0x50] sm:$0xff] %vm4042_vm4, %v4792_v36 }
 0x5d1   : > { %v8554_v1 = vpop.eup %8553 }
 0x5d2   : > { %v4795_v42 = vmul.f32 %v8554_v1, %v12921_v44 }
 0x5d3   : > { %v8556_v31 = vpop.eup %8555 }
 0x5d4   : > { %6504 = vst.msk [vmem:[%s13001_s27 + $0x68] sm:$0xff] %vm4042_vm4, %v4795_v42  ;;  %v4794_v15 = vmul.f32 %v8556_v31, %v12924_v17 }
 0x5d6   : > { %6503 = vst.msk [vmem:[%s13001_s27 + $0x60] sm:$0xff] %vm4042_vm4, %v4794_v15 }
 0x5d7   : > { %v8558_v14 = vpop.eup %8557 }
 0x5d8   : > { %v4797_v19 = vmul.f32 %v8558_v14, %v12931_v3 }
 0x5d9   : > { %v8560_v33 = vpop.eup %8559 }
 0x5da   : > { %v4796_v55 = vmul.f32 %v8560_v33, %v12934_v26  ;;  %6506 = vst.msk [vmem:[%s13001_s27 + $0x78] sm:$0xff] %vm4042_vm4, %v4797_v19 }
 0x5dc   : > { %6505 = vst.msk [vmem:[%s13001_s27 + $0x70] sm:$0xff] %vm4042_vm4, %v4796_v55 }
 0x5ec   : > { %v5465_v11 = vpop.xlane.xlu0 %5464 }
 0x5ed   : > { %v5485_v57 = vmax.f32 %v5465_v11, 1e-24 }
 0x5ee   : > { %v5462_v44 = vpop.xlane.xlu1 %5461 }
 0x5ef   : > { %8561 = vrsqrt.f32 %v5485_v57  ;;  %v5484_v35 = vmax.f32 %v5462_v44, 1e-24 }
 0x5f1   : > { %8563 = vrsqrt.f32 %v5484_v35 }
 0x5f2   : > { %v5471_v17 = vpop.xlane.xlu0 %5470 }
 0x5f3   : > { %v5487_v16 = vmax.f32 %v5471_v17, 1e-24 }
 0x5f4   : > { %v5468_v34 = vpop.xlane.xlu1 %5467 }
 0x5f5   : > { %8565 = vrsqrt.f32 %v5487_v16  ;;  %v5486_v3 = vmax.f32 %v5468_v34, 1e-24 }
 0x5f7   : > { %8567 = vrsqrt.f32 %v5486_v3 }
 0x5fa   : > { %v5474_v12 = vpop.xlane.xlu1 %5473 }
 0x5fb   : > { %v5488_v26 = vmax.f32 %v5474_v12, 1e-24 }
 0x5fc   : > { %v8562_v37 = vpop.eup %8561  ;;  %v5477_v40 = vpop.xlane.xlu0 %5476 }
 0x5fd   : > { %v5501_v56 = vmul.f32 %v8562_v37, %v12946_v43  ;;  %8569 = vrsqrt.f32 %v5488_v26  ;;  %v5489_v45 = vmax.f32 %v5477_v40, 1e-24 }
 0x5fe   : > { %v8564_v38 = vpop.eup %8563 }
 0x5ff   : > { %6516 = vst.msk [vmem:[%s13001_s27 + $0x88] sm:$0xff] %vm4042_vm4, %v5501_v56  ;;  %v5500_v28 = vmul.f32 %v8564_v38, %v12948_v41  ;;  %8571 = vrsqrt.f32 %v5489_v45 }
 0x601   : > { %6515 = vst.msk [vmem:[%s13001_s27 + $0x80] sm:$0xff] %vm4042_vm4, %v5500_v28 }
 0x602   : > { %v8566_v46 = vpop.eup %8565  ;;  %v5480_v7 = vpop.xlane.xlu1 %5479 }
 0x603   : > { %v5503_v54 = vmul.f32 %v8566_v46, %v12955_v27  ;;  %v5490_v62 = vmax.f32 %v5480_v7, 1e-24 }
 0x604   : > { %v8568_v48 = vpop.eup %8567 }
 0x605   : > { %6518 = vst.msk [vmem:[%s13001_s27 + $0x98] sm:$0xff] %vm4042_vm4, %v5503_v54  ;;  %v5502_v43 = vmul.f32 %v8568_v48, %v12958_v60  ;;  %8573 = vrsqrt.f32 %v5490_v62 }
 0x607   : > { %6517 = vst.msk [vmem:[%s13001_s27 + $0x90] sm:$0xff] %vm4042_vm4, %v5502_v43 }
 0x608   : > { %v5483_v41 = vpop.xlane.xlu0 %5482 }
 0x609   : > { %v5491_v58 = vmax.f32 %v5483_v41, 1e-24 }
 0x60a   : > { %v8570_v52 = vpop.eup %8569 }
 0x60b   : > { %v5504_v22 = vmul.f32 %v8570_v52, %v12966_v49  ;;  %8575 = vrsqrt.f32 %v5491_v58 }
 0x60c   : > { %v8572_v23 = vpop.eup %8571 }
 0x60d   : > { %6519 = vst.msk [vmem:[%s13001_s27 + $0xa0] sm:$0xff] %vm4042_vm4, %v5504_v22  ;;  %v5505_v27 = vmul.f32 %v8572_v23, %v12970_v51 }
 0x60f   : > { %6520 = vst.msk [vmem:[%s13001_s27 + $0xa8] sm:$0xff] %vm4042_vm4, %v5505_v27 }
 0x612   : > { %v8574_v59 = vpop.eup %8573 }
 0x613   : > { %v5506_v60 = vmul.f32 %v8574_v59, %v12976_v24 }
 0x615   : > { %6521 = vst.msk [vmem:[%s13001_s27 + $0xb0] sm:$0xff] %vm4042_vm4, %v5506_v60 }
 0x618   : > { %v8576_v13 = vpop.eup %8575 }
 0x619   : > { %v5507_v20 = vmul.f32 %v8576_v13, %v12987_v4 }
 0x61b   : > { %6522 = vst.msk [vmem:[%s13001_s27 + $0xb8] sm:$0xff] %vm4042_vm4, %v5507_v20 }
 0x627   : > { %v6173_v53 = vpop.xlane.xlu0 %6172 }
 0x628   : > { %v6193_v49 = vmax.f32 %v6173_v53, 1e-24 }
 0x629   : > { %v6170_v0 = vpop.xlane.xlu1 %6169 }
 0x62a   : > { %8577 = vrsqrt.f32 %v6193_v49  ;;  %v6192_v10 = vmax.f32 %v6170_v0, 1e-24 }
 0x62b   : > { %v6179_v2 = vpop.xlane.xlu0 %6178 }
 0x62c   : > { %8579 = vrsqrt.f32 %v6192_v10  ;;  %v6195_v51 = vmax.f32 %v6179_v2, 1e-24 }
 0x62d   : > { %v6176_v30 = vpop.xlane.xlu1 %6175 }
 0x62e   : > { %8581 = vrsqrt.f32 %v6195_v51  ;;  %v6194_v32 = vmax.f32 %v6176_v30, 1e-24 }
 0x62f   : > { %v6185_v9 = vpop.xlane.xlu0 %6184 }
 0x630   : > { %8583 = vrsqrt.f32 %v6194_v32  ;;  %v6197_v24 = vmax.f32 %v6185_v9, 1e-24 }
 0x631   : > { %v6182_v47 = vpop.xlane.xlu1 %6181 }
 0x632   : > { %8585 = vrsqrt.f32 %v6197_v24  ;;  %v6196_v4 = vmax.f32 %v6182_v47, 1e-24 }
 0x634   : > { %8587 = vrsqrt.f32 %v6196_v4 }
 0x635   : > { %v6188_v61 = vpop.xlane.xlu1 %6187 }
 0x636   : > { %v6198_v29 = vmax.f32 %v6188_v61, 1e-24  ;;  %v6191_v6 = vpop.xlane.xlu0 %6190 }
 0x637   : > { %v8578_v36 = vpop.eup %8577  ;;  %v6199_v1 = vmax.f32 %v6191_v6, 1e-24 }
 0x638   : > { %v6209_v42 = vmul.f32 %v8578_v36, %v13031_v50  ;;  %8589 = vrsqrt.f32 %v6198_v29 }
 0x639   : > { %v8580_v31 = vpop.eup %8579  ;;  %8591 = vrsqrt.f32 %v6199_v1 }
 0x63a   : > { %6532 = vst.msk [vmem:[%s13001_s27 + $0xc8] sm:$0xff] %vm4042_vm4, %v6209_v42  ;;  %v6208_v15 = vmul.f32 %v8580_v31, %v13035_v39 }
 0x63b   : > { %v8582_v14 = vpop.eup %8581 }
 0x63c   : > { %6531 = vst.msk [vmem:[%s13001_s27 + $0xc0] sm:$0xff] %vm4042_vm4, %v6208_v15  ;;  %v6211_v19 = vmul.f32 %v8582_v14, %v13040_v8 }
 0x63d   : > { %v8584_v33 = vpop.eup %8583 }
 0x63e   : > { %6534 = vst.msk [vmem:[%s13001_s27 + $0xd8] sm:$0xff] %vm4042_vm4, %v6211_v19  ;;  %v6210_v50 = vmul.f32 %v8584_v33, %v13048_v63 }
 0x63f   : > { %v8586_v55 = vpop.eup %8585 }
 0x640   : > { %6533 = vst.msk [vmem:[%s13001_s27 + $0xd0] sm:$0xff] %vm4042_vm4, %v6210_v50  ;;  %v6213_v11 = vmul.f32 %v8586_v55, %v13053_v5 }
 0x641   : > { %v8588_v57 = vpop.eup %8587 }
 0x642   : > { %6536 = vst.msk [vmem:[%s13001_s27 + $0xe8] sm:$0xff] %vm4042_vm4, %v6213_v11  ;;  %v6212_v39 = vmul.f32 %v8588_v57, %v13061_v21 }
 0x644   : > { %6535 = vst.msk [vmem:[%s13001_s27 + $0xe0] sm:$0xff] %vm4042_vm4, %v6212_v39 }
 0x645   : > { %v8590_v44 = vpop.eup %8589 }
 0x646   : > { %v8592_v8 = vpop.eup %8591  ;;  %v6214_v35 = vmul.f32 %v8590_v44, %v13072_v18 }
 0x647   : > { %v6215_v17 = vmul.f32 %v8592_v8, %v13075_v25 }
 0x648   : > { %6537 = vst.msk [vmem:[%s13001_s27 + $0xf0] sm:$0xff] %vm4042_vm4, %v6214_v35 }
 0x649   : > { %6538 = vst.msk [vmem:[%s13001_s27 + $0xf8] sm:$0xff] %vm4042_vm4, %v6215_v17 }
 0x64a PF: > { %s17_s24 = sadd.s32 1, %s8665_s24  }
 0x64b   : > { %p14_p4 = scmp.ge.s32.totalorder %s17_s24, 4  }
 0x64d   :  { %16 = sbr.rel (!%p14_p4) target bundleno = 1 (0x1), region = 97 }

</bundles_post_ra>
